<compile_context>
chip_gen: v7x
topology: tpu7x:2x2x1
jax: 0.10.0
libtpu: 0.0.40
codegen_flags: <defaults>
</compile_context>

<pallas_src>
import functools
import math

import numpy as np

import jax
import jax.numpy as jnp
from jax.experimental import pallas as pl
from jax.experimental.pallas import tpu as pltpu

EPS_GLN = 1e-8   # GlobalLayerNorm eps (matches EPS in the PyTorch code)
EPS_LN = 1e-5    # nn.LayerNorm default eps
EPS_BN = 1e-5    # nn.BatchNorm1d default eps


# ----------------------------------------------------------------------------
# Generation-aware scoped-VMEM limit
# ----------------------------------------------------------------------------
def _pick_vmem_limit_bytes():
    cap = None
    try:
        cap = int(pltpu.get_tpu_info().vmem_capacity_bytes)
    except Exception:
        cap = None
    if cap is None:
        try:
            kind = jax.devices()[0].device_kind.lower()
            cap = (64 << 20) if "v7" in kind else (128 << 20)
        except Exception:
            cap = 64 << 20
    # leave ~16 MiB headroom, never request more than 100 MiB
    return int(min(cap - (16 << 20), 100 << 20))


_VMEM_LIMIT = _pick_vmem_limit_bytes()


def _cparams(dims):
    return pltpu.CompilerParams(dimension_semantics=dims,
                                vmem_limit_bytes=_VMEM_LIMIT)


# ----------------------------------------------------------------------------
# Fused encoder: conv1d(nc->N, kernel L, stride L//2) + ReLU + cLN + bottleneck 1x1
# ----------------------------------------------------------------------------
def _encoder_front_kernel(p_ref, we_ref, lw_ref, lb_ref, wb_ref, mw_ref, x_ref, *, eps):
    # encoder conv as a single bf16 MXU matmul, f32 accumulate, + ReLU
    mw = jnp.maximum(jnp.dot(we_ref[...], p_ref[0],
                             preferred_element_type=jnp.float32), 0.0)       # (N, K) f32
    mw_ref[0] = mw
    # ChannelWiseLayerNorm over channels: single-pass stats (E[x], E[x^2])
    inv_n = 1.0 / mw.shape[0]
    mu = jnp.sum(mw, axis=0, keepdims=True) * inv_n
    var = jnp.sum(mw * mw, axis=0, keepdims=True) * inv_n - mu * mu
    y = (mw - mu) * jax.lax.rsqrt(var + eps) * lw_ref[...] + lb_ref[...]
    # bottleneck 1x1 conv (bf16 MXU)
    x_ref[0] = jnp.dot(wb_ref[...], y.astype(jnp.bfloat16),
                       preferred_element_type=jnp.float32)


def encoder_front(patches, enc_w, ln_w, ln_b, bott_w):
    batch, CL, K = patches.shape
    N = enc_w.shape[0]
    B = bott_w.shape[0]
    return pl.pallas_call(
        functools.partial(_encoder_front_kernel, eps=EPS_LN),
        out_shape=(jax.ShapeDtypeStruct((batch, N, K), jnp.float32),
                   jax.ShapeDtypeStruct((batch, B, K), jnp.float32)),
        grid=(batch,),
        in_specs=[pl.BlockSpec((1, CL, K), lambda b: (b, 0, 0)),
                  pl.BlockSpec((N, CL), lambda b: (0, 0)),
                  pl.BlockSpec((N, 1), lambda b: (0, 0)),
                  pl.BlockSpec((N, 1), lambda b: (0, 0)),
                  pl.BlockSpec((B, N), lambda b: (0, 0))],
        out_specs=(pl.BlockSpec((1, N, K), lambda b: (b, 0, 0)),
                   pl.BlockSpec((1, B, K), lambda b: (b, 0, 0))),
        compiler_params=_cparams(("parallel",)),
    )(patches, enc_w, ln_w, ln_b, bott_w)


# ----------------------------------------------------------------------------
# Fused visual front-end: all VisualConv1D blocks (ReLU, BN, dwconv3, PReLU, BN,
# pwconv, +residual) in a single kernel, stacked weights, grid over batch.
# Pad scratch is (VD, Tv+2); only the two boundary columns are zeroed (once).
# ----------------------------------------------------------------------------
def _visual_frontend_kernel(v_ref, s1_ref, h1_ref, dw_ref, s2_ref, h2_ref, pw_ref,
                            a_ref, o_ref, pad_ref, *, n_blocks, Tv):
    v = v_ref[0]                                                     # (VD, Tv) f32
    zcol = jnp.zeros((pad_ref.shape[0], 1), jnp.float32)
    pad_ref[:, 0:1] = zcol                                           # left zero column
    pad_ref[:, Tv + 1:Tv + 2] = zcol                                 # right zero column
    for i in range(n_blocks):
        t = jnp.maximum(v, 0.0) * s1_ref[i] + h1_ref[i]              # ReLU + folded BN
        pad_ref[:, 1:1 + Tv] = t                                     # interior (pad=1)
        w = dw_ref[i]                                                # (VD, 3)
        # slice the pad Ref per tap (no full-buffer value materialization)
        acc = w[:, 0:1] * pad_ref[:, 0:Tv]
        acc = acc + w[:, 1:2] * pad_ref[:, 1:1 + Tv]
        acc = acc + w[:, 2:3] * pad_ref[:, 2:2 + Tv]
        a = a_ref[i]                                                 # (1, 1)
        t2 = jnp.where(acc > 0, acc, a * acc) * s2_ref[i] + h2_ref[i]  # PReLU + folded BN
        v = jnp.dot(pw_ref[i], t2.astype(jnp.bfloat16),
                    preferred_element_type=jnp.float32) + v          # bf16 MXU + residual
    o_ref[0] = v


def visual_frontend(v, vp):
    batch, VD, Tv = v.shape
    nvb = vp['pw_w'].shape[0]
    return pl.pallas_call(
        functools.partial(_visual_frontend_kernel, n_blocks=nvb, Tv=Tv),
        out_shape=jax.ShapeDtypeStruct((batch, VD, Tv), jnp.float32),
        grid=(batch,),
        in_specs=[pl.BlockSpec((1, VD, Tv), lambda b: (b, 0, 0)),
                  pl.BlockSpec((nvb, VD, 1), lambda b: (0, 0, 0)),
                  pl.BlockSpec((nvb, VD, 1), lambda b: (0, 0, 0)),
                  pl.BlockSpec((nvb, VD, 3), lambda b: (0, 0, 0)),
                  pl.BlockSpec((nvb, VD, 1), lambda b: (0, 0, 0)),
                  pl.BlockSpec((nvb, VD, 1), lambda b: (0, 0, 0)),
                  pl.BlockSpec((nvb, VD, VD), lambda b: (0, 0, 0)),
                  pl.BlockSpec((nvb, 1, 1), lambda b: (0, 0, 0))],
        out_specs=pl.BlockSpec((1, VD, Tv), lambda b: (b, 0, 0)),
        scratch_shapes=[pltpu.VMEM((VD, Tv + 2), jnp.float32)],
        compiler_params=_cparams(("parallel",)),
    )(v, vp['bn1_scale'], vp['bn1_shift'], vp['dw_w'],
      vp['bn2_scale'], vp['bn2_shift'], vp['pw_w'], vp['alpha'])


# ----------------------------------------------------------------------------
# Fused TCN repeat: concat([x, v_proj]) + 1x1 (as two split dots), then X
# TemporalBlocks (1x1 -> PReLU+gLN -> dilated dwconv -> PReLU+gLN -> 1x1 + res),
# all resident in VMEM.  bf16 MXU matmuls, f32 elementwise/norms.
# ----------------------------------------------------------------------------
def _tcn_repeat_kernel(x_ref, v_ref, fwx_ref, fwv_ref, w1_ref, g1_ref, b1_ref,
                       dw_ref, g2_ref, b2_ref, pw_ref, a1_ref, a2_ref,
                       o_ref, ypad_ref, *, X, P, H, K, base, pad_max, eps):
    x = x_ref[0]                                                     # (B, K) f32
    # concat([x, v]) followed by the 2B->B 1x1 conv == split weight, two bf16 dots
    x = (jnp.dot(fwx_ref[...], x.astype(jnp.bfloat16), preferred_element_type=jnp.float32)
         + jnp.dot(fwv_ref[...], v_ref[0], preferred_element_type=jnp.float32))

    # zero only the halo columns of the depthwise pad buffer (once); the interior
    # [base:base+K) is fully rewritten every block, halos are never written.
    ypad_ref[:, 0:base] = jnp.zeros((H, base), jnp.float32)
    if pad_max > 0:
        ypad_ref[:, base + K:base + K + pad_max] = jnp.zeros((H, pad_max), jnp.float32)

    inv_hk = 1.0 / (H * K)
    for i in range(X):
        dilation = 2 ** i
        pad = (P - 1) * dilation // 2
        res = x
        # 1x1 conv B -> H (bf16 MXU)
        y = jnp.dot(w1_ref[i], x.astype(jnp.bfloat16),
                    preferred_element_type=jnp.float32)              # (H, K)
        # PReLU + GlobalLayerNorm (single-pass stats over channels AND time)
        a1 = a1_ref[i]
        y = jnp.where(y > 0, y, a1 * y)
        mu = jnp.sum(y) * inv_hk
        var = jnp.sum(y * y) * inv_hk - mu * mu
        y = g1_ref[i] * (y - mu) * jax.lax.rsqrt(var + eps) + b1_ref[i]
        # dilated depthwise conv (groups=H), zero padding via VMEM pad buffer;
        # per-tap slices read the Ref directly.
        ypad_ref[:, base:base + K] = y
        w = dw_ref[i]                                                # (H, P) f32
        start = base - pad
        acc = w[:, 0:1] * ypad_ref[:, start:start + K]
        for t in range(1, P):
            off = start + t * dilation
            acc = acc + w[:, t:t + 1] * ypad_ref[:, off:off + K]
        # PReLU + GlobalLayerNorm
        a2 = a2_ref[i]
        z = jnp.where(acc > 0, acc, a2 * acc)
        mu2 = jnp.sum(z) * inv_hk
        var2 = jnp.sum(z * z) * inv_hk - mu2 * mu2
        z = g2_ref[i] * (z - mu2) * jax.lax.rsqrt(var2 + eps) + b2_ref[i]
        # pointwise conv H -> B (bf16 MXU), + residual
        x = jnp.dot(pw_ref[i], z.astype(jnp.bfloat16),
                    preferred_element_type=jnp.float32) + res
    o_ref[0] = x


def tcn_repeat(x, v_proj, rep, *, P):
    batch, B, K = x.shape
    X, H, _ = rep['w1'].shape
    pad_max = (P - 1) * (2 ** (X - 1)) // 2
    base = max(((pad_max + 127) // 128) * 128, 128)   # lane-aligned interior offset
    return pl.pallas_call(
        functools.partial(_tcn_repeat_kernel, X=X, P=P, H=H, K=K, base=base,
                          pad_max=pad_max, eps=EPS_GLN),
        out_shape=jax.ShapeDtypeStruct((batch, B, K), jnp.float32),
        grid=(batch,),
        in_specs=[pl.BlockSpec((1, B, K), lambda b: (b, 0, 0)),       # x (f32)
                  pl.BlockSpec((1, B, K), lambda b: (b, 0, 0)),       # v_proj (bf16)
                  pl.BlockSpec((B, B), lambda b: (0, 0)),             # first_w_x (bf16)
                  pl.BlockSpec((B, B), lambda b: (0, 0)),             # first_w_v (bf16)
                  pl.BlockSpec((X, H, B), lambda b: (0, 0, 0)),       # w1 (bf16)
                  pl.BlockSpec((X, H, 1), lambda b: (0, 0, 0)),       # g1
                  pl.BlockSpec((X, H, 1), lambda b: (0, 0, 0)),       # be1
                  pl.BlockSpec((X, H, P), lambda b: (0, 0, 0)),       # dw (f32, VPU)
                  pl.BlockSpec((X, H, 1), lambda b: (0, 0, 0)),       # g2
                  pl.BlockSpec((X, H, 1), lambda b: (0, 0, 0)),       # be2
                  pl.BlockSpec((X, B, H), lambda b: (0, 0, 0)),       # pw (bf16)
                  pl.BlockSpec((X, 1, 1), lambda b: (0, 0, 0)),       # a1
                  pl.BlockSpec((X, 1, 1), lambda b: (0, 0, 0))],      # a2
        out_specs=pl.BlockSpec((1, B, K), lambda b: (b, 0, 0)),
        scratch_shapes=[pltpu.VMEM((H, base + K + pad_max), jnp.float32)],
        compiler_params=_cparams(("parallel",)),
    )(x, v_proj, rep['first_w_x'], rep['first_w_v'], rep['w1'], rep['g1'], rep['be1'],
      rep['dw'], rep['g2'], rep['be2'], rep['pw'], rep['a1'], rep['a2'])


# ----------------------------------------------------------------------------
# Fused mask conv + ReLU + (mixture_w * mask) + basis-signal matmul.
# Output per (batch, speaker) block is (L, K): lane axis = K (lane-dense stores).
# ----------------------------------------------------------------------------
def _decoder_kernel(x_ref, mkw_ref, mw_ref, dw_ref, o_ref):
    mask = jnp.maximum(jnp.dot(mkw_ref[...], x_ref[0].astype(jnp.bfloat16),
                               preferred_element_type=jnp.float32), 0.0)     # (N, K)
    src = mw_ref[0] * mask
    o_ref[0, 0] = jnp.dot(dw_ref[...], src.astype(jnp.bfloat16),
                          preferred_element_type=jnp.float32)                 # (L, K)


def decode(x, mixture_w, mask_w, dec_w, nc):
    batch, B, K = x.shape
    N = mixture_w.shape[1]
    L = dec_w.shape[0]
    return pl.pallas_call(
        _decoder_kernel,
        out_shape=jax.ShapeDtypeStruct((batch, nc, L, K), jnp.float32),
        grid=(batch, nc),
        in_specs=[pl.BlockSpec((1, B, K), lambda b, c: (b, 0, 0)),
                  pl.BlockSpec((N, B), lambda b, c: (c, 0)),
                  pl.BlockSpec((1, N, K), lambda b, c: (b, 0, 0)),
                  pl.BlockSpec((L, N), lambda b, c: (0, 0))],
        out_specs=pl.BlockSpec((1, 1, L, K), lambda b, c: (b, c, 0, 0)),
        compiler_params=_cparams(("parallel", "parallel")),
    )(x, mask_w, mixture_w, dec_w)


# ----------------------------------------------------------------------------
# JAX glue: structured 32x linear-interpolation matrix (exact F.interpolate,
# mode='linear', align_corners=False), no gather.
# ----------------------------------------------------------------------------
def _interp_matrix(t_in, out_size):
    scale = t_in / out_size
    src = (np.arange(out_size, dtype=np.float64) + 0.5) * scale - 0.5
    src = np.maximum(src, 0.0)
    i0 = np.floor(src).astype(np.int64)
    i1 = np.minimum(i0 + 1, t_in - 1)
    w = (src - i0).astype(np.float32)
    M = np.zeros((t_in, out_size), np.float32)
    cols = np.arange(out_size)
    M[i0, cols] += (1.0 - w)
    M[i1, cols] += w
    return jnp.asarray(M)


# ----------------------------------------------------------------------------
# Parameters (deterministic synthetic init).  Matmul weights are stored bf16.
# ----------------------------------------------------------------------------
def init_params(key, cfg):
    N, L, B, H, P, X, R = cfg['N'], cfg['L'], cfg['B'], cfg['H'], cfg['P'], cfg['X'], cfg['R']
    nc, VD, nvb = cfg['num_channels'], cfg['VD'], cfg['n_visual_blocks']
    keys = iter(jax.random.split(key, 160))
    nk = lambda: next(keys)
    bf16 = jnp.bfloat16

    def xavier(k, shape, fi, fo):
        return jax.random.normal(k, shape, jnp.float32) * math.sqrt(2.0 / (fi + fo))

    bn_scale = 1.0 / math.sqrt(1.0 + EPS_BN)
    # TODO(synk): BatchNorm1d folded in eval mode (running_mean=0, running_var=1);
    # training-mode batch statistics are not modeled.

    p = {
        'enc_w': xavier(nk(), (N, nc * L), nc * L, N).astype(bf16),
        'ln_w': jnp.ones((N, 1), jnp.float32),
        'ln_b': jnp.zeros((N, 1), jnp.float32),
        'bottleneck_w': xavier(nk(), (B, N), N, B).astype(bf16),
        'visual': {
            'bn1_scale': jnp.full((nvb, VD, 1), bn_scale, jnp.float32),
            'bn1_shift': jnp.zeros((nvb, VD, 1), jnp.float32),
            'dw_w': xavier(nk(), (nvb, VD, 3), 3, 3),
            'alpha': jnp.full((nvb, 1, 1), 0.25, jnp.float32),
            'bn2_scale': jnp.full((nvb, VD, 1), bn_scale, jnp.float32),
            'bn2_shift': jnp.zeros((nvb, VD, 1), jnp.float32),
            'pw_w': xavier(nk(), (nvb, VD, VD), VD, VD).astype(bf16),
        },
        've_w': xavier(nk(), (R, B, VD), VD, B),            # used in glue (f32)
        'tcn': [],
        'mask_w': xavier(nk(), (N * nc, B), B, N * nc).astype(bf16),
        'dec_w': xavier(nk(), (L, N), N, L).astype(bf16),
    }
    for _ in range(R):
        p['tcn'].append({
            'first_w_x': xavier(nk(), (B, B), 2 * B, B).astype(bf16),
            'first_w_v': xavier(nk(), (B, B), 2 * B, B).astype(bf16),
            'w1': xavier(nk(), (X, H, B), B, H).astype(bf16),
            'a1': jnp.full((X, 1, 1), 0.25, jnp.float32),
            'g1': 1.0 + 0.1 * jax.random.normal(nk(), (X, H, 1), jnp.float32),
            'be1': 0.1 * jax.random.normal(nk(), (X, H, 1), jnp.float32),
            'dw': xavier(nk(), (X, H, P), P, P),
            'a2': jnp.full((X, 1, 1), 0.25, jnp.float32),
            'g2': 1.0 + 0.1 * jax.random.normal(nk(), (X, H, 1), jnp.float32),
            'be2': 0.1 * jax.random.normal(nk(), (X, H, 1), jnp.float32),
            'pw': xavier(nk(), (X, B, H), H, B).astype(bf16),
        })
    return p


# ----------------------------------------------------------------------------
# Forward pass (== avse4_separator.forward)
# ----------------------------------------------------------------------------
def avse4_forward(params, mixture, visual, cfg):
    N, L, B, H, P, X, R = cfg['N'], cfg['L'], cfg['B'], cfg['H'], cfg['P'], cfg['X'], cfg['R']
    nc = cfg['num_channels']
    batch, _, T = mixture.shape
    assert L % 2 == 0
    hop = L // 2
    K = (T - L) // hop + 1

    # -------- Encoder framing: 50% overlap -> two shifted subframe views (no gather)
    sub = mixture[:, :, :hop * (K + 1)].reshape(batch, nc, K + 1, hop)
    frames = jnp.concatenate([sub[:, :, :K, :], sub[:, :, 1:, :]], axis=-1)     # (batch,nc,K,L)
    patches = jnp.transpose(frames, (0, 1, 3, 2)).reshape(batch, nc * L, K)
    patches = patches.astype(jnp.bfloat16)                                      # MXU operand

    # -------- Fused encoder conv+ReLU + ChannelWiseLayerNorm + bottleneck 1x1
    mixture_w, x = encoder_front(patches, params['enc_w'], params['ln_w'],
                                 params['ln_b'], params['bottleneck_w'])        # (b,N,K),(b,B,K)

    # -------- Visual front-end: all VisualConv1D blocks fused in one kernel
    v_feat = jnp.transpose(visual, (0, 2, 1))                                   # (batch, VD, Tv)
    Tv = v_feat.shape[-1]
    v_feat = visual_frontend(v_feat, params['visual'])

    # -------- ve 1x1 projections (all R repeats) at the low visual rate, then a
    # structured 32x linear upsample as one small dense matmul (no gather).
    # The bias-free pointwise ve conv commutes with linear time interpolation.
    out_t = 32 * Tv
    v_proj = jnp.einsum('rcv,nvt->nrct', params['ve_w'], v_feat)                # (b,R,B,Tv)
    M = _interp_matrix(Tv, out_t)
    v_up = jnp.einsum('nrct,tk->nrck', v_proj, M)                               # (b,R,B,32Tv)
    if K >= out_t:
        v_up = jnp.pad(v_up, ((0, 0), (0, 0), (0, 0), (0, K - out_t)))
    else:
        v_up = v_up[..., :K]
    v_up = v_up.astype(jnp.bfloat16)   # only consumed as an MXU operand in the repeats

    # -------- TCN repeats: one fused Pallas kernel per repeat
    for r in range(R):
        x = tcn_repeat(x, v_up[:, r], params['tcn'][r], P=P)                    # (batch,B,K)

    # -------- Fused mask 1x1 + ReLU + (mixture_w * mask) + basis-signal matmul
    est = decode(x, mixture_w, params['mask_w'], params['dec_w'], nc)           # (batch,nc,L,K)

    # -------- Overlap-and-add (50% overlap): two shifted adds, no scatter
    first = est[:, :, :hop, :]                                                  # (batch,nc,hop,K)
    second = est[:, :, hop:, :]                                                 # (batch,nc,hop,K)
    zcol = jnp.zeros((batch, nc, hop, 1), est.dtype)
    out_sub = (jnp.concatenate([first, zcol], axis=-1)
               + jnp.concatenate([zcol, second], axis=-1))                      # (batch,nc,hop,K+1)
    est_source = jnp.transpose(out_sub, (0, 1, 3, 2)).reshape(batch, nc, (K + 1) * hop)

    # -------- Pad / trim to the original length (F.pad with possibly negative pad)
    T_conv = est_source.shape[-1]
    if T >= T_conv:
        est_source = jnp.pad(est_source, ((0, 0), (0, 0), (0, T - T_conv)))
    else:
        est_source = est_source[..., :T]
    return est_source


# ----------------------------------------------------------------------------
if __name__ == "__main__":
    cfg = dict(N=16, L=8, B=16, H=32, P=3, X=2, R=2, C=2,
               num_channels=2, VD=64, n_visual_blocks=5)
    key = jax.random.PRNGKey(0)
    pkey, mkey, vkey = jax.random.split(key, 3)
    params = init_params(pkey, cfg)

    batch, T, Tv = 2, 260, 2          # K = (260-8)//4 + 1 = 64 = 32*Tv
    mixture = jax.random.normal(mkey, (batch, cfg['num_channels'], T), dtype=jnp.float32)
    visual = jax.random.normal(vkey, (batch, Tv, cfg['VD']), dtype=jnp.float32)

    fwd = jax.jit(functools.partial(avse4_forward, params, cfg=cfg))
    out = jax.block_until_ready(fwd(mixture, visual))
    assert out.shape == (batch, cfg['num_channels'], T), out.shape
    assert bool(jnp.all(jnp.isfinite(out)))
    print("KERNEL_OK")
</pallas_src>

<mosaic_0001>
module attributes {stable_mosaic.version = 11 : i64} {
  func.func @_encoder_front_kernel(%arg0: i32, %arg1: memref<1x16x64xbf16, #tpu.memory_space<vmem>>, %arg2: memref<16x16xbf16, #tpu.memory_space<vmem>>, %arg3: memref<16x1xf32, #tpu.memory_space<vmem>>, %arg4: memref<16x1xf32, #tpu.memory_space<vmem>>, %arg5: memref<16x16xbf16, #tpu.memory_space<vmem>>, %arg6: memref<1x16x64xf32, #tpu.memory_space<vmem>>, %arg7: memref<1x16x64xf32, #tpu.memory_space<vmem>>) attributes {dimension_semantics = [#tpu.dimension_semantics<parallel>], iteration_bounds = array<i64: 2>, scalar_prefetch = 0 : i64, scratch_operands = 0 : i64, tpu.core_type = #tpu.core_type<tc>, window_params = [{transform_indices = @transform_0, window_bounds = array<i64: 1, 16, 64>}, {pipeline_mode = #tpu.pipeline_mode<synchronous>, transform_indices = @transform_1, window_bounds = array<i64: 16, 16>}, {pipeline_mode = #tpu.pipeline_mode<synchronous>, transform_indices = @transform_2, window_bounds = array<i64: 16, 1>}, {pipeline_mode = #tpu.pipeline_mode<synchronous>, transform_indices = @transform_3, window_bounds = array<i64: 16, 1>}, {pipeline_mode = #tpu.pipeline_mode<synchronous>, transform_indices = @transform_4, window_bounds = array<i64: 16, 16>}, {transform_indices = @transform_5, window_bounds = array<i64: 1, 16, 64>}, {transform_indices = @transform_6, window_bounds = array<i64: 1, 16, 64>}]} {
    %c0 = arith.constant 0 : index
    %c0_0 = arith.constant 0 : index
    %0 = vector.load %arg2[%c0, %c0_0] : memref<16x16xbf16, #tpu.memory_space<vmem>>, vector<16x16xbf16>
    %c0_1 = arith.constant 0 : index
    %c0_2 = arith.constant 0 : index
    %c0_3 = arith.constant 0 : index
    %1 = vector.load %arg1[%c0_1, %c0_2, %c0_3] : memref<1x16x64xbf16, #tpu.memory_space<vmem>>, vector<1x16x64xbf16>
    %2 = vector.shape_cast %1 : vector<1x16x64xbf16> to vector<16x64xbf16>
    %cst = arith.constant dense<0.000000e+00> : vector<16x64xf32>
    %3 = tpu.matmul %0, %2, %cst {dimension_numbers = #tpu.dot_dimension_numbers<[1], [0], [0], [1], [0, 0, 1, 1], [], []>} : vector<16x16xbf16>, vector<16x64xbf16>, vector<16x64xf32> -> vector<16x64xf32>
    %cst_4 = arith.constant 0.000000e+00 : f32
    %4 = vector.broadcast %cst_4 : f32 to vector<16x64xf32>
    %5 = arith.maximumf %3, %4 : vector<16x64xf32>
    %c0_5 = arith.constant 0 : index
    %c0_6 = arith.constant 0 : index
    %c0_7 = arith.constant 0 : index
    %6 = vector.load %arg6[%c0_5, %c0_6, %c0_7] : memref<1x16x64xf32, #tpu.memory_space<vmem>>, vector<1x16x64xf32>
    %7 = vector.shape_cast %6 : vector<1x16x64xf32> to vector<16x64xf32>
    %8 = vector.shape_cast %5 : vector<16x64xf32> to vector<1x16x64xf32>
    tpu.vector_store %arg6[%c0_5, %c0_6, %c0_7], %8 {strides = array<i32>} : memref<1x16x64xf32, #tpu.memory_space<vmem>>, vector<1x16x64xf32>,
    %cst_8 = arith.constant dense<0.000000e+00> : vector<64xf32>
    %9 = vector.multi_reduction <add>, %5, %cst_8 [0] : vector<16x64xf32> to vector<64xf32>
    %10 = vector.shape_cast %9 : vector<64xf32> to vector<1x64xf32>
    %cst_9 = arith.constant 6.250000e-02 : f32
    %11 = vector.broadcast %cst_9 : f32 to vector<1x64xf32>
    %12 = arith.mulf %10, %11 : vector<1x64xf32>
    %13 = arith.mulf %5, %5 : vector<16x64xf32>
    %cst_10 = arith.constant dense<0.000000e+00> : vector<64xf32>
    %14 = vector.multi_reduction <add>, %13, %cst_10 [0] : vector<16x64xf32> to vector<64xf32>
    %15 = vector.shape_cast %14 : vector<64xf32> to vector<1x64xf32>
    %cst_11 = arith.constant 6.250000e-02 : f32
    %16 = vector.broadcast %cst_11 : f32 to vector<1x64xf32>
    %17 = arith.mulf %15, %16 : vector<1x64xf32>
    %18 = arith.mulf %12, %12 : vector<1x64xf32>
    %19 = arith.subf %17, %18 : vector<1x64xf32>
    %20 = vector.broadcast %12 : vector<1x64xf32> to vector<16x64xf32>
    %21 = arith.subf %5, %20 : vector<16x64xf32>
    %cst_12 = arith.constant 9.99999974E-6 : f32
    %22 = vector.broadcast %cst_12 : f32 to vector<1x64xf32>
    %23 = arith.addf %19, %22 : vector<1x64xf32>
    %24 = math.rsqrt %23 : vector<1x64xf32>
    %25 = vector.broadcast %24 : vector<1x64xf32> to vector<16x64xf32>
    %26 = arith.mulf %21, %25 : vector<16x64xf32>
    %c0_13 = arith.constant 0 : index
    %c0_14 = arith.constant 0 : index
    %27 = vector.load %arg3[%c0_13, %c0_14] : memref<16x1xf32, #tpu.memory_space<vmem>>, vector<16x1xf32>
    %28 = vector.broadcast %27 : vector<16x1xf32> to vector<16x64xf32>
    %29 = arith.mulf %26, %28 : vector<16x64xf32>
    %c0_15 = arith.constant 0 : index
    %c0_16 = arith.constant 0 : index
    %30 = vector.load %arg4[%c0_15, %c0_16] : memref<16x1xf32, #tpu.memory_space<vmem>>, vector<16x1xf32>
    %31 = vector.broadcast %30 : vector<16x1xf32> to vector<16x64xf32>
    %32 = arith.addf %29, %31 : vector<16x64xf32>
    %c0_17 = arith.constant 0 : index
    %c0_18 = arith.constant 0 : index
    %33 = vector.load %arg5[%c0_17, %c0_18] : memref<16x16xbf16, #tpu.memory_space<vmem>>, vector<16x16xbf16>
    %34 = arith.truncf %32 : vector<16x64xf32> to vector<16x64xbf16>
    %cst_19 = arith.constant dense<0.000000e+00> : vector<16x64xf32>
    %35 = tpu.matmul %33, %34, %cst_19 {dimension_numbers = #tpu.dot_dimension_numbers<[1], [0], [0], [1], [0, 0, 1, 1], [], []>} : vector<16x16xbf16>, vector<16x64xbf16>, vector<16x64xf32> -> vector<16x64xf32>
    %c0_20 = arith.constant 0 : index
    %c0_21 = arith.constant 0 : index
    %c0_22 = arith.constant 0 : index
    %36 = vector.load %arg7[%c0_20, %c0_21, %c0_22] : memref<1x16x64xf32, #tpu.memory_space<vmem>>, vector<1x16x64xf32>
    %37 = vector.shape_cast %36 : vector<1x16x64xf32> to vector<16x64xf32>
    %38 = vector.shape_cast %35 : vector<16x64xf32> to vector<1x16x64xf32>
    tpu.vector_store %arg7[%c0_20, %c0_21, %c0_22], %38 {strides = array<i32>} : memref<1x16x64xf32, #tpu.memory_space<vmem>>, vector<1x16x64xf32>,
    return
  }
  func.func @transform_0(%arg0: i32) -> (i32, i32, i32) {
    %c0_i32 = arith.constant 0 : i32
    %c0_i32_0 = arith.constant 0 : i32
    %c0_i32_1 = arith.constant 0 : i32
    return %arg0, %c0_i32, %c0_i32_0 : i32, i32, i32
  }
  func.func @transform_1(%arg0: i32) -> (i32, i32) {
    %c0_i32 = arith.constant 0 : i32
    %c0_i32_0 = arith.constant 0 : i32
    %c0_i32_1 = arith.constant 0 : i32
    return %c0_i32, %c0_i32_0 : i32, i32
  }
  func.func @transform_2(%arg0: i32) -> (i32, i32) {
    %c0_i32 = arith.constant 0 : i32
    %c0_i32_0 = arith.constant 0 : i32
    %c0_i32_1 = arith.constant 0 : i32
    return %c0_i32, %c0_i32_0 : i32, i32
  }
  func.func @transform_3(%arg0: i32) -> (i32, i32) {
    %c0_i32 = arith.constant 0 : i32
    %c0_i32_0 = arith.constant 0 : i32
    %c0_i32_1 = arith.constant 0 : i32
    return %c0_i32, %c0_i32_0 : i32, i32
  }
  func.func @transform_4(%arg0: i32) -> (i32, i32) {
    %c0_i32 = arith.constant 0 : i32
    %c0_i32_0 = arith.constant 0 : i32
    %c0_i32_1 = arith.constant 0 : i32
    return %c0_i32, %c0_i32_0 : i32, i32
  }
  func.func @transform_5(%arg0: i32) -> (i32, i32, i32) {
    %c0_i32 = arith.constant 0 : i32
    %c0_i32_0 = arith.constant 0 : i32
    %c0_i32_1 = arith.constant 0 : i32
    return %arg0, %c0_i32, %c0_i32_0 : i32, i32, i32
  }
  func.func @transform_6(%arg0: i32) -> (i32, i32, i32) {
    %c0_i32 = arith.constant 0 : i32
    %c0_i32_0 = arith.constant 0 : i32
    %c0_i32_1 = arith.constant 0 : i32
    return %arg0, %c0_i32, %c0_i32_0 : i32, i32, i32
  }
}

module attributes {stable_mosaic.version = 11 : i64} {
  func.func @_visual_frontend_kernel(%arg0: i32, %arg1: memref<1x64x2xf32, #tpu.memory_space<vmem>>, %arg2: memref<5x64x1xf32, #tpu.memory_space<vmem>>, %arg3: memref<5x64x1xf32, #tpu.memory_space<vmem>>, %arg4: memref<5x64x3xf32, #tpu.memory_space<vmem>>, %arg5: memref<5x64x1xf32, #tpu.memory_space<vmem>>, %arg6: memref<5x64x1xf32, #tpu.memory_space<vmem>>, %arg7: memref<5x64x64xbf16, #tpu.memory_space<vmem>>, %arg8: memref<5x1x1xf32, #tpu.memory_space<vmem>>, %arg9: memref<1x64x2xf32, #tpu.memory_space<vmem>>, %arg10: memref<64x4xf32, #tpu.memory_space<vmem>>) attributes {dimension_semantics = [#tpu.dimension_semantics<parallel>], iteration_bounds = array<i64: 2>, scalar_prefetch = 0 : i64, scratch_operands = 1 : i64, tpu.core_type = #tpu.core_type<tc>, window_params = [{transform_indices = @transform_0, window_bounds = array<i64: 1, 64, 2>}, {pipeline_mode = #tpu.pipeline_mode<synchronous>, transform_indices = @transform_1, window_bounds = array<i64: 5, 64, 1>}, {pipeline_mode = #tpu.pipeline_mode<synchronous>, transform_indices = @transform_2, window_bounds = array<i64: 5, 64, 1>}, {pipeline_mode = #tpu.pipeline_mode<synchronous>, transform_indices = @transform_3, window_bounds = array<i64: 5, 64, 3>}, {pipeline_mode = #tpu.pipeline_mode<synchronous>, transform_indices = @transform_4, window_bounds = array<i64: 5, 64, 1>}, {pipeline_mode = #tpu.pipeline_mode<synchronous>, transform_indices = @transform_5, window_bounds = array<i64: 5, 64, 1>}, {pipeline_mode = #tpu.pipeline_mode<synchronous>, transform_indices = @transform_6, window_bounds = array<i64: 5, 64, 64>}, {pipeline_mode = #tpu.pipeline_mode<synchronous>, transform_indices = @transform_7, window_bounds = array<i64: 5, 1, 1>}, {transform_indices = @transform_8, window_bounds = array<i64: 1, 64, 2>}]} {
    %c0 = arith.constant 0 : index
    %c0_0 = arith.constant 0 : index
    %c0_1 = arith.constant 0 : index
    %0 = vector.load %arg1[%c0, %c0_0, %c0_1] : memref<1x64x2xf32, #tpu.memory_space<vmem>>, vector<1x64x2xf32>
    %1 = vector.shape_cast %0 : vector<1x64x2xf32> to vector<64x2xf32>
    %cst = arith.constant 0.000000e+00 : f32
    %2 = vector.broadcast %cst : f32 to vector<64x1xf32>
    %c0_2 = arith.constant 0 : index
    %c0_3 = arith.constant 0 : index
    %3 = vector.load %arg10[%c0_2, %c0_3] : memref<64x4xf32, #tpu.memory_space<vmem>>, vector<64x1xf32>
    tpu.vector_store %arg10[%c0_2, %c0_3], %2 {strides = array<i32>} : memref<64x4xf32, #tpu.memory_space<vmem>>, vector<64x1xf32>,
    %c0_4 = arith.constant 0 : index
    %c3 = arith.constant 3 : index
    %4 = vector.load %arg10[%c0_4, %c3] : memref<64x4xf32, #tpu.memory_space<vmem>>, vector<64x1xf32>
    tpu.vector_store %arg10[%c0_4, %c3], %2 {strides = array<i32>} : memref<64x4xf32, #tpu.memory_space<vmem>>, vector<64x1xf32>,
    %cst_5 = arith.constant 0.000000e+00 : f32
    %5 = vector.broadcast %cst_5 : f32 to vector<64x2xf32>
    %6 = arith.maximumf %1, %5 : vector<64x2xf32>
    %c0_6 = arith.constant 0 : index
    %c0_7 = arith.constant 0 : index
    %c0_8 = arith.constant 0 : index
    %7 = vector.load %arg2[%c0_6, %c0_7, %c0_8] : memref<5x64x1xf32, #tpu.memory_space<vmem>>, vector<1x64x1xf32>
    %8 = vector.shape_cast %7 : vector<1x64x1xf32> to vector<64x1xf32>
    %9 = vector.broadcast %8 : vector<64x1xf32> to vector<64x2xf32>
    %10 = arith.mulf %6, %9 : vector<64x2xf32>
    %c0_9 = arith.constant 0 : index
    %c0_10 = arith.constant 0 : index
    %c0_11 = arith.constant 0 : index
    %11 = vector.load %arg3[%c0_9, %c0_10, %c0_11] : memref<5x64x1xf32, #tpu.memory_space<vmem>>, vector<1x64x1xf32>
    %12 = vector.shape_cast %11 : vector<1x64x1xf32> to vector<64x1xf32>
    %13 = vector.broadcast %12 : vector<64x1xf32> to vector<64x2xf32>
    %14 = arith.addf %10, %13 : vector<64x2xf32>
    %c0_12 = arith.constant 0 : index
    %c1 = arith.constant 1 : index
    %15 = vector.load %arg10[%c0_12, %c1] : memref<64x4xf32, #tpu.memory_space<vmem>>, vector<64x2xf32>
    tpu.vector_store %arg10[%c0_12, %c1], %14 {strides = array<i32>} : memref<64x4xf32, #tpu.memory_space<vmem>>, vector<64x2xf32>,
    %c0_13 = arith.constant 0 : index
    %c0_14 = arith.constant 0 : index
    %c0_15 = arith.constant 0 : index
    %16 = vector.load %arg4[%c0_13, %c0_14, %c0_15] : memref<5x64x3xf32, #tpu.memory_space<vmem>>, vector<1x64x3xf32>
    %17 = vector.shape_cast %16 : vector<1x64x3xf32> to vector<64x3xf32>
    %18 = vector.extract_strided_slice %17 {offsets = [0, 0], sizes = [64, 1], strides = [1, 1]} : vector<64x3xf32> to vector<64x1xf32>
    %c0_16 = arith.constant 0 : index
    %c0_17 = arith.constant 0 : index
    %19 = vector.load %arg10[%c0_16, %c0_17] : memref<64x4xf32, #tpu.memory_space<vmem>>, vector<64x2xf32>
    %20 = vector.broadcast %18 : vector<64x1xf32> to vector<64x2xf32>
    %21 = arith.mulf %20, %19 : vector<64x2xf32>
    %22 = vector.extract_strided_slice %17 {offsets = [0, 1], sizes = [64, 1], strides = [1, 1]} : vector<64x3xf32> to vector<64x1xf32>
    %c0_18 = arith.constant 0 : index
    %c1_19 = arith.constant 1 : index
    %23 = vector.load %arg10[%c0_18, %c1_19] : memref<64x4xf32, #tpu.memory_space<vmem>>, vector<64x2xf32>
    %24 = vector.broadcast %22 : vector<64x1xf32> to vector<64x2xf32>
    %25 = arith.mulf %24, %23 : vector<64x2xf32>
    %26 = arith.addf %21, %25 : vector<64x2xf32>
    %27 = vector.extract_strided_slice %17 {offsets = [0, 2], sizes = [64, 1], strides = [1, 1]} : vector<64x3xf32> to vector<64x1xf32>
    %c0_20 = arith.constant 0 : index
    %c2 = arith.constant 2 : index
    %28 = vector.load %arg10[%c0_20, %c2] : memref<64x4xf32, #tpu.memory_space<vmem>>, vector<64x2xf32>
    %29 = vector.broadcast %27 : vector<64x1xf32> to vector<64x2xf32>
    %30 = arith.mulf %29, %28 : vector<64x2xf32>
    %31 = arith.addf %26, %30 : vector<64x2xf32>
    %c0_21 = arith.constant 0 : index
    %c0_22 = arith.constant 0 : index
    %c0_23 = arith.constant 0 : index
    %32 = vector.load %arg8[%c0_21, %c0_22, %c0_23] : memref<5x1x1xf32, #tpu.memory_space<vmem>>, vector<1x1x1xf32>
    %33 = vector.shape_cast %32 : vector<1x1x1xf32> to vector<1x1xf32>
    %cst_24 = arith.constant 0.000000e+00 : f32
    %34 = vector.broadcast %cst_24 : f32 to vector<64x2xf32>
    %35 = arith.cmpf ogt, %31, %34 : vector<64x2xf32>
    %36 = vector.broadcast %33 : vector<1x1xf32> to vector<64x2xf32>
    %37 = arith.mulf %36, %31 : vector<64x2xf32>
    %38 = arith.select %35, %31, %37 : vector<64x2xi1>, vector<64x2xf32>
    %c0_25 = arith.constant 0 : index
    %c0_26 = arith.constant 0 : index
    %c0_27 = arith.constant 0 : index
    %39 = vector.load %arg5[%c0_25, %c0_26, %c0_27] : memref<5x64x1xf32, #tpu.memory_space<vmem>>, vector<1x64x1xf32>
    %40 = vector.shape_cast %39 : vector<1x64x1xf32> to vector<64x1xf32>
    %41 = vector.broadcast %40 : vector<64x1xf32> to vector<64x2xf32>
    %42 = arith.mulf %38, %41 : vector<64x2xf32>
    %c0_28 = arith.constant 0 : index
    %c0_29 = arith.constant 0 : index
    %c0_30 = arith.constant 0 : index
    %43 = vector.load %arg6[%c0_28, %c0_29, %c0_30] : memref<5x64x1xf32, #tpu.memory_space<vmem>>, vector<1x64x1xf32>
    %44 = vector.shape_cast %43 : vector<1x64x1xf32> to vector<64x1xf32>
    %45 = vector.broadcast %44 : vector<64x1xf32> to vector<64x2xf32>
    %46 = arith.addf %42, %45 : vector<64x2xf32>
    %c0_31 = arith.constant 0 : index
    %c0_32 = arith.constant 0 : index
    %c0_33 = arith.constant 0 : index
    %47 = vector.load %arg7[%c0_31, %c0_32, %c0_33] : memref<5x64x64xbf16, #tpu.memory_space<vmem>>, vector<1x64x64xbf16>
    %48 = vector.shape_cast %47 : vector<1x64x64xbf16> to vector<64x64xbf16>
    %49 = arith.truncf %46 : vector<64x2xf32> to vector<64x2xbf16>
    %cst_34 = arith.constant dense<0.000000e+00> : vector<64x2xf32>
    %50 = tpu.matmul %48, %49, %cst_34 {dimension_numbers = #tpu.dot_dimension_numbers<[1], [0], [0], [1], [0, 0, 1, 1], [], []>} : vector<64x64xbf16>, vector<64x2xbf16>, vector<64x2xf32> -> vector<64x2xf32>
    %51 = arith.addf %50, %1 : vector<64x2xf32>
    %cst_35 = arith.constant 0.000000e+00 : f32
    %52 = vector.broadcast %cst_35 : f32 to vector<64x2xf32>
    %53 = arith.maximumf %51, %52 : vector<64x2xf32>
    %c1_36 = arith.constant 1 : index
    %c0_37 = arith.constant 0 : index
    %c0_38 = arith.constant 0 : index
    %54 = vector.load %arg2[%c1_36, %c0_37, %c0_38] : memref<5x64x1xf32, #tpu.memory_space<vmem>>, vector<1x64x1xf32>
    %55 = vector.shape_cast %54 : vector<1x64x1xf32> to vector<64x1xf32>
    %56 = vector.broadcast %55 : vector<64x1xf32> to vector<64x2xf32>
    %57 = arith.mulf %53, %56 : vector<64x2xf32>
    %c1_39 = arith.constant 1 : index
    %c0_40 = arith.constant 0 : index
    %c0_41 = arith.constant 0 : index
    %58 = vector.load %arg3[%c1_39, %c0_40, %c0_41] : memref<5x64x1xf32, #tpu.memory_space<vmem>>, vector<1x64x1xf32>
    %59 = vector.shape_cast %58 : vector<1x64x1xf32> to vector<64x1xf32>
    %60 = vector.broadcast %59 : vector<64x1xf32> to vector<64x2xf32>
    %61 = arith.addf %57, %60 : vector<64x2xf32>
    %c0_42 = arith.constant 0 : index
    %c1_43 = arith.constant 1 : index
    %62 = vector.load %arg10[%c0_42, %c1_43] : memref<64x4xf32, #tpu.memory_space<vmem>>, vector<64x2xf32>
    tpu.vector_store %arg10[%c0_42, %c1_43], %61 {strides = array<i32>} : memref<64x4xf32, #tpu.memory_space<vmem>>, vector<64x2xf32>,
    %c1_44 = arith.constant 1 : index
    %c0_45 = arith.constant 0 : index
    %c0_46 = arith.constant 0 : index
    %63 = vector.load %arg4[%c1_44, %c0_45, %c0_46] : memref<5x64x3xf32, #tpu.memory_space<vmem>>, vector<1x64x3xf32>
    %64 = vector.shape_cast %63 : vector<1x64x3xf32> to vector<64x3xf32>
    %65 = vector.extract_strided_slice %64 {offsets = [0, 0], sizes = [64, 1], strides = [1, 1]} : vector<64x3xf32> to vector<64x1xf32>
    %c0_47 = arith.constant 0 : index
    %c0_48 = arith.constant 0 : index
    %66 = vector.load %arg10[%c0_47, %c0_48] : memref<64x4xf32, #tpu.memory_space<vmem>>, vector<64x2xf32>
    %67 = vector.broadcast %65 : vector<64x1xf32> to vector<64x2xf32>
    %68 = arith.mulf %67, %66 : vector<64x2xf32>
    %69 = vector.extract_strided_slice %64 {offsets = [0, 1], sizes = [64, 1], strides = [1, 1]} : vector<64x3xf32> to vector<64x1xf32>
    %c0_49 = arith.constant 0 : index
    %c1_50 = arith.constant 1 : index
    %70 = vector.load %arg10[%c0_49, %c1_50] : memref<64x4xf32, #tpu.memory_space<vmem>>, vector<64x2xf32>
    %71 = vector.broadcast %69 : vector<64x1xf32> to vector<64x2xf32>
    %72 = arith.mulf %71, %70 : vector<64x2xf32>
    %73 = arith.addf %68, %72 : vector<64x2xf32>
    %74 = vector.extract_strided_slice %64 {offsets = [0, 2], sizes = [64, 1], strides = [1, 1]} : vector<64x3xf32> to vector<64x1xf32>
    %c0_51 = arith.constant 0 : index
    %c2_52 = arith.constant 2 : index
    %75 = vector.load %arg10[%c0_51, %c2_52] : memref<64x4xf32, #tpu.memory_space<vmem>>, vector<64x2xf32>
    %76 = vector.broadcast %74 : vector<64x1xf32> to vector<64x2xf32>
    %77 = arith.mulf %76, %75 : vector<64x2xf32>
    %78 = arith.addf %73, %77 : vector<64x2xf32>
    %c1_53 = arith.constant 1 : index
    %c0_54 = arith.constant 0 : index
    %c0_55 = arith.constant 0 : index
    %79 = vector.load %arg8[%c1_53, %c0_54, %c0_55] : memref<5x1x1xf32, #tpu.memory_space<vmem>>, vector<1x1x1xf32>
    %80 = vector.shape_cast %79 : vector<1x1x1xf32> to vector<1x1xf32>
    %cst_56 = arith.constant 0.000000e+00 : f32
    %81 = vector.broadcast %cst_56 : f32 to vector<64x2xf32>
    %82 = arith.cmpf ogt, %78, %81 : vector<64x2xf32>
    %83 = vector.broadcast %80 : vector<1x1xf32> to vector<64x2xf32>
    %84 = arith.mulf %83, %78 : vector<64x2xf32>
    %85 = arith.select %82, %78, %84 : vector<64x2xi1>, vector<64x2xf32>
    %c1_57 = arith.constant 1 : index
    %c0_58 = arith.constant 0 : index
    %c0_59 = arith.constant 0 : index
    %86 = vector.load %arg5[%c1_57, %c0_58, %c0_59] : memref<5x64x1xf32, #tpu.memory_space<vmem>>, vector<1x64x1xf32>
    %87 = vector.shape_cast %86 : vector<1x64x1xf32> to vector<64x1xf32>
    %88 = vector.broadcast %87 : vector<64x1xf32> to vector<64x2xf32>
    %89 = arith.mulf %85, %88 : vector<64x2xf32>
    %c1_60 = arith.constant 1 : index
    %c0_61 = arith.constant 0 : index
    %c0_62 = arith.constant 0 : index
    %90 = vector.load %arg6[%c1_60, %c0_61, %c0_62] : memref<5x64x1xf32, #tpu.memory_space<vmem>>, vector<1x64x1xf32>
    %91 = vector.shape_cast %90 : vector<1x64x1xf32> to vector<64x1xf32>
    %92 = vector.broadcast %91 : vector<64x1xf32> to vector<64x2xf32>
    %93 = arith.addf %89, %92 : vector<64x2xf32>
    %c1_63 = arith.constant 1 : index
    %c0_64 = arith.constant 0 : index
    %c0_65 = arith.constant 0 : index
    %94 = vector.load %arg7[%c1_63, %c0_64, %c0_65] : memref<5x64x64xbf16, #tpu.memory_space<vmem>>, vector<1x64x64xbf16>
    %95 = vector.shape_cast %94 : vector<1x64x64xbf16> to vector<64x64xbf16>
    %96 = arith.truncf %93 : vector<64x2xf32> to vector<64x2xbf16>
    %cst_66 = arith.constant dense<0.000000e+00> : vector<64x2xf32>
    %97 = tpu.matmul %95, %96, %cst_66 {dimension_numbers = #tpu.dot_dimension_numbers<[1], [0], [0], [1], [0, 0, 1, 1], [], []>} : vector<64x64xbf16>, vector<64x2xbf16>, vector<64x2xf32> -> vector<64x2xf32>
    %98 = arith.addf %97, %51 : vector<64x2xf32>
    %cst_67 = arith.constant 0.000000e+00 : f32
    %99 = vector.broadcast %cst_67 : f32 to vector<64x2xf32>
    %100 = arith.maximumf %98, %99 : vector<64x2xf32>
    %c2_68 = arith.constant 2 : index
    %c0_69 = arith.constant 0 : index
    %c0_70 = arith.constant 0 : index
    %101 = vector.load %arg2[%c2_68, %c0_69, %c0_70] : memref<5x64x1xf32, #tpu.memory_space<vmem>>, vector<1x64x1xf32>
    %102 = vector.shape_cast %101 : vector<1x64x1xf32> to vector<64x1xf32>
    %103 = vector.broadcast %102 : vector<64x1xf32> to vector<64x2xf32>
    %104 = arith.mulf %100, %103 : vector<64x2xf32>
    %c2_71 = arith.constant 2 : index
    %c0_72 = arith.constant 0 : index
    %c0_73 = arith.constant 0 : index
    %105 = vector.load %arg3[%c2_71, %c0_72, %c0_73] : memref<5x64x1xf32, #tpu.memory_space<vmem>>, vector<1x64x1xf32>
    %106 = vector.shape_cast %105 : vector<1x64x1xf32> to vector<64x1xf32>
    %107 = vector.broadcast %106 : vector<64x1xf32> to vector<64x2xf32>
    %108 = arith.addf %104, %107 : vector<64x2xf32>
    %c0_74 = arith.constant 0 : index
    %c1_75 = arith.constant 1 : index
    %109 = vector.load %arg10[%c0_74, %c1_75] : memref<64x4xf32, #tpu.memory_space<vmem>>, vector<64x2xf32>
    tpu.vector_store %arg10[%c0_74, %c1_75], %108 {strides = array<i32>} : memref<64x4xf32, #tpu.memory_space<vmem>>, vector<64x2xf32>,
    %c2_76 = arith.constant 2 : index
    %c0_77 = arith.constant 0 : index
    %c0_78 = arith.constant 0 : index
    %110 = vector.load %arg4[%c2_76, %c0_77, %c0_78] : memref<5x64x3xf32, #tpu.memory_space<vmem>>, vector<1x64x3xf32>
    %111 = vector.shape_cast %110 : vector<1x64x3xf32> to vector<64x3xf32>
    %112 = vector.extract_strided_slice %111 {offsets = [0, 0], sizes = [64, 1], strides = [1, 1]} : vector<64x3xf32> to vector<64x1xf32>
    %c0_79 = arith.constant 0 : index
    %c0_80 = arith.constant 0 : index
    %113 = vector.load %arg10[%c0_79, %c0_80] : memref<64x4xf32, #tpu.memory_space<vmem>>, vector<64x2xf32>
    %114 = vector.broadcast %112 : vector<64x1xf32> to vector<64x2xf32>
    %115 = arith.mulf %114, %113 : vector<64x2xf32>
    %116 = vector.extract_strided_slice %111 {offsets = [0, 1], sizes = [64, 1], strides = [1, 1]} : vector<64x3xf32> to vector<64x1xf32>
    %c0_81 = arith.constant 0 : index
    %c1_82 = arith.constant 1 : index
    %117 = vector.load %arg10[%c0_81, %c1_82] : memref<64x4xf32, #tpu.memory_space<vmem>>, vector<64x2xf32>
    %118 = vector.broadcast %116 : vector<64x1xf32> to vector<64x2xf32>
    %119 = arith.mulf %118, %117 : vector<64x2xf32>
    %120 = arith.addf %115, %119 : vector<64x2xf32>
    %121 = vector.extract_strided_slice %111 {offsets = [0, 2], sizes = [64, 1], strides = [1, 1]} : vector<64x3xf32> to vector<64x1xf32>
    %c0_83 = arith.constant 0 : index
    %c2_84 = arith.constant 2 : index
    %122 = vector.load %arg10[%c0_83, %c2_84] : memref<64x4xf32, #tpu.memory_space<vmem>>, vector<64x2xf32>
    %123 = vector.broadcast %121 : vector<64x1xf32> to vector<64x2xf32>
    %124 = arith.mulf %123, %122 : vector<64x2xf32>
    %125 = arith.addf %120, %124 : vector<64x2xf32>
    %c2_85 = arith.constant 2 : index
    %c0_86 = arith.constant 0 : index
    %c0_87 = arith.constant 0 : index
    %126 = vector.load %arg8[%c2_85, %c0_86, %c0_87] : memref<5x1x1xf32, #tpu.memory_space<vmem>>, vector<1x1x1xf32>
    %127 = vector.shape_cast %126 : vector<1x1x1xf32> to vector<1x1xf32>
    %cst_88 = arith.constant 0.000000e+00 : f32
    %128 = vector.broadcast %cst_88 : f32 to vector<64x2xf32>
    %129 = arith.cmpf ogt, %125, %128 : vector<64x2xf32>
    %130 = vector.broadcast %127 : vector<1x1xf32> to vector<64x2xf32>
    %131 = arith.mulf %130, %125 : vector<64x2xf32>
    %132 = arith.select %129, %125, %131 : vector<64x2xi1>, vector<64x2xf32>
    %c2_89 = arith.constant 2 : index
    %c0_90 = arith.constant 0 : index
    %c0_91 = arith.constant 0 : index
    %133 = vector.load %arg5[%c2_89, %c0_90, %c0_91] : memref<5x64x1xf32, #tpu.memory_space<vmem>>, vector<1x64x1xf32>
    %134 = vector.shape_cast %133 : vector<1x64x1xf32> to vector<64x1xf32>
    %135 = vector.broadcast %134 : vector<64x1xf32> to vector<64x2xf32>
    %136 = arith.mulf %132, %135 : vector<64x2xf32>
    %c2_92 = arith.constant 2 : index
    %c0_93 = arith.constant 0 : index
    %c0_94 = arith.constant 0 : index
    %137 = vector.load %arg6[%c2_92, %c0_93, %c0_94] : memref<5x64x1xf32, #tpu.memory_space<vmem>>, vector<1x64x1xf32>
    %138 = vector.shape_cast %137 : vector<1x64x1xf32> to vector<64x1xf32>
    %139 = vector.broadcast %138 : vector<64x1xf32> to vector<64x2xf32>
    %140 = arith.addf %136, %139 : vector<64x2xf32>
    %c2_95 = arith.constant 2 : index
    %c0_96 = arith.constant 0 : index
    %c0_97 = arith.constant 0 : index
    %141 = vector.load %arg7[%c2_95, %c0_96, %c0_97] : memref<5x64x64xbf16, #tpu.memory_space<vmem>>, vector<1x64x64xbf16>
    %142 = vector.shape_cast %141 : vector<1x64x64xbf16> to vector<64x64xbf16>
    %143 = arith.truncf %140 : vector<64x2xf32> to vector<64x2xbf16>
    %cst_98 = arith.constant dense<0.000000e+00> : vector<64x2xf32>
    %144 = tpu.matmul %142, %143, %cst_98 {dimension_numbers = #tpu.dot_dimension_numbers<[1], [0], [0], [1], [0, 0, 1, 1], [], []>} : vector<64x64xbf16>, vector<64x2xbf16>, vector<64x2xf32> -> vector<64x2xf32>
    %145 = arith.addf %144, %98 : vector<64x2xf32>
    %cst_99 = arith.constant 0.000000e+00 : f32
    %146 = vector.broadcast %cst_99 : f32 to vector<64x2xf32>
    %147 = arith.maximumf %145, %146 : vector<64x2xf32>
    %c3_100 = arith.constant 3 : index
    %c0_101 = arith.constant 0 : index
    %c0_102 = arith.constant 0 : index
    %148 = vector.load %arg2[%c3_100, %c0_101, %c0_102] : memref<5x64x1xf32, #tpu.memory_space<vmem>>, vector<1x64x1xf32>
    %149 = vector.shape_cast %148 : vector<1x64x1xf32> to vector<64x1xf32>
    %150 = vector.broadcast %149 : vector<64x1xf32> to vector<64x2xf32>
    %151 = arith.mulf %147, %150 : vector<64x2xf32>
    %c3_103 = arith.constant 3 : index
    %c0_104 = arith.constant 0 : index
    %c0_105 = arith.constant 0 : index
    %152 = vector.load %arg3[%c3_103, %c0_104, %c0_105] : memref<5x64x1xf32, #tpu.memory_space<vmem>>, vector<1x64x1xf32>
    %153 = vector.shape_cast %152 : vector<1x64x1xf32> to vector<64x1xf32>
    %154 = vector.broadcast %153 : vector<64x1xf32> to vector<64x2xf32>
    %155 = arith.addf %151, %154 : vector<64x2xf32>
    %c0_106 = arith.constant 0 : index
    %c1_107 = arith.constant 1 : index
    %156 = vector.load %arg10[%c0_106, %c1_107] : memref<64x4xf32, #tpu.memory_space<vmem>>, vector<64x2xf32>
    tpu.vector_store %arg10[%c0_106, %c1_107], %155 {strides = array<i32>} : memref<64x4xf32, #tpu.memory_space<vmem>>, vector<64x2xf32>,
    %c3_108 = arith.constant 3 : index
    %c0_109 = arith.constant 0 : index
    %c0_110 = arith.constant 0 : index
    %157 = vector.load %arg4[%c3_108, %c0_109, %c0_110] : memref<5x64x3xf32, #tpu.memory_space<vmem>>, vector<1x64x3xf32>
    %158 = vector.shape_cast %157 : vector<1x64x3xf32> to vector<64x3xf32>
    %159 = vector.extract_strided_slice %158 {offsets = [0, 0], sizes = [64, 1], strides = [1, 1]} : vector<64x3xf32> to vector<64x1xf32>
    %c0_111 = arith.constant 0 : index
    %c0_112 = arith.constant 0 : index
    %160 = vector.load %arg10[%c0_111, %c0_112] : memref<64x4xf32, #tpu.memory_space<vmem>>, vector<64x2xf32>
    %161 = vector.broadcast %159 : vector<64x1xf32> to vector<64x2xf32>
    %162 = arith.mulf %161, %160 : vector<64x2xf32>
    %163 = vector.extract_strided_slice %158 {offsets = [0, 1], sizes = [64, 1], strides = [1, 1]} : vector<64x3xf32> to vector<64x1xf32>
    %c0_113 = arith.constant 0 : index
    %c1_114 = arith.constant 1 : index
    %164 = vector.load %arg10[%c0_113, %c1_114] : memref<64x4xf32, #tpu.memory_space<vmem>>, vector<64x2xf32>
    %165 = vector.broadcast %163 : vector<64x1xf32> to vector<64x2xf32>
    %166 = arith.mulf %165, %164 : vector<64x2xf32>
    %167 = arith.addf %162, %166 : vector<64x2xf32>
    %168 = vector.extract_strided_slice %158 {offsets = [0, 2], sizes = [64, 1], strides = [1, 1]} : vector<64x3xf32> to vector<64x1xf32>
    %c0_115 = arith.constant 0 : index
    %c2_116 = arith.constant 2 : index
    %169 = vector.load %arg10[%c0_115, %c2_116] : memref<64x4xf32, #tpu.memory_space<vmem>>, vector<64x2xf32>
    %170 = vector.broadcast %168 : vector<64x1xf32> to vector<64x2xf32>
    %171 = arith.mulf %170, %169 : vector<64x2xf32>
    %172 = arith.addf %167, %171 : vector<64x2xf32>
    %c3_117 = arith.constant 3 : index
    %c0_118 = arith.constant 0 : index
    %c0_119 = arith.constant 0 : index
    %173 = vector.load %arg8[%c3_117, %c0_118, %c0_119] : memref<5x1x1xf32, #tpu.memory_space<vmem>>, vector<1x1x1xf32>
    %174 = vector.shape_cast %173 : vector<1x1x1xf32> to vector<1x1xf32>
    %cst_120 = arith.constant 0.000000e+00 : f32
    %175 = vector.broadcast %cst_120 : f32 to vector<64x2xf32>
    %176 = arith.cmpf ogt, %172, %175 : vector<64x2xf32>
    %177 = vector.broadcast %174 : vector<1x1xf32> to vector<64x2xf32>
    %178 = arith.mulf %177, %172 : vector<64x2xf32>
    %179 = arith.select %176, %172, %178 : vector<64x2xi1>, vector<64x2xf32>
    %c3_121 = arith.constant 3 : index
    %c0_122 = arith.constant 0 : index
    %c0_123 = arith.constant 0 : index
    %180 = vector.load %arg5[%c3_121, %c0_122, %c0_123] : memref<5x64x1xf32, #tpu.memory_space<vmem>>, vector<1x64x1xf32>
    %181 = vector.shape_cast %180 : vector<1x64x1xf32> to vector<64x1xf32>
    %182 = vector.broadcast %181 : vector<64x1xf32> to vector<64x2xf32>
    %183 = arith.mulf %179, %182 : vector<64x2xf32>
    %c3_124 = arith.constant 3 : index
    %c0_125 = arith.constant 0 : index
    %c0_126 = arith.constant 0 : index
    %184 = vector.load %arg6[%c3_124, %c0_125, %c0_126] : memref<5x64x1xf32, #tpu.memory_space<vmem>>, vector<1x64x1xf32>
    %185 = vector.shape_cast %184 : vector<1x64x1xf32> to vector<64x1xf32>
    %186 = vector.broadcast %185 : vector<64x1xf32> to vector<64x2xf32>
    %187 = arith.addf %183, %186 : vector<64x2xf32>
    %c3_127 = arith.constant 3 : index
    %c0_128 = arith.constant 0 : index
    %c0_129 = arith.constant 0 : index
    %188 = vector.load %arg7[%c3_127, %c0_128, %c0_129] : memref<5x64x64xbf16, #tpu.memory_space<vmem>>, vector<1x64x64xbf16>
    %189 = vector.shape_cast %188 : vector<1x64x64xbf16> to vector<64x64xbf16>
    %190 = arith.truncf %187 : vector<64x2xf32> to vector<64x2xbf16>
    %cst_130 = arith.constant dense<0.000000e+00> : vector<64x2xf32>
    %191 = tpu.matmul %189, %190, %cst_130 {dimension_numbers = #tpu.dot_dimension_numbers<[1], [0], [0], [1], [0, 0, 1, 1], [], []>} : vector<64x64xbf16>, vector<64x2xbf16>, vector<64x2xf32> -> vector<64x2xf32>
    %192 = arith.addf %191, %145 : vector<64x2xf32>
    %cst_131 = arith.constant 0.000000e+00 : f32
    %193 = vector.broadcast %cst_131 : f32 to vector<64x2xf32>
    %194 = arith.maximumf %192, %193 : vector<64x2xf32>
    %c4 = arith.constant 4 : index
    %c0_132 = arith.constant 0 : index
    %c0_133 = arith.constant 0 : index
    %195 = vector.load %arg2[%c4, %c0_132, %c0_133] : memref<5x64x1xf32, #tpu.memory_space<vmem>>, vector<1x64x1xf32>
    %196 = vector.shape_cast %195 : vector<1x64x1xf32> to vector<64x1xf32>
    %197 = vector.broadcast %196 : vector<64x1xf32> to vector<64x2xf32>
    %198 = arith.mulf %194, %197 : vector<64x2xf32>
    %c4_134 = arith.constant 4 : index
    %c0_135 = arith.constant 0 : index
    %c0_136 = arith.constant 0 : index
    %199 = vector.load %arg3[%c4_134, %c0_135, %c0_136] : memref<5x64x1xf32, #tpu.memory_space<vmem>>, vector<1x64x1xf32>
    %200 = vector.shape_cast %199 : vector<1x64x1xf32> to vector<64x1xf32>
    %201 = vector.broadcast %200 : vector<64x1xf32> to vector<64x2xf32>
    %202 = arith.addf %198, %201 : vector<64x2xf32>
    %c0_137 = arith.constant 0 : index
    %c1_138 = arith.constant 1 : index
    %203 = vector.load %arg10[%c0_137, %c1_138] : memref<64x4xf32, #tpu.memory_space<vmem>>, vector<64x2xf32>
    tpu.vector_store %arg10[%c0_137, %c1_138], %202 {strides = array<i32>} : memref<64x4xf32, #tpu.memory_space<vmem>>, vector<64x2xf32>,
    %c4_139 = arith.constant 4 : index
    %c0_140 = arith.constant 0 : index
    %c0_141 = arith.constant 0 : index
    %204 = vector.load %arg4[%c4_139, %c0_140, %c0_141] : memref<5x64x3xf32, #tpu.memory_space<vmem>>, vector<1x64x3xf32>
    %205 = vector.shape_cast %204 : vector<1x64x3xf32> to vector<64x3xf32>
    %206 = vector.extract_strided_slice %205 {offsets = [0, 0], sizes = [64, 1], strides = [1, 1]} : vector<64x3xf32> to vector<64x1xf32>
    %c0_142 = arith.constant 0 : index
    %c0_143 = arith.constant 0 : index
    %207 = vector.load %arg10[%c0_142, %c0_143] : memref<64x4xf32, #tpu.memory_space<vmem>>, vector<64x2xf32>
    %208 = vector.broadcast %206 : vector<64x1xf32> to vector<64x2xf32>
    %209 = arith.mulf %208, %207 : vector<64x2xf32>
    %210 = vector.extract_strided_slice %205 {offsets = [0, 1], sizes = [64, 1], strides = [1, 1]} : vector<64x3xf32> to vector<64x1xf32>
    %c0_144 = arith.constant 0 : index
    %c1_145 = arith.constant 1 : index
    %211 = vector.load %arg10[%c0_144, %c1_145] : memref<64x4xf32, #tpu.memory_space<vmem>>, vector<64x2xf32>
    %212 = vector.broadcast %210 : vector<64x1xf32> to vector<64x2xf32>
    %213 = arith.mulf %212, %211 : vector<64x2xf32>
    %214 = arith.addf %209, %213 : vector<64x2xf32>
    %215 = vector.extract_strided_slice %205 {offsets = [0, 2], sizes = [64, 1], strides = [1, 1]} : vector<64x3xf32> to vector<64x1xf32>
    %c0_146 = arith.constant 0 : index
    %c2_147 = arith.constant 2 : index
    %216 = vector.load %arg10[%c0_146, %c2_147] : memref<64x4xf32, #tpu.memory_space<vmem>>, vector<64x2xf32>
    %217 = vector.broadcast %215 : vector<64x1xf32> to vector<64x2xf32>
    %218 = arith.mulf %217, %216 : vector<64x2xf32>
    %219 = arith.addf %214, %218 : vector<64x2xf32>
    %c4_148 = arith.constant 4 : index
    %c0_149 = arith.constant 0 : index
    %c0_150 = arith.constant 0 : index
    %220 = vector.load %arg8[%c4_148, %c0_149, %c0_150] : memref<5x1x1xf32, #tpu.memory_space<vmem>>, vector<1x1x1xf32>
    %221 = vector.shape_cast %220 : vector<1x1x1xf32> to vector<1x1xf32>
    %cst_151 = arith.constant 0.000000e+00 : f32
    %222 = vector.broadcast %cst_151 : f32 to vector<64x2xf32>
    %223 = arith.cmpf ogt, %219, %222 : vector<64x2xf32>
    %224 = vector.broadcast %221 : vector<1x1xf32> to vector<64x2xf32>
    %225 = arith.mulf %224, %219 : vector<64x2xf32>
    %226 = arith.select %223, %219, %225 : vector<64x2xi1>, vector<64x2xf32>
    %c4_152 = arith.constant 4 : index
    %c0_153 = arith.constant 0 : index
    %c0_154 = arith.constant 0 : index
    %227 = vector.load %arg5[%c4_152, %c0_153, %c0_154] : memref<5x64x1xf32, #tpu.memory_space<vmem>>, vector<1x64x1xf32>
    %228 = vector.shape_cast %227 : vector<1x64x1xf32> to vector<64x1xf32>
    %229 = vector.broadcast %228 : vector<64x1xf32> to vector<64x2xf32>
    %230 = arith.mulf %226, %229 : vector<64x2xf32>
    %c4_155 = arith.constant 4 : index
    %c0_156 = arith.constant 0 : index
    %c0_157 = arith.constant 0 : index
    %231 = vector.load %arg6[%c4_155, %c0_156, %c0_157] : memref<5x64x1xf32, #tpu.memory_space<vmem>>, vector<1x64x1xf32>
    %232 = vector.shape_cast %231 : vector<1x64x1xf32> to vector<64x1xf32>
    %233 = vector.broadcast %232 : vector<64x1xf32> to vector<64x2xf32>
    %234 = arith.addf %230, %233 : vector<64x2xf32>
    %c4_158 = arith.constant 4 : index
    %c0_159 = arith.constant 0 : index
    %c0_160 = arith.constant 0 : index
    %235 = vector.load %arg7[%c4_158, %c0_159, %c0_160] : memref<5x64x64xbf16, #tpu.memory_space<vmem>>, vector<1x64x64xbf16>
    %236 = vector.shape_cast %235 : vector<1x64x64xbf16> to vector<64x64xbf16>
    %237 = arith.truncf %234 : vector<64x2xf32> to vector<64x2xbf16>
    %cst_161 = arith.constant dense<0.000000e+00> : vector<64x2xf32>
    %238 = tpu.matmul %236, %237, %cst_161 {dimension_numbers = #tpu.dot_dimension_numbers<[1], [0], [0], [1], [0, 0, 1, 1], [], []>} : vector<64x64xbf16>, vector<64x2xbf16>, vector<64x2xf32> -> vector<64x2xf32>
    %239 = arith.addf %238, %192 : vector<64x2xf32>
    %c0_162 = arith.constant 0 : index
    %c0_163 = arith.constant 0 : index
    %c0_164 = arith.constant 0 : index
    %240 = vector.load %arg9[%c0_162, %c0_163, %c0_164] : memref<1x64x2xf32, #tpu.memory_space<vmem>>, vector<1x64x2xf32>
    %241 = vector.shape_cast %240 : vector<1x64x2xf32> to vector<64x2xf32>
    %242 = vector.shape_cast %239 : vector<64x2xf32> to vector<1x64x2xf32>
    tpu.vector_store %arg9[%c0_162, %c0_163, %c0_164], %242 {strides = array<i32>} : memref<1x64x2xf32, #tpu.memory_space<vmem>>, vector<1x64x2xf32>,
    return
  }
  func.func @transform_0(%arg0: i32) -> (i32, i32, i32) {
    %c0_i32 = arith.constant 0 : i32
    %c0_i32_0 = arith.constant 0 : i32
    %c0_i32_1 = arith.constant 0 : i32
    return %arg0, %c0_i32, %c0_i32_0 : i32, i32, i32
  }
  func.func @transform_1(%arg0: i32) -> (i32, i32, i32) {
    %c0_i32 = arith.constant 0 : i32
    %c0_i32_0 = arith.constant 0 : i32
    %c0_i32_1 = arith.constant 0 : i32
    %c0_i32_2 = arith.constant 0 : i32
    return %c0_i32, %c0_i32_0, %c0_i32_1 : i32, i32, i32
  }
  func.func @transform_2(%arg0: i32) -> (i32, i32, i32) {
    %c0_i32 = arith.constant 0 : i32
    %c0_i32_0 = arith.constant 0 : i32
    %c0_i32_1 = arith.constant 0 : i32
    %c0_i32_2 = arith.constant 0 : i32
    return %c0_i32, %c0_i32_0, %c0_i32_1 : i32, i32, i32
  }
  func.func @transform_3(%arg0: i32) -> (i32, i32, i32) {
    %c0_i32 = arith.constant 0 : i32
    %c0_i32_0 = arith.constant 0 : i32
    %c0_i32_1 = arith.constant 0 : i32
    %c0_i32_2 = arith.constant 0 : i32
    return %c0_i32, %c0_i32_0, %c0_i32_1 : i32, i32, i32
  }
  func.func @transform_4(%arg0: i32) -> (i32, i32, i32) {
    %c0_i32 = arith.constant 0 : i32
    %c0_i32_0 = arith.constant 0 : i32
    %c0_i32_1 = arith.constant 0 : i32
    %c0_i32_2 = arith.constant 0 : i32
    return %c0_i32, %c0_i32_0, %c0_i32_1 : i32, i32, i32
  }
  func.func @transform_5(%arg0: i32) -> (i32, i32, i32) {
    %c0_i32 = arith.constant 0 : i32
    %c0_i32_0 = arith.constant 0 : i32
    %c0_i32_1 = arith.constant 0 : i32
    %c0_i32_2 = arith.constant 0 : i32
    return %c0_i32, %c0_i32_0, %c0_i32_1 : i32, i32, i32
  }
  func.func @transform_6(%arg0: i32) -> (i32, i32, i32) {
    %c0_i32 = arith.constant 0 : i32
    %c0_i32_0 = arith.constant 0 : i32
    %c0_i32_1 = arith.constant 0 : i32
    %c0_i32_2 = arith.constant 0 : i32
    return %c0_i32, %c0_i32_0, %c0_i32_1 : i32, i32, i32
  }
  func.func @transform_7(%arg0: i32) -> (i32, i32, i32) {
    %c0_i32 = arith.constant 0 : i32
    %c0_i32_0 = arith.constant 0 : i32
    %c0_i32_1 = arith.constant 0 : i32
    %c0_i32_2 = arith.constant 0 : i32
    return %c0_i32, %c0_i32_0, %c0_i32_1 : i32, i32, i32
  }
  func.func @transform_8(%arg0: i32) -> (i32, i32, i32) {
    %c0_i32 = arith.constant 0 : i32
    %c0_i32_0 = arith.constant 0 : i32
    %c0_i32_1 = arith.constant 0 : i32
    return %arg0, %c0_i32, %c0_i32_0 : i32, i32, i32
  }
}

module attributes {stable_mosaic.version = 11 : i64} {
  func.func @_tcn_repeat_kernel(%arg0: i32, %arg1: memref<1x16x64xf32, #tpu.memory_space<vmem>>, %arg2: memref<1x16x64xbf16, #tpu.memory_space<vmem>>, %arg3: memref<16x16xbf16, #tpu.memory_space<vmem>>, %arg4: memref<16x16xbf16, #tpu.memory_space<vmem>>, %arg5: memref<2x32x16xbf16, #tpu.memory_space<vmem>>, %arg6: memref<2x32x1xf32, #tpu.memory_space<vmem>>, %arg7: memref<2x32x1xf32, #tpu.memory_space<vmem>>, %arg8: memref<2x32x3xf32, #tpu.memory_space<vmem>>, %arg9: memref<2x32x1xf32, #tpu.memory_space<vmem>>, %arg10: memref<2x32x1xf32, #tpu.memory_space<vmem>>, %arg11: memref<2x16x32xbf16, #tpu.memory_space<vmem>>, %arg12: memref<2x1x1xf32, #tpu.memory_space<vmem>>, %arg13: memref<2x1x1xf32, #tpu.memory_space<vmem>>, %arg14: memref<1x16x64xf32, #tpu.memory_space<vmem>>, %arg15: memref<32x194xf32, #tpu.memory_space<vmem>>) attributes {dimension_semantics = [#tpu.dimension_semantics<parallel>], iteration_bounds = array<i64: 2>, scalar_prefetch = 0 : i64, scratch_operands = 1 : i64, tpu.core_type = #tpu.core_type<tc>, window_params = [{transform_indices = @transform_0, window_bounds = array<i64: 1, 16, 64>}, {transform_indices = @transform_1, window_bounds = array<i64: 1, 16, 64>}, {pipeline_mode = #tpu.pipeline_mode<synchronous>, transform_indices = @transform_2, window_bounds = array<i64: 16, 16>}, {pipeline_mode = #tpu.pipeline_mode<synchronous>, transform_indices = @transform_3, window_bounds = array<i64: 16, 16>}, {pipeline_mode = #tpu.pipeline_mode<synchronous>, transform_indices = @transform_4, window_bounds = array<i64: 2, 32, 16>}, {pipeline_mode = #tpu.pipeline_mode<synchronous>, transform_indices = @transform_5, window_bounds = array<i64: 2, 32, 1>}, {pipeline_mode = #tpu.pipeline_mode<synchronous>, transform_indices = @transform_6, window_bounds = array<i64: 2, 32, 1>}, {pipeline_mode = #tpu.pipeline_mode<synchronous>, transform_indices = @transform_7, window_bounds = array<i64: 2, 32, 3>}, {pipeline_mode = #tpu.pipeline_mode<synchronous>, transform_indices = @transform_8, window_bounds = array<i64: 2, 32, 1>}, {pipeline_mode = #tpu.pipeline_mode<synchronous>, transform_indices = @transform_9, window_bounds = array<i64: 2, 32, 1>}, {pipeline_mode = #tpu.pipeline_mode<synchronous>, transform_indices = @transform_10, window_bounds = array<i64: 2, 16, 32>}, {pipeline_mode = #tpu.pipeline_mode<synchronous>, transform_indices = @transform_11, window_bounds = array<i64: 2, 1, 1>}, {pipeline_mode = #tpu.pipeline_mode<synchronous>, transform_indices = @transform_12, window_bounds = array<i64: 2, 1, 1>}, {transform_indices = @transform_13, window_bounds = array<i64: 1, 16, 64>}]} {
    %c0 = arith.constant 0 : index
    %c0_0 = arith.constant 0 : index
    %c0_1 = arith.constant 0 : index
    %0 = vector.load %arg1[%c0, %c0_0, %c0_1] : memref<1x16x64xf32, #tpu.memory_space<vmem>>, vector<1x16x64xf32>
    %1 = vector.shape_cast %0 : vector<1x16x64xf32> to vector<16x64xf32>
    %c0_2 = arith.constant 0 : index
    %c0_3 = arith.constant 0 : index
    %2 = vector.load %arg3[%c0_2, %c0_3] : memref<16x16xbf16, #tpu.memory_space<vmem>>, vector<16x16xbf16>
    %3 = arith.truncf %1 : vector<16x64xf32> to vector<16x64xbf16>
    %cst = arith.constant dense<0.000000e+00> : vector<16x64xf32>
    %4 = tpu.matmul %2, %3, %cst {dimension_numbers = #tpu.dot_dimension_numbers<[1], [0], [0], [1], [0, 0, 1, 1], [], []>} : vector<16x16xbf16>, vector<16x64xbf16>, vector<16x64xf32> -> vector<16x64xf32>
    %c0_4 = arith.constant 0 : index
    %c0_5 = arith.constant 0 : index
    %5 = vector.load %arg4[%c0_4, %c0_5] : memref<16x16xbf16, #tpu.memory_space<vmem>>, vector<16x16xbf16>
    %c0_6 = arith.constant 0 : index
    %c0_7 = arith.constant 0 : index
    %c0_8 = arith.constant 0 : index
    %6 = vector.load %arg2[%c0_6, %c0_7, %c0_8] : memref<1x16x64xbf16, #tpu.memory_space<vmem>>, vector<1x16x64xbf16>
    %7 = vector.shape_cast %6 : vector<1x16x64xbf16> to vector<16x64xbf16>
    %cst_9 = arith.constant dense<0.000000e+00> : vector<16x64xf32>
    %8 = tpu.matmul %5, %7, %cst_9 {dimension_numbers = #tpu.dot_dimension_numbers<[1], [0], [0], [1], [0, 0, 1, 1], [], []>} : vector<16x16xbf16>, vector<16x64xbf16>, vector<16x64xf32> -> vector<16x64xf32>
    %9 = arith.addf %4, %8 : vector<16x64xf32>
    %cst_10 = arith.constant 0.000000e+00 : f32
    %10 = vector.broadcast %cst_10 : f32 to vector<32x128xf32>
    %c0_11 = arith.constant 0 : index
    %c0_12 = arith.constant 0 : index
    %11 = vector.load %arg15[%c0_11, %c0_12] : memref<32x194xf32, #tpu.memory_space<vmem>>, vector<32x128xf32>
    tpu.vector_store %arg15[%c0_11, %c0_12], %10 {strides = array<i32>} : memref<32x194xf32, #tpu.memory_space<vmem>>, vector<32x128xf32>,
    %cst_13 = arith.constant 0.000000e+00 : f32
    %12 = vector.broadcast %cst_13 : f32 to vector<32x2xf32>
    %c0_14 = arith.constant 0 : index
    %c192 = arith.constant 192 : index
    %13 = vector.load %arg15[%c0_14, %c192] : memref<32x194xf32, #tpu.memory_space<vmem>>, vector<32x2xf32>
    tpu.vector_store %arg15[%c0_14, %c192], %12 {strides = array<i32>} : memref<32x194xf32, #tpu.memory_space<vmem>>, vector<32x2xf32>,
    %c0_15 = arith.constant 0 : index
    %c0_16 = arith.constant 0 : index
    %c0_17 = arith.constant 0 : index
    %14 = vector.load %arg5[%c0_15, %c0_16, %c0_17] : memref<2x32x16xbf16, #tpu.memory_space<vmem>>, vector<1x32x16xbf16>
    %15 = vector.shape_cast %14 : vector<1x32x16xbf16> to vector<32x16xbf16>
    %16 = arith.truncf %9 : vector<16x64xf32> to vector<16x64xbf16>
    %cst_18 = arith.constant dense<0.000000e+00> : vector<32x64xf32>
    %17 = tpu.matmul %15, %16, %cst_18 {dimension_numbers = #tpu.dot_dimension_numbers<[1], [0], [0], [1], [0, 0, 1, 1], [], []>} : vector<32x16xbf16>, vector<16x64xbf16>, vector<32x64xf32> -> vector<32x64xf32>
    %c0_19 = arith.constant 0 : index
    %c0_20 = arith.constant 0 : index
    %c0_21 = arith.constant 0 : index
    %18 = vector.load %arg12[%c0_19, %c0_20, %c0_21] : memref<2x1x1xf32, #tpu.memory_space<vmem>>, vector<1x1x1xf32>
    %19 = vector.shape_cast %18 : vector<1x1x1xf32> to vector<1x1xf32>
    %cst_22 = arith.constant 0.000000e+00 : f32
    %20 = vector.broadcast %cst_22 : f32 to vector<32x64xf32>
    %21 = arith.cmpf ogt, %17, %20 : vector<32x64xf32>
    %22 = vector.broadcast %19 : vector<1x1xf32> to vector<32x64xf32>
    %23 = arith.mulf %22, %17 : vector<32x64xf32>
    %24 = arith.select %21, %17, %23 : vector<32x64xi1>, vector<32x64xf32>
    %25 = vector.shape_cast %24 : vector<32x64xf32> to vector<1x32x64xf32>
    %cst_23 = arith.constant dense<0.000000e+00> : vector<1xf32>
    %26 = vector.multi_reduction <add>, %25, %cst_23 [1, 2] : vector<1x32x64xf32> to vector<1xf32>
    %27 = vector.shape_cast %26 : vector<1xf32> to vector<1x1x1xf32>
    %28 = vector.extract %27[0, 0, 0] : f32 from vector<1x1x1xf32>
    %cst_24 = arith.constant 4.8828125E-4 : f32
    %29 = arith.mulf %28, %cst_24 : f32
    %30 = arith.mulf %24, %24 : vector<32x64xf32>
    %31 = vector.shape_cast %30 : vector<32x64xf32> to vector<1x32x64xf32>
    %cst_25 = arith.constant dense<0.000000e+00> : vector<1xf32>
    %32 = vector.multi_reduction <add>, %31, %cst_25 [1, 2] : vector<1x32x64xf32> to vector<1xf32>
    %33 = vector.shape_cast %32 : vector<1xf32> to vector<1x1x1xf32>
    %34 = vector.extract %33[0, 0, 0] : f32 from vector<1x1x1xf32>
    %cst_26 = arith.constant 4.8828125E-4 : f32
    %35 = arith.mulf %34, %cst_26 : f32
    %36 = arith.mulf %29, %29 : f32
    %37 = arith.subf %35, %36 : f32
    %c0_27 = arith.constant 0 : index
    %c0_28 = arith.constant 0 : index
    %c0_29 = arith.constant 0 : index
    %38 = vector.load %arg6[%c0_27, %c0_28, %c0_29] : memref<2x32x1xf32, #tpu.memory_space<vmem>>, vector<1x32x1xf32>
    %39 = vector.shape_cast %38 : vector<1x32x1xf32> to vector<32x1xf32>
    %40 = vector.broadcast %29 : f32 to vector<32x64xf32>
    %41 = arith.subf %24, %40 : vector<32x64xf32>
    %42 = vector.broadcast %39 : vector<32x1xf32> to vector<32x64xf32>
    %43 = arith.mulf %42, %41 : vector<32x64xf32>
    %cst_30 = arith.constant 9.99999993E-9 : f32
    %44 = arith.addf %37, %cst_30 : f32
    %45 = math.rsqrt %44 : f32
    %46 = vector.broadcast %45 : f32 to vector<32x64xf32>
    %47 = arith.mulf %43, %46 : vector<32x64xf32>
    %c0_31 = arith.constant 0 : index
    %c0_32 = arith.constant 0 : index
    %c0_33 = arith.constant 0 : index
    %48 = vector.load %arg7[%c0_31, %c0_32, %c0_33] : memref<2x32x1xf32, #tpu.memory_space<vmem>>, vector<1x32x1xf32>
    %49 = vector.shape_cast %48 : vector<1x32x1xf32> to vector<32x1xf32>
    %50 = vector.broadcast %49 : vector<32x1xf32> to vector<32x64xf32>
    %51 = arith.addf %47, %50 : vector<32x64xf32>
    %c0_34 = arith.constant 0 : index
    %c128 = arith.constant 128 : index
    %52 = vector.load %arg15[%c0_34, %c128] : memref<32x194xf32, #tpu.memory_space<vmem>>, vector<32x64xf32>
    tpu.vector_store %arg15[%c0_34, %c128], %51 {strides = array<i32>} : memref<32x194xf32, #tpu.memory_space<vmem>>, vector<32x64xf32>,
    %c0_35 = arith.constant 0 : index
    %c0_36 = arith.constant 0 : index
    %c0_37 = arith.constant 0 : index
    %53 = vector.load %arg8[%c0_35, %c0_36, %c0_37] : memref<2x32x3xf32, #tpu.memory_space<vmem>>, vector<1x32x3xf32>
    %54 = vector.shape_cast %53 : vector<1x32x3xf32> to vector<32x3xf32>
    %55 = vector.extract_strided_slice %54 {offsets = [0, 0], sizes = [32, 1], strides = [1, 1]} : vector<32x3xf32> to vector<32x1xf32>
    %c0_38 = arith.constant 0 : index
    %c127 = arith.constant 127 : index
    %56 = vector.load %arg15[%c0_38, %c127] : memref<32x194xf32, #tpu.memory_space<vmem>>, vector<32x64xf32>
    %57 = vector.broadcast %55 : vector<32x1xf32> to vector<32x64xf32>
    %58 = arith.mulf %57, %56 : vector<32x64xf32>
    %59 = vector.extract_strided_slice %54 {offsets = [0, 1], sizes = [32, 1], strides = [1, 1]} : vector<32x3xf32> to vector<32x1xf32>
    %c0_39 = arith.constant 0 : index
    %c128_40 = arith.constant 128 : index
    %60 = vector.load %arg15[%c0_39, %c128_40] : memref<32x194xf32, #tpu.memory_space<vmem>>, vector<32x64xf32>
    %61 = vector.broadcast %59 : vector<32x1xf32> to vector<32x64xf32>
    %62 = arith.mulf %61, %60 : vector<32x64xf32>
    %63 = arith.addf %58, %62 : vector<32x64xf32>
    %64 = vector.extract_strided_slice %54 {offsets = [0, 2], sizes = [32, 1], strides = [1, 1]} : vector<32x3xf32> to vector<32x1xf32>
    %c0_41 = arith.constant 0 : index
    %c129 = arith.constant 129 : index
    %65 = vector.load %arg15[%c0_41, %c129] : memref<32x194xf32, #tpu.memory_space<vmem>>, vector<32x64xf32>
    %66 = vector.broadcast %64 : vector<32x1xf32> to vector<32x64xf32>
    %67 = arith.mulf %66, %65 : vector<32x64xf32>
    %68 = arith.addf %63, %67 : vector<32x64xf32>
    %c0_42 = arith.constant 0 : index
    %c0_43 = arith.constant 0 : index
    %c0_44 = arith.constant 0 : index
    %69 = vector.load %arg13[%c0_42, %c0_43, %c0_44] : memref<2x1x1xf32, #tpu.memory_space<vmem>>, vector<1x1x1xf32>
    %70 = vector.shape_cast %69 : vector<1x1x1xf32> to vector<1x1xf32>
    %cst_45 = arith.constant 0.000000e+00 : f32
    %71 = vector.broadcast %cst_45 : f32 to vector<32x64xf32>
    %72 = arith.cmpf ogt, %68, %71 : vector<32x64xf32>
    %73 = vector.broadcast %70 : vector<1x1xf32> to vector<32x64xf32>
    %74 = arith.mulf %73, %68 : vector<32x64xf32>
    %75 = arith.select %72, %68, %74 : vector<32x64xi1>, vector<32x64xf32>
    %76 = vector.shape_cast %75 : vector<32x64xf32> to vector<1x32x64xf32>
    %cst_46 = arith.constant dense<0.000000e+00> : vector<1xf32>
    %77 = vector.multi_reduction <add>, %76, %cst_46 [1, 2] : vector<1x32x64xf32> to vector<1xf32>
    %78 = vector.shape_cast %77 : vector<1xf32> to vector<1x1x1xf32>
    %79 = vector.extract %78[0, 0, 0] : f32 from vector<1x1x1xf32>
    %cst_47 = arith.constant 4.8828125E-4 : f32
    %80 = arith.mulf %79, %cst_47 : f32
    %81 = arith.mulf %75, %75 : vector<32x64xf32>
    %82 = vector.shape_cast %81 : vector<32x64xf32> to vector<1x32x64xf32>
    %cst_48 = arith.constant dense<0.000000e+00> : vector<1xf32>
    %83 = vector.multi_reduction <add>, %82, %cst_48 [1, 2] : vector<1x32x64xf32> to vector<1xf32>
    %84 = vector.shape_cast %83 : vector<1xf32> to vector<1x1x1xf32>
    %85 = vector.extract %84[0, 0, 0] : f32 from vector<1x1x1xf32>
    %cst_49 = arith.constant 4.8828125E-4 : f32
    %86 = arith.mulf %85, %cst_49 : f32
    %87 = arith.mulf %80, %80 : f32
    %88 = arith.subf %86, %87 : f32
    %c0_50 = arith.constant 0 : index
    %c0_51 = arith.constant 0 : index
    %c0_52 = arith.constant 0 : index
    %89 = vector.load %arg9[%c0_50, %c0_51, %c0_52] : memref<2x32x1xf32, #tpu.memory_space<vmem>>, vector<1x32x1xf32>
    %90 = vector.shape_cast %89 : vector<1x32x1xf32> to vector<32x1xf32>
    %91 = vector.broadcast %80 : f32 to vector<32x64xf32>
    %92 = arith.subf %75, %91 : vector<32x64xf32>
    %93 = vector.broadcast %90 : vector<32x1xf32> to vector<32x64xf32>
    %94 = arith.mulf %93, %92 : vector<32x64xf32>
    %cst_53 = arith.constant 9.99999993E-9 : f32
    %95 = arith.addf %88, %cst_53 : f32
    %96 = math.rsqrt %95 : f32
    %97 = vector.broadcast %96 : f32 to vector<32x64xf32>
    %98 = arith.mulf %94, %97 : vector<32x64xf32>
    %c0_54 = arith.constant 0 : index
    %c0_55 = arith.constant 0 : index
    %c0_56 = arith.constant 0 : index
    %99 = vector.load %arg10[%c0_54, %c0_55, %c0_56] : memref<2x32x1xf32, #tpu.memory_space<vmem>>, vector<1x32x1xf32>
    %100 = vector.shape_cast %99 : vector<1x32x1xf32> to vector<32x1xf32>
    %101 = vector.broadcast %100 : vector<32x1xf32> to vector<32x64xf32>
    %102 = arith.addf %98, %101 : vector<32x64xf32>
    %c0_57 = arith.constant 0 : index
    %c0_58 = arith.constant 0 : index
    %c0_59 = arith.constant 0 : index
    %103 = vector.load %arg11[%c0_57, %c0_58, %c0_59] : memref<2x16x32xbf16, #tpu.memory_space<vmem>>, vector<1x16x32xbf16>
    %104 = vector.shape_cast %103 : vector<1x16x32xbf16> to vector<16x32xbf16>
    %105 = arith.truncf %102 : vector<32x64xf32> to vector<32x64xbf16>
    %cst_60 = arith.constant dense<0.000000e+00> : vector<16x64xf32>
    %106 = tpu.matmul %104, %105, %cst_60 {dimension_numbers = #tpu.dot_dimension_numbers<[1], [0], [0], [1], [0, 0, 1, 1], [], []>} : vector<16x32xbf16>, vector<32x64xbf16>, vector<16x64xf32> -> vector<16x64xf32>
    %107 = arith.addf %106, %9 : vector<16x64xf32>
    %c1 = arith.constant 1 : index
    %c0_61 = arith.constant 0 : index
    %c0_62 = arith.constant 0 : index
    %108 = vector.load %arg5[%c1, %c0_61, %c0_62] : memref<2x32x16xbf16, #tpu.memory_space<vmem>>, vector<1x32x16xbf16>
    %109 = vector.shape_cast %108 : vector<1x32x16xbf16> to vector<32x16xbf16>
    %110 = arith.truncf %107 : vector<16x64xf32> to vector<16x64xbf16>
    %cst_63 = arith.constant dense<0.000000e+00> : vector<32x64xf32>
    %111 = tpu.matmul %109, %110, %cst_63 {dimension_numbers = #tpu.dot_dimension_numbers<[1], [0], [0], [1], [0, 0, 1, 1], [], []>} : vector<32x16xbf16>, vector<16x64xbf16>, vector<32x64xf32> -> vector<32x64xf32>
    %c1_64 = arith.constant 1 : index
    %c0_65 = arith.constant 0 : index
    %c0_66 = arith.constant 0 : index
    %112 = vector.load %arg12[%c1_64, %c0_65, %c0_66] : memref<2x1x1xf32, #tpu.memory_space<vmem>>, vector<1x1x1xf32>
    %113 = vector.shape_cast %112 : vector<1x1x1xf32> to vector<1x1xf32>
    %cst_67 = arith.constant 0.000000e+00 : f32
    %114 = vector.broadcast %cst_67 : f32 to vector<32x64xf32>
    %115 = arith.cmpf ogt, %111, %114 : vector<32x64xf32>
    %116 = vector.broadcast %113 : vector<1x1xf32> to vector<32x64xf32>
    %117 = arith.mulf %116, %111 : vector<32x64xf32>
    %118 = arith.select %115, %111, %117 : vector<32x64xi1>, vector<32x64xf32>
    %119 = vector.shape_cast %118 : vector<32x64xf32> to vector<1x32x64xf32>
    %cst_68 = arith.constant dense<0.000000e+00> : vector<1xf32>
    %120 = vector.multi_reduction <add>, %119, %cst_68 [1, 2] : vector<1x32x64xf32> to vector<1xf32>
    %121 = vector.shape_cast %120 : vector<1xf32> to vector<1x1x1xf32>
    %122 = vector.extract %121[0, 0, 0] : f32 from vector<1x1x1xf32>
    %cst_69 = arith.constant 4.8828125E-4 : f32
    %123 = arith.mulf %122, %cst_69 : f32
    %124 = arith.mulf %118, %118 : vector<32x64xf32>
    %125 = vector.shape_cast %124 : vector<32x64xf32> to vector<1x32x64xf32>
    %cst_70 = arith.constant dense<0.000000e+00> : vector<1xf32>
    %126 = vector.multi_reduction <add>, %125, %cst_70 [1, 2] : vector<1x32x64xf32> to vector<1xf32>
    %127 = vector.shape_cast %126 : vector<1xf32> to vector<1x1x1xf32>
    %128 = vector.extract %127[0, 0, 0] : f32 from vector<1x1x1xf32>
    %cst_71 = arith.constant 4.8828125E-4 : f32
    %129 = arith.mulf %128, %cst_71 : f32
    %130 = arith.mulf %123, %123 : f32
    %131 = arith.subf %129, %130 : f32
    %c1_72 = arith.constant 1 : index
    %c0_73 = arith.constant 0 : index
    %c0_74 = arith.constant 0 : index
    %132 = vector.load %arg6[%c1_72, %c0_73, %c0_74] : memref<2x32x1xf32, #tpu.memory_space<vmem>>, vector<1x32x1xf32>
    %133 = vector.shape_cast %132 : vector<1x32x1xf32> to vector<32x1xf32>
    %134 = vector.broadcast %123 : f32 to vector<32x64xf32>
    %135 = arith.subf %118, %134 : vector<32x64xf32>
    %136 = vector.broadcast %133 : vector<32x1xf32> to vector<32x64xf32>
    %137 = arith.mulf %136, %135 : vector<32x64xf32>
    %cst_75 = arith.constant 9.99999993E-9 : f32
    %138 = arith.addf %131, %cst_75 : f32
    %139 = math.rsqrt %138 : f32
    %140 = vector.broadcast %139 : f32 to vector<32x64xf32>
    %141 = arith.mulf %137, %140 : vector<32x64xf32>
    %c1_76 = arith.constant 1 : index
    %c0_77 = arith.constant 0 : index
    %c0_78 = arith.constant 0 : index
    %142 = vector.load %arg7[%c1_76, %c0_77, %c0_78] : memref<2x32x1xf32, #tpu.memory_space<vmem>>, vector<1x32x1xf32>
    %143 = vector.shape_cast %142 : vector<1x32x1xf32> to vector<32x1xf32>
    %144 = vector.broadcast %143 : vector<32x1xf32> to vector<32x64xf32>
    %145 = arith.addf %141, %144 : vector<32x64xf32>
    %c0_79 = arith.constant 0 : index
    %c128_80 = arith.constant 128 : index
    %146 = vector.load %arg15[%c0_79, %c128_80] : memref<32x194xf32, #tpu.memory_space<vmem>>, vector<32x64xf32>
    tpu.vector_store %arg15[%c0_79, %c128_80], %145 {strides = array<i32>} : memref<32x194xf32, #tpu.memory_space<vmem>>, vector<32x64xf32>,
    %c1_81 = arith.constant 1 : index
    %c0_82 = arith.constant 0 : index
    %c0_83 = arith.constant 0 : index
    %147 = vector.load %arg8[%c1_81, %c0_82, %c0_83] : memref<2x32x3xf32, #tpu.memory_space<vmem>>, vector<1x32x3xf32>
    %148 = vector.shape_cast %147 : vector<1x32x3xf32> to vector<32x3xf32>
    %149 = vector.extract_strided_slice %148 {offsets = [0, 0], sizes = [32, 1], strides = [1, 1]} : vector<32x3xf32> to vector<32x1xf32>
    %c0_84 = arith.constant 0 : index
    %c126 = arith.constant 126 : index
    %150 = vector.load %arg15[%c0_84, %c126] : memref<32x194xf32, #tpu.memory_space<vmem>>, vector<32x64xf32>
    %151 = vector.broadcast %149 : vector<32x1xf32> to vector<32x64xf32>
    %152 = arith.mulf %151, %150 : vector<32x64xf32>
    %153 = vector.extract_strided_slice %148 {offsets = [0, 1], sizes = [32, 1], strides = [1, 1]} : vector<32x3xf32> to vector<32x1xf32>
    %c0_85 = arith.constant 0 : index
    %c128_86 = arith.constant 128 : index
    %154 = vector.load %arg15[%c0_85, %c128_86] : memref<32x194xf32, #tpu.memory_space<vmem>>, vector<32x64xf32>
    %155 = vector.broadcast %153 : vector<32x1xf32> to vector<32x64xf32>
    %156 = arith.mulf %155, %154 : vector<32x64xf32>
    %157 = arith.addf %152, %156 : vector<32x64xf32>
    %158 = vector.extract_strided_slice %148 {offsets = [0, 2], sizes = [32, 1], strides = [1, 1]} : vector<32x3xf32> to vector<32x1xf32>
    %c0_87 = arith.constant 0 : index
    %c130 = arith.constant 130 : index
    %159 = vector.load %arg15[%c0_87, %c130] : memref<32x194xf32, #tpu.memory_space<vmem>>, vector<32x64xf32>
    %160 = vector.broadcast %158 : vector<32x1xf32> to vector<32x64xf32>
    %161 = arith.mulf %160, %159 : vector<32x64xf32>
    %162 = arith.addf %157, %161 : vector<32x64xf32>
    %c1_88 = arith.constant 1 : index
    %c0_89 = arith.constant 0 : index
    %c0_90 = arith.constant 0 : index
    %163 = vector.load %arg13[%c1_88, %c0_89, %c0_90] : memref<2x1x1xf32, #tpu.memory_space<vmem>>, vector<1x1x1xf32>
    %164 = vector.shape_cast %163 : vector<1x1x1xf32> to vector<1x1xf32>
    %cst_91 = arith.constant 0.000000e+00 : f32
    %165 = vector.broadcast %cst_91 : f32 to vector<32x64xf32>
    %166 = arith.cmpf ogt, %162, %165 : vector<32x64xf32>
    %167 = vector.broadcast %164 : vector<1x1xf32> to vector<32x64xf32>
    %168 = arith.mulf %167, %162 : vector<32x64xf32>
    %169 = arith.select %166, %162, %168 : vector<32x64xi1>, vector<32x64xf32>
    %170 = vector.shape_cast %169 : vector<32x64xf32> to vector<1x32x64xf32>
    %cst_92 = arith.constant dense<0.000000e+00> : vector<1xf32>
    %171 = vector.multi_reduction <add>, %170, %cst_92 [1, 2] : vector<1x32x64xf32> to vector<1xf32>
    %172 = vector.shape_cast %171 : vector<1xf32> to vector<1x1x1xf32>
    %173 = vector.extract %172[0, 0, 0] : f32 from vector<1x1x1xf32>
    %cst_93 = arith.constant 4.8828125E-4 : f32
    %174 = arith.mulf %173, %cst_93 : f32
    %175 = arith.mulf %169, %169 : vector<32x64xf32>
    %176 = vector.shape_cast %175 : vector<32x64xf32> to vector<1x32x64xf32>
    %cst_94 = arith.constant dense<0.000000e+00> : vector<1xf32>
    %177 = vector.multi_reduction <add>, %176, %cst_94 [1, 2] : vector<1x32x64xf32> to vector<1xf32>
    %178 = vector.shape_cast %177 : vector<1xf32> to vector<1x1x1xf32>
    %179 = vector.extract %178[0, 0, 0] : f32 from vector<1x1x1xf32>
    %cst_95 = arith.constant 4.8828125E-4 : f32
    %180 = arith.mulf %179, %cst_95 : f32
    %181 = arith.mulf %174, %174 : f32
    %182 = arith.subf %180, %181 : f32
    %c1_96 = arith.constant 1 : index
    %c0_97 = arith.constant 0 : index
    %c0_98 = arith.constant 0 : index
    %183 = vector.load %arg9[%c1_96, %c0_97, %c0_98] : memref<2x32x1xf32, #tpu.memory_space<vmem>>, vector<1x32x1xf32>
    %184 = vector.shape_cast %183 : vector<1x32x1xf32> to vector<32x1xf32>
    %185 = vector.broadcast %174 : f32 to vector<32x64xf32>
    %186 = arith.subf %169, %185 : vector<32x64xf32>
    %187 = vector.broadcast %184 : vector<32x1xf32> to vector<32x64xf32>
    %188 = arith.mulf %187, %186 : vector<32x64xf32>
    %cst_99 = arith.constant 9.99999993E-9 : f32
    %189 = arith.addf %182, %cst_99 : f32
    %190 = math.rsqrt %189 : f32
    %191 = vector.broadcast %190 : f32 to vector<32x64xf32>
    %192 = arith.mulf %188, %191 : vector<32x64xf32>
    %c1_100 = arith.constant 1 : index
    %c0_101 = arith.constant 0 : index
    %c0_102 = arith.constant 0 : index
    %193 = vector.load %arg10[%c1_100, %c0_101, %c0_102] : memref<2x32x1xf32, #tpu.memory_space<vmem>>, vector<1x32x1xf32>
    %194 = vector.shape_cast %193 : vector<1x32x1xf32> to vector<32x1xf32>
    %195 = vector.broadcast %194 : vector<32x1xf32> to vector<32x64xf32>
    %196 = arith.addf %192, %195 : vector<32x64xf32>
    %c1_103 = arith.constant 1 : index
    %c0_104 = arith.constant 0 : index
    %c0_105 = arith.constant 0 : index
    %197 = vector.load %arg11[%c1_103, %c0_104, %c0_105] : memref<2x16x32xbf16, #tpu.memory_space<vmem>>, vector<1x16x32xbf16>
    %198 = vector.shape_cast %197 : vector<1x16x32xbf16> to vector<16x32xbf16>
    %199 = arith.truncf %196 : vector<32x64xf32> to vector<32x64xbf16>
    %cst_106 = arith.constant dense<0.000000e+00> : vector<16x64xf32>
    %200 = tpu.matmul %198, %199, %cst_106 {dimension_numbers = #tpu.dot_dimension_numbers<[1], [0], [0], [1], [0, 0, 1, 1], [], []>} : vector<16x32xbf16>, vector<32x64xbf16>, vector<16x64xf32> -> vector<16x64xf32>
    %201 = arith.addf %200, %107 : vector<16x64xf32>
    %c0_107 = arith.constant 0 : index
    %c0_108 = arith.constant 0 : index
    %c0_109 = arith.constant 0 : index
    %202 = vector.load %arg14[%c0_107, %c0_108, %c0_109] : memref<1x16x64xf32, #tpu.memory_space<vmem>>, vector<1x16x64xf32>
    %203 = vector.shape_cast %202 : vector<1x16x64xf32> to vector<16x64xf32>
    %204 = vector.shape_cast %201 : vector<16x64xf32> to vector<1x16x64xf32>
    tpu.vector_store %arg14[%c0_107, %c0_108, %c0_109], %204 {strides = array<i32>} : memref<1x16x64xf32, #tpu.memory_space<vmem>>, vector<1x16x64xf32>,
    return
  }
  func.func @transform_0(%arg0: i32) -> (i32, i32, i32) {
    %c0_i32 = arith.constant 0 : i32
    %c0_i32_0 = arith.constant 0 : i32
    %c0_i32_1 = arith.constant 0 : i32
    return %arg0, %c0_i32, %c0_i32_0 : i32, i32, i32
  }
  func.func @transform_1(%arg0: i32) -> (i32, i32, i32) {
    %c0_i32 = arith.constant 0 : i32
    %c0_i32_0 = arith.constant 0 : i32
    %c0_i32_1 = arith.constant 0 : i32
    return %arg0, %c0_i32, %c0_i32_0 : i32, i32, i32
  }
  func.func @transform_2(%arg0: i32) -> (i32, i32) {
    %c0_i32 = arith.constant 0 : i32
    %c0_i32_0 = arith.constant 0 : i32
    %c0_i32_1 = arith.constant 0 : i32
    return %c0_i32, %c0_i32_0 : i32, i32
  }
  func.func @transform_3(%arg0: i32) -> (i32, i32) {
    %c0_i32 = arith.constant 0 : i32
    %c0_i32_0 = arith.constant 0 : i32
    %c0_i32_1 = arith.constant 0 : i32
    return %c0_i32, %c0_i32_0 : i32, i32
  }
  func.func @transform_4(%arg0: i32) -> (i32, i32, i32) {
    %c0_i32 = arith.constant 0 : i32
    %c0_i32_0 = arith.constant 0 : i32
    %c0_i32_1 = arith.constant 0 : i32
    %c0_i32_2 = arith.constant 0 : i32
    return %c0_i32, %c0_i32_0, %c0_i32_1 : i32, i32, i32
  }
  func.func @transform_5(%arg0: i32) -> (i32, i32, i32) {
    %c0_i32 = arith.constant 0 : i32
    %c0_i32_0 = arith.constant 0 : i32
    %c0_i32_1 = arith.constant 0 : i32
    %c0_i32_2 = arith.constant 0 : i32
    return %c0_i32, %c0_i32_0, %c0_i32_1 : i32, i32, i32
  }
  func.func @transform_6(%arg0: i32) -> (i32, i32, i32) {
    %c0_i32 = arith.constant 0 : i32
    %c0_i32_0 = arith.constant 0 : i32
    %c0_i32_1 = arith.constant 0 : i32
    %c0_i32_2 = arith.constant 0 : i32
    return %c0_i32, %c0_i32_0, %c0_i32_1 : i32, i32, i32
  }
  func.func @transform_7(%arg0: i32) -> (i32, i32, i32) {
    %c0_i32 = arith.constant 0 : i32
    %c0_i32_0 = arith.constant 0 : i32
    %c0_i32_1 = arith.constant 0 : i32
    %c0_i32_2 = arith.constant 0 : i32
    return %c0_i32, %c0_i32_0, %c0_i32_1 : i32, i32, i32
  }
  func.func @transform_8(%arg0: i32) -> (i32, i32, i32) {
    %c0_i32 = arith.constant 0 : i32
    %c0_i32_0 = arith.constant 0 : i32
    %c0_i32_1 = arith.constant 0 : i32
    %c0_i32_2 = arith.constant 0 : i32
    return %c0_i32, %c0_i32_0, %c0_i32_1 : i32, i32, i32
  }
  func.func @transform_9(%arg0: i32) -> (i32, i32, i32) {
    %c0_i32 = arith.constant 0 : i32
    %c0_i32_0 = arith.constant 0 : i32
    %c0_i32_1 = arith.constant 0 : i32
    %c0_i32_2 = arith.constant 0 : i32
    return %c0_i32, %c0_i32_0, %c0_i32_1 : i32, i32, i32
  }
  func.func @transform_10(%arg0: i32) -> (i32, i32, i32) {
    %c0_i32 = arith.constant 0 : i32
    %c0_i32_0 = arith.constant 0 : i32
    %c0_i32_1 = arith.constant 0 : i32
    %c0_i32_2 = arith.constant 0 : i32
    return %c0_i32, %c0_i32_0, %c0_i32_1 : i32, i32, i32
  }
  func.func @transform_11(%arg0: i32) -> (i32, i32, i32) {
    %c0_i32 = arith.constant 0 : i32
    %c0_i32_0 = arith.constant 0 : i32
    %c0_i32_1 = arith.constant 0 : i32
    %c0_i32_2 = arith.constant 0 : i32
    return %c0_i32, %c0_i32_0, %c0_i32_1 : i32, i32, i32
  }
  func.func @transform_12(%arg0: i32) -> (i32, i32, i32) {
    %c0_i32 = arith.constant 0 : i32
    %c0_i32_0 = arith.constant 0 : i32
    %c0_i32_1 = arith.constant 0 : i32
    %c0_i32_2 = arith.constant 0 : i32
    return %c0_i32, %c0_i32_0, %c0_i32_1 : i32, i32, i32
  }
  func.func @transform_13(%arg0: i32) -> (i32, i32, i32) {
    %c0_i32 = arith.constant 0 : i32
    %c0_i32_0 = arith.constant 0 : i32
    %c0_i32_1 = arith.constant 0 : i32
    return %arg0, %c0_i32, %c0_i32_0 : i32, i32, i32
  }
}

module attributes {stable_mosaic.version = 11 : i64} {
  func.func @_decoder_kernel(%arg0: i32, %arg1: i32, %arg2: memref<1x16x64xf32, #tpu.memory_space<vmem>>, %arg3: memref<16x16xbf16, #tpu.memory_space<vmem>>, %arg4: memref<1x16x64xf32, #tpu.memory_space<vmem>>, %arg5: memref<8x16xbf16, #tpu.memory_space<vmem>>, %arg6: memref<1x1x8x64xf32, #tpu.memory_space<vmem>>) attributes {dimension_semantics = [#tpu.dimension_semantics<parallel>, #tpu.dimension_semantics<parallel>], iteration_bounds = array<i64: 2, 2>, scalar_prefetch = 0 : i64, scratch_operands = 0 : i64, tpu.core_type = #tpu.core_type<tc>, window_params = [{transform_indices = @transform_0, window_bounds = array<i64: 1, 16, 64>}, {transform_indices = @transform_1, window_bounds = array<i64: 16, 16>}, {transform_indices = @transform_2, window_bounds = array<i64: 1, 16, 64>}, {pipeline_mode = #tpu.pipeline_mode<synchronous>, transform_indices = @transform_3, window_bounds = array<i64: 8, 16>}, {transform_indices = @transform_4, window_bounds = array<i64: 1, 1, 8, 64>}]} {
    %c0 = arith.constant 0 : index
    %c0_0 = arith.constant 0 : index
    %0 = vector.load %arg3[%c0, %c0_0] : memref<16x16xbf16, #tpu.memory_space<vmem>>, vector<16x16xbf16>
    %c0_1 = arith.constant 0 : index
    %c0_2 = arith.constant 0 : index
    %c0_3 = arith.constant 0 : index
    %1 = vector.load %arg2[%c0_1, %c0_2, %c0_3] : memref<1x16x64xf32, #tpu.memory_space<vmem>>, vector<1x16x64xf32>
    %2 = vector.shape_cast %1 : vector<1x16x64xf32> to vector<16x64xf32>
    %3 = arith.truncf %2 : vector<16x64xf32> to vector<16x64xbf16>
    %cst = arith.constant dense<0.000000e+00> : vector<16x64xf32>
    %4 = tpu.matmul %0, %3, %cst {dimension_numbers = #tpu.dot_dimension_numbers<[1], [0], [0], [1], [0, 0, 1, 1], [], []>} : vector<16x16xbf16>, vector<16x64xbf16>, vector<16x64xf32> -> vector<16x64xf32>
    %cst_4 = arith.constant 0.000000e+00 : f32
    %5 = vector.broadcast %cst_4 : f32 to vector<16x64xf32>
    %6 = arith.maximumf %4, %5 : vector<16x64xf32>
    %c0_5 = arith.constant 0 : index
    %c0_6 = arith.constant 0 : index
    %c0_7 = arith.constant 0 : index
    %7 = vector.load %arg4[%c0_5, %c0_6, %c0_7] : memref<1x16x64xf32, #tpu.memory_space<vmem>>, vector<1x16x64xf32>
    %8 = vector.shape_cast %7 : vector<1x16x64xf32> to vector<16x64xf32>
    %9 = arith.mulf %8, %6 : vector<16x64xf32>
    %c0_8 = arith.constant 0 : index
    %c0_9 = arith.constant 0 : index
    %10 = vector.load %arg5[%c0_8, %c0_9] : memref<8x16xbf16, #tpu.memory_space<vmem>>, vector<8x16xbf16>
    %11 = arith.truncf %9 : vector<16x64xf32> to vector<16x64xbf16>
    %cst_10 = arith.constant dense<0.000000e+00> : vector<8x64xf32>
    %12 = tpu.matmul %10, %11, %cst_10 {dimension_numbers = #tpu.dot_dimension_numbers<[1], [0], [0], [1], [0, 0, 1, 1], [], []>} : vector<8x16xbf16>, vector<16x64xbf16>, vector<8x64xf32> -> vector<8x64xf32>
    %c0_11 = arith.constant 0 : index
    %c0_12 = arith.constant 0 : index
    %c0_13 = arith.constant 0 : index
    %c0_14 = arith.constant 0 : index
    %13 = vector.load %arg6[%c0_11, %c0_12, %c0_13, %c0_14] : memref<1x1x8x64xf32, #tpu.memory_space<vmem>>, vector<1x1x8x64xf32>
    %14 = vector.shape_cast %13 : vector<1x1x8x64xf32> to vector<8x64xf32>
    %15 = vector.shape_cast %12 : vector<8x64xf32> to vector<1x1x8x64xf32>
    tpu.vector_store %arg6[%c0_11, %c0_12, %c0_13, %c0_14], %15 {strides = array<i32>} : memref<1x1x8x64xf32, #tpu.memory_space<vmem>>, vector<1x1x8x64xf32>,
    return
  }
  func.func @transform_0(%arg0: i32, %arg1: i32) -> (i32, i32, i32) {
    %c0_i32 = arith.constant 0 : i32
    %c0_i32_0 = arith.constant 0 : i32
    %c0_i32_1 = arith.constant 0 : i32
    return %arg0, %c0_i32, %c0_i32_0 : i32, i32, i32
  }
  func.func @transform_1(%arg0: i32, %arg1: i32) -> (i32, i32) {
    %c0_i32 = arith.constant 0 : i32
    %c0_i32_0 = arith.constant 0 : i32
    return %arg1, %c0_i32 : i32, i32
  }
  func.func @transform_2(%arg0: i32, %arg1: i32) -> (i32, i32, i32) {
    %c0_i32 = arith.constant 0 : i32
    %c0_i32_0 = arith.constant 0 : i32
    %c0_i32_1 = arith.constant 0 : i32
    return %arg0, %c0_i32, %c0_i32_0 : i32, i32, i32
  }
  func.func @transform_3(%arg0: i32, %arg1: i32) -> (i32, i32) {
    %c0_i32 = arith.constant 0 : i32
    %c0_i32_0 = arith.constant 0 : i32
    %c0_i32_1 = arith.constant 0 : i32
    return %c0_i32, %c0_i32_0 : i32, i32
  }
  func.func @transform_4(%arg0: i32, %arg1: i32) -> (i32, i32, i32, i32) {
    %c0_i32 = arith.constant 0 : i32
    %c0_i32_0 = arith.constant 0 : i32
    %c0_i32_1 = arith.constant 0 : i32
    return %arg0, %arg1, %c0_i32, %c0_i32_0 : i32, i32, i32, i32
  }
}

</mosaic_0001>

<bundles_post_ra>
// kernel: avse4_forward.5
= control target key start
LH: loop header
LB: loop body
LE: loop exit
PB: predicated region body
PF: predicated region fallthrough
CT: control target
= control target key end

     0   :  { %12 = vsyncpa [#allocation3], 0  ;;  %s1484_s0 = inlined_call_operand.hbm [shape: bf16[2,16,64], index: 0, kind: input, shape index: {}]   ;;  %s1485_s1 = inlined_call_operand.hbm [shape: bf16[16,16], index: 1, kind: input, shape index: {}]   ;;  %s1486_s2 = inlined_call_operand.hbm [shape: f32[16,1], index: 2, kind: input, shape index: {}]   ;;  %s1487_s3 = inlined_call_operand.hbm [shape: f32[16,1], index: 3, kind: input, shape index: {}]   ;;  %s1488_s4 = inlined_call_operand.hbm [shape: bf16[16,16], index: 4, kind: input, shape index: {}]   ;;  %s1489_s5 = inlined_call_operand.hbm [shape: f32[2,16,64], index: 5, kind: output, shape index: {0}]   ;;  %s1490_s6 = inlined_call_operand.hbm [shape: f32[2,16,64], index: 6, kind: output, shape index: {1}]  }
   0x1   :  { %14 = vsyncpa [#allocation3 + $0x1], 0 }
   0x2   :  { %15 = vsyncpa [#allocation6], 0 }
   0x3   :  { %16 = vsyncpa [#allocation9], 0 }
   0x4   :  { %17 = vsyncpa [#allocation4], 0 }
   0x5   :  { %19 = vsyncpa [#allocation4 + $0x1], 0 }
   0x6   :  { %20 = vsyncpa [#allocation13], 0 }
   0x7   :  { %22 = vsyncpa [#allocation13 + $0x1], 0  ;;  %s1154_s21 = smov 0   ;;  %s1156_s22 = smov 0  }
   0x8   :  { %s1158_s23 = smov 0   ;;  %s1160_s24 = smov 0  }
   0x9 LB: > { %s1175_s25 = sadd.s32 4294967295, %s1101_s24   ;;  %s695_s26 = sadd.s32 4294967294, %s1101_s24   ;;  %s1101_s24 = sphi %s1160_s24, %s1519_s24   ;;  %s1097_s23 = sphi %s1158_s23, %s1518_s23   ;;  %s1093_s22 = sphi %s1156_s22, %s1517_s22   ;;  %s1089_s21 = sphi %s1154_s21, %s1516_s21  }
   0xa   : > { %p48_p0 = scmp.ne.s32.totalorder %s1093_s22, %s1089_s21  ;;  %p1491_p1 = scmp.eq.s32.totalorder %s1175_s25, 0 }
   0xb   : > { %p162_p3 = scmp.eq.s32.totalorder %s695_s26, 1  ;;  %p696_p5 = scmp.ge.s32.totalorder %s1101_s24, 1 }
   0xc   : > { %p1184_p4 = por %p1491_p1, %p48_p0  ;;  %p195_p7 = scmp.lt.s32.totalorder %s1101_s24, 3 }
   0xd   : > { %p1189_p6 = por %p162_p3, %p48_p0  ;;  %s1103_s30 = smov [#allocation5]  }
   0xe   : > { %s1497_s27 = scalar_select %p1184_p4, 1, 0 }
   0xf   : > { %s1498_s28 = scalar_select %p1189_p6, 1, 0 }
  0x10   : > { %p1194_p8 = pnand %p696_p5, %p195_p7  ;;  %s207_s7 = sshll.u32 %s1103_s30, 4  ;;  %s208_s7 = int_to_ptr.vmem [resolvable:$true] %s207_s7 }
  0x11   : > { %1499 = sst [smem:[#allocation19_spill]] %s1498_s28  ;;  %s1104_s9 = smov [#allocation8]  }
  0x12   : > { %s1500_s29 = scalar_select %p1194_p8, 1, 0 }
  0x13   : > { %p767_p9 = pneg %p1194_p8  ;;  %s233_s10 = sshll.u32 %s1104_s9, 4  ;;  %s234_s10 = int_to_ptr.vmem [resolvable:$true] %s233_s10 }
  0x14   : > { %s853_s13 = scalar_lea.hbm %s1485_s1, 128 }
  0x15   : > { %p1203_p11 = pnand %p767_p9, %p1491_p1  ;;  %p854_p12 = scmp.ne.s32.totalorder %s1485_s1, %s853_s13 }
  0x16   : > { %p860_p5 = scmp.lt.u32.totalorder %s853_s13, %s1485_s1 }
  0x17   : > { %p1215_p13 = pneg %p1203_p11 }
  0x19   : > { %p856_p0 = pnand %p1215_p13, %p854_p12 }
  0x1b   : > { %p857_p3 = pneg %p856_p0 }
  0x1d   : > { %p862_p7 = pnand %p860_p5, %p857_p3 }
  0x1f   : > { %865 = shalt.err (!%p862_p7)
}
  0x20   : > { %s866_s19 = scalar_lea.vmem %s208_s7, 128  ;;  %p874_p2 = scmp.lt.s32.totalorder %s208_s7, %s208_s7 }
  0x21   : > { %p867_p9 = scmp.ne.s32.totalorder %s208_s7, %s866_s19  ;;  %p875_p6 = scmp.lt.s32.totalorder %s866_s19, %s866_s19 }
  0x23   : > { %p869_p10 = pnand %p867_p9, %p1215_p13  ;;  %p876_p4 = por %p875_p6, %p874_p2 }
  0x25   : > { %p870_p1 = pneg %p869_p10 }
  0x27   : > { %p877_p8 = pnand %p876_p4, %p870_p1 }
  0x29   : > { %880 = shalt.err (!%p877_p8)
}
  0x2a   : > { %s1495_s20 = smov 64   ;;  %s1106_s26 = smov 4  }
  0x2b   : > { %770 = dma.hbm_to_vmem [thread:$0]  (!%p1203_p11), %s1485_s1, 128, %s208_s7, [#allocation6], %s1495_s20, %s1495_s20, %s1106_s26  }
  0x2c   : > { %s1107_s11 = smov [#allocation7]   ;;  %s881_s15 = scalar_lea.hbm %s1487_s3, 256 }
  0x2d   : > { %s220_s12 = sshll.u32 %s1107_s11, 4  ;;  %p882_p1 = scmp.ne.s32.totalorder %s1487_s3, %s881_s15  ;;  %s221_s12 = int_to_ptr.vmem [resolvable:$true] %s220_s12 }
  0x2e   : > { %p888_p6 = scmp.lt.u32.totalorder %s881_s15, %s1487_s3 }
  0x2f   : > { %p884_p2 = pnand %p882_p1, %p1215_p13 }
  0x31   : > { %p885_p4 = pneg %p884_p2 }
  0x33   : > { %p890_p8 = pnand %p888_p6, %p885_p4 }
  0x35   : > { %893 = shalt.err (!%p890_p8)
}
  0x36   : > { %s894_s7 = scalar_lea.vmem %s234_s10, 256  ;;  %p902_p3 = scmp.lt.s32.totalorder %s234_s10, %s234_s10 }
  0x37   : > { %p895_p10 = scmp.ne.s32.totalorder %s234_s10, %s894_s7  ;;  %p903_p5 = scmp.lt.s32.totalorder %s894_s7, %s894_s7 }
  0x39   : > { %p897_p12 = pnand %p895_p10, %p1215_p13  ;;  %p904_p7 = por %p903_p5, %p902_p3 }
  0x3b   : > { %p898_p0 = pneg %p897_p12 }
  0x3d   : > { %p905_p9 = pnand %p904_p7, %p898_p0 }
  0x3f   : > { %908 = shalt.err (!%p905_p9)
}
  0x40   : > { %s1108_s30 = smov 128   ;;  %s1109_s9 = smov 8  }
  0x41   : > { %776 = dma.hbm_to_vmem [thread:$0]  (!%p1203_p11), %s1487_s3, 256, %s234_s10, [#allocation9], %s1108_s30, %s1108_s30, %s1109_s9  }
  0x42   : > { %s909_s15 = scalar_lea.hbm %s1486_s2, 256 }
  0x43   : > { %p910_p1 = scmp.ne.s32.totalorder %s1486_s2, %s909_s15  ;;  %p916_p6 = scmp.lt.u32.totalorder %s909_s15, %s1486_s2 }
  0x45   : > { %p912_p2 = pnand %p910_p1, %p1215_p13 }
  0x47   : > { %p913_p4 = pneg %p912_p2 }
  0x49   : > { %p918_p8 = pnand %p916_p6, %p913_p4 }
  0x4b   : > { %921 = shalt.err (!%p918_p8)
}
  0x4c   : > { %s922_s28 = scalar_lea.vmem %s221_s12, 256  ;;  %p930_p3 = scmp.lt.s32.totalorder %s221_s12, %s221_s12 }
  0x4d   : > { %p923_p10 = scmp.ne.s32.totalorder %s221_s12, %s922_s28  ;;  %p931_p5 = scmp.lt.s32.totalorder %s922_s28, %s922_s28 }
  0x4f   : > { %p925_p12 = pnand %p923_p10, %p1215_p13  ;;  %p932_p7 = por %p931_p5, %p930_p3 }
  0x51   : > { %p926_p0 = pneg %p925_p12 }
  0x53   : > { %p933_p9 = pnand %p932_p7, %p926_p0 }
  0x55   : > { %936 = shalt.err (!%p933_p9)
}
  0x56   : > { %773 = dma.hbm_to_vmem [thread:$0]  (!%p1203_p11), %s1486_s2, 256, %s221_s12, [#allocation6], %s1108_s30, %s1108_s30, %s1109_s9  }
  0x57   : > { %s1110_s13 = smov [#allocation10]   ;;  %s937_s18 = scalar_lea.hbm %s1488_s4, 128 }
  0x58   : > { %s246_s14 = sshll.u32 %s1110_s13, 4  ;;  %p938_p1 = scmp.ne.s32.totalorder %s1488_s4, %s937_s18  ;;  %s247_s14 = int_to_ptr.vmem [resolvable:$true] %s246_s14 }
  0x59   : > { %p944_p6 = scmp.lt.u32.totalorder %s937_s18, %s1488_s4 }
  0x5a   : > { %p940_p2 = pnand %p938_p1, %p1215_p13 }
  0x5c   : > { %p941_p4 = pneg %p940_p2 }
  0x5e   : > { %p946_p8 = pnand %p944_p6, %p941_p4 }
  0x60   : > { %949 = shalt.err (!%p946_p8)
}
  0x61   : > { %s950_s12 = scalar_lea.vmem %s247_s14, 128  ;;  %p958_p3 = scmp.lt.s32.totalorder %s247_s14, %s247_s14 }
  0x62   : > { %p951_p10 = scmp.ne.s32.totalorder %s247_s14, %s950_s12  ;;  %p959_p5 = scmp.lt.s32.totalorder %s950_s12, %s950_s12 }
  0x64   : > { %p953_p12 = pnand %p951_p10, %p1215_p13  ;;  %p960_p7 = por %p959_p5, %p958_p3 }
  0x66   : > { %p954_p0 = pneg %p953_p12 }
  0x68   : > { %p961_p9 = pnand %p960_p7, %p954_p0 }
  0x6a   : > { %964 = shalt.err (!%p961_p9)
}
  0x6b   : > { %s1503_s30 = smov 64   ;;  %s1292_s16 = sadd.s32 1, %s1101_s24  }
  0x6c   : > { %779 = dma.hbm_to_vmem [thread:$0]  (!%p1203_p11), %s1488_s4, 128, %s247_s14, [#allocation9], %s1503_s30, %s1503_s30, %s1106_s26  }
  0x6d   : > { %s35_s8 = sadd.s32 1, %s1097_s23  ;;  %s32_s10 = ssub.s32 %s1101_s24, %s1292_s16 }
  0x6e   : > { %p42_p13 = scmp.ne.s32.totalorder %s1097_s23, %s1093_s22  ;;  %p33_p1 = scmp.eq.s32.totalorder %s32_s10, 0 }
  0x6f   : > { %p43_p2 = scmp.eq.s32.totalorder %s1101_s24, 0  ;;  %p1504_p4 = scmp.eq.s32.totalorder %s1175_s25, 1 }
  0x70   : > { %p795_p8 = scmp.lt.s32.totalorder %s1101_s24, 2  ;;  %s260_s15 = sand.u32 1, %s1097_s23  }
  0x71   : > { %p1302_p6 = por %p1504_p4, %p42_p13  ;;  %p44_p10 = por %p43_p2, %p42_p13 }
  0x72   : > { %s1308_s13 = scalar_select %p33_p1, %s1097_s23, %s35_s8  }
  0x73   : > { %s702_s17 = sshll.u32 %s260_s15, 3  ;;  %s726_s14 = sshll.u32 %s1101_s24, 7 }
  0x74   : > { %s1315_s7 = scalar_lea.hbm %s1484_s0, %s726_s14  ;;  %s264_s28 = scalar_lea.vmem [#allocation2], %s702_s17 }
  0x75   : > { %s271_s12 = sshll.u32 %s264_s28, 4  ;;  %p1319_p11 = pnand %p795_p8, %p44_p10  ;;  %s1317_s12 = int_to_ptr.vmem [resolvable:$true] %s271_s12 }
  0x76   : > { %s1323_s9 = scalar_lea.sflag [#allocation3], %s260_s15  ;;  %s965_s8 = scalar_lea.hbm %s1315_s7, 128 }
  0x77   : > { %p966_p12 = scmp.ne.s32.totalorder %s1315_s7, %s965_s8  ;;  %p967_p0 = pneg %p1319_p11 }
  0x78   : > { %s970_s14 = scalar_lea.hbm %s1484_s0, 256  ;;  %p971_p7 = scmp.lt.u32.totalorder %s1315_s7, %s1484_s0 }
  0x79   : > { %p968_p3 = pnand %p967_p0, %p966_p12  ;;  %p972_p9 = scmp.lt.u32.totalorder %s970_s14, %s965_s8 }
  0x7a   : > { %p974_p1 = scmp.lt.u32.totalorder %s965_s8, %s1315_s7 }
  0x7b   : > { %p969_p5 = pneg %p968_p3  ;;  %p973_p13 = por %p972_p9, %p971_p7 }
  0x7d   : > { %p975_p2 = por %p974_p1, %p973_p13 }
  0x7f   : > { %p976_p4 = pnand %p975_p2, %p969_p5 }
  0x81   : > { %979 = shalt.err (!%p976_p4)
}
  0x82   : > { %s980_s15 = scalar_lea.vmem %s1317_s12, 128  ;;  %s1111_s28 = smov [#allocation2]  }
  0x83   : > { %p981_p8 = scmp.ne.s32.totalorder %s1317_s12, %s980_s15  ;;  %s985_s10 = sshll.u32 %s1111_s28, 4  ;;  %s986_s10 = int_to_ptr.vmem [resolvable:$false] %s985_s10 }
  0x84   : > { %s987_s17 = scalar_lea.vmem %s986_s10, 256  ;;  %p988_p3 = scmp.lt.s32.totalorder %s1317_s12, %s986_s10 }
  0x85   : > { %p983_p10 = pnand %p981_p8, %p967_p0  ;;  %p989_p7 = scmp.lt.s32.totalorder %s987_s17, %s980_s15 }
  0x87   : > { %p984_p12 = pneg %p983_p10  ;;  %p990_p9 = por %p989_p7, %p988_p3 }
  0x89   : > { %p991_p13 = pnand %p990_p9, %p984_p12 }
  0x8b   : > { %994 = shalt.err (!%p991_p13)
}
  0x8c   : > { %783 = dma.hbm_to_vmem [thread:$0]  (!%p1319_p11), %s1315_s7, 128, %s1317_s12, %s1323_s9, %s1503_s30, %s1503_s30, %s1106_s26  }
  0x8d   : > { %p1507_p0 = scmp.ne.s32.totalorder %s1500_s29, 0 }
  0x8e   : > { %s1357_s8 = sand.u32 (!%p1507_p0), 1, %s1093_s22   ;;  %p1508_p5 = scmp.ne.s32.totalorder (!%p1507_p0), %s1497_s27, 0 }
  0x8f   : > { %283 = sbr.rel (%p1507_p0) target bundleno = 653 (0x28d), region = 40  ;;  %s706_s14 = sshll.u32 (!%p1507_p0), %s1357_s8, 3 }
  0x90   : > { %s286_s18 = scalar_lea.sflag (!%p1507_p0), [#allocation3], %s1357_s8  ;;  %s289_s19 = scalar_lea.vmem (!%p1507_p0), [#allocation2], %s706_s14 }
  0x96   : > { %1068 = dma.done.wait (%p1508_p5), %s286_s18, 128  }
  0x97   : > { %1070 = vsyncadd (%p1508_p5), %s286_s18, 4294967168  ;;  %p1509_p1 = scmp.eq.s32.totalorder %s1175_s25, 0 }
  0x99   : > { %1072 = dma.done.wait (%p1509_p1), [#allocation6], 384   ;;  %p1510_p11 = pmov %p1509_p1 }
  0x9a   : > { %p1511_p2 = pmov %p1509_p1 }
  0x9b   : > { %1074 = vsyncadd (%p1510_p11), [#allocation6], 4294966912 }
  0x9c   : > { %1076 = dma.done.wait (%p1511_p2), [#allocation9], 384   ;;  %p1512_p4 = pmov %p1509_p1 }
  0x9d   : > { %v1112_v0 = vmov 0.0   ;;  %vm1113_vm0 = vmmov 0   ;;  %v1114_v1 = vmov 0   ;;  %v848_v2 = vld [vmem:[%s289_s19] sm:$0xff]   ;;  %v849_v3 = vld [vmem:[#allocation5] sm:$0xff]   ;;  %vm355_vm1 = vcmask 130048  }
  0x9e   : > { %1078 = vsyncadd (%p1512_p4), [#allocation9], 4294966912  ;;  %733 = vmatprep.subr.bf16.mxu0 %v1112_v0  ;;  %735 = vmatprep.mubr.msk.bf16.mxu0 %vm1113_vm0, %v1112_v0  ;;  %v435_v4 = vld [vmem:[#allocation7] sm:$0xff]  ;;  %v449_v5 = vld [vmem:[#allocation8] sm:$0xff]  ;;  %s711_s27 = sshll.u32 %s1357_s8, 4  ;;  %vm402_vm2 = vcmask 523264  }
  0x9f   : > { %846 = vset.pattern.permute.xlu0 %v1114_v1  ;;  %847 = vset.pattern.permute.xlu1 %v1114_v1  ;;  %v436_v6 = vld [vmem:[#allocation7 + $0x8] sm:$0xff]  ;;  %v450_v7 = vld [vmem:[#allocation8 + $0x8] sm:$0xff]  ;;  %s1377_s29 = scalar_lea.vmem [#allocation11], %s711_s27  ;;  %v850_v53 = vld [vmem:[#allocation10] sm:$0xff]   ;;  %s727_s30 = sshll.u32 %s1175_s25, 8 }
  0xa0   : > { %739 = vmatprep.subr.bf16.mxu1 %v1112_v0  ;;  %741 = vmatprep.mubr.msk.bf16.mxu1 %vm1113_vm0, %v1112_v0  ;;  %s536_s26 = sshll.u32 %s1377_s29, 4  ;;  %s1397_s20 = scalar_lea.hbm %s1489_s5, %s727_s30  ;;  %s1389_s26 = int_to_ptr.vmem [resolvable:$true] %s536_s26 }
  0xa1   : > { %734 = vmatpush3.bf16.msra.mxu0 %v848_v2  ;;  %439 = vperm.xlu0 %846, %v435_v4   ;;  %s518_s9 = scalar_lea.sflag [#allocation4], %s1357_s8  ;;  %s995_s15 = scalar_lea.vmem %s1389_s26, 256 }
  0xa2   : > { %453 = vperm.xlu1 %847, %v449_v5   ;;  %p996_p8 = scmp.ne.s32.totalorder %s1389_s26, %s995_s15  ;;  %s1115_s28 = smov [#allocation11]  }
  0xa3   : > { %s999_s10 = sshll.u32 %s1115_s28, 4  ;;  %s1000_s10 = int_to_ptr.vmem [resolvable:$false] %s999_s10 }
  0xa4   : > { %736 = vmatmul.mubr.msk.bf16.vlgmr.msra.gmra.mrb[0].mxu0 %vm355_vm1, %v849_v3  ;;  %p997_p10 = pnand %p996_p8, %p1302_p6  ;;  %s1001_s17 = scalar_lea.vmem %s1000_s10, 512 }
  0xa5   : > { %444 = vperm.xlu0 %846, %v436_v6   ;;  %p1002_p3 = scmp.lt.s32.totalorder %s1389_s26, %s1000_s10  ;;  %p1003_p7 = scmp.lt.s32.totalorder %s1001_s17, %s995_s15 }
  0xa6   : > { %458 = vperm.xlu1 %847, %v450_v7   ;;  %p998_p12 = pneg %p997_p10 }
  0xa7   : > { %p1004_p9 = por %p1003_p7, %p1002_p3 }
  0xa9   : > { %p1005_p13 = pnand %p1004_p9, %p998_p12 }
 0x120   : > { %v440_v41 = vpop.permute.xlu0 %439 }
 0x121   : > { %v454_v42 = vpop.permute.xlu1 %453 }
 0x124   : > { %v445_v46 = vpop.permute.xlu0 %444 }
 0x125   : > { %v459_v49 = vpop.permute.xlu1 %458 }
 0x177   : > { %v393_v8 = vpop.f32.mrb[0].mxu0 }
 0x178   : > { %v400_v9 = vmax.f32 %v393_v8, 0.0  ;;  %v737_v10 = vpop.f32.mrb[1].mxu0 }
 0x179   : > { %v396_v11 = vpop.f32.mrb[2].mxu0 }
 0x17a   : > { %403 = vst.msk [vmem:[%s1377_s29] sm:$0xff] %vm402_vm2, %v400_v9  ;;  %v415_v12 = vmul.f32 %v400_v9, %v400_v9  ;;  %v401_v13 = vmax.f32 %v396_v11, 0.0  ;;  %v738_v14 = vpop.f32.mrb[3].mxu0  ;;  %v405_v15 = vsel %vm402_vm2, %v400_v9, 0.0 }
 0x17c   : > { %404 = vst.msk [vmem:[%s1377_s29 + $0x8] sm:$0xff] %vm402_vm2, %v401_v13  ;;  %v406_v16 = vsel %vm402_vm2, %v401_v13, 0.0  ;;  %v416_v17 = vmul.f32 %v401_v13, %v401_v13  ;;  %v417_v19 = vsel %vm402_vm2, %v415_v12, 0.0 }
 0x17d   : > { %v407_v18 = vadd.f32 %v406_v16, %v405_v15 }
 0x17e   : > { %v418_v20 = vsel %vm402_vm2, %v416_v17, 0.0 }
 0x17f   : > { %v408_v21 = vrot.slane %v407_v18, 4  ;;  %v419_v22 = vadd.f32 %v418_v20, %v417_v19 }
 0x181   : > { %v409_v23 = vadd.f32 %v408_v21, %v407_v18  ;;  %v420_v24 = vrot.slane %v419_v22, 4 }
 0x183   : > { %v421_v25 = vadd.f32 %v420_v24, %v419_v22  ;;  %v410_v26 = vrot.slane %v409_v23, 2 }
 0x185   : > { %v422_v27 = vrot.slane %v421_v25, 2  ;;  %v411_v28 = vadd.f32 %v410_v26, %v409_v23 }
 0x187   : > { %v423_v29 = vadd.f32 %v422_v27, %v421_v25  ;;  %v412_v30 = vrot.slane %v411_v28, 1 }
 0x189   : > { %v424_v31 = vrot.slane %v423_v29, 1  ;;  %v413_v32 = vadd.f32 %v412_v30, %v411_v28 }
 0x18b   : > { %v414_v33 = vmul.f32 0.0625, %v413_v32  ;;  %v425_v34 = vadd.f32 %v424_v31, %v423_v29 }
 0x18d   : > { %v426_v35 = vmul.f32 0.0625, %v425_v34  ;;  %v427_v36 = vmul.f32 %v414_v33, %v414_v33  ;;  %v429_v37 = vsub.f32 %v400_v9, %v414_v33  ;;  %v430_v38 = vsub.f32 %v401_v13, %v414_v33 }
 0x18f   : > { %v428_v39 = vsub.f32 %v426_v35, %v427_v36 }
 0x191   : > { %v431_v40 = vadd.f32 1e-05, %v428_v39 }
 0x193   : > { %851 = vrsqrt.f32 %v431_v40 }
 0x19d   : > { %v852_v43 = vpop.eup %851 }
 0x19e   : > { %v433_v44 = vmul.f32 %v852_v43, %v429_v37  ;;  %v434_v45 = vmul.f32 %v852_v43, %v430_v38 }
 0x1a0   : > { %v447_v47 = vmul.f32 %v440_v41, %v433_v44  ;;  %v448_v48 = vmul.f32 %v445_v46, %v434_v45 }
 0x1a2   : > { %v461_v50 = vadd.f32 %v454_v42, %v447_v47  ;;  %v462_v51 = vadd.f32 %v459_v49, %v448_v48 }
 0x1a4   : > { %v465_v52 = vpack.c.bf16 %v462_v51, %v461_v50 }
 0x1a6   : > { %740 = vmatpush3.bf16.msra.mxu1 %v465_v52 }
 0x1a9   : > { %742 = vmatmul.mubr.msk.bf16.vlgmr.msra.gmra.mrb[0].mxu1 %vm355_vm1, %v850_v53 }
 0x1aa   : > { %1008 = shalt.err (!%p1005_p13)
}
 0x1ab   : > { %s1009_s14 = scalar_lea.hbm %s1397_s20, 256  ;;  %s1013_s29 = scalar_lea.hbm %s1489_s5, 512 }
 0x1ac   : > { %p1010_p0 = scmp.ne.s32.totalorder %s1397_s20, %s1009_s14  ;;  %p1014_p11 = scmp.lt.u32.totalorder %s1397_s20, %s1489_s5 }
 0x1ad   : > { %p1015_p2 = scmp.lt.u32.totalorder %s1013_s29, %s1009_s14  ;;  %p1017_p8 = scmp.lt.u32.totalorder %s1009_s14, %s1397_s20 }
 0x1ae   : > { %p1011_p5 = pnand %p1010_p0, %p1302_p6 }
 0x1af   : > { %p1016_p4 = por %p1015_p2, %p1014_p11 }
 0x1b0   : > { %p1012_p1 = pneg %p1011_p5 }
 0x1b1   : > { %p1018_p10 = por %p1017_p8, %p1016_p4 }
 0x1b3   : > { %p1019_p12 = pnand %p1018_p10, %p1012_p1 }
 0x1b5   : > { %1022 = shalt.err (!%p1019_p12)
}
 0x1b6   : > { %s1116_s15 = smov 128   ;;  %s1117_s28 = smov 8  }
 0x1b7   : > { %763 = dma.vmem_to_hbm [thread:$0]  (%p1302_p6), %s1389_s26, 256, %s1397_s20, %s518_s9, %s1116_s15, %s1116_s15, %s1117_s28  }
 0x1b8   : > { %s338_s10 = scalar_lea.vmem [#allocation12], %s711_s27  ;;  %s1436_s19 = scalar_lea.hbm %s1490_s6, %s727_s30 }
 0x1b9   : > { %s552_s17 = sshll.u32 %s338_s10, 4  ;;  %s523_s27 = scalar_lea.sflag [#allocation13], %s1357_s8  ;;  %s1428_s17 = int_to_ptr.vmem [resolvable:$true] %s552_s17 }
 0x1ba   : > { %s1023_s26 = scalar_lea.vmem %s1428_s17, 256  ;;  %s1118_s20 = smov [#allocation12]  }
 0x1bb   : > { %p1024_p3 = scmp.ne.s32.totalorder %s1428_s17, %s1023_s26  ;;  %s1027_s9 = sshll.u32 %s1118_s20, 4  ;;  %s1028_s9 = int_to_ptr.vmem [resolvable:$false] %s1027_s9 }
 0x1bc   : > { %s1029_s29 = scalar_lea.vmem %s1028_s9, 512  ;;  %p1030_p13 = scmp.lt.s32.totalorder %s1428_s17, %s1028_s9 }
 0x1bd   : > { %p1025_p7 = pnand %p1024_p3, %p1302_p6  ;;  %p1031_p0 = scmp.lt.s32.totalorder %s1029_s29, %s1023_s26 }
 0x1bf   : > { %p1026_p9 = pneg %p1025_p7  ;;  %p1032_p5 = por %p1031_p0, %p1030_p13 }
 0x1c1   : > { %p1033_p1 = pnand %p1032_p5, %p1026_p9 }
 0x27c   : > { %v508_v54 = vpop.f32.mrb[0].mxu1 }
 0x27d   : > { %515 = vst.msk [vmem:[%s338_s10] sm:$0xff] %vm402_vm2, %v508_v54  ;;  %v743_v55 = vpop.f32.mrb[1].mxu1 }
 0x27e   : > { %v511_v56 = vpop.f32.mrb[2].mxu1 }
 0x27f   : > { %516 = vst.msk [vmem:[%s338_s10 + $0x8] sm:$0xff] %vm402_vm2, %v511_v56  ;;  %v744_v57 = vpop.f32.mrb[3].mxu1 }
 0x280   : > { %1036 = shalt.err (!%p1033_p1)
}
 0x281   : > { %s1037_s25 = scalar_lea.hbm %s1436_s19, 256  ;;  %s1041_s12 = scalar_lea.hbm %s1490_s6, 512 }
 0x282   : > { %p1038_p11 = scmp.ne.s32.totalorder %s1436_s19, %s1037_s25  ;;  %p1042_p8 = scmp.lt.u32.totalorder %s1436_s19, %s1490_s6 }
 0x283   : > { %p1043_p10 = scmp.lt.u32.totalorder %s1041_s12, %s1037_s25  ;;  %p1045_p3 = scmp.lt.u32.totalorder %s1037_s25, %s1436_s19 }
 0x284   : > { %p1039_p2 = pnand %p1038_p11, %p1302_p6 }
 0x285   : > { %p1044_p12 = por %p1043_p10, %p1042_p8 }
 0x286   : > { %p1040_p4 = pneg %p1039_p2 }
 0x287   : > { %p1046_p7 = por %p1045_p3, %p1044_p12 }
 0x289   : > { %p1047_p9 = pnand %p1046_p7, %p1040_p4 }
 0x28b   : > { %1050 = shalt.err (!%p1047_p9)
}
 0x28c   : > { %764 = dma.vmem_to_hbm [thread:$0]  (%p1302_p6), %s1428_s17, 256, %s1436_s19, %s523_s27, %s1116_s15, %s1116_s15, %s1117_s28  }
 0x28d PF: > { %s1513_s18 = sld [smem:[#allocation19_spill]]  ;;  %s567_s26 = sand.u32 1, %s1089_s21  }
 0x28e   : > { %p1515_p0 = scmp.ge.s32.totalorder %s1101_s24, 2  ;;  %s568_s20 = scalar_lea.sflag [#allocation4], %s567_s26 }
 0x293   : > { %p1514_p13 = scmp.ne.s32.totalorder %s1513_s18, 0 }
 0x295   : > { %p785_p5 = pnand %p1515_p0, %p1514_p13 }
 0x297   : > { %1080 = dma.done.wait (!%p785_p5), %s568_s20, 256  }
 0x298   : > { %1082 = vsyncadd (!%p785_p5), %s568_s20, 4294967040  ;;  %s577_s11 = scalar_lea.sflag [#allocation13], %s567_s26 }
 0x299   : > { %1084 = dma.done.wait (!%p785_p5), %s577_s11, 256  }
 0x29a   : > { %1086 = vsyncadd (!%p785_p5), %s577_s11, 4294967040  ;;  %p25_p6 = scmp.ge.s32.totalorder %s1292_s16, 4   ;;  %s1516_s21 = smov %s1093_s22 }
 0x29b   : > { %s1517_s22 = smov %s1097_s23  ;;  %s1518_s23 = smov %s1308_s13 }
 0x29c   : > { %s1519_s24 = smov %s1292_s16  ;;  %27 = sbr.rel (!%p25_p6) target bundleno = 9 (0x9), region = 118 }
 0x2a3   :  { %582 = vsyncpa [#allocation3], 1 }
 0x2a4   :  { %584 = vsyncpa [#allocation3 + $0x1], 1 }
 0x2a5   :  { %585 = vsyncpa [#allocation6], 1 }
 0x2a6   :  { %586 = vsyncpa [#allocation9], 1 }
 0x2a7   :  { %587 = vsyncpa [#allocation4], 1 }
 0x2a8   :  { %589 = vsyncpa [#allocation4 + $0x1], 1 }
 0x2a9   :  { %590 = vsyncpa [#allocation13], 1 }
 0x2aa   :  { %592 = vsyncpa [#allocation13 + $0x1], 1 }

// kernel: avse4_forward.9
= control target key start
LH: loop header
LB: loop body
LE: loop exit
PB: predicated region body
PF: predicated region fallthrough
CT: control target
= control target key end

     0   :  { %s1525_s0 = inlined_call_operand.hbm [shape: f32[2,16,64], index: 0, kind: input, shape index: {}]   ;;  %s1526_s1 = inlined_call_operand.hbm [shape: bf16[32,16], index: 1, kind: input, shape index: {}]   ;;  %s1527_s2 = inlined_call_operand.hbm [shape: f32[2,16,64], index: 2, kind: input, shape index: {}]   ;;  %s1528_s3 = inlined_call_operand.hbm [shape: bf16[8,16], index: 3, kind: input, shape index: {}]   ;;  %s1529_s4 = inlined_call_operand.hbm [shape: f32[2,2,8,64], index: 4, kind: output, shape index: {}]  }
   0x1   :  { %1548 = sst [smem:[#allocation26_spill]] %s1525_s0 }
   0x2   :  { %1549 = sst [smem:[#allocation27_spill]] %s1526_s1 }
   0x3   :  { %1550 = sst [smem:[#allocation28_spill]] %s1528_s3 }
   0x4   :  { %1551 = sst [smem:[#allocation29_spill]] %s1529_s4 }
   0x5   :  { %9 = vsyncpa [#allocation3], 0 }
   0x6   :  { %11 = vsyncpa [#allocation3 + $0x1], 0 }
   0x7   :  { %12 = vsyncpa [#allocation6], 0 }
   0x8   :  { %14 = vsyncpa [#allocation6 + $0x1], 0 }
   0x9   :  { %15 = vsyncpa [#allocation9], 0 }
   0xa   :  { %16 = vsyncpa [#allocation4], 0 }
   0xb   :  { %18 = vsyncpa [#allocation4 + $0x1], 0  ;;  %s1097_s15 = smov 0   ;;  %s1099_s16 = smov 0  }
   0xc   :  { %s1101_s17 = smov 0   ;;  %s1103_s18 = smov 0  }
   0xd   :  { %s1105_s19 = smov 0   ;;  %s1107_s20 = smov 0  }
   0xe   :  { %s1109_s21 = smov 0   ;;  %s1111_s22 = smov 0  }
   0xf   :  { %s1113_s23 = smov 0   ;;  %s1115_s24 = smov 0  }
  0x10   :  { %s1117_s25 = smov 0   ;;  %s1119_s26 = smov 0  }
  0x11   :  { %s1121_s27 = smov 0   ;;  %s1123_s28 = smov 0  }
  0x12 LB: > { %1552 = sst [smem:[#allocation16_spill]] %s1007_s15  ;;  %s33_s29 = sadd.s32 1, %s1051_s26  ;;  %s1059_s28 = sphi %s1123_s28, %s24_s28   ;;  %s1055_s27 = sphi %s1121_s27, %s1600_s27   ;;  %s1051_s26 = sphi %s1119_s26, %s1599_s26   ;;  %s1047_s25 = sphi %s1117_s25, %s1598_s25   ;;  %s1043_s24 = sphi %s1115_s24, %s1597_s24   ;;  %s1039_s23 = sphi %s1113_s23, %s1608_s23   ;;  %s1035_s22 = sphi %s1111_s22, %s1607_s22   ;;  %s1031_s21 = sphi %s1109_s21, %s1606_s21   ;;  %s1027_s20 = sphi %s1107_s20, %s1595_s20   ;;  %s1023_s19 = sphi %s1105_s19, %s1605_s19   ;;  %s1019_s18 = sphi %s1103_s18, %s1604_s18   ;;  %s1015_s17 = sphi %s1101_s17, %s1603_s17   ;;  %s1011_s16 = sphi %s1099_s16, %s1602_s16   ;;  %s1007_s15 = sphi %s1097_s15, %s1601_s15  }
  0x13   : > { %1553 = sst [smem:[#allocation17_spill]] %s1027_s20  ;;  %p1535_p0 = scmp.eq.s32.totalorder %s1059_s28, 0 }
  0x14   : > { %1554 = sst [smem:[#allocation18_spill]] %s1043_s24  ;;  %p1169_p1 = scmp.ge.s32.totalorder %s33_s29, 2 }
  0x15   : > { %1555 = sst [smem:[#allocation19_spill]] %s1051_s26  ;;  %s69_s5 = sadd.s32 1, %s1027_s20 }
  0x16   : > { %1556 = sst [smem:[#allocation20_spill]] %s1055_s27  ;;  %p76_p2 = scmp.ne.s32.totalorder %s1027_s20, %s1023_s19 }
  0x17   : > { %s1557_s30 = scalar_select %p1169_p1, 1, 0 }
  0x18   : > { %s1610_s29 = smov (%p1169_p1, %s33_s29), 0  ;;  %p78_p3 = por %p76_p2, %p1535_p0 }
  0x19   : > { %1558 = sst [smem:[#allocation21_spill]] %s1610_s29  ;;  %p1534_p4 = scmp.lt.s32.totalorder %s1059_s28, 4 }
  0x1a   : > { %s1185_s6 = ssub.s32 %s1051_s26, %s1610_s29  ;;  %s213_s7 = sand.u32 1, %s1059_s28  }
  0x1b   : > { %p67_p5 = scmp.eq.s32.totalorder %s1185_s6, 0  ;;  %s215_s8 = sand.u32 1, %s1027_s20  }
  0x1c   : > { %s611_s9 = sshll.u32 %s1051_s26, 7  ;;  %s590_s11 = sshll.u32 %s215_s8, 3 }
  0x1d   : > { %s1192_s10 = scalar_select %p67_p5, %s1027_s20, %s69_s5  }
  0x1e   : > { %s1560_s1 = sld [smem:[#allocation27_spill]]  ;;  %p1201_p6 = pnand %p1534_p4, %p78_p3 }
  0x1f   : > { %1559 = sst [smem:[#allocation22_spill]] %s1192_s10  ;;  %s217_s26 = scalar_lea.vmem [#allocation5], %s590_s11 }
  0x20   : > { %s224_s5 = sshll.u32 %s217_s26, 4  ;;  %s1207_s8 = scalar_lea.sflag [#allocation6], %s213_s7  ;;  %s1205_s5 = int_to_ptr.vmem [resolvable:$true] %s224_s5 }
  0x21   : > { %p785_p8 = pneg %p1201_p6 }
  0x24   : > { %s1197_s14 = scalar_lea.hbm %s1560_s1, %s611_s9  ;;  %s788_s10 = scalar_lea.hbm %s1560_s1, 256 }
  0x25   : > { %s783_s12 = scalar_lea.hbm %s1197_s14, 128  ;;  %p789_p11 = scmp.lt.u32.totalorder %s1197_s14, %s1560_s1 }
  0x26   : > { %p784_p7 = scmp.ne.s32.totalorder %s1197_s14, %s783_s12  ;;  %p790_p12 = scmp.lt.u32.totalorder %s788_s10, %s783_s12 }
  0x27   : > { %p792_p2 = scmp.lt.u32.totalorder %s783_s12, %s1197_s14 }
  0x28   : > { %p786_p9 = pnand %p785_p8, %p784_p7  ;;  %p791_p13 = por %p790_p12, %p789_p11 }
  0x2a   : > { %p787_p10 = pneg %p786_p9  ;;  %p793_p3 = por %p792_p2, %p791_p13 }
  0x2c   : > { %p794_p5 = pnand %p793_p3, %p787_p10 }
  0x2e   : > { %797 = shalt.err (!%p794_p5)
}
  0x2f   : > { %s798_s26 = scalar_lea.vmem %s1205_s5, 128  ;;  %s1061_s7 = smov [#allocation5]  }
  0x30   : > { %p799_p7 = scmp.ne.s32.totalorder %s1205_s5, %s798_s26  ;;  %s803_s11 = sshll.u32 %s1061_s7, 4  ;;  %s804_s11 = int_to_ptr.vmem [resolvable:$false] %s803_s11 }
  0x31   : > { %s805_s4 = scalar_lea.vmem %s804_s11, 256  ;;  %p806_p0 = scmp.lt.s32.totalorder %s1205_s5, %s804_s11 }
  0x32   : > { %p801_p9 = pnand %p799_p7, %p785_p8  ;;  %p807_p11 = scmp.lt.s32.totalorder %s805_s4, %s798_s26 }
  0x34   : > { %p802_p4 = pneg %p801_p9  ;;  %p808_p12 = por %p807_p11, %p806_p0 }
  0x36   : > { %p809_p13 = pnand %p808_p12, %p802_p4 }
  0x38   : > { %812 = shalt.err (!%p809_p13)
}
  0x39   : > { %s1062_s20 = smov 64   ;;  %s1063_s10 = smov 4  }
  0x3a   : > { %651 = dma.hbm_to_vmem [thread:$0]  (!%p1201_p6), %s1197_s14, 128, %s1205_s5, %s1207_s8, %s1062_s20, %s1062_s20, %s1063_s10  }
  0x3b   : > { %s1236_s12 = sadd.s32 4294967295, %s1059_s28   ;;  %s583_s9 = sadd.s32 4294967294, %s1059_s28  }
  0x3c   : > { %p56_p0 = scmp.ne.s32.totalorder %s1035_s22, %s1031_s21  ;;  %p1538_p4 = scmp.eq.s32.totalorder %s1236_s12, 0 }
  0x3d   : > { %p82_p8 = scmp.ne.s32.totalorder %s1023_s19, %s1019_s18  ;;  %p154_p10 = scmp.ne.s32.totalorder %s1015_s17, %s1011_s16 }
  0x3e   : > { %p1249_p2 = por %p1538_p4, %p56_p0  ;;  %p155_p3 = scmp.eq.s32.totalorder %s1236_s12, 3 }
  0x3f   : > { %p1255_p6 = por %p82_p8, %p1538_p4  ;;  %p160_p5 = scmp.ne.s32.totalorder %s1011_s16, %s1007_s15 }
  0x40   : > { %s1562_s26 = scalar_select %p1249_p2, 1, 0 }
  0x41   : > { %s1563_s29 = scalar_select %p1255_p6, 1, 0 }
  0x42   : > { %p161_p7 = scmp.eq.s32.totalorder %s583_s9, 3  ;;  %p584_p9 = scmp.ge.s32.totalorder %s1059_s28, 1 }
  0x43   : > { %p1263_p11 = por %p155_p3, %p154_p10  ;;  %p168_p12 = scmp.lt.s32.totalorder %s1059_s28, 5 }
  0x44   : > { %p1268_p13 = por %p161_p7, %p160_p5  ;;  %s1064_s5 = smov [#allocation8]  }
  0x45   : > { %s1564_s18 = scalar_select %p1263_p11, 1, 0 }
  0x46   : > { %s1566_s21 = scalar_select %p1268_p13, 1, 0 }
  0x47   : > { %1565 = sst [smem:[#allocation23_spill]] %s1564_s18  ;;  %p1272_p0 = pnand %p584_p9, %p168_p12 }
  0x48   : > { %1567 = sst [smem:[#allocation24_spill]] %s1566_s21  ;;  %s181_s7 = sshll.u32 %s1064_s5, 4  ;;  %s182_s7 = int_to_ptr.vmem [resolvable:$true] %s181_s7 }
  0x49   : > { %s1568_s14 = scalar_select %p1272_p0, 1, 0 }
  0x4a   : > { %p641_p8 = pneg %p1272_p0  ;;  %s36_s4 = sadd.s32 1, %s1055_s27 }
  0x4b   : > { %s1570_s3 = sld [smem:[#allocation28_spill]] }
  0x4c   : > { %p1280_p10 = pnand %p641_p8, %p1538_p4 }
  0x4e   : > { %p815_p7 = pneg %p1280_p10 }
  0x51   : > { %s813_s13 = scalar_lea.hbm %s1570_s3, 64 }
  0x52   : > { %p814_p5 = scmp.ne.s32.totalorder %s1570_s3, %s813_s13  ;;  %p820_p8 = scmp.lt.u32.totalorder %s813_s13, %s1570_s3 }
  0x54   : > { %p816_p9 = pnand %p815_p7, %p814_p5 }
  0x56   : > { %p817_p12 = pneg %p816_p9 }
  0x58   : > { %p822_p4 = pnand %p820_p8, %p817_p12 }
  0x5a   : > { %825 = shalt.err (!%p822_p4)
}
  0x5b   : > { %s826_s20 = scalar_lea.vmem %s182_s7, 64  ;;  %p834_p6 = scmp.lt.s32.totalorder %s182_s7, %s182_s7 }
  0x5c   : > { %p827_p3 = scmp.ne.s32.totalorder %s182_s7, %s826_s20  ;;  %p835_p2 = scmp.lt.s32.totalorder %s826_s20, %s826_s20 }
  0x5e   : > { %p829_p13 = pnand %p827_p3, %p815_p7  ;;  %p836_p0 = por %p835_p2, %p834_p6 }
  0x60   : > { %p830_p11 = pneg %p829_p13 }
  0x62   : > { %p837_p1 = pnand %p836_p0, %p830_p11 }
  0x64   : > { %840 = shalt.err (!%p837_p1)
}
  0x65   : > { %644 = dma.hbm_to_vmem [thread:$0]  (!%p1280_p10), %s1570_s3, 64, %s182_s7, [#allocation9]  }
  0x66   : > { %p1571_p4 = scmp.ne.s32.totalorder %s1557_s30, 0  ;;  %p1572_p1 = scmp.ne.s32.totalorder %s1039_s23, %s1035_s22 }
  0x67   : > { %p1573_p2 = scmp.eq.s32.totalorder %s1059_s28, 0  ;;  %s192_s13 = sand.u32 1, %s1039_s23  }
  0x68   : > { %s1612_s4 = smov (!%p1571_p4, %s36_s4), %s1055_s27  ;;  %s1317_s11 = sshll.u32 %s192_s13, 4 }
  0x69   : > { %p1312_p6 = por %p1573_p2, %p1572_p1  ;;  %p38_p11 = scmp.ge.s32.totalorder %s1612_s4, 2 }
  0x6a   : > { %s610_s7 = sshll.u32 %s1055_s27, 8  ;;  %s1576_s0 = sld [smem:[#allocation26_spill]] }
  0x6b   : > { %s1614_s4 = smov (%p38_p11, %s1612_s4), 0  ;;  %s196_s5 = scalar_lea.vmem [#allocation2], %s1317_s11 }
  0x6c   : > { %1575 = sst [smem:[#allocation25_spill]] %s1614_s4  ;;  %s40_s9 = ssub.s32 %s1055_s27, %s1614_s4 }
  0x6d   : > { %s203_s1 = sshll.u32 %s196_s5, 4  ;;  %p41_p13 = scmp.eq.s32.totalorder %s40_s9, 0  ;;  %s1331_s1 = int_to_ptr.vmem [resolvable:$true] %s203_s1 }
  0x6e   : > { %s141_s21 = sor.u32 %s1185_s6, %s40_s9  ;;  %s1577_s3 = sadd.s32 1, %s1039_s23 }
  0x6f   : > { %p142_p0 = scmp.eq.s32.totalorder %s141_s21, 0  ;;  %s1578_s24 = sadd.s32 1, %s1015_s17 }
  0x70   : > { %s1325_s10 = scalar_lea.hbm %s1576_s0, %s610_s7  ;;  %p1579_p10 = scmp.lt.s32.totalorder %s1059_s28, 4 }
  0x71   : > { %s1336_s18 = scalar_select %p41_p13, %s1039_s23, %s1577_s3  }
  0x72   : > { %s1341_s30 = scalar_select %p142_p0, %s1015_s17, %s1578_s24  }
  0x73   : > { %p1347_p3 = pnand %p1579_p10, %p1312_p6  ;;  %s1354_s6 = scalar_lea.hbm %s1527_s2, %s610_s7 }
  0x74   : > { %s1356_s9 = scalar_lea.sflag [#allocation3], %s192_s13  ;;  %s841_s3 = scalar_lea.hbm %s1325_s10, 256 }
  0x75   : > { %p842_p5 = scmp.ne.s32.totalorder %s1325_s10, %s841_s3  ;;  %p843_p7 = pneg %p1347_p3 }
  0x76   : > { %s846_s21 = scalar_lea.hbm %s1576_s0, 512  ;;  %p847_p8 = scmp.lt.u32.totalorder %s1325_s10, %s1576_s0 }
  0x77   : > { %p844_p9 = pnand %p843_p7, %p842_p5  ;;  %p848_p4 = scmp.lt.u32.totalorder %s846_s21, %s841_s3 }
  0x78   : > { %p850_p2 = scmp.lt.u32.totalorder %s841_s3, %s1325_s10 }
  0x79   : > { %p845_p12 = pneg %p844_p9  ;;  %p849_p1 = por %p848_p4, %p847_p8 }
  0x7b   : > { %p851_p6 = por %p850_p2, %p849_p1 }
  0x7d   : > { %p852_p11 = pnand %p851_p6, %p845_p12 }
  0x7f   : > { %855 = shalt.err (!%p852_p11)
}
  0x80   : > { %s856_s13 = scalar_lea.vmem %s1331_s1, 256  ;;  %s1065_s7 = smov [#allocation2]  }
  0x81   : > { %p857_p13 = scmp.ne.s32.totalorder %s1331_s1, %s856_s13  ;;  %s861_s5 = sshll.u32 %s1065_s7, 4  ;;  %s862_s5 = int_to_ptr.vmem [resolvable:$false] %s861_s5 }
  0x82   : > { %s863_s27 = scalar_lea.vmem %s862_s5, 512  ;;  %p864_p5 = scmp.lt.s32.totalorder %s1331_s1, %s862_s5 }
  0x83   : > { %p859_p0 = pnand %p857_p13, %p843_p7  ;;  %p865_p9 = scmp.lt.s32.totalorder %s863_s27, %s856_s13 }
  0x85   : > { %p860_p10 = pneg %p859_p0  ;;  %p866_p8 = por %p865_p9, %p864_p5 }
  0x87   : > { %p867_p4 = pnand %p866_p8, %p860_p10 }
  0x89   : > { %870 = shalt.err (!%p867_p4)
}
  0x8a   : > { %s1066_s3 = smov 128   ;;  %s1067_s24 = smov 8  }
  0x8b   : > { %648 = dma.hbm_to_vmem [thread:$0]  (!%p1347_p3), %s1325_s10, 256, %s1331_s1, %s1356_s9, %s1066_s3, %s1066_s3, %s1067_s24  }
  0x8c   : > { %s238_s15 = scalar_lea.vmem [#allocation7], %s1317_s11  ;;  %s871_s4 = scalar_lea.hbm %s1354_s6, 256 }
  0x8d   : > { %s245_s21 = sshll.u32 %s238_s15, 4  ;;  %p872_p12 = scmp.ne.s32.totalorder %s1354_s6, %s871_s4  ;;  %s1388_s21 = int_to_ptr.vmem [resolvable:$true] %s245_s21 }
  0x8e   : > { %s876_s5 = scalar_lea.hbm %s1527_s2, 512  ;;  %p877_p6 = scmp.lt.u32.totalorder %s1354_s6, %s1527_s2 }
  0x8f   : > { %p874_p1 = pnand %p872_p12, %p843_p7  ;;  %p878_p11 = scmp.lt.u32.totalorder %s876_s5, %s871_s4 }
  0x90   : > { %p880_p0 = scmp.lt.u32.totalorder %s871_s4, %s1354_s6 }
  0x91   : > { %p875_p2 = pneg %p874_p1  ;;  %p879_p13 = por %p878_p11, %p877_p6 }
  0x93   : > { %p881_p10 = por %p880_p0, %p879_p13 }
  0x95   : > { %p882_p5 = pnand %p881_p10, %p875_p2 }
  0x97   : > { %885 = shalt.err (!%p882_p5)
}
  0x98   : > { %s886_s11 = scalar_lea.vmem %s1388_s21, 256  ;;  %s1068_s10 = smov [#allocation7]  }
  0x99   : > { %p887_p9 = scmp.ne.s32.totalorder %s1388_s21, %s886_s11  ;;  %s891_s1 = sshll.u32 %s1068_s10, 4  ;;  %s892_s1 = int_to_ptr.vmem [resolvable:$false] %s891_s1 }
  0x9a   : > { %s893_s0 = scalar_lea.vmem %s892_s1, 512  ;;  %p894_p12 = scmp.lt.s32.totalorder %s1388_s21, %s892_s1 }
  0x9b   : > { %p889_p8 = pnand %p887_p9, %p843_p7  ;;  %p895_p1 = scmp.lt.s32.totalorder %s893_s0, %s886_s11 }
  0x9d   : > { %p890_p4 = pneg %p889_p8  ;;  %p896_p6 = por %p895_p1, %p894_p12 }
  0x9f   : > { %p897_p11 = pnand %p896_p6, %p890_p4 }
  0xa1   : > { %900 = shalt.err (!%p897_p11)
}
  0xa2   : > { %654 = dma.hbm_to_vmem [thread:$0]  (!%p1347_p3), %s1354_s6, 256, %s1388_s21, %s1207_s8, %s1066_s3, %s1066_s3, %s1067_s24  }
  0xa3   : > { %p1581_p7 = scmp.ne.s32.totalorder %s1568_s14, 0 }
  0xa4   : > { %s259_s9 = sand.u32 (!%p1581_p7), 1, %s1035_s22   ;;  %p1582_p2 = scmp.ne.s32.totalorder (!%p1581_p7), %s1562_s26, 0 }
  0xa5   : > { %257 = sbr.rel (%p1581_p7) target bundleno = 639 (0x27f), region = 36  ;;  %s1420_s15 = sshll.u32 (!%p1581_p7), %s259_s9, 4 }
  0xa6   : > { %s260_s4 = scalar_lea.sflag (!%p1581_p7), [#allocation3], %s259_s9  ;;  %s263_s13 = scalar_lea.vmem (!%p1581_p7), [#allocation2], %s1420_s15 }
  0xac   : > { %986 = dma.done.wait (%p1582_p2), %s260_s4, 256  }
  0xad   : > { %988 = vsyncadd (%p1582_p2), %s260_s4, 4294967040  ;;  %s268_s8 = sand.u32 1, %s1236_s12   ;;  %s270_s20 = sand.u32 1, %s1023_s19  }
  0xae   : > { %s598_s14 = sshll.u32 %s270_s20, 3  ;;  %s269_s6 = scalar_lea.sflag [#allocation6], %s268_s8 }
  0xaf   : > { %s272_s3 = scalar_lea.vmem [#allocation5], %s598_s14  ;;  %p1583_p3 = scmp.ne.s32.totalorder %s1563_s29, 0 }
  0xb1   : > { %990 = dma.done.wait (%p1583_p3), %s269_s6, 128  }
  0xb2   : > { %992 = vsyncadd (%p1583_p3), %s269_s6, 4294967168  ;;  %s281_s24 = scalar_lea.vmem [#allocation7], %s1420_s15 }
  0xb3   : > { %994 = dma.done.wait (%p1582_p2), %s269_s6, 256  }
  0xb4   : > { %996 = vsyncadd (%p1582_p2), %s269_s6, 4294967040  ;;  %p1584_p13 = scmp.eq.s32.totalorder %s1236_s12, 0 }
  0xb6   : > { %998 = dma.done.wait (%p1584_p13), [#allocation9], 64   ;;  %p1585_p0 = pmov %p1584_p13 }
  0xb7   : > { %v1069_v0 = vmov 0.0   ;;  %vm1070_vm0 = vmmov 0   ;;  %v324_v1 = vld [vmem:[%s263_s13] sm:$0xff]  ;;  %v325_v2 = vld [vmem:[%s263_s13 + $0x8] sm:$0xff]  ;;  %vm332_vm1 = vcmask 130048   ;;  %s1586_s26 = sld [smem:[#allocation18_spill]] }
  0xb8   : > { %1000 = vsyncadd (%p1585_p0), [#allocation9], 4294967232  ;;  %617 = vmatprep.subr.bf16.mxu0 %v1069_v0  ;;  %619 = vmatprep.mubr.msk.bf16.mxu0 %vm1070_vm0, %v1069_v0  ;;  %v326_v3 = vpack.c.bf16 %v325_v2, %v324_v1  ;;  %v782_v4 = vld [vmem:[%s272_s3] sm:$0xff]   ;;  %v379_v8 = vld [vmem:[%s281_s24] sm:$0xff]  ;;  %s317_s12 = sand.u32 1, %s1011_s16   ;;  %s1587_s21 = sld [smem:[#allocation23_spill]] }
  0xb9   : > { %623 = vmatprep.subr.bf16.mxu1 %v1069_v0  ;;  %625 = vmatprep.mubr.msk.bf16.mxu1 %vm1070_vm0, %v1069_v0  ;;  %v380_v10 = vld [vmem:[%s281_s24 + $0x8] sm:$0xff]  ;;  %v383_v16 = vld [vmem:[#allocation8] sm:$0xf]  ;;  %s601_s29 = sshll.u32 %s317_s12, 3  ;;  %s606_s7 = sshll.u32 %s1047_s25, 1  ;;  %vm428_vm2 = vcmask 523264  }
  0xba   : > { %618 = vmatpush3.bf16.msra.mxu0 %v326_v3  ;;  %s319_s11 = scalar_lea.vmem [#allocation10], %s601_s29  ;;  %s1588_s9 = sld [smem:[#allocation29_spill]] }
  0xbb   : > { %s446_s10 = sshll.u32 %s319_s11, 4  ;;  %s431_s25 = scalar_lea.sflag [#allocation4], %s317_s12  ;;  %s1450_s10 = int_to_ptr.vmem [resolvable:$true] %s446_s10 }
  0xbc   : > { %s901_s4 = scalar_lea.vmem %s1450_s10, 128  ;;  %s1071_s13 = smov [#allocation10]  }
  0xbd   : > { %620 = vmatmul.mubr.msk.bf16.vlgmr.msra.gmra.mrb[0].mxu0 %vm332_vm1, %v782_v4  ;;  %s442_s5 = sadd.s32 %s1586_s26, %s606_s7  ;;  %p902_p10 = scmp.ne.s32.totalorder %s1450_s10, %s901_s4 }
  0xbe   : > { %s607_s27 = sshll.u32 %s442_s5, 7  ;;  %p1589_p5 = scmp.ne.s32.totalorder %s1587_s21, 0 }
  0xbf   : > { %s905_s8 = sshll.u32 %s1071_s13, 4  ;;  %s906_s8 = int_to_ptr.vmem [resolvable:$false] %s905_s8 }
  0xc0   : > { %s1448_s15 = scalar_lea.hbm %s1588_s9, %s607_s27  ;;  %p903_p9 = pnand %p902_p10, %p1589_p5 }
  0xc1   : > { %s907_s20 = scalar_lea.vmem %s906_s8, 256  ;;  %p908_p4 = scmp.lt.s32.totalorder %s1450_s10, %s906_s8 }
  0xc2   : > { %p904_p8 = pneg %p903_p9  ;;  %p909_p12 = scmp.lt.s32.totalorder %s907_s20, %s901_s4 }
  0xc4   : > { %p910_p1 = por %p909_p12, %p908_p4 }
  0xc6   : > { %p911_p6 = pnand %p910_p1, %p904_p8 }
 0x190   : > { %v370_v5 = vpop.f32.mrb[0].mxu0 }
 0x191   : > { %v377_v6 = vmax.f32 %v370_v5, 0.0  ;;  %v621_v7 = vpop.f32.mrb[1].mxu0 }
 0x192   : > { %v373_v9 = vpop.f32.mrb[2].mxu0 }
 0x193   : > { %v378_v11 = vmax.f32 %v373_v9, 0.0  ;;  %v622_v12 = vpop.f32.mrb[3].mxu0  ;;  %v381_v13 = vmul.f32 %v379_v8, %v377_v6 }
 0x195   : > { %v382_v14 = vmul.f32 %v380_v10, %v378_v11 }
 0x197   : > { %v384_v15 = vpack.c.bf16 %v382_v14, %v381_v13 }
 0x199   : > { %624 = vmatpush3.bf16.msra.mxu1 %v384_v15 }
 0x19c   : > { %626 = vmatmul.mubr.msk.bf16.vlgmr.msra.gmra.mrb[0].mxu1 %vm332_vm1, %v383_v16 }
 0x26f   : > { %v422_v17 = vpop.f32.mrb[0].mxu1 }
 0x270   : > { %429 = vst.msk [vmem:[%s319_s11] sm:$0xff] %vm428_vm2, %v422_v17  ;;  %v627_v18 = vpop.f32.mrb[1].mxu1 }
 0x271   : > { %v425_v19 = vpop.f32.mrb[2].mxu1 }
 0x272   : > { %914 = shalt.err (!%p911_p6)
}
 0x273   : > { %s915_s14 = scalar_lea.hbm %s1448_s15, 128  ;;  %s919_s24 = scalar_lea.hbm %s1588_s9, 512 }
 0x274   : > { %p916_p11 = scmp.ne.s32.totalorder %s1448_s15, %s915_s14  ;;  %p920_p3 = scmp.lt.u32.totalorder %s1448_s15, %s1588_s9 }
 0x275   : > { %p921_p13 = scmp.lt.u32.totalorder %s919_s24, %s915_s14  ;;  %p923_p10 = scmp.lt.u32.totalorder %s915_s14, %s1448_s15 }
 0x276   : > { %p917_p7 = pnand %p916_p11, %p1589_p5 }
 0x277   : > { %p922_p0 = por %p921_p13, %p920_p3 }
 0x278   : > { %p918_p2 = pneg %p917_p7 }
 0x279   : > { %p924_p9 = por %p923_p10, %p922_p0 }
 0x27b   : > { %p925_p8 = pnand %p924_p9, %p918_p2 }
 0x27d   : > { %928 = shalt.err (!%p925_p8)
}
 0x27e   : > { %639 = dma.vmem_to_hbm [thread:$0]  (%p1589_p5), %s1450_s10, 128, %s1448_s15, %s431_s25   ;;  %v628_v20 = vpop.f32.mrb[3].mxu1 }
 0x27f PF: > { %s1590_s29 = sld [smem:[#allocation16_spill]]  ;;  %s1591_s7 = sld [smem:[#allocation24_spill]] }
 0x280   : > { %p662_p4 = scmp.ge.s32.totalorder %s1059_s28, 2 }
 0x285   : > { %s458_s5 = sand.u32 1, %s1590_s29   ;;  %p1592_p12 = scmp.ne.s32.totalorder %s1591_s7, 0 }
 0x286   : > { %s459_s27 = scalar_lea.sflag [#allocation4], %s458_s5 }
 0x287   : > { %p656_p1 = pnand %p662_p4, %p1592_p12 }
 0x289   : > { %1002 = dma.done.wait (!%p656_p1), %s459_s27, 128  }
 0x28a   : > { %1004 = vsyncadd (!%p656_p1), %s459_s27, 4294967168  ;;  %s24_s28 = sadd.s32 1, %s1059_s28   ;;  %s1594_s21 = sld [smem:[#allocation17_spill]] }
 0x28b   : > { %p1478_p6 = scmp.ge.s32.totalorder %s24_s28, 6   ;;  %s1595_s20 = sld [smem:[#allocation22_spill]] }
 0x28c   : > { %s1596_s10 = smov %s1336_s18  ;;  %s1597_s24 = sld [smem:[#allocation19_spill]] }
 0x28d   : > { %s1598_s25 = sld [smem:[#allocation20_spill]]  ;;  %s1599_s26 = sld [smem:[#allocation21_spill]] }
 0x28e   : > { %s1600_s27 = sld [smem:[#allocation25_spill]]  ;;  %s1601_s15 = smov %s1011_s16 }
 0x28f   : > { %s1602_s16 = smov %s1015_s17  ;;  %s1603_s17 = smov %s1341_s30 }
 0x290   : > { %s1604_s18 = smov %s1023_s19  ;;  %s1605_s19 = smov %s1594_s21 }
 0x291   : > { %s1606_s21 = smov %s1035_s22  ;;  %s1607_s22 = smov %s1039_s23 }
 0x292   : > { %s1608_s23 = smov %s1596_s10  ;;  %23 = sbr.rel (!%p1478_p6) target bundleno = 18 (0x12), region = 109 }
 0x299   :  { %464 = vsyncpa [#allocation3], 1 }
 0x29a   :  { %466 = vsyncpa [#allocation3 + $0x1], 1 }
 0x29b   :  { %467 = vsyncpa [#allocation6], 1 }
 0x29c   :  { %469 = vsyncpa [#allocation6 + $0x1], 1 }
 0x29d   :  { %470 = vsyncpa [#allocation9], 1 }
 0x29e   :  { %471 = vsyncpa [#allocation4], 1 }
 0x29f   :  { %473 = vsyncpa [#allocation4 + $0x1], 1 }

// kernel: avse4_forward.7
= control target key start
LH: loop header
LB: loop body
LE: loop exit
PB: predicated region body
PF: predicated region fallthrough
CT: control target
= control target key end

     0   :  { %s4057_s0 = inlined_call_operand.hbm [shape: f32[2,16,64], index: 0, kind: input, shape index: {}]   ;;  %s4058_s1 = inlined_call_operand.hbm [shape: bf16[2,16,64], index: 1, kind: input, shape index: {}]   ;;  %s4059_s2 = inlined_call_operand.hbm [shape: bf16[16,16], index: 2, kind: input, shape index: {}]   ;;  %s4060_s3 = inlined_call_operand.hbm [shape: bf16[16,16], index: 3, kind: input, shape index: {}]   ;;  %s4061_s4 = inlined_call_operand.hbm [shape: bf16[2,32,16], index: 4, kind: input, shape index: {}]   ;;  %s4062_s5 = inlined_call_operand.hbm [shape: f32[2,32,1], index: 5, kind: input, shape index: {}]   ;;  %s4063_s6 = inlined_call_operand.hbm [shape: f32[2,32,1], index: 6, kind: input, shape index: {}]   ;;  %s4064_s7 = inlined_call_operand.hbm [shape: f32[2,32,3], index: 7, kind: input, shape index: {}]   ;;  %s4065_s8 = inlined_call_operand.hbm [shape: f32[2,32,1], index: 8, kind: input, shape index: {}]   ;;  %s4066_s9 = inlined_call_operand.hbm [shape: f32[2,32,1], index: 9, kind: input, shape index: {}]   ;;  %s4067_s10 = inlined_call_operand.hbm [shape: bf16[2,16,32], index: 10, kind: input, shape index: {}]   ;;  %s4068_s11 = inlined_call_operand.hbm [shape: f32[2,1,1], index: 11, kind: input, shape index: {}, may-alias: {11,12}]   ;;  %s4069_s12 = inlined_call_operand.hbm [shape: f32[2,1,1], index: 12, kind: input, shape index: {}, may-alias: {11,12}]   ;;  %s4070_s13 = inlined_call_operand.hbm [shape: f32[2,16,64], index: 13, kind: output, shape index: {}]  }
   0x1   :  { %4089 = sst [smem:[#allocation36_spill]] %s4057_s0 }
   0x2   :  { %4090 = sst [smem:[#allocation37_spill]] %s4058_s1 }
   0x3   :  { %4091 = sst [smem:[#allocation38_spill]] %s4059_s2 }
   0x4   :  { %4092 = sst [smem:[#allocation39_spill]] %s4060_s3 }
   0x5   :  { %4093 = sst [smem:[#allocation40_spill]] %s4061_s4 }
   0x6   :  { %4094 = sst [smem:[#allocation41_spill]] %s4062_s5 }
   0x7   :  { %4095 = sst [smem:[#allocation42_spill]] %s4063_s6 }
   0x8   :  { %4096 = sst [smem:[#allocation43_spill]] %s4064_s7 }
   0x9   :  { %4097 = sst [smem:[#allocation44_spill]] %s4065_s8 }
   0xa   :  { %4098 = sst [smem:[#allocation45_spill]] %s4066_s9 }
   0xb   :  { %4099 = sst [smem:[#allocation46_spill]] %s4067_s10 }
   0xc   :  { %4100 = sst [smem:[#allocation47_spill]] %s4068_s11 }
   0xd   :  { %4101 = sst [smem:[#allocation48_spill]] %s4070_s13 }
   0xe   :  { %18 = vsyncpa [#allocation4], 0 }
   0xf   :  { %20 = vsyncpa [#allocation4 + $0x1], 0 }
  0x10   :  { %21 = vsyncpa [#allocation7], 0 }
  0x11   :  { %23 = vsyncpa [#allocation7 + $0x1], 0 }
  0x12   :  { %24 = vsyncpa [#allocation10], 0 }
  0x13   :  { %25 = vsyncpa [#allocation13], 0 }
  0x14   :  { %26 = vsyncpa [#allocation16], 0 }
  0x15   :  { %27 = vsyncpa [#allocation19], 0 }
  0x16   :  { %28 = vsyncpa [#allocation22], 0 }
  0x17   :  { %29 = vsyncpa [#allocation5], 0 }
  0x18   :  { %31 = vsyncpa [#allocation5 + $0x1], 0  ;;  %s3208_s25 = smov 0   ;;  %s3210_s26 = smov 0  }
  0x19   :  { %s3212_s27 = smov 0   ;;  %s3214_s28 = smov 0  }
  0x1a LB: > { %s3106_s29 = smov [#allocation8]   ;;  %s3229_s14 = sadd.s32 4294967295, %s3104_s28   ;;  %s3104_s28 = sphi %s3214_s28, %s4154_s28   ;;  %s3100_s27 = sphi %s3212_s27, %s4153_s27   ;;  %s3096_s26 = sphi %s3210_s26, %s4152_s26   ;;  %s3092_s25 = sphi %s3208_s25, %s4151_s25  }
  0x1b   : > { %s363_s30 = sshll.u32 %s3106_s29, 4  ;;  %4102 = sst [smem:[#allocation34_spill]] %s3229_s14  ;;  %s3234_s30 = int_to_ptr.vmem [resolvable:$true] %s363_s30 }
  0x1c   : > { %p2280_p0 = scmp.ge.s32.totalorder %s3104_s28, 1  ;;  %p4082_p1 = scmp.eq.s32.totalorder %s3229_s14, 0 }
  0x1d   : > { %p351_p2 = scmp.lt.s32.totalorder %s3104_s28, 3  ;;  %s3107_s16 = smov [#allocation9]  }
  0x1e   : > { %s376_s17 = sshll.u32 %s3107_s16, 4  ;;  %s3108_s19 = smov [#allocation12]   ;;  %s3249_s17 = int_to_ptr.vmem [resolvable:$true] %s376_s17 }
  0x1f   : > { %p3236_p3 = pnand %p2280_p0, %p351_p2  ;;  %s402_s20 = sshll.u32 %s3108_s19, 4  ;;  %s3251_s20 = int_to_ptr.vmem [resolvable:$true] %s402_s20 }
  0x20   : > { %s4106_s2 = sld [smem:[#allocation38_spill]] }
  0x21   : > { %s4103_s15 = scalar_select %p3236_p3, 1, 0 }
  0x22   : > { %p2477_p5 = pneg %p3236_p3 }
  0x23   : > { %4104 = sst [smem:[#allocation35_spill]] %s4103_s15 }
  0x24   : > { %p3245_p6 = pnand %p2477_p5, %p4082_p1 }
  0x26   : > { %s2642_s23 = scalar_lea.hbm %s4106_s2, 128  ;;  %p3261_p8 = pneg %p3245_p6 }
  0x27   : > { %p2643_p7 = scmp.ne.s32.totalorder %s4106_s2, %s2642_s23  ;;  %p2649_p11 = scmp.lt.u32.totalorder %s2642_s23, %s4106_s2 }
  0x29   : > { %p2645_p9 = pnand %p3261_p8, %p2643_p7 }
  0x2b   : > { %p2646_p10 = pneg %p2645_p9 }
  0x2d   : > { %p2651_p12 = pnand %p2649_p11, %p2646_p10 }
  0x2f   : > { %2654 = shalt.err (!%p2651_p12)
}
  0x30   : > { %s2655_s21 = scalar_lea.vmem %s3234_s30, 128  ;;  %p2663_p5 = scmp.lt.s32.totalorder %s3234_s30, %s3234_s30 }
  0x31   : > { %p2656_p13 = scmp.ne.s32.totalorder %s3234_s30, %s2655_s21  ;;  %p2664_p4 = scmp.lt.s32.totalorder %s2655_s21, %s2655_s21 }
  0x33   : > { %p2658_p0 = pnand %p2656_p13, %p3261_p8  ;;  %p2665_p7 = por %p2664_p4, %p2663_p5 }
  0x35   : > { %p2659_p2 = pneg %p2658_p0 }
  0x37   : > { %p2666_p9 = pnand %p2665_p7, %p2659_p2 }
  0x39   : > { %2669 = shalt.err (!%p2666_p9)
}
  0x3a   : > { %s4078_s22 = smov 64   ;;  %s4080_s13 = smov 4  }
  0x3b   : > { %2480 = dma.hbm_to_vmem [thread:$0]  (!%p3245_p6), %s4106_s2, 128, %s3234_s30, [#allocation7], %s4078_s22, %s4078_s22, %s4080_s13  }
  0x3c   : > { %s4108_s3 = sld [smem:[#allocation39_spill]] }
  0x42   : > { %s2670_s21 = scalar_lea.hbm %s4108_s3, 128 }
  0x43   : > { %p2671_p4 = scmp.ne.s32.totalorder %s4108_s3, %s2670_s21  ;;  %p2677_p12 = scmp.lt.u32.totalorder %s2670_s21, %s4108_s3 }
  0x45   : > { %p2673_p10 = pnand %p2671_p4, %p3261_p8 }
  0x47   : > { %p2674_p11 = pneg %p2673_p10 }
  0x49   : > { %p2679_p13 = pnand %p2677_p12, %p2674_p11 }
  0x4b   : > { %2682 = shalt.err (!%p2679_p13)
}
  0x4c   : > { %s2683_s30 = scalar_lea.vmem %s3249_s17, 128  ;;  %p2691_p7 = scmp.lt.s32.totalorder %s3249_s17, %s3249_s17 }
  0x4d   : > { %p2684_p0 = scmp.ne.s32.totalorder %s3249_s17, %s2683_s30  ;;  %p2692_p9 = scmp.lt.s32.totalorder %s2683_s30, %s2683_s30 }
  0x4f   : > { %p2686_p2 = pnand %p2684_p0, %p3261_p8  ;;  %p2693_p4 = por %p2692_p9, %p2691_p7 }
  0x51   : > { %p2687_p5 = pneg %p2686_p2 }
  0x53   : > { %p2694_p10 = pnand %p2693_p4, %p2687_p5 }
  0x55   : > { %2697 = shalt.err (!%p2694_p10)
}
  0x56   : > { %2483 = dma.hbm_to_vmem [thread:$0]  (!%p3245_p6), %s4108_s3, 128, %s3249_s17, [#allocation10], %s4078_s22, %s4078_s22, %s4080_s13  }
  0x57   : > { %s4109_s5 = sld [smem:[#allocation41_spill]] }
  0x5d   : > { %s2698_s23 = scalar_lea.hbm %s4109_s5, 1024 }
  0x5e   : > { %p2699_p11 = scmp.ne.s32.totalorder %s4109_s5, %s2698_s23  ;;  %p2705_p0 = scmp.lt.u32.totalorder %s2698_s23, %s4109_s5 }
  0x60   : > { %p2701_p12 = pnand %p2699_p11, %p3261_p8 }
  0x62   : > { %p2702_p13 = pneg %p2701_p12 }
  0x64   : > { %p2707_p2 = pnand %p2705_p0, %p2702_p13 }
  0x66   : > { %2710 = shalt.err (!%p2707_p2)
}
  0x67   : > { %s2711_s17 = scalar_lea.vmem %s3251_s20, 1024  ;;  %p2719_p4 = scmp.lt.s32.totalorder %s3251_s20, %s3251_s20 }
  0x68   : > { %p2712_p5 = scmp.ne.s32.totalorder %s3251_s20, %s2711_s17  ;;  %p2720_p10 = scmp.lt.s32.totalorder %s2711_s17, %s2711_s17 }
  0x6a   : > { %p2714_p7 = pnand %p2712_p5, %p3261_p8  ;;  %p2721_p11 = por %p2720_p10, %p2719_p4 }
  0x6c   : > { %p2715_p9 = pneg %p2714_p7 }
  0x6e   : > { %p2722_p12 = pnand %p2721_p11, %p2715_p9 }
  0x70   : > { %2725 = shalt.err (!%p2722_p12)
}
  0x71   : > { %s4086_s30 = smov 128   ;;  %s4087_s0 = smov 8  }
  0x72   : > { %2489 = dma.hbm_to_vmem [thread:$0]  (!%p3245_p6), %s4109_s5, 1024, %s3251_s20, [#allocation13], %s4086_s30, %s4086_s30, %s4087_s0  }
  0x73   : > { %s3113_s15 = smov [#allocation15]   ;;  %s3114_s24 = smov [#allocation18]  }
  0x74   : > { %s428_s23 = sshll.u32 %s3113_s15, 4  ;;  %s454_s29 = sshll.u32 %s3114_s24, 4  ;;  %s429_s23 = int_to_ptr.vmem [resolvable:$true] %s428_s23  ;;  %s455_s29 = int_to_ptr.vmem [resolvable:$true] %s454_s29 }
  0x75   : > { %s4110_s7 = sld [smem:[#allocation43_spill]] }
  0x7b   : > { %s2726_s17 = scalar_lea.hbm %s4110_s7, 1024 }
  0x7c   : > { %p2727_p13 = scmp.ne.s32.totalorder %s4110_s7, %s2726_s17  ;;  %p2733_p5 = scmp.lt.u32.totalorder %s2726_s17, %s4110_s7 }
  0x7e   : > { %p2729_p0 = pnand %p2727_p13, %p3261_p8 }
  0x80   : > { %p2730_p2 = pneg %p2729_p0 }
  0x82   : > { %p2735_p7 = pnand %p2733_p5, %p2730_p2 }
  0x84   : > { %2738 = shalt.err (!%p2735_p7)
}
  0x85   : > { %s2739_s20 = scalar_lea.vmem %s429_s23, 1024  ;;  %p2747_p11 = scmp.lt.s32.totalorder %s429_s23, %s429_s23 }
  0x86   : > { %p2740_p9 = scmp.ne.s32.totalorder %s429_s23, %s2739_s20  ;;  %p2748_p12 = scmp.lt.s32.totalorder %s2739_s20, %s2739_s20 }
  0x88   : > { %p2742_p4 = pnand %p2740_p9, %p3261_p8  ;;  %p2749_p1 = por %p2748_p12, %p2747_p11 }
  0x8a   : > { %p2743_p10 = pneg %p2742_p4 }
  0x8c   : > { %p2750_p3 = pnand %p2749_p1, %p2743_p10 }
  0x8e   : > { %2753 = shalt.err (!%p2750_p3)
}
  0x8f   : > { %2495 = dma.hbm_to_vmem [thread:$0]  (!%p3245_p6), %s4110_s7, 1024, %s429_s23, [#allocation16], %s4086_s30, %s4086_s30, %s4087_s0  }
  0x90   : > { %s4111_s9 = sld [smem:[#allocation45_spill]] }
  0x96   : > { %s2754_s1 = scalar_lea.hbm %s4111_s9, 1024 }
  0x97   : > { %p2755_p1 = scmp.ne.s32.totalorder %s4111_s9, %s2754_s1  ;;  %p2761_p0 = scmp.lt.u32.totalorder %s2754_s1, %s4111_s9 }
  0x99   : > { %p2757_p3 = pnand %p2755_p1, %p3261_p8 }
  0x9b   : > { %p2758_p13 = pneg %p2757_p3 }
  0x9d   : > { %p2763_p2 = pnand %p2761_p0, %p2758_p13 }
  0x9f   : > { %2766 = shalt.err (!%p2763_p2)
}
  0xa0   : > { %s2767_s21 = scalar_lea.vmem %s455_s29, 1024  ;;  %p2775_p4 = scmp.lt.s32.totalorder %s455_s29, %s455_s29 }
  0xa1   : > { %p2768_p5 = scmp.ne.s32.totalorder %s455_s29, %s2767_s21  ;;  %p2776_p10 = scmp.lt.s32.totalorder %s2767_s21, %s2767_s21 }
  0xa3   : > { %p2770_p7 = pnand %p2768_p5, %p3261_p8  ;;  %p2777_p11 = por %p2776_p10, %p2775_p4 }
  0xa5   : > { %p2771_p9 = pneg %p2770_p7 }
  0xa7   : > { %p2778_p12 = pnand %p2777_p11, %p2771_p9 }
  0xa9   : > { %2781 = shalt.err (!%p2778_p12)
}
  0xaa   : > { %2501 = dma.hbm_to_vmem [thread:$0]  (!%p3245_p6), %s4111_s9, 1024, %s455_s29, [#allocation19], %s4086_s30, %s4086_s30, %s4087_s0  }
  0xab   : > { %s3115_s20 = smov [#allocation21]   ;;  %s4112_s11 = sld [smem:[#allocation47_spill]] }
  0xac   : > { %s480_s2 = sshll.u32 %s3115_s20, 4  ;;  %s481_s2 = int_to_ptr.vmem [resolvable:$true] %s480_s2 }
  0xb1   : > { %s2782_s13 = scalar_lea.hbm %s4112_s11, 32 }
  0xb2   : > { %p2783_p1 = scmp.ne.s32.totalorder %s4112_s11, %s2782_s13  ;;  %p2789_p0 = scmp.lt.u32.totalorder %s2782_s13, %s4112_s11 }
  0xb4   : > { %p2785_p3 = pnand %p2783_p1, %p3261_p8 }
  0xb6   : > { %p2786_p13 = pneg %p2785_p3 }
  0xb8   : > { %p2791_p2 = pnand %p2789_p0, %p2786_p13 }
  0xba   : > { %2794 = shalt.err (!%p2791_p2)
}
  0xbb   : > { %s2795_s29 = scalar_lea.vmem %s481_s2, 32  ;;  %p2803_p4 = scmp.lt.s32.totalorder %s481_s2, %s481_s2 }
  0xbc   : > { %p2796_p5 = scmp.ne.s32.totalorder %s481_s2, %s2795_s29  ;;  %p2804_p10 = scmp.lt.s32.totalorder %s2795_s29, %s2795_s29 }
  0xbe   : > { %p2798_p7 = pnand %p2796_p5, %p3261_p8  ;;  %p2805_p11 = por %p2804_p10, %p2803_p4 }
  0xc0   : > { %p2799_p9 = pneg %p2798_p7 }
  0xc2   : > { %p2806_p12 = pnand %p2805_p11, %p2799_p9 }
  0xc4   : > { %2809 = shalt.err (!%p2806_p12)
}
  0xc5   : > { %s4084_s19 = smov 16   ;;  %s4085_s21 = smov 1  }
  0xc6   : > { %2507 = dma.hbm_to_vmem [thread:$0]  (!%p3245_p6), %s4112_s11, 32, %s481_s2, [#allocation22], %s4084_s19, %s4084_s19, %s4085_s21  }
  0xc7   : > { %s3118_s20 = smov [#allocation11]   ;;  %s3119_s22 = smov [#allocation14]  }
  0xc8   : > { %s389_s3 = sshll.u32 %s3118_s20, 4  ;;  %s415_s13 = sshll.u32 %s3119_s22, 4  ;;  %s390_s3 = int_to_ptr.vmem [resolvable:$true] %s389_s3  ;;  %s3400_s13 = int_to_ptr.vmem [resolvable:$true] %s415_s13 }
  0xc9   : > { %s4113_s4 = sld [smem:[#allocation40_spill]] }
  0xcf   : > { %s2810_s15 = scalar_lea.hbm %s4113_s4, 512 }
  0xd0   : > { %p2811_p1 = scmp.ne.s32.totalorder %s4113_s4, %s2810_s15  ;;  %p2817_p0 = scmp.lt.u32.totalorder %s2810_s15, %s4113_s4 }
  0xd2   : > { %p2813_p3 = pnand %p2811_p1, %p3261_p8 }
  0xd4   : > { %p2814_p13 = pneg %p2813_p3 }
  0xd6   : > { %p2819_p2 = pnand %p2817_p0, %p2814_p13 }
  0xd8   : > { %2822 = shalt.err (!%p2819_p2)
}
  0xd9   : > { %s2823_s17 = scalar_lea.vmem %s390_s3, 512  ;;  %p2831_p4 = scmp.lt.s32.totalorder %s390_s3, %s390_s3 }
  0xda   : > { %p2824_p5 = scmp.ne.s32.totalorder %s390_s3, %s2823_s17  ;;  %p2832_p10 = scmp.lt.s32.totalorder %s2823_s17, %s2823_s17 }
  0xdc   : > { %p2826_p7 = pnand %p2824_p5, %p3261_p8  ;;  %p2833_p11 = por %p2832_p10, %p2831_p4 }
  0xde   : > { %p2827_p9 = pneg %p2826_p7 }
  0xe0   : > { %p2834_p12 = pnand %p2833_p11, %p2827_p9 }
  0xe2   : > { %2837 = shalt.err (!%p2834_p12)
}
  0xe3   : > { %s4114_s20 = smov 4   ;;  %s4115_s22 = smov 64  }
  0xe4   : > { %2486 = dma.hbm_to_vmem [thread:$0]  (!%p3245_p6), %s4113_s4, 512, %s390_s3, [#allocation10], %s4115_s22, %s4115_s22, %s4114_s20  }
  0xe5   : > { %s4116_s6 = sld [smem:[#allocation42_spill]] }
  0xeb   : > { %s2838_s29 = scalar_lea.hbm %s4116_s6, 1024 }
  0xec   : > { %p2839_p1 = scmp.ne.s32.totalorder %s4116_s6, %s2838_s29  ;;  %p2845_p0 = scmp.lt.u32.totalorder %s2838_s29, %s4116_s6 }
  0xee   : > { %p2841_p3 = pnand %p2839_p1, %p3261_p8 }
  0xf0   : > { %p2842_p13 = pneg %p2841_p3 }
  0xf2   : > { %p2847_p2 = pnand %p2845_p0, %p2842_p13 }
  0xf4   : > { %2850 = shalt.err (!%p2847_p2)
}
  0xf5   : > { %s2851_s3 = scalar_lea.vmem %s3400_s13, 1024  ;;  %p2859_p4 = scmp.lt.s32.totalorder %s3400_s13, %s3400_s13 }
  0xf6   : > { %p2852_p5 = scmp.ne.s32.totalorder %s3400_s13, %s2851_s3  ;;  %p2860_p10 = scmp.lt.s32.totalorder %s2851_s3, %s2851_s3 }
  0xf8   : > { %p2854_p7 = pnand %p2852_p5, %p3261_p8  ;;  %p2861_p11 = por %p2860_p10, %p2859_p4 }
  0xfa   : > { %p2855_p9 = pneg %p2854_p7 }
  0xfc   : > { %p2862_p12 = pnand %p2861_p11, %p2855_p9 }
  0xfe   : > { %2865 = shalt.err (!%p2862_p12)
}
  0xff   : > { %2492 = dma.hbm_to_vmem [thread:$0]  (!%p3245_p6), %s4116_s6, 1024, %s3400_s13, [#allocation13], %s4086_s30, %s4086_s30, %s4087_s0  }
 0x100   : > { %s3120_s14 = smov [#allocation17]   ;;  %s3121_s24 = smov [#allocation20]  }
 0x101   : > { %s441_s15 = sshll.u32 %s3120_s14, 4  ;;  %s467_s29 = sshll.u32 %s3121_s24, 4  ;;  %s442_s15 = int_to_ptr.vmem [resolvable:$true] %s441_s15  ;;  %s3449_s29 = int_to_ptr.vmem [resolvable:$true] %s467_s29 }
 0x102   : > { %s4117_s8 = sld [smem:[#allocation44_spill]] }
 0x108   : > { %s2866_s17 = scalar_lea.hbm %s4117_s8, 1024 }
 0x109   : > { %p2867_p1 = scmp.ne.s32.totalorder %s4117_s8, %s2866_s17  ;;  %p2873_p0 = scmp.lt.u32.totalorder %s2866_s17, %s4117_s8 }
 0x10b   : > { %p2869_p3 = pnand %p2867_p1, %p3261_p8 }
 0x10d   : > { %p2870_p13 = pneg %p2869_p3 }
 0x10f   : > { %p2875_p2 = pnand %p2873_p0, %p2870_p13 }
 0x111   : > { %2878 = shalt.err (!%p2875_p2)
}
 0x112   : > { %s2879_s1 = scalar_lea.vmem %s442_s15, 1024  ;;  %p2887_p4 = scmp.lt.s32.totalorder %s442_s15, %s442_s15 }
 0x113   : > { %p2880_p5 = scmp.ne.s32.totalorder %s442_s15, %s2879_s1  ;;  %p2888_p10 = scmp.lt.s32.totalorder %s2879_s1, %s2879_s1 }
 0x115   : > { %p2882_p7 = pnand %p2880_p5, %p3261_p8  ;;  %p2889_p11 = por %p2888_p10, %p2887_p4 }
 0x117   : > { %p2883_p9 = pneg %p2882_p7 }
 0x119   : > { %p2890_p12 = pnand %p2889_p11, %p2883_p9 }
 0x11b   : > { %2893 = shalt.err (!%p2890_p12)
}
 0x11c   : > { %2498 = dma.hbm_to_vmem [thread:$0]  (!%p3245_p6), %s4117_s8, 1024, %s442_s15, [#allocation16], %s4086_s30, %s4086_s30, %s4087_s0  }
 0x11d   : > { %s4118_s10 = sld [smem:[#allocation46_spill]] }
 0x123   : > { %s2894_s2 = scalar_lea.hbm %s4118_s10, 256 }
 0x124   : > { %p2895_p1 = scmp.ne.s32.totalorder %s4118_s10, %s2894_s2  ;;  %p2901_p0 = scmp.lt.u32.totalorder %s2894_s2, %s4118_s10 }
 0x126   : > { %p2897_p3 = pnand %p2895_p1, %p3261_p8 }
 0x128   : > { %p2898_p13 = pneg %p2897_p3 }
 0x12a   : > { %p2903_p2 = pnand %p2901_p0, %p2898_p13 }
 0x12c   : > { %2906 = shalt.err (!%p2903_p2)
}
 0x12d   : > { %s2907_s15 = scalar_lea.vmem %s3449_s29, 256  ;;  %p2915_p4 = scmp.lt.s32.totalorder %s3449_s29, %s3449_s29 }
 0x12e   : > { %p2908_p5 = scmp.ne.s32.totalorder %s3449_s29, %s2907_s15  ;;  %p2916_p10 = scmp.lt.s32.totalorder %s2907_s15, %s2907_s15 }
 0x130   : > { %p2910_p7 = pnand %p2908_p5, %p3261_p8  ;;  %p2917_p11 = por %p2916_p10, %p2915_p4 }
 0x132   : > { %p2911_p9 = pneg %p2910_p7 }
 0x134   : > { %p2918_p12 = pnand %p2917_p11, %p2911_p9 }
 0x136   : > { %2921 = shalt.err (!%p2918_p12)
}
 0x137   : > { %2504 = dma.hbm_to_vmem [thread:$0]  (!%p3245_p6), %s4118_s10, 256, %s3449_s29, [#allocation19], %s4115_s22, %s4115_s22, %s4114_s20  }
 0x138   : > { %s3122_s14 = smov [#allocation23]   ;;  %s2922_s17 = scalar_lea.hbm %s4069_s12, 32 }
 0x139   : > { %s493_s24 = sshll.u32 %s3122_s14, 4  ;;  %p2923_p1 = scmp.ne.s32.totalorder %s4069_s12, %s2922_s17  ;;  %s494_s24 = int_to_ptr.vmem [resolvable:$true] %s493_s24 }
 0x13a   : > { %p2929_p0 = scmp.lt.u32.totalorder %s2922_s17, %s4069_s12 }
 0x13b   : > { %p2925_p3 = pnand %p2923_p1, %p3261_p8 }
 0x13d   : > { %p2926_p13 = pneg %p2925_p3 }
 0x13f   : > { %p2931_p2 = pnand %p2929_p0, %p2926_p13 }
 0x141   : > { %2934 = shalt.err (!%p2931_p2)
}
 0x142   : > { %s2935_s29 = scalar_lea.vmem %s494_s24, 32  ;;  %p2943_p4 = scmp.lt.s32.totalorder %s494_s24, %s494_s24 }
 0x143   : > { %p2936_p5 = scmp.ne.s32.totalorder %s494_s24, %s2935_s29  ;;  %p2944_p10 = scmp.lt.s32.totalorder %s2935_s29, %s2935_s29 }
 0x145   : > { %p2938_p7 = pnand %p2936_p5, %p3261_p8  ;;  %p2945_p11 = por %p2944_p10, %p2943_p4 }
 0x147   : > { %p2939_p9 = pneg %p2938_p7 }
 0x149   : > { %p2946_p12 = pnand %p2945_p11, %p2939_p9 }
 0x14b   : > { %2949 = shalt.err (!%p2946_p12)
}
 0x14c   : > { %s4119_s1 = smov 1   ;;  %s4120_s21 = smov 16  }
 0x14d   : > { %s4121_s16 = sld [smem:[#allocation34_spill]]  ;;  %s2279_s18 = sadd.s32 4294967294, %s3104_s28  }
 0x14e   : > { %2510 = dma.hbm_to_vmem [thread:$0]  (!%p3245_p6), %s4069_s12, 32, %s494_s24, [#allocation22], %s4120_s21, %s4120_s21, %s4119_s1  }
 0x14f   : > { %s3521_s2 = sadd.s32 1, %s3104_s28   ;;  %s44_s17 = sadd.s32 1, %s3100_s27 }
 0x150   : > { %s41_s3 = ssub.s32 %s3104_s28, %s3521_s2  ;;  %p51_p8 = scmp.ne.s32.totalorder %s3100_s27, %s3096_s26 }
 0x151   : > { %p42_p1 = scmp.eq.s32.totalorder %s41_s3, 0  ;;  %p52_p3 = scmp.eq.s32.totalorder %s3104_s28, 0 }
 0x152   : > { %p57_p13 = scmp.ne.s32.totalorder %s3096_s26, %s3092_s25  ;;  %p344_p9 = scmp.eq.s32.totalorder %s2279_s18, 1 }
 0x153   : > { %p338_p0 = scmp.eq.s32.totalorder %s4121_s16, 1  ;;  %p53_p2 = por %p52_p3, %p51_p8 }
 0x154   : > { %s3533_s19 = scalar_select %p42_p1, %s3100_s27, %s44_s17  }
 0x155   : > { %p4122_p5 = scmp.eq.s32.totalorder %s4121_s16, 0  ;;  %p3541_p6 = por %p338_p0, %p51_p8 }
 0x156   : > { %p2533_p4 = scmp.lt.s32.totalorder %s3104_s28, 2  ;;  %s3547_s15 = sand.u32 1, %s3100_s27  }
 0x157   : > { %p3537_p7 = por %p4122_p5, %p57_p13  ;;  %p3549_p10 = por %p344_p9, %p57_p13 }
 0x158   : > { %s4124_s13 = scalar_select %p3541_p6, 1, 0 }
 0x159   : > { %s4125_s29 = scalar_select %p3549_p10, 1, 0 }
 0x15a   : > { %s2293_s1 = sshll.u32 %s3547_s15, 4  ;;  %s2340_s21 = sshll.u32 %s3104_s28, 8 }
 0x15b   : > { %s4126_s16 = sld [smem:[#allocation36_spill]]  ;;  %s511_s18 = scalar_lea.vmem [#allocation3], %s2293_s1 }
 0x15c   : > { %s518_s3 = sshll.u32 %s511_s18, 4  ;;  %p3560_p11 = pnand %p2533_p4, %p53_p2  ;;  %s3564_s3 = int_to_ptr.vmem [resolvable:$true] %s518_s3 }
 0x15d   : > { %s508_s4 = scalar_lea.sflag [#allocation4], %s3547_s15 }
 0x15e   : > { %p2952_p8 = pneg %p3560_p11 }
 0x161   : > { %s3558_s17 = scalar_lea.hbm %s4126_s16, %s2340_s21  ;;  %s2955_s14 = scalar_lea.hbm %s4126_s16, 512 }
 0x162   : > { %s2950_s5 = scalar_lea.hbm %s3558_s17, 256  ;;  %p2956_p13 = scmp.lt.u32.totalorder %s3558_s17, %s4126_s16 }
 0x163   : > { %p2951_p12 = scmp.ne.s32.totalorder %s3558_s17, %s2950_s5  ;;  %p2957_p0 = scmp.lt.u32.totalorder %s2955_s14, %s2950_s5 }
 0x164   : > { %p2959_p5 = scmp.lt.u32.totalorder %s2950_s5, %s3558_s17 }
 0x165   : > { %p2953_p1 = pnand %p2952_p8, %p2951_p12  ;;  %p2958_p2 = por %p2957_p0, %p2956_p13 }
 0x167   : > { %p2954_p3 = pneg %p2953_p1  ;;  %p2960_p9 = por %p2959_p5, %p2958_p2 }
 0x169   : > { %p2961_p4 = pnand %p2960_p9, %p2954_p3 }
 0x16b   : > { %2964 = shalt.err (!%p2961_p4)
}
 0x16c   : > { %s2965_s0 = scalar_lea.vmem %s3564_s3, 256  ;;  %s3123_s1 = smov [#allocation3]  }
 0x16d   : > { %p2966_p12 = scmp.ne.s32.totalorder %s3564_s3, %s2965_s0  ;;  %s2970_s21 = sshll.u32 %s3123_s1, 4  ;;  %s2971_s21 = int_to_ptr.vmem [resolvable:$false] %s2970_s21 }
 0x16e   : > { %s2972_s23 = scalar_lea.vmem %s2971_s21, 512  ;;  %p2973_p6 = scmp.lt.s32.totalorder %s3564_s3, %s2971_s21 }
 0x16f   : > { %p2968_p1 = pnand %p2966_p12, %p2952_p8  ;;  %p2974_p13 = scmp.lt.s32.totalorder %s2972_s23, %s2965_s0 }
 0x171   : > { %p2969_p10 = pneg %p2968_p1  ;;  %p2975_p0 = por %p2974_p13, %p2973_p6 }
 0x173   : > { %p2976_p2 = pnand %p2975_p0, %p2969_p10 }
 0x175   : > { %2979 = shalt.err (!%p2976_p2)
}
 0x176   : > { %s4128_s5 = smov 8   ;;  %s4129_s14 = smov 128  }
 0x177   : > { %2514 = dma.hbm_to_vmem [thread:$0]  (!%p3560_p11), %s3558_s17, 256, %s3564_s3, %s508_s4, %s4129_s14, %s4129_s14, %s4128_s5  }
 0x178   : > { %s2296_s18 = sshll.u32 %s3547_s15, 3  ;;  %s2341_s1 = sshll.u32 %s3104_s28, 7 }
 0x179   : > { %s4130_s23 = sld [smem:[#allocation37_spill]]  ;;  %s532_s7 = scalar_lea.vmem [#allocation6], %s2296_s18 }
 0x17a   : > { %s539_s8 = sshll.u32 %s532_s7, 4  ;;  %s4131_s9 = sand.u32 1, %s3104_s28   ;;  %s3605_s8 = int_to_ptr.vmem [resolvable:$true] %s539_s8 }
 0x17b   : > { %s3609_s10 = scalar_lea.sflag [#allocation7], %s4131_s9 }
 0x17f   : > { %s3603_s6 = scalar_lea.hbm %s4130_s23, %s2341_s1  ;;  %s2985_s17 = scalar_lea.hbm %s4130_s23, 256 }
 0x180   : > { %s2980_s11 = scalar_lea.hbm %s3603_s6, 128  ;;  %p2986_p5 = scmp.lt.u32.totalorder %s3603_s6, %s4130_s23 }
 0x181   : > { %p2981_p6 = scmp.ne.s32.totalorder %s3603_s6, %s2980_s11  ;;  %p2987_p9 = scmp.lt.u32.totalorder %s2985_s17, %s2980_s11 }
 0x182   : > { %p2989_p12 = scmp.lt.u32.totalorder %s2980_s11, %s3603_s6 }
 0x183   : > { %p2983_p10 = pnand %p2981_p6, %p2952_p8  ;;  %p2988_p4 = por %p2987_p9, %p2986_p5 }
 0x185   : > { %p2984_p3 = pneg %p2983_p10  ;;  %p2990_p1 = por %p2989_p12, %p2988_p4 }
 0x187   : > { %p2991_p13 = pnand %p2990_p1, %p2984_p3 }
 0x189   : > { %2994 = shalt.err (!%p2991_p13)
}
 0x18a   : > { %s2995_s7 = scalar_lea.vmem %s3605_s8, 128  ;;  %s3124_s9 = smov [#allocation6]  }
 0x18b   : > { %p2996_p0 = scmp.ne.s32.totalorder %s3605_s8, %s2995_s7  ;;  %s3000_s14 = sshll.u32 %s3124_s9, 4  ;;  %s3001_s14 = int_to_ptr.vmem [resolvable:$false] %s3000_s14 }
 0x18c   : > { %s3002_s18 = scalar_lea.vmem %s3001_s14, 256  ;;  %p3003_p10 = scmp.lt.s32.totalorder %s3605_s8, %s3001_s14 }
 0x18d   : > { %p2998_p2 = pnand %p2996_p0, %p2952_p8  ;;  %p3004_p5 = scmp.lt.s32.totalorder %s3002_s18, %s2995_s7 }
 0x18f   : > { %p2999_p6 = pneg %p2998_p2  ;;  %p3005_p9 = por %p3004_p5, %p3003_p10 }
 0x191   : > { %p3006_p4 = pnand %p3005_p9, %p2999_p6 }
 0x193   : > { %3009 = shalt.err (!%p3006_p4)
}
 0x194   : > { %2517 = dma.hbm_to_vmem [thread:$0]  (!%p3560_p11), %s3603_s6, 128, %s3605_s8, %s3609_s10, %s4115_s22, %s4115_s22, %s4114_s20  }
 0x195   : > { %s4132_s11 = sld [smem:[#allocation35_spill]] }
 0x19b   : > { %p4133_p8 = scmp.ne.s32.totalorder %s4132_s11, 0 }
 0x19c   : > { %s3641_s1 = sand.u32 (!%p4133_p8), 1, %s3096_s26  }
 0x19d   : > { %551 = sbr.rel (%p4133_p8) target bundleno = 3517 (0xdbd), region = 72  ;;  %s2300_s0 = sshll.u32 (!%p4133_p8), %s3641_s1, 4 }
 0x19e   : > { %s554_s21 = scalar_lea.sflag (!%p4133_p8), [#allocation4], %s3641_s1  ;;  %s3647_s30 = scalar_lea.vmem (!%p4133_p8), [#allocation3], %s2300_s0 }
 0x1a4   : > { %3055 = dma.done.wait (%p3537_p7), %s554_s21, 256  }
 0x1a5   : > { %3057 = vsyncadd (%p3537_p7), %s554_s21, 4294967040  ;;  %s4134_s6 = sld [smem:[#allocation34_spill]]  ;;  %s2301_s10 = sshll.u32 %s3641_s1, 3 }
 0x1a6   : > { %s566_s22 = scalar_lea.vmem [#allocation6], %s2301_s10 }
 0x1ab   : > { %s562_s8 = sand.u32 1, %s4134_s6  }
 0x1ac   : > { %s563_s20 = scalar_lea.sflag [#allocation7], %s562_s8 }
 0x1ad   : > { %3059 = dma.done.wait (%p3537_p7), %s563_s20, 128  }
 0x1ae   : > { %3061 = vsyncadd (%p3537_p7), %s563_s20, 4294967168  ;;  %p4135_p11 = scmp.eq.s32.totalorder %s4134_s6, 0 }
 0x1b0   : > { %3063 = dma.done.wait (%p4135_p11), [#allocation7], 128   ;;  %p4136_p3 = pmov %p4135_p11 }
 0x1b2   : > { %3065 = vsyncadd (%p4136_p3), [#allocation7], 4294967168  ;;  %p4137_p12 = pmov %p4136_p3 }
 0x1b3   : > { %p4138_p1 = pmov %p4136_p3 }
 0x1b4   : > { %3067 = dma.done.wait (%p4137_p12), [#allocation10], 640  }
 0x1b5   : > { %3069 = vsyncadd (%p4138_p1), [#allocation10], 4294966656  ;;  %p4139_p13 = pmov %p4138_p1 }
 0x1b6   : > { %p4140_p0 = pmov %p4138_p1 }
 0x1b7   : > { %3071 = dma.done.wait (%p4139_p13), [#allocation13], 2048  }
 0x1b8   : > { %3073 = vsyncadd (%p4140_p0), [#allocation13], 4294965248  ;;  %p4141_p7 = pmov %p4140_p0 }
 0x1b9   : > { %p4142_p2 = pmov %p4140_p0 }
 0x1ba   : > { %3075 = dma.done.wait (%p4141_p7), [#allocation16], 2048  }
 0x1bb   : > { %3077 = vsyncadd (%p4142_p2), [#allocation16], 4294965248  ;;  %p4143_p6 = pmov %p4140_p0 }
 0x1bc   : > { %p4144_p10 = pmov %p4140_p0 }
 0x1bd   : > { %3079 = dma.done.wait (%p4143_p6), [#allocation19], 1280  }
 0x1be   : > { %3081 = vsyncadd (%p4144_p10), [#allocation19], 4294966016  ;;  %p4145_p5 = pmov %p4140_p0 }
 0x1bf   : > { %p4146_p9 = pmov %p4140_p0 }
 0x1c0   : > { %3083 = dma.done.wait (%p4145_p5), [#allocation22], 64  }
 0x1c1   : > { %3085 = vsyncadd (%p4146_p9), [#allocation22], 4294967232  ;;  %v3125_v0 = vmov 0.0   ;;  %vm3126_vm0 = vmmov 0   ;;  %v2624_v1 = vld [vmem:[%s566_s22] sm:$0xff]   ;;  %v2625_v2 = vld [vmem:[#allocation9] sm:$0xff]  }
 0x1c2   : > { %2359 = vmatprep.subr.bf16.mxu0 %v3125_v0  ;;  %773 = vst [vmem:[#allocation2] sm:$0xff] %v3125_v0  ;;  %2361 = vmatprep.mubr.msk.bf16.mxu0 %vm3126_vm0, %v3125_v0  ;;  %vm679_vm1 = vcmask 130048   ;;  %v659_v3 = vld [vmem:[%s3647_s30] sm:$0xff]  ;;  %v660_v4 = vld [vmem:[%s3647_s30 + $0x8] sm:$0xff]  ;;  %v3127_v9 = vmov 0   ;;  %vm874_vm4 = vcmask 523264  }
 0x1c3   : > { %2360 = vmatpush3.bf16.msra.mxu0 %v2624_v1  ;;  %v663_v5 = vpack.c.bf16 %v660_v4, %v659_v3  ;;  %v2626_v6 = vld [vmem:[#allocation8] sm:$0xff]   ;;  %v2627_v7 = vld [vmem:[#allocation11] sm:$0xff]   ;;  %2607 = vset.pattern.permute.xlu0 %v3127_v9  ;;  %v2628_v15 = vld [vmem:[#allocation11 + $0x8] sm:$0xff]   ;;  %v3128_v52 = vmov 2   ;;  %v3129_v59 = vmov 1   ;;  %vm777_vm7 = vcmask 540160  }
 0x1c4   : > { %2365 = vmatprep.subr.bf16.mxu0 %v3125_v0  ;;  %2373 = vmatprep.mubr.msk.bf16.mxu1 %vm679_vm1, %v2627_v7  ;;  %v2323_v8 = vld [vmem:[#allocation21] ss:$0 sm:$0xff]  ;;  %v915_v47 = vld [vmem:[#allocation12] sm:$0xff]  ;;  %v958_v48 = vld [vmem:[#allocation14 + $0x8] sm:$0xff]  ;;  %778 = vst.msk [vmem:[#allocation2 + $0x8] sm:$0xff] %vm777_vm7, %v3125_v0  ;;  %s3130_s14 = smov 127  }
 0x1c5   : > { %2608 = vset.pattern.permute.xlu1 %v3127_v9  ;;  %863 = vperm.xlu0 %2607, %v2323_v8   ;;  %v916_v49 = vld [vmem:[#allocation12 + $0x8] sm:$0xff]  ;;  %v917_v50 = vld [vmem:[#allocation12 + $0x10] sm:$0xff]  ;;  %v989_v51 = vld [vmem:[#allocation15] sm:$0xff]  ;;  %779 = vst.msk [vmem:[#allocation2 + $0x18] sm:$0xff] %vm777_vm7, %v3125_v0  ;;  %s3131_s18 = smov 126   ;;  %s3132_s11 = smov 1  }
 0x1c6   : > { %2362 = vmatmul.mubr.msk.bf16.vlgmr.msra.gmra.mrb[0].mxu0 %vm679_vm1, %v2625_v2  ;;  %v918_v53 = vld [vmem:[#allocation12 + $0x18] sm:$0xff]  ;;  %v991_v54 = vld [vmem:[#allocation15 + $0x10] sm:$0xff]  ;;  %v957_v55 = vld [vmem:[#allocation14] sm:$0xff]  ;;  %780 = vst.msk [vmem:[#allocation2 + $0x28] sm:$0xff] %vm777_vm7, %v3125_v0  ;;  %p4148_p8 = scmp.ne.s32.totalorder %s4124_s13, 0 }
 0x1c7   : > { %2366 = vmatpush3.bf16.msra.mxu0 %v663_v5  ;;  %2367 = vmatprep.mubr.msk.bf16.mxu0 %vm3126_vm0, %v3125_v0  ;;  %v959_v56 = vld [vmem:[#allocation14 + $0x10] sm:$0xff]  ;;  %v992_v57 = vld [vmem:[#allocation15 + $0x18] sm:$0xff]  ;;  %v990_v60 = vld [vmem:[#allocation15 + $0x8] sm:$0xff]  ;;  %781 = vst.msk [vmem:[#allocation2 + $0x38] sm:$0xff] %vm777_vm7, %v3125_v0 }
 0x1c8   : > { %v960_v58 = vld [vmem:[#allocation14 + $0x18] sm:$0xff]  ;;  %v2324_v61 = vld [vmem:[#allocation23] ss:$0 sm:$0xff] }
 0x1d2   : > { %2368 = vmatmul.mubr.msk.bf16.vlgmr.msra.gmra.mrb[0].mxu0 %vm679_vm1, %v2626_v6 }
 0x244   : > { %v864_v16 = vpop.permute.xlu0 %863 }
 0x2a5   : > { %v3697_v10 = vpop.f32.mrb[0].mxu0 }
 0x2a6   : > { %v2369_v11 = vpop.f32.mrb[1].mxu0 }
 0x2a7   : > { %v3699_v12 = vpop.f32.mrb[2].mxu0 }
 0x2a8   : > { %v2370_v13 = vpop.f32.mrb[3].mxu0  ;;  %v786_v14 = vpack.c.bf16 %v3699_v12, %v3697_v10 }
 0x2aa   : > { %2371 = vmatprep.subr.bf16.mxu1 %v786_v14 }
 0x2ab   : > { %2372 = vmatpush3.bf16.msra.mxu1 %v786_v14 }
 0x2ac   : > { %2377 = vmatprep.subr.bf16.mxu1 %v3125_v0 }
 0x2ae   : > { %2374 = vmatmul.mubr.msk.bf16.vlgmr.msra.gmra.mrb[0].mxu1 %vm679_vm1, %v2628_v15 }
 0x2af   : > { %2381 = vmatprep.mubr.msk.bf16.mxu1 %vm3126_vm0, %v3125_v0 }
 0x381   : > { %v2375_v17 = vpop.f32.mrb[0].mxu1 }
 0x382   : > { %vm855_vm2 = vcmp.gt.f32.partialorder %v2375_v17, 0.0  ;;  %v868_v18 = vmul.f32 %v2375_v17, %v864_v16  ;;  %v837_v19 = vpop.f32.mrb[1].mxu1 }
 0x383   : > { %vm853_vm3 = vcmp.gt.f32.partialorder %v837_v19, 0.0  ;;  %v866_v20 = vmul.f32 %v864_v16, %v837_v19  ;;  %v2376_v21 = vpop.f32.mrb[2].mxu1 }
 0x384   : > { %vm856_vm5 = vcmp.gt.f32.partialorder %v2376_v21, 0.0  ;;  %v869_v22 = vmul.f32 %v2376_v21, %v864_v16  ;;  %v840_v23 = vpop.f32.mrb[3].mxu1  ;;  %v3707_v24 = vsel %vm855_vm2, %v2375_v17, %v868_v18  ;;  %vm1175_vm2 = vcmask 7168  }
 0x385   : > { %v3709_v25 = vsel %vm853_vm3, %v837_v19, %v866_v20  ;;  %vm854_vm6 = vcmp.gt.f32.partialorder %v840_v23, 0.0  ;;  %v867_v26 = vmul.f32 %v864_v16, %v840_v23  ;;  %v894_v33 = vmul.f32 %v3707_v24, %v3707_v24 }
 0x386   : > { %v892_v27 = vmul.f32 %v3709_v25, %v3709_v25  ;;  %v3713_v28 = vsel %vm856_vm5, %v2376_v21, %v869_v22  ;;  %v875_v30 = vsel %vm874_vm4, %v3709_v25, 0.0  ;;  %v878_v35 = vsel %vm874_vm4, %v3707_v24, 0.0 }
 0x387   : > { %v3715_v29 = vsel %vm854_vm6, %v840_v23, %v867_v26  ;;  %v895_v36 = vmul.f32 %v3713_v28, %v3713_v28  ;;  %v880_v41 = vsel %vm874_vm4, %v3713_v28, 0.0  ;;  %v899_v42 = vsel %vm874_vm4, %v894_v33, 0.0 }
 0x388   : > { %v876_v31 = vsel %vm874_vm4, %v3715_v29, 0.0  ;;  %v893_v32 = vmul.f32 %v3715_v29, %v3715_v29  ;;  %v896_v37 = vsel %vm874_vm4, %v892_v27, 0.0  ;;  %vm1374_vm3 = vcmask 261120  }
 0x389   : > { %v877_v34 = vadd.f32 %v876_v31, %v875_v30  ;;  %v901_v45 = vsel %vm874_vm4, %v895_v36, 0.0 }
 0x38a   : > { %v897_v38 = vsel %vm874_vm4, %v893_v32, 0.0 }
 0x38b   : > { %v879_v39 = vadd.f32 %v878_v35, %v877_v34  ;;  %v898_v40 = vadd.f32 %v897_v38, %v896_v37 }
 0x38d   : > { %v881_v43 = vadd.f32 %v880_v41, %v879_v39  ;;  %v900_v44 = vadd.f32 %v899_v42, %v898_v40 }
 0x38f   : > { %882 = vadd.xlane.f32.xlu0 %v881_v43  ;;  %v902_v46 = vadd.f32 %v901_v45, %v900_v44 }
 0x391   : > { %903 = vadd.xlane.f32.xlu1 %v902_v46 }
 0x3a2   : > { %926 = vperm.xlu1 %2608, %v915_v47  }
 0x3a5   : > { %968 = vperm.xlu0 %2607, %v958_v48  }
 0x3a6   : > { %931 = vperm.xlu1 %2608, %v916_v49  }
 0x3a9   : > { %2610 = vset.pattern.permute.xlu0 %v3128_v52 }
 0x3aa   : > { %936 = vperm.xlu1 %2608, %v917_v50   ;;  %1074 = vperm.xlu0 %2610, %v989_v51  }
 0x3ae   : > { %941 = vperm.xlu1 %2608, %v918_v53   ;;  %1082 = vperm.xlu0 %2610, %v991_v54  }
 0x3b2   : > { %963 = vperm.xlu1 %2608, %v957_v55   ;;  %2614 = vset.pattern.permute.xlu0 %v3127_v9 }
 0x3b3   : > { %1003 = vperm.xlu0 %2614, %v989_v51  }
 0x3b6   : > { %973 = vperm.xlu1 %2608, %v959_v56  }
 0x3b7   : > { %1018 = vperm.xlu0 %2614, %v992_v57  }
 0x3ba   : > { %978 = vperm.xlu1 %2608, %v960_v58  }
 0x3be   : > { %2609 = vset.pattern.permute.xlu1 %v3129_v59 }
 0x3bf   : > { %1030 = vperm.xlu1 %2609, %v989_v51  }
 0x3c3   : > { %1034 = vperm.xlu1 %2609, %v990_v60  }
 0x3c7   : > { %1038 = vperm.xlu1 %2609, %v991_v54  }
 0x3cb   : > { %2611 = vset.pattern.permute.xlu1 %v3128_v52 }
 0x3cc   : > { %1078 = vperm.xlu1 %2611, %v990_v60  }
 0x3d0   : > { %2612 = vset.pattern.permute.xlu1 %v3129_v59 }
 0x3d1   : > { %1042 = vperm.xlu1 %2612, %v992_v57  }
 0x3d5   : > { %2613 = vset.pattern.permute.xlu1 %v3128_v52 }
 0x3d6   : > { %1086 = vperm.xlu1 %2613, %v992_v57  }
 0x3da   : > { %2615 = vset.pattern.permute.xlu1 %v3127_v9 }
 0x3db   : > { %1008 = vperm.xlu1 %2615, %v990_v60  }
 0x3df   : > { %1013 = vperm.xlu1 %2615, %v991_v54  }
 0x3e3   : > { %1132 = vperm.xlu1 %2615, %v2324_v61  }
 0x41c   : > { %v883_v62 = vpop.xlane.xlu0 %882 }
 0x41d   : > { %v884_v63 = vrot.slane %v883_v62, 4 }
 0x41e   : > { %v904_v1 = vpop.xlane.xlu1 %903 }
 0x41f   : > { %v885_v2 = vadd.f32 %v884_v63, %v883_v62  ;;  %v905_v3 = vrot.slane %v904_v1, 4 }
 0x421   : > { %v906_v4 = vadd.f32 %v905_v3, %v904_v1  ;;  %v886_v5 = vrot.slane %v885_v2, 2 }
 0x422   : > { %v927_v18 = vpop.permute.xlu1 %926 }
 0x423   : > { %v887_v6 = vadd.f32 %v886_v5, %v885_v2  ;;  %v907_v7 = vrot.slane %v906_v4, 2 }
 0x424   : > { %v969_v44 = vpop.permute.xlu0 %968 }
 0x425   : > { %v888_v8 = vrot.slane %v887_v6, 1  ;;  %v908_v11 = vadd.f32 %v907_v7, %v906_v4 }
 0x426   : > { %v932_v19 = vpop.permute.xlu1 %931 }
 0x427   : > { %v889_v13 = vadd.f32 %v888_v8, %v887_v6  ;;  %v909_v14 = vrot.slane %v908_v11, 1 }
 0x429   : > { %2403 = vpush %v889_v13  ;;  %v910_v15 = vadd.f32 %v909_v14, %v908_v11  ;;  %v1075_v54 = vpop.permute.xlu0 %1074 }
 0x42a   : > { %v937_v20 = vpop.permute.xlu1 %936 }
 0x42b   : > { %2405 = vpush %v910_v15 }
 0x42d   : > { %v1083_v63 = vpop.permute.xlu0 %1082 }
 0x42e   : > { %v942_v21 = vpop.permute.xlu1 %941 }
 0x432   : > { %v964_v22 = vpop.permute.xlu1 %963  ;;  %v1004_v4 = vpop.permute.xlu0 %1003 }
 0x433   : > { %v1021_v13 = vmul.f32 0.0, %v1004_v4 }
 0x436   : > { %v974_v23 = vpop.permute.xlu1 %973  ;;  %v1019_v6 = vpop.permute.xlu0 %1018 }
 0x43a   : > { %v979_v27 = vpop.permute.xlu1 %978 }
 0x43e   : > { %v1031_v34 = vpop.permute.xlu1 %1030 }
 0x442   : > { %v1035_v45 = vpop.permute.xlu1 %1034 }
 0x45a   : > { %s2404_s24 = spop %2403 }
 0x45b   : > { %s891_s4 = smul.f32 0.00048828125, %s2404_s24 }
 0x45c   : > { %s2406_s15 = spop %2405 }
 0x45d   : > { %s913_s17 = smul.f32 %s891_s4, %s891_s4  ;;  %v919_v26 = vstv %s891_s4 }
 0x45e   : > { %s912_s3 = smul.f32 0.00048828125, %s2406_s15  ;;  %v920_v30 = vsub.f32 %v3709_v25, %v919_v26  ;;  %v921_v31 = vsub.f32 %v3715_v29, %v919_v26  ;;  %v922_v32 = vsub.f32 %v3707_v24, %v919_v26  ;;  %v923_v33 = vsub.f32 %v3713_v28, %v919_v26  ;;  %v1039_v24 = vpop.permute.xlu1 %1038 }
 0x460   : > { %s914_s5 = ssub.f32 %s912_s3, %s913_s17  ;;  %v946_v35 = vmul.f32 %v937_v20, %v922_v32  ;;  %v947_v36 = vmul.f32 %v942_v21, %v923_v33  ;;  %v944_v37 = vmul.f32 %v927_v18, %v920_v30  ;;  %v945_v38 = vmul.f32 %v932_v19, %v921_v31 }
 0x462   : > { %s948_s7 = sadd.f32 1e-08, %s914_s5  ;;  %v1079_v49 = vpop.permute.xlu1 %1078 }
 0x464   : > { %v949_v16 = vstv %s948_s7 }
 0x465   : > { %2633 = vrsqrt.f32 %v949_v16 }
 0x466   : > { %v1043_v57 = vpop.permute.xlu1 %1042 }
 0x46a   : > { %v1087_v62 = vpop.permute.xlu1 %1086 }
 0x46e   : > { %v1009_v3 = vpop.permute.xlu1 %1008 }
 0x46f   : > { %v2634_v17 = vpop.eup %2633 }
 0x470   : > { %2407 = vpush %v2634_v17  ;;  %v1023_v17 = vmul.f32 0.0, %v1009_v3 }
 0x472   : > { %v1014_v5 = vpop.permute.xlu1 %1013 }
 0x473   : > { %v1025_v31 = vmul.f32 0.0, %v1014_v5 }
 0x476   : > { %v1133_v7 = vpop.permute.xlu1 %1132 }
 0x4a1   : > { %s2408_s9 = spop %2407 }
 0x4a2   : > { %v952_v39 = vstv %s2408_s9 }
 0x4a3   : > { %v953_v40 = vmul.f32 %v952_v39, %v944_v37  ;;  %v954_v41 = vmul.f32 %v952_v39, %v945_v38  ;;  %v955_v42 = vmul.f32 %v952_v39, %v946_v35  ;;  %v956_v43 = vmul.f32 %v952_v39, %v947_v36 }
 0x4a4   : > { %v1027_v35 = vmul.f32 0.0, %v1019_v6 }
 0x4a5   : > { %v981_v25 = vadd.f32 %v964_v22, %v953_v40  ;;  %v982_v46 = vadd.f32 %v969_v44, %v954_v41  ;;  %v983_v29 = vadd.f32 %v974_v23, %v955_v42  ;;  %v984_v47 = vadd.f32 %v979_v27, %v956_v43 }
 0x4a7   : > { %985 = vst.msk [vmem:[#allocation2 + $0x8] sm:$0xff] %vm874_vm4, %v981_v25  ;;  %986 = vst.msk [vmem:[#allocation2 + $0x18] sm:$0xff] %vm874_vm4, %v982_v46 }
 0x4a8   : > { %987 = vst.msk [vmem:[#allocation2 + $0x28] sm:$0xff] %vm874_vm4, %v983_v29  ;;  %988 = vst.msk [vmem:[#allocation2 + $0x38] sm:$0xff] %vm874_vm4, %v984_v47 }
 0x4ae   : > { %v994_v28 = vld [vmem:[#allocation2 + $0x8] sm:$0xff]  ;;  %v996_v48 = vld [vmem:[#allocation2 + $0x18] sm:$0xff] }
 0x4af   : > { %v1045_v50 = vmul.f32 %v1031_v34, %v994_v28  ;;  %v1046_v51 = vmul.f32 %v1035_v45, %v996_v48  ;;  %v998_v53 = vld [vmem:[#allocation2 + $0x28] sm:$0xff]  ;;  %v1089_v55 = vmul.f32 %v1075_v54, %v994_v28  ;;  %v1000_v58 = vld [vmem:[#allocation2 + $0x38] sm:$0xff]  ;;  %v1090_v61 = vmul.f32 %v1079_v49, %v996_v48 }
 0x4b0   : > { %v1047_v56 = vmul.f32 %v1039_v24, %v998_v53  ;;  %v1048_v60 = vmul.f32 %v1043_v57, %v1000_v58  ;;  %v1092_v1 = vmul.f32 %v1087_v62, %v1000_v58  ;;  %v1091_v2 = vmul.f32 %v1083_v63, %v998_v53 }
 0x4b1   : > { %1053 = vrot.lane.b32.xlu0 %v1045_v50, %s3130_s14  ;;  %1055 = vrot.lane.b32.xlu1 %v1046_v51, %s3130_s14  ;;  %v1022_v14 = vmul.f32 %v1004_v4, %v994_v28  ;;  %v1024_v18 = vmul.f32 %v1009_v3, %v996_v48  ;;  %v1026_v32 = vmul.f32 %v1014_v5, %v998_v53 }
 0x4b2   : > { %v1028_v36 = vmul.f32 %v1019_v6, %v1000_v58 }
 0x4b5   : > { %1057 = vrot.lane.b32.xlu0 %v1047_v56, %s3130_s14  ;;  %1097 = vrot.lane.b32.xlu1 %v1089_v55, %s3131_s18 }
 0x4b9   : > { %1099 = vrot.lane.b32.xlu0 %v1090_v61, %s3131_s18  ;;  %1059 = vrot.lane.b32.xlu1 %v1048_v60, %s3130_s14 }
 0x4bd   : > { %1103 = vrot.lane.b32.xlu1 %v1092_v1, %s3131_s18  ;;  %1101 = vrot.lane.b32.xlu0 %v1091_v2, %s3131_s18 }
 0x523   : > { %v1056_v8 = vpop.permute.xlu1 %1055  ;;  %v1054_v11 = vpop.permute.xlu0 %1053 }
 0x524   : > { %v1065_v15 = vadd.f32 %v1054_v11, %v1021_v13  ;;  %v1066_v16 = vadd.f32 %v1054_v11, %v1022_v14  ;;  %v1067_v23 = vadd.f32 %v1056_v8, %v1023_v17  ;;  %v1068_v26 = vadd.f32 %v1056_v8, %v1024_v18 }
 0x527   : > { %v1098_v19 = vpop.permute.xlu1 %1097  ;;  %v1058_v20 = vpop.permute.xlu0 %1057 }
 0x528   : > { %v1109_v21 = vadd.f32 %v1098_v19, %v1065_v15  ;;  %v1110_v22 = vadd.f32 %v1098_v19, %v1066_v16  ;;  %v1069_v39 = vadd.f32 %v1058_v20, %v1025_v31  ;;  %v1070_v40 = vadd.f32 %v1058_v20, %v1026_v32 }
 0x52a   : > { %vm1119_vm8 = vcmp.gt.f32.partialorder %v1110_v22, 0.0  ;;  %v1136_v27 = vmul.f32 %v1133_v7, %v1110_v22  ;;  %vm1118_vm9 = vcmp.gt.f32.partialorder %v1109_v21, 0.0  ;;  %v1135_v30 = vmul.f32 %v1133_v7, %v1109_v21 }
 0x52b   : > { %v1060_v33 = vpop.permute.xlu1 %1059  ;;  %v1100_v34 = vpop.permute.xlu0 %1099 }
 0x52c   : > { %v1111_v37 = vadd.f32 %v1100_v34, %v1067_v23  ;;  %v1112_v38 = vadd.f32 %v1100_v34, %v1068_v26  ;;  %v3758_v41 = vsel %vm1119_vm8, %v1110_v22, %v1136_v27  ;;  %v3760_v42 = vsel %vm1118_vm9, %v1109_v21, %v1135_v30 }
 0x52d   : > { %1161 = vrot.lane.b32.xlu1 %v3758_v41, %s3132_s11  ;;  %1159 = vrot.lane.b32.xlu0 %v3760_v42, %s3132_s11  ;;  %v1071_v45 = vadd.f32 %v1060_v33, %v1027_v35  ;;  %v1072_v25 = vadd.f32 %v1060_v33, %v1028_v36  ;;  %v1202_v61 = vmul.f32 %v3758_v41, %v3758_v41 }
 0x52e   : > { %vm1121_vm10 = vcmp.gt.f32.partialorder %v1112_v38, 0.0  ;;  %v1138_v43 = vmul.f32 %v1133_v7, %v1112_v38  ;;  %vm1120_vm11 = vcmp.gt.f32.partialorder %v1111_v37, 0.0  ;;  %v1137_v44 = vmul.f32 %v1133_v7, %v1111_v37 }
 0x52f   : > { %v1104_v46 = vpop.permute.xlu1 %1103  ;;  %v1102_v29 = vpop.permute.xlu0 %1101  ;;  %v1201_v62 = vmul.f32 %v3760_v42, %v3760_v42 }
 0x530   : > { %v1113_v47 = vadd.f32 %v1102_v29, %v1069_v39  ;;  %v1114_v24 = vadd.f32 %v1102_v29, %v1070_v40  ;;  %v1115_v28 = vadd.f32 %v1104_v46, %v1071_v45  ;;  %v1116_v48 = vadd.f32 %v1104_v46, %v1072_v25 }
 0x531   : > { %v3766_v49 = vsel %vm1121_vm10, %v1112_v38, %v1138_v43  ;;  %v3768_v50 = vsel %vm1120_vm11, %v1111_v37, %v1137_v44 }
 0x532   : > { %1165 = vrot.lane.b32.xlu1 %v3766_v49, %s3132_s11  ;;  %1163 = vrot.lane.b32.xlu0 %v3768_v50, %s3132_s11  ;;  %vm1123_vm12 = vcmp.gt.f32.partialorder %v1114_v24, 0.0  ;;  %v1140_v51 = vmul.f32 %v1133_v7, %v1114_v24  ;;  %vm1122_vm13 = vcmp.gt.f32.partialorder %v1113_v47, 0.0  ;;  %v1139_v53 = vmul.f32 %v1133_v7, %v1113_v47 }
 0x533   : > { %v1142_v56 = vmul.f32 %v1133_v7, %v1116_v48  ;;  %v1141_v57 = vmul.f32 %v1133_v7, %v1115_v28  ;;  %vm1125_vm14 = vcmp.gt.f32.partialorder %v1116_v48, 0.0  ;;  %vm1124_vm15 = vcmp.gt.f32.partialorder %v1115_v28, 0.0 }
 0x534   : > { %v3774_v54 = vsel %vm1123_vm12, %v1114_v24, %v1140_v51  ;;  %v3776_v55 = vsel %vm1122_vm13, %v1113_v47, %v1139_v53  ;;  %v1204_v63 = vmul.f32 %v3766_v49, %v3766_v49  ;;  %v1203_v1 = vmul.f32 %v3768_v50, %v3768_v50  ;;  %v1260_v51 = vld [vmem:[#allocation17] sm:$0xff]  ;;  %v1262_v53 = vld [vmem:[#allocation17 + $0x10] sm:$0xff] }
 0x535   : > { %v3782_v58 = vsel %vm1125_vm14, %v1116_v48, %v1142_v56  ;;  %v3784_v60 = vsel %vm1124_vm15, %v1115_v28, %v1141_v57  ;;  %v1206_v2 = vmul.f32 %v3774_v54, %v3774_v54  ;;  %v1205_v3 = vmul.f32 %v3776_v55, %v3776_v55  ;;  %v1314_v56 = vld [vmem:[#allocation18] sm:$0xff]  ;;  %v1261_v57 = vld [vmem:[#allocation17 + $0x8] sm:$0xff] }
 0x536   : > { %1169 = vrot.lane.b32.xlu1 %v3774_v54, %s3132_s11  ;;  %1167 = vrot.lane.b32.xlu0 %v3776_v55, %s3132_s11  ;;  %v1208_v4 = vmul.f32 %v3782_v58, %v3782_v58  ;;  %v1207_v5 = vmul.f32 %v3784_v60, %v3784_v60  ;;  %vm1817_vm15 = vcmask 15360  }
 0x53a   : > { %1173 = vrot.lane.b32.xlu1 %v3782_v58, %s3132_s11  ;;  %1171 = vrot.lane.b32.xlu0 %v3784_v60, %s3132_s11 }
 0x53e   : > { %1219 = vrot.lane.b32.xlu1 %v1202_v61, %s3132_s11  ;;  %1217 = vrot.lane.b32.xlu0 %v1201_v62, %s3132_s11  ;;  %v1316_v61 = vld [vmem:[#allocation18 + $0x10] sm:$0xff]  ;;  %v1263_v62 = vld [vmem:[#allocation17 + $0x18] sm:$0xff] }
 0x542   : > { %1223 = vrot.lane.b32.xlu1 %v1204_v63, %s3132_s11  ;;  %1221 = vrot.lane.b32.xlu0 %v1203_v1, %s3132_s11  ;;  %v1315_v63 = vld [vmem:[#allocation18 + $0x8] sm:$0xff]  ;;  %v1317_v1 = vld [vmem:[#allocation18 + $0x18] sm:$0xff] }
 0x546   : > { %1227 = vrot.lane.b32.xlu1 %v1206_v2, %s3132_s11  ;;  %1225 = vrot.lane.b32.xlu0 %v1205_v3, %s3132_s11 }
 0x54a   : > { %1231 = vrot.lane.b32.xlu1 %v1208_v4, %s3132_s11  ;;  %1229 = vrot.lane.b32.xlu0 %v1207_v5, %s3132_s11 }
 0x59f   : > { %v1162_v6 = vpop.permute.xlu1 %1161  ;;  %v1160_v7 = vpop.permute.xlu0 %1159 }
 0x5a0   : > { %v1176_v14 = vsel %vm1175_vm2, %v1160_v7, %v1162_v6 }
 0x5a1   : > { %v1184_v19 = vsel %vm874_vm4, %v1176_v14, 0.0 }
 0x5a4   : > { %v1166_v8 = vpop.permute.xlu1 %1165  ;;  %v1164_v11 = vpop.permute.xlu0 %1163 }
 0x5a5   : > { %v1177_v13 = vsel %vm1175_vm2, %v1164_v11, %v1166_v8 }
 0x5a6   : > { %v1185_v15 = vsel %vm874_vm4, %v1177_v13, 0.0 }
 0x5a7   : > { %v1186_v21 = vadd.f32 %v1185_v15, %v1184_v19 }
 0x5a8   : > { %v1170_v16 = vpop.permute.xlu1 %1169  ;;  %v1168_v17 = vpop.permute.xlu0 %1167 }
 0x5a9   : > { %v1178_v18 = vsel %vm1175_vm2, %v1168_v17, %v1170_v16 }
 0x5aa   : > { %v1187_v20 = vsel %vm874_vm4, %v1178_v18, 0.0 }
 0x5ab   : > { %v1188_v27 = vadd.f32 %v1187_v20, %v1186_v21 }
 0x5ac   : > { %v1174_v22 = vpop.permute.xlu1 %1173  ;;  %v1172_v23 = vpop.permute.xlu0 %1171 }
 0x5ad   : > { %v1179_v26 = vsel %vm1175_vm2, %v1172_v23, %v1174_v22 }
 0x5ae   : > { %v1189_v30 = vsel %vm874_vm4, %v1179_v26, 0.0 }
 0x5af   : > { %v1190_v31 = vadd.f32 %v1189_v30, %v1188_v27 }
 0x5b0   : > { %v1220_v32 = vpop.permute.xlu1 %1219  ;;  %v1218_v33 = vpop.permute.xlu0 %1217 }
 0x5b1   : > { %1191 = vadd.xlane.f32.xlu0 %v1190_v31  ;;  %v1233_v37 = vsel %vm1175_vm2, %v1218_v33, %v1220_v32 }
 0x5b2   : > { %v1241_v44 = vsel %vm874_vm4, %v1233_v37, 0.0 }
 0x5b4   : > { %v1224_v34 = vpop.permute.xlu1 %1223  ;;  %v1222_v35 = vpop.permute.xlu0 %1221 }
 0x5b5   : > { %v1234_v36 = vsel %vm1175_vm2, %v1222_v35, %v1224_v34 }
 0x5b6   : > { %v1242_v38 = vsel %vm874_vm4, %v1234_v36, 0.0 }
 0x5b7   : > { %v1243_v25 = vadd.f32 %v1242_v38, %v1241_v44 }
 0x5b8   : > { %v1228_v39 = vpop.permute.xlu1 %1227  ;;  %v1226_v40 = vpop.permute.xlu0 %1225 }
 0x5b9   : > { %v1235_v43 = vsel %vm1175_vm2, %v1226_v40, %v1228_v39 }
 0x5ba   : > { %v1244_v45 = vsel %vm874_vm4, %v1235_v43, 0.0 }
 0x5bb   : > { %v1245_v24 = vadd.f32 %v1244_v45, %v1243_v25 }
 0x5bc   : > { %v1232_v46 = vpop.permute.xlu1 %1231  ;;  %v1230_v29 = vpop.permute.xlu0 %1229 }
 0x5bd   : > { %v1236_v47 = vsel %vm1175_vm2, %v1230_v29, %v1232_v46 }
 0x5be   : > { %v1246_v28 = vsel %vm874_vm4, %v1236_v47, 0.0 }
 0x5bf   : > { %v1247_v48 = vadd.f32 %v1246_v28, %v1245_v24 }
 0x5c1   : > { %1248 = vadd.xlane.f32.xlu1 %v1247_v48 }
 0x5c7   : > { %1275 = vperm.xlu0 %2614, %v1260_v51  }
 0x5cb   : > { %1285 = vperm.xlu0 %2614, %v1262_v53  }
 0x5cf   : > { %1320 = vperm.xlu0 %2614, %v1314_v56  }
 0x5d2   : > { %1280 = vperm.xlu1 %2615, %v1261_v57  }
 0x5d3   : > { %1330 = vperm.xlu0 %2614, %v1316_v61  }
 0x5d6   : > { %1290 = vperm.xlu1 %2615, %v1263_v62  }
 0x5da   : > { %1325 = vperm.xlu1 %2615, %v1315_v63  }
 0x5de   : > { %1335 = vperm.xlu1 %2615, %v1317_v1  }
 0x63e   : > { %v1192_v2 = vpop.xlane.xlu0 %1191 }
 0x63f   : > { %v1193_v3 = vrot.slane %v1192_v2, 4 }
 0x641   : > { %v1194_v4 = vadd.f32 %v1193_v3, %v1192_v2 }
 0x643   : > { %v1195_v5 = vrot.slane %v1194_v4, 2 }
 0x645   : > { %v1196_v6 = vadd.f32 %v1195_v5, %v1194_v4 }
 0x646   : > { %v1276_v21 = vpop.permute.xlu0 %1275 }
 0x647   : > { %v1197_v7 = vrot.slane %v1196_v6, 1 }
 0x649   : > { %v1198_v8 = vadd.f32 %v1197_v7, %v1196_v6  ;;  %v2331_v6 = vld [vmem:[#allocation21 + $0x1] ss:$0 sm:$0xff] }
 0x64a   : > { %v1286_v23 = vpop.permute.xlu0 %1285 }
 0x64b   : > { %2409 = vpush %v1198_v8 }
 0x64e   : > { %v1249_v11 = vpop.xlane.xlu1 %1248  ;;  %v1321_v38 = vpop.permute.xlu0 %1320 }
 0x64f   : > { %v1250_v13 = vrot.slane %v1249_v11, 4 }
 0x651   : > { %v1251_v14 = vadd.f32 %v1250_v13, %v1249_v11 }
 0x652   : > { %v1281_v22 = vpop.permute.xlu1 %1280  ;;  %v1331_v28 = vpop.permute.xlu0 %1330 }
 0x653   : > { %v1252_v15 = vrot.slane %v1251_v14, 2 }
 0x655   : > { %v1253_v16 = vadd.f32 %v1252_v15, %v1251_v14 }
 0x656   : > { %v1291_v26 = vpop.permute.xlu1 %1290 }
 0x657   : > { %v1254_v17 = vrot.slane %v1253_v16, 1 }
 0x659   : > { %v1255_v18 = vadd.f32 %v1254_v17, %v1253_v16  ;;  %v2629_v16 = vld [vmem:[#allocation20] sm:$0xff]   ;;  %v2630_v17 = vld [vmem:[#allocation11 + $0x10] sm:$0xff]  }
 0x65a   : > { %v1326_v39 = vpop.permute.xlu1 %1325  ;;  %2387 = vmatprep.mubr.msk.bf16.mxu0 %vm679_vm1, %v2630_v17 }
 0x65b   : > { %2411 = vpush %v1255_v18 }
 0x65e   : > { %v1336_v48 = vpop.permute.xlu1 %1335 }
 0x67c   : > { %s2410_s21 = spop %2409 }
 0x67d   : > { %s1200_s30 = smul.f32 0.00048828125, %s2410_s21  ;;  %s3133_s21 = smov 124  }
 0x67f   : > { %s1258_s8 = smul.f32 %s1200_s30, %s1200_s30  ;;  %v1264_v27 = vstv %s1200_s30 }
 0x680   : > { %v1266_v30 = vsub.f32 %v3758_v41, %v1264_v27  ;;  %v1268_v31 = vsub.f32 %v3766_v49, %v1264_v27  ;;  %v1265_v32 = vsub.f32 %v3760_v42, %v1264_v27  ;;  %v1267_v33 = vsub.f32 %v3768_v50, %v1264_v27 }
 0x681   : > { %v1270_v34 = vsub.f32 %v3774_v54, %v1264_v27  ;;  %v1272_v35 = vsub.f32 %v3782_v58, %v1264_v27  ;;  %v1269_v36 = vsub.f32 %v3776_v55, %v1264_v27  ;;  %v1271_v37 = vsub.f32 %v3784_v60, %v1264_v27  ;;  %v2631_v27 = vld [vmem:[#allocation11 + $0x18] sm:$0xff]  }
 0x682   : > { %v1294_v40 = vmul.f32 %v1276_v21, %v1266_v30  ;;  %v1296_v43 = vmul.f32 %v1281_v22, %v1268_v31  ;;  %v1293_v41 = vmul.f32 %v1276_v21, %v1265_v32  ;;  %v1295_v44 = vmul.f32 %v1281_v22, %v1267_v33 }
 0x683   : > { %v1298_v49 = vmul.f32 %v1286_v23, %v1270_v34  ;;  %v1300_v42 = vmul.f32 %v1291_v26, %v1272_v35  ;;  %v1297_v25 = vmul.f32 %v1286_v23, %v1269_v36  ;;  %v1299_v50 = vmul.f32 %v1291_v26, %v1271_v37 }
 0x68c   : > { %s2412_s10 = spop %2411 }
 0x68d   : > { %s1257_s20 = smul.f32 0.00048828125, %s2412_s10 }
 0x68f   : > { %s1259_s22 = ssub.f32 %s1257_s20, %s1258_s8 }
 0x691   : > { %s1301_s24 = sadd.f32 1e-08, %s1259_s22 }
 0x693   : > { %v1302_v19 = vstv %s1301_s24 }
 0x694   : > { %2635 = vrsqrt.f32 %v1302_v19 }
 0x69e   : > { %v2636_v20 = vpop.eup %2635 }
 0x69f   : > { %2413 = vpush %v2636_v20 }
 0x6d0   : > { %s2414_s4 = spop %2413 }
 0x6d1   : > { %v1305_v45 = vstv %s2414_s4 }
 0x6d2   : > { %v1307_v46 = vmul.f32 %v1305_v45, %v1294_v40  ;;  %v1309_v54 = vmul.f32 %v1305_v45, %v1296_v43  ;;  %v1306_v29 = vmul.f32 %v1305_v45, %v1293_v41  ;;  %v1308_v58 = vmul.f32 %v1305_v45, %v1295_v44 }
 0x6d3   : > { %v1311_v47 = vmul.f32 %v1305_v45, %v1298_v49  ;;  %v1313_v55 = vmul.f32 %v1305_v45, %v1300_v42  ;;  %v1310_v24 = vmul.f32 %v1305_v45, %v1297_v25  ;;  %v1312_v60 = vmul.f32 %v1305_v45, %v1299_v50 }
 0x6d4   : > { %v1339_v51 = vadd.f32 %v1321_v38, %v1307_v46  ;;  %v1341_v53 = vadd.f32 %v1326_v39, %v1309_v54  ;;  %v1338_v56 = vadd.f32 %v1321_v38, %v1306_v29  ;;  %v1340_v57 = vadd.f32 %v1326_v39, %v1308_v58 }
 0x6d5   : > { %v1343_v61 = vadd.f32 %v1331_v28, %v1311_v47  ;;  %v1345_v62 = vadd.f32 %v1336_v48, %v1313_v55  ;;  %v1342_v2 = vadd.f32 %v1331_v28, %v1310_v24  ;;  %v1344_v3 = vadd.f32 %v1336_v48, %v1312_v60  ;;  %v1555_v48 = vld [vmem:[#allocation12 + $0x28] sm:$0xff] }
 0x6d6   : > { %v1349_v63 = vpack.c.bf16 %v1341_v53, %v1339_v51  ;;  %v1348_v1 = vpack.c.bf16 %v1340_v57, %v1338_v56  ;;  %v1556_v51 = vld [vmem:[#allocation12 + $0x30] sm:$0xff]  ;;  %v1554_v53 = vld [vmem:[#allocation12 + $0x20] sm:$0xff]  ;;  %v1557_v57 = vld [vmem:[#allocation12 + $0x38] sm:$0xff] }
 0x6d7   : > { %v1351_v4 = vpack.c.bf16 %v1345_v62, %v1343_v61  ;;  %v1350_v5 = vpack.c.bf16 %v1344_v3, %v1342_v2  ;;  %v1597_v56 = vld [vmem:[#allocation14 + $0x20] sm:$0xff]  ;;  %v1599_v61 = vld [vmem:[#allocation14 + $0x30] sm:$0xff]  ;;  %v1598_v62 = vld [vmem:[#allocation14 + $0x28] sm:$0xff] }
 0x6d8   : > { %1363 = vrot.lane.b32.xlu1 %v1349_v63, %s3132_s11  ;;  %1361 = vrot.lane.b32.xlu0 %v1348_v1, %s3132_s11  ;;  %v1630_v63 = vld [vmem:[#allocation15 + $0x20] sm:$0xff]  ;;  %v1600_v1 = vld [vmem:[#allocation14 + $0x38] sm:$0xff]  ;;  %v1632_v2 = vld [vmem:[#allocation15 + $0x30] sm:$0xff] }
 0x6d9   : > { %v1631_v3 = vld [vmem:[#allocation15 + $0x28] sm:$0xff] }
 0x6dc   : > { %1367 = vrot.lane.b32.xlu1 %v1351_v4, %s3132_s11  ;;  %1365 = vrot.lane.b32.xlu0 %v1350_v5, %s3132_s11  ;;  %v1633_v4 = vld [vmem:[#allocation15 + $0x38] sm:$0xff]  ;;  %v2332_v5 = vld [vmem:[#allocation23 + $0x1] ss:$0 sm:$0xff] }
 0x6e0   : > { %1502 = vperm.xlu0 %2614, %v2331_v6  }
 0x74a   : > { %v1364_v7 = vpop.permute.xlu1 %1363  ;;  %v1362_v8 = vpop.permute.xlu0 %1361 }
 0x74b   : > { %v1370_v11 = vsel %vm1175_vm2, %v1362_v8, %v1364_v7 }
 0x74c   : > { %2378 = vmatpush3.bf16.msra.mxu1 %v1370_v11 }
 0x74d   : > { %2379 = vmatprep.subr.bf16.mxu1 %v3125_v0 }
 0x74e   : > { %v1368_v13 = vpop.permute.xlu1 %1367  ;;  %v1366_v14 = vpop.permute.xlu0 %1365 }
 0x74f   : > { %v1371_v15 = vsel %vm1175_vm2, %v1366_v14, %v1368_v13 }
 0x750   : > { %2380 = vmatpush3.bf16.msra.mxu1 %v1371_v15 }
 0x751   : > { %2391 = vmatprep.subr.bf16.mxu1 %v3125_v0 }
 0x753   : > { %2382 = vmatmul.mubr.msk.bf16.vlgmr.msra.gmra.mrb[4].mxu1 %vm1374_vm3, %v2629_v16 }
 0x754   : > { %2395 = vmatprep.mubr.msk.bf16.mxu1 %vm3126_vm0, %v3125_v0 }
 0x75f   : > { %v1503_v0 = vpop.permute.xlu0 %1502 }
 0x826   : > { %v1412_v18 = vpop.f32.mrb[4].mxu1 }
 0x827   : > { %v3851_v19 = vadd.f32 %v1412_v18, %v3697_v10  ;;  %v2383_v20 = vpop.f32.mrb[5].mxu1 }
 0x828   : > { %v1415_v21 = vpop.f32.mrb[6].mxu1 }
 0x829   : > { %v3854_v22 = vadd.f32 %v1415_v21, %v3699_v12  ;;  %v2384_v23 = vpop.f32.mrb[7].mxu1 }
 0x82b   : > { %v1424_v26 = vpack.c.bf16 %v3854_v22, %v3851_v19 }
 0x82d   : > { %2385 = vmatprep.subr.bf16.mxu0 %v1424_v26 }
 0x82e   : > { %2386 = vmatpush3.bf16.msra.mxu0 %v1424_v26 }
 0x831   : > { %2388 = vmatmul.mubr.msk.bf16.vlgmr.msra.gmra.mrb[4].mxu0 %vm679_vm1, %v2631_v27 }
 0x904   : > { %v2389_v30 = vpop.f32.mrb[4].mxu0 }
 0x905   : > { %vm1494_vm0 = vcmp.gt.f32.partialorder %v2389_v30, 0.0  ;;  %v1507_v31 = vmul.f32 %v2389_v30, %v1503_v0  ;;  %v1475_v10 = vpop.f32.mrb[5].mxu0 }
 0x906   : > { %vm1492_vm5 = vcmp.gt.f32.partialorder %v1475_v10, 0.0  ;;  %v1505_v32 = vmul.f32 %v1503_v0, %v1475_v10  ;;  %v2390_v33 = vpop.f32.mrb[6].mxu0 }
 0x907   : > { %vm1495_vm6 = vcmp.gt.f32.partialorder %v2390_v33, 0.0  ;;  %v1508_v12 = vmul.f32 %v2390_v33, %v1503_v0  ;;  %v1478_v34 = vpop.f32.mrb[7].mxu0  ;;  %v3859_v35 = vsel %vm1494_vm0, %v2389_v30, %v1507_v31 }
 0x908   : > { %v3861_v36 = vsel %vm1492_vm5, %v1475_v10, %v1505_v32  ;;  %vm1493_vm7 = vcmp.gt.f32.partialorder %v1478_v34, 0.0  ;;  %v1506_v37 = vmul.f32 %v1503_v0, %v1478_v34  ;;  %v1532_v43 = vmul.f32 %v3859_v35, %v3859_v35 }
 0x909   : > { %v1530_v38 = vmul.f32 %v3861_v36, %v3861_v36  ;;  %v3865_v39 = vsel %vm1495_vm6, %v2390_v33, %v1508_v12  ;;  %v1513_v41 = vsel %vm874_vm4, %v3861_v36, 0.0  ;;  %v1516_v25 = vsel %vm874_vm4, %v3859_v35, 0.0 }
 0x90a   : > { %v3867_v40 = vsel %vm1493_vm7, %v1478_v34, %v1506_v37  ;;  %v1533_v50 = vmul.f32 %v3865_v39, %v3865_v39  ;;  %v1518_v58 = vsel %vm874_vm4, %v3865_v39, 0.0  ;;  %v1537_v47 = vsel %vm874_vm4, %v1532_v43, 0.0 }
 0x90b   : > { %v1514_v44 = vsel %vm874_vm4, %v3867_v40, 0.0  ;;  %v1531_v49 = vmul.f32 %v3867_v40, %v3867_v40  ;;  %v1534_v46 = vsel %vm874_vm4, %v1530_v38, 0.0 }
 0x90c   : > { %v1515_v45 = vadd.f32 %v1514_v44, %v1513_v41  ;;  %v1539_v60 = vsel %vm874_vm4, %v1533_v50, 0.0 }
 0x90d   : > { %v1535_v42 = vsel %vm874_vm4, %v1531_v49, 0.0 }
 0x90e   : > { %v1517_v54 = vadd.f32 %v1516_v25, %v1515_v45  ;;  %v1536_v29 = vadd.f32 %v1535_v42, %v1534_v46 }
 0x910   : > { %v1519_v55 = vadd.f32 %v1518_v58, %v1517_v54  ;;  %v1538_v24 = vadd.f32 %v1537_v47, %v1536_v29 }
 0x912   : > { %1520 = vadd.xlane.f32.xlu1 %v1519_v55  ;;  %v1540_v28 = vadd.f32 %v1539_v60, %v1538_v24 }
 0x914   : > { %1541 = vadd.xlane.f32.xlu0 %v1540_v28 }
 0x923   : > { %1570 = vperm.xlu1 %2615, %v1555_v48  }
 0x927   : > { %1575 = vperm.xlu1 %2615, %v1556_v51  }
 0x92a   : > { %1565 = vperm.xlu0 %2614, %v1554_v53  }
 0x92b   : > { %1603 = vperm.xlu1 %2615, %v1597_v56  }
 0x92e   : > { %1580 = vperm.xlu0 %2614, %v1557_v57  }
 0x92f   : > { %1613 = vperm.xlu1 %2615, %v1599_v61  }
 0x932   : > { %1608 = vperm.xlu0 %2614, %v1598_v62  }
 0x933   : > { %2616 = vset.pattern.permute.xlu1 %v3129_v59 }
 0x934   : > { %1671 = vperm.xlu1 %2616, %v1630_v63  }
 0x936   : > { %1618 = vperm.xlu0 %2614, %v1600_v1  }
 0x938   : > { %1679 = vperm.xlu1 %2616, %v1632_v2  }
 0x93a   : > { %2617 = vset.pattern.permute.xlu0 %v3129_v59 }
 0x93b   : > { %1675 = vperm.xlu0 %2617, %v1631_v3  }
 0x93c   : > { %2618 = vset.pattern.permute.xlu1 %v3128_v52 }
 0x93d   : > { %1715 = vperm.xlu1 %2618, %v1630_v63  }
 0x93f   : > { %2619 = vset.pattern.permute.xlu0 %v3128_v52 }
 0x940   : > { %1719 = vperm.xlu0 %2619, %v1631_v3  }
 0x941   : > { %2620 = vset.pattern.permute.xlu1 %v3129_v59 }
 0x942   : > { %1683 = vperm.xlu1 %2620, %v1633_v4  }
 0x944   : > { %1727 = vperm.xlu0 %2619, %v1633_v4  }
 0x946   : > { %2621 = vset.pattern.permute.xlu1 %v3128_v52 }
 0x947   : > { %1723 = vperm.xlu1 %2621, %v1632_v2  }
 0x948   : > { %2623 = vset.pattern.permute.xlu0 %v3127_v9 }
 0x949   : > { %1649 = vperm.xlu0 %2623, %v1631_v3  }
 0x94b   : > { %2622 = vset.pattern.permute.xlu1 %v3127_v9 }
 0x94c   : > { %1644 = vperm.xlu1 %2622, %v1630_v63  }
 0x94d   : > { %1774 = vperm.xlu0 %2623, %v2332_v5  }
 0x950   : > { %1654 = vperm.xlu1 %2622, %v1632_v2  }
 0x954   : > { %1659 = vperm.xlu1 %2622, %v1633_v4  }
 0x99f   : > { %v1521_v6 = vpop.xlane.xlu1 %1520 }
 0x9a0   : > { %v1522_v7 = vrot.slane %v1521_v6, 4 }
 0x9a1   : > { %v1542_v8 = vpop.xlane.xlu0 %1541 }
 0x9a2   : > { %v1523_v11 = vadd.f32 %v1522_v7, %v1521_v6  ;;  %v1543_v59 = vrot.slane %v1542_v8, 4 }
 0x9a3   : > { %v1571_v26 = vpop.permute.xlu1 %1570 }
 0x9a4   : > { %v1524_v13 = vrot.slane %v1523_v11, 2  ;;  %v1544_v14 = vadd.f32 %v1543_v59, %v1542_v8 }
 0x9a6   : > { %v1545_v15 = vrot.slane %v1544_v14, 2  ;;  %v1525_v52 = vadd.f32 %v1524_v13, %v1523_v11 }
 0x9a7   : > { %v1576_v0 = vpop.permute.xlu1 %1575 }
 0x9a8   : > { %v1526_v16 = vrot.slane %v1525_v52, 1  ;;  %v1546_v17 = vadd.f32 %v1545_v15, %v1544_v14  ;;  %v3907_v14 = vld [vmem:[#allocation2] sm:$0xff] }
 0x9a9   : > { %v1566_v27 = vpop.permute.xlu0 %1565 }
 0x9aa   : > { %v1527_v18 = vadd.f32 %v1526_v16, %v1525_v52  ;;  %v1547_v20 = vrot.slane %v1546_v17, 1 }
 0x9ab   : > { %v1604_v31 = vpop.permute.xlu1 %1603 }
 0x9ac   : > { %2415 = vpush %v1527_v18  ;;  %v1548_v9 = vadd.f32 %v1547_v20, %v1546_v17 }
 0x9ad   : > { %v1581_v30 = vpop.permute.xlu0 %1580 }
 0x9ae   : > { %2417 = vpush %v1548_v9 }
 0x9af   : > { %v1614_v38 = vpop.permute.xlu1 %1613 }
 0x9b1   : > { %v1609_v37 = vpop.permute.xlu0 %1608 }
 0x9b3   : > { %v1672_v42 = vpop.permute.xlu1 %1671 }
 0x9dd   : > { %s2416_s15 = spop %2415 }
 0x9de   : > { %s1529_s17 = smul.f32 0.00048828125, %s2416_s15 }
 0x9df   : > { %s2418_s3 = spop %2417 }
 0x9e0   : > { %s1551_s5 = smul.f32 %s1529_s17, %s1529_s17  ;;  %v1558_v10 = vstv %s1529_s17  ;;  %s657_s17 = scalar_lea.vmem [#allocation24], %s2300_s0 }
 0x9e1   : > { %s1550_s7 = smul.f32 0.00048828125, %s2418_s3  ;;  %v1559_v32 = vsub.f32 %v3861_v36, %v1558_v10  ;;  %v1560_v33 = vsub.f32 %v3867_v40, %v1558_v10  ;;  %v1561_v12 = vsub.f32 %v3859_v35, %v1558_v10  ;;  %v1562_v34 = vsub.f32 %v3865_v39, %v1558_v10  ;;  %v1619_v36 = vpop.permute.xlu0 %1618  ;;  %v1680_v39 = vpop.permute.xlu1 %1679  ;;  %s2079_s3 = sshll.u32 %s657_s17, 4  ;;  %s4005_s3 = int_to_ptr.vmem [resolvable:$true] %s2079_s3 }
 0x9e2   : > { %s2066_s0 = scalar_lea.sflag [#allocation5], %s3641_s1 }
 0x9e3   : > { %s1552_s9 = ssub.f32 %s1550_s7, %s1551_s5  ;;  %v1583_v43 = vmul.f32 %v1566_v27, %v1559_v32  ;;  %v1584_v41 = vmul.f32 %v1571_v26, %v1560_v33  ;;  %v1585_v44 = vmul.f32 %v1576_v0, %v1561_v12  ;;  %v1586_v49 = vmul.f32 %v1581_v30, %v1562_v34  ;;  %s2342_s5 = sshll.u32 %s4134_s6, 8 }
 0x9e4   : > { %s3010_s6 = scalar_lea.vmem %s4005_s3, 256 }
 0x9e5   : > { %s1587_s14 = sadd.f32 1e-08, %s1552_s9  ;;  %v1676_v47 = vpop.permute.xlu0 %1675  ;;  %v1716_v60 = vpop.permute.xlu1 %1715  ;;  %p3011_p4 = scmp.ne.s32.totalorder %s4005_s3, %s3010_s6 }
 0x9e7   : > { %v1588_v21 = vstv %s1587_s14  ;;  %s4147_s14 = sld [smem:[#allocation48_spill]]  ;;  %p3012_p11 = pnand %p3011_p4, %p4148_p8 }
 0x9e8   : > { %2637 = vrsqrt.f32 %v1588_v21 }
 0x9e9   : > { %v1720_v57 = vpop.permute.xlu0 %1719  ;;  %v1684_v62 = vpop.permute.xlu1 %1683  ;;  %p3013_p3 = pneg %p3012_p11 }
 0x9ed   : > { %v1728_v2 = vpop.permute.xlu0 %1727  ;;  %v1724_v3 = vpop.permute.xlu1 %1723 }
 0x9f1   : > { %v1645_v6 = vpop.permute.xlu1 %1644  ;;  %v1650_v8 = vpop.permute.xlu0 %1649 }
 0x9f2   : > { %v2638_v23 = vpop.eup %2637  ;;  %v1662_v15 = vmul.f32 %v3907_v14, %v1645_v6  ;;  %v1664_v26 = vmul.f32 %v3907_v14, %v1650_v8 }
 0x9f3   : > { %2419 = vpush %v2638_v23 }
 0x9f5   : > { %v1655_v7 = vpop.permute.xlu1 %1654  ;;  %v1775_v11 = vpop.permute.xlu0 %1774 }
 0x9f9   : > { %v1660_v59 = vpop.permute.xlu1 %1659 }
 0x9fa   : > { %v1668_v10 = vmul.f32 %v3907_v14, %v1660_v59 }
 0xa24   : > { %s2420_s11 = spop %2419 }
 0xa25   : > { %v1591_v45 = vstv %s2420_s11  ;;  %s4010_s11 = scalar_lea.hbm %s4147_s14, %s2342_s5 }
 0xa26   : > { %v1592_v25 = vmul.f32 %v1591_v45, %v1583_v43  ;;  %v1593_v50 = vmul.f32 %v1591_v45, %v1584_v41  ;;  %v1594_v46 = vmul.f32 %v1591_v45, %v1585_v44  ;;  %v1595_v54 = vmul.f32 %v1591_v45, %v1586_v49 }
 0xa28   : > { %v1621_v29 = vadd.f32 %v1604_v31, %v1592_v25  ;;  %v1622_v40 = vadd.f32 %v1609_v37, %v1593_v50  ;;  %v1623_v58 = vadd.f32 %v1614_v38, %v1594_v46  ;;  %v1624_v35 = vadd.f32 %v1619_v36, %v1595_v54 }
 0xa29   : > { %v1666_v31 = vmul.f32 %v3907_v14, %v1655_v7 }
 0xa2a   : > { %1625 = vst.msk [vmem:[#allocation2 + $0x8] sm:$0xff] %vm874_vm4, %v1621_v29  ;;  %1626 = vst.msk [vmem:[#allocation2 + $0x18] sm:$0xff] %vm874_vm4, %v1622_v40 }
 0xa2b   : > { %1627 = vst.msk [vmem:[#allocation2 + $0x28] sm:$0xff] %vm874_vm4, %v1623_v58  ;;  %1628 = vst.msk [vmem:[#allocation2 + $0x38] sm:$0xff] %vm874_vm4, %v1624_v35 }
 0xa31   : > { %v1637_v55 = vld [vmem:[#allocation2 + $0x18] sm:$0xff]  ;;  %v1635_v24 = vld [vmem:[#allocation2 + $0x8] sm:$0xff] }
 0xa32   : > { %v1687_v28 = vmul.f32 %v1676_v47, %v1637_v55  ;;  %v1686_v48 = vmul.f32 %v1672_v42, %v1635_v24  ;;  %v1639_v51 = vld [vmem:[#allocation2 + $0x28] sm:$0xff]  ;;  %v1730_v53 = vmul.f32 %v1716_v60, %v1635_v24  ;;  %v1641_v61 = vld [vmem:[#allocation2 + $0x38] sm:$0xff]  ;;  %v1731_v1 = vmul.f32 %v1720_v57, %v1637_v55 }
 0xa33   : > { %v1688_v56 = vmul.f32 %v1680_v39, %v1639_v51  ;;  %v1689_v63 = vmul.f32 %v1684_v62, %v1641_v61  ;;  %v1733_v4 = vmul.f32 %v1728_v2, %v1641_v61  ;;  %v1732_v5 = vmul.f32 %v1724_v3, %v1639_v51 }
 0xa34   : > { %1696 = vrot.lane.b32.xlu0 %v1687_v28, %s3131_s18  ;;  %1694 = vrot.lane.b32.xlu1 %v1686_v48, %s3131_s18  ;;  %v1663_v52 = vmul.f32 %v1645_v6, %v1635_v24  ;;  %v1665_v27 = vmul.f32 %v1650_v8, %v1637_v55  ;;  %v1667_v34 = vmul.f32 %v1655_v7, %v1639_v51 }
 0xa35   : > { %v1669_v37 = vmul.f32 %v1660_v59, %v1641_v61 }
 0xa38   : > { %1738 = vrot.lane.b32.xlu0 %v1730_v53, %s3133_s21  ;;  %1698 = vrot.lane.b32.xlu1 %v1688_v56, %s3131_s18 }
 0xa3c   : > { %1700 = vrot.lane.b32.xlu0 %v1689_v63, %s3131_s18  ;;  %1740 = vrot.lane.b32.xlu1 %v1731_v1, %s3133_s21  ;;  %s3134_s18 = smov 2  }
 0xa40   : > { %1744 = vrot.lane.b32.xlu0 %v1733_v4, %s3133_s21  ;;  %1742 = vrot.lane.b32.xlu1 %v1732_v5, %s3133_s21  ;;  %s3135_s21 = smov [#allocation24]  }
 0xaa6   : > { %v1697_v13 = vpop.permute.xlu0 %1696  ;;  %v1695_v16 = vpop.permute.xlu1 %1694 }
 0xaa7   : > { %v1706_v17 = vadd.f32 %v1695_v16, %v1662_v15  ;;  %v1707_v18 = vadd.f32 %v1695_v16, %v1663_v52  ;;  %v1708_v32 = vadd.f32 %v1697_v13, %v1664_v26  ;;  %v1709_v33 = vadd.f32 %v1697_v13, %v1665_v27 }
 0xaaa   : > { %v1739_v20 = vpop.permute.xlu0 %1738  ;;  %v1699_v23 = vpop.permute.xlu1 %1698 }
 0xaab   : > { %v1750_v9 = vadd.f32 %v1739_v20, %v1706_v17  ;;  %v1751_v21 = vadd.f32 %v1739_v20, %v1707_v18  ;;  %v1710_v45 = vadd.f32 %v1699_v23, %v1666_v31  ;;  %v1711_v42 = vadd.f32 %v1699_v23, %v1667_v34 }
 0xaad   : > { %v1777_v0 = vmul.f32 %v1775_v11, %v1750_v9  ;;  %vm1761_vm1 = vcmp.gt.f32.partialorder %v1751_v21, 0.0  ;;  %v1778_v30 = vmul.f32 %v1775_v11, %v1751_v21  ;;  %vm1760_vm8 = vcmp.gt.f32.partialorder %v1750_v9, 0.0 }
 0xaae   : > { %v1701_v12 = vpop.permute.xlu0 %1700  ;;  %v1741_v38 = vpop.permute.xlu1 %1740 }
 0xaaf   : > { %v3913_v43 = vsel %vm1761_vm1, %v1751_v21, %v1778_v30  ;;  %v3915_v41 = vsel %vm1760_vm8, %v1750_v9, %v1777_v0  ;;  %v1752_v44 = vadd.f32 %v1741_v38, %v1708_v32  ;;  %v1753_v49 = vadd.f32 %v1741_v38, %v1709_v33 }
 0xab0   : > { %1803 = vrot.lane.b32.xlu0 %v3913_v43, %s3134_s18  ;;  %1801 = vrot.lane.b32.xlu1 %v3915_v41, %s3134_s18  ;;  %v1712_v25 = vadd.f32 %v1701_v12, %v1668_v10  ;;  %v1713_v50 = vadd.f32 %v1701_v12, %v1669_v37  ;;  %v1843_v61 = vmul.f32 %v3915_v41, %v3915_v41 }
 0xab1   : > { %v1779_v46 = vmul.f32 %v1775_v11, %v1752_v44  ;;  %vm1763_vm9 = vcmp.gt.f32.partialorder %v1753_v49, 0.0  ;;  %v1780_v36 = vmul.f32 %v1775_v11, %v1753_v49  ;;  %vm1762_vm10 = vcmp.gt.f32.partialorder %v1752_v44, 0.0 }
 0xab2   : > { %v1745_v54 = vpop.permute.xlu0 %1744  ;;  %v1743_v58 = vpop.permute.xlu1 %1742  ;;  %v1844_v62 = vmul.f32 %v3913_v43, %v3913_v43 }
 0xab3   : > { %v1756_v29 = vadd.f32 %v1745_v54, %v1712_v25  ;;  %v1757_v40 = vadd.f32 %v1745_v54, %v1713_v50  ;;  %v1754_v35 = vadd.f32 %v1743_v58, %v1710_v45  ;;  %v1755_v39 = vadd.f32 %v1743_v58, %v1711_v42  ;;  %v1904_v58 = vld [vmem:[#allocation17 + $0x28] sm:$0xff] }
 0xab4   : > { %v3921_v47 = vsel %vm1763_vm9, %v1753_v49, %v1780_v36  ;;  %v3923_v55 = vsel %vm1762_vm10, %v1752_v44, %v1779_v46 }
 0xab5   : > { %1807 = vrot.lane.b32.xlu0 %v3921_v47, %s3134_s18  ;;  %1805 = vrot.lane.b32.xlu1 %v3923_v55, %s3134_s18  ;;  %v1781_v24 = vmul.f32 %v1775_v11, %v1754_v35  ;;  %vm1765_vm11 = vcmp.gt.f32.partialorder %v1755_v39, 0.0  ;;  %v1782_v60 = vmul.f32 %v1775_v11, %v1755_v39  ;;  %vm1764_vm12 = vcmp.gt.f32.partialorder %v1754_v35, 0.0 }
 0xab6   : > { %v1783_v28 = vmul.f32 %v1775_v11, %v1756_v29  ;;  %v1784_v53 = vmul.f32 %v1775_v11, %v1757_v40  ;;  %vm1767_vm13 = vcmp.gt.f32.partialorder %v1757_v40, 0.0  ;;  %vm1766_vm14 = vcmp.gt.f32.partialorder %v1756_v29, 0.0 }
 0xab7   : > { %v3929_v48 = vsel %vm1765_vm11, %v1755_v39, %v1782_v60  ;;  %v3931_v51 = vsel %vm1764_vm12, %v1754_v35, %v1781_v24  ;;  %v1845_v63 = vmul.f32 %v3923_v55, %v3923_v55  ;;  %v1846_v1 = vmul.f32 %v3921_v47, %v3921_v47  ;;  %v1905_v35 = vld [vmem:[#allocation17 + $0x30] sm:$0xff]  ;;  %v1958_v39 = vld [vmem:[#allocation18 + $0x20] sm:$0xff] }
 0xab8   : > { %v3937_v56 = vsel %vm1767_vm13, %v1757_v40, %v1784_v53  ;;  %v3939_v57 = vsel %vm1766_vm14, %v1756_v29, %v1783_v28  ;;  %v1847_v2 = vmul.f32 %v3931_v51, %v3931_v51  ;;  %v1848_v3 = vmul.f32 %v3929_v48, %v3929_v48  ;;  %v1960_v24 = vld [vmem:[#allocation18 + $0x30] sm:$0xff]  ;;  %v1903_v60 = vld [vmem:[#allocation17 + $0x20] sm:$0xff]  ;;  %v1906_v28 = vld [vmem:[#allocation17 + $0x38] sm:$0xff] }
 0xab9   : > { %1811 = vrot.lane.b32.xlu0 %v3929_v48, %s3134_s18  ;;  %1809 = vrot.lane.b32.xlu1 %v3931_v51, %s3134_s18  ;;  %v1849_v4 = vmul.f32 %v3939_v57, %v3939_v57  ;;  %v1850_v5 = vmul.f32 %v3937_v56, %v3937_v56  ;;  %v1959_v53 = vld [vmem:[#allocation18 + $0x28] sm:$0xff] }
 0xabd   : > { %1815 = vrot.lane.b32.xlu0 %v3937_v56, %s3134_s18  ;;  %1813 = vrot.lane.b32.xlu1 %v3939_v57, %s3134_s18 }
 0xac1   : > { %1861 = vrot.lane.b32.xlu0 %v1844_v62, %s3134_s18  ;;  %1859 = vrot.lane.b32.xlu1 %v1843_v61, %s3134_s18  ;;  %v1961_v61 = vld [vmem:[#allocation18 + $0x38] sm:$0xff] }
 0xac5   : > { %1865 = vrot.lane.b32.xlu0 %v1846_v1, %s3134_s18  ;;  %1863 = vrot.lane.b32.xlu1 %v1845_v63, %s3134_s18 }
 0xac9   : > { %1869 = vrot.lane.b32.xlu0 %v1848_v3, %s3134_s18  ;;  %1867 = vrot.lane.b32.xlu1 %v1847_v2, %s3134_s18 }
 0xacd   : > { %1873 = vrot.lane.b32.xlu0 %v1850_v5, %s3134_s18  ;;  %1871 = vrot.lane.b32.xlu1 %v1849_v4, %s3134_s18 }
 0xb22   : > { %v1804_v6 = vpop.permute.xlu0 %1803  ;;  %v1802_v7 = vpop.permute.xlu1 %1801 }
 0xb23   : > { %v1818_v13 = vsel %vm1817_vm15, %v1802_v7, %v1804_v6 }
 0xb24   : > { %v1826_v18 = vsel %vm874_vm4, %v1818_v13, 0.0 }
 0xb27   : > { %v1808_v8 = vpop.permute.xlu0 %1807  ;;  %v1806_v11 = vpop.permute.xlu1 %1805 }
 0xb28   : > { %v1819_v59 = vsel %vm1817_vm15, %v1806_v11, %v1808_v8 }
 0xb29   : > { %v1827_v15 = vsel %vm874_vm4, %v1819_v59, 0.0 }
 0xb2a   : > { %v1828_v9 = vadd.f32 %v1827_v15, %v1826_v18 }
 0xb2b   : > { %v1812_v52 = vpop.permute.xlu0 %1811  ;;  %v1810_v16 = vpop.permute.xlu1 %1809 }
 0xb2c   : > { %v1820_v17 = vsel %vm1817_vm15, %v1810_v16, %v1812_v52 }
 0xb2d   : > { %v1829_v20 = vsel %vm874_vm4, %v1820_v17, 0.0 }
 0xb2e   : > { %v1830_v26 = vadd.f32 %v1829_v20, %v1828_v9 }
 0xb2f   : > { %v1816_v21 = vpop.permute.xlu0 %1815  ;;  %v1814_v23 = vpop.permute.xlu1 %1813 }
 0xb30   : > { %v1821_v27 = vsel %vm1817_vm15, %v1814_v23, %v1816_v21 }
 0xb31   : > { %v1831_v0 = vsel %vm874_vm4, %v1821_v27, 0.0 }
 0xb32   : > { %v1832_v30 = vadd.f32 %v1831_v0, %v1830_v26 }
 0xb33   : > { %v1862_v31 = vpop.permute.xlu0 %1861  ;;  %v1860_v10 = vpop.permute.xlu1 %1859 }
 0xb34   : > { %1833 = vadd.xlane.f32.xlu1 %v1832_v30  ;;  %v1875_v34 = vsel %vm1817_vm15, %v1860_v10, %v1862_v31 }
 0xb35   : > { %v1883_v45 = vsel %vm874_vm4, %v1875_v34, 0.0 }
 0xb37   : > { %v1866_v32 = vpop.permute.xlu0 %1865  ;;  %v1864_v33 = vpop.permute.xlu1 %1863 }
 0xb38   : > { %v1876_v12 = vsel %vm1817_vm15, %v1864_v33, %v1866_v32 }
 0xb39   : > { %v1884_v37 = vsel %vm874_vm4, %v1876_v12, 0.0 }
 0xb3a   : > { %v1885_v25 = vadd.f32 %v1884_v37, %v1883_v45 }
 0xb3b   : > { %v1870_v38 = vpop.permute.xlu0 %1869  ;;  %v1868_v44 = vpop.permute.xlu1 %1867 }
 0xb3c   : > { %v1877_v49 = vsel %vm1817_vm15, %v1868_v44, %v1870_v38 }
 0xb3d   : > { %v1886_v42 = vsel %vm874_vm4, %v1877_v49, 0.0 }
 0xb3e   : > { %v1887_v54 = vadd.f32 %v1886_v42, %v1885_v25 }
 0xb3f   : > { %v1874_v50 = vpop.permute.xlu0 %1873  ;;  %v1872_v46 = vpop.permute.xlu1 %1871 }
 0xb40   : > { %v1878_v36 = vsel %vm1817_vm15, %v1872_v46, %v1874_v50 }
 0xb41   : > { %v1888_v29 = vsel %vm874_vm4, %v1878_v36, 0.0 }
 0xb42   : > { %v1889_v40 = vadd.f32 %v1888_v29, %v1887_v54 }
 0xb44   : > { %1890 = vadd.xlane.f32.xlu0 %v1889_v40 }
 0xb45   : > { %1923 = vperm.xlu1 %2622, %v1904_v58  }
 0xb49   : > { %1928 = vperm.xlu1 %2622, %v1905_v35  }
 0xb4d   : > { %1964 = vperm.xlu1 %2622, %v1958_v39  }
 0xb51   : > { %1974 = vperm.xlu1 %2622, %v1960_v24  }
 0xb5a   : > { %1918 = vperm.xlu0 %2623, %v1903_v60  }
 0xb5e   : > { %1933 = vperm.xlu0 %2623, %v1906_v28  }
 0xb62   : > { %1969 = vperm.xlu0 %2623, %v1959_v53  }
 0xb66   : > { %1979 = vperm.xlu0 %2623, %v1961_v61  }
 0xbc1   : > { %v1834_v62 = vpop.xlane.xlu1 %1833 }
 0xbc2   : > { %v1835_v63 = vrot.slane %v1834_v62, 4 }
 0xbc4   : > { %v1836_v1 = vadd.f32 %v1835_v63, %v1834_v62 }
 0xbc5   : > { %v1924_v17 = vpop.permute.xlu1 %1923 }
 0xbc6   : > { %v1837_v2 = vrot.slane %v1836_v1, 2 }
 0xbc8   : > { %v1838_v3 = vadd.f32 %v1837_v2, %v1836_v1 }
 0xbc9   : > { %v1929_v20 = vpop.permute.xlu1 %1928 }
 0xbca   : > { %v1839_v4 = vrot.slane %v1838_v3, 1 }
 0xbcc   : > { %v1840_v5 = vadd.f32 %v1839_v4, %v1838_v3 }
 0xbcd   : > { %v1965_v33 = vpop.permute.xlu1 %1964 }
 0xbce   : > { %2421 = vpush %v1840_v5 }
 0xbd1   : > { %v1891_v6 = vpop.xlane.xlu0 %1890  ;;  %v1975_v46 = vpop.permute.xlu1 %1974 }
 0xbd2   : > { %v1892_v7 = vrot.slane %v1891_v6, 4 }
 0xbd4   : > { %v1893_v8 = vadd.f32 %v1892_v7, %v1891_v6  ;;  %v2632_v6 = vld [vmem:[#allocation20 + $0x8] sm:$0xff]  }
 0xbd6   : > { %v1894_v11 = vrot.slane %v1893_v8, 2 }
 0xbd8   : > { %v1895_v59 = vadd.f32 %v1894_v11, %v1893_v8 }
 0xbd9   : > { %v1919_v18 = vpop.permute.xlu0 %1918 }
 0xbda   : > { %v1896_v13 = vrot.slane %v1895_v59, 1 }
 0xbdc   : > { %v1897_v15 = vadd.f32 %v1896_v13, %v1895_v59 }
 0xbdd   : > { %v1934_v9 = vpop.permute.xlu0 %1933 }
 0xbde   : > { %2423 = vpush %v1897_v15 }
 0xbe1   : > { %v1970_v12 = vpop.permute.xlu0 %1969 }
 0xbe5   : > { %v1980_v54 = vpop.permute.xlu0 %1979 }
 0xbff   : > { %s2422_s30 = spop %2421 }
 0xc00   : > { %s1842_s8 = smul.f32 0.00048828125, %s2422_s30 }
 0xc02   : > { %s1900_s10 = smul.f32 %s1842_s8, %s1842_s8  ;;  %v1907_v21 = vstv %s1842_s8 }
 0xc03   : > { %v1909_v23 = vsub.f32 %v3913_v43, %v1907_v21  ;;  %v1911_v26 = vsub.f32 %v3921_v47, %v1907_v21  ;;  %v1908_v27 = vsub.f32 %v3915_v41, %v1907_v21  ;;  %v1910_v0 = vsub.f32 %v3923_v55, %v1907_v21 }
 0xc04   : > { %v1913_v30 = vsub.f32 %v3929_v48, %v1907_v21  ;;  %v1915_v31 = vsub.f32 %v3937_v56, %v1907_v21  ;;  %v1912_v10 = vsub.f32 %v3931_v51, %v1907_v21  ;;  %v1914_v32 = vsub.f32 %v3939_v57, %v1907_v21 }
 0xc05   : > { %v1937_v34 = vmul.f32 %v1919_v18, %v1909_v23  ;;  %v1939_v37 = vmul.f32 %v1924_v17, %v1911_v26  ;;  %v1936_v43 = vmul.f32 %v1919_v18, %v1908_v27  ;;  %v1938_v38 = vmul.f32 %v1924_v17, %v1910_v0 }
 0xc06   : > { %v1941_v47 = vmul.f32 %v1929_v20, %v1913_v30  ;;  %v1943_v41 = vmul.f32 %v1934_v9, %v1915_v31  ;;  %v1940_v49 = vmul.f32 %v1929_v20, %v1912_v10  ;;  %v1942_v55 = vmul.f32 %v1934_v9, %v1914_v32 }
 0xc0f   : > { %s2424_s20 = spop %2423 }
 0xc10   : > { %s1899_s22 = smul.f32 0.00048828125, %s2424_s20 }
 0xc12   : > { %s1901_s24 = ssub.f32 %s1899_s22, %s1900_s10 }
 0xc14   : > { %s1944_s4 = sadd.f32 1e-08, %s1901_s24 }
 0xc16   : > { %v1945_v52 = vstv %s1944_s4 }
 0xc17   : > { %2639 = vrsqrt.f32 %v1945_v52 }
 0xc21   : > { %v2640_v16 = vpop.eup %2639 }
 0xc22   : > { %2425 = vpush %v2640_v16 }
 0xc53   : > { %s2426_s15 = spop %2425 }
 0xc54   : > { %v1948_v44 = vstv %s2426_s15 }
 0xc55   : > { %v1950_v45 = vmul.f32 %v1948_v44, %v1937_v34  ;;  %v1952_v48 = vmul.f32 %v1948_v44, %v1939_v37  ;;  %v1949_v42 = vmul.f32 %v1948_v44, %v1936_v43  ;;  %v1951_v56 = vmul.f32 %v1948_v44, %v1938_v38 }
 0xc56   : > { %v1954_v25 = vmul.f32 %v1948_v44, %v1941_v47  ;;  %v1956_v51 = vmul.f32 %v1948_v44, %v1943_v41  ;;  %v1953_v50 = vmul.f32 %v1948_v44, %v1940_v49  ;;  %v1955_v57 = vmul.f32 %v1948_v44, %v1942_v55 }
 0xc57   : > { %v1983_v36 = vadd.f32 %v1965_v33, %v1950_v45  ;;  %v1985_v29 = vadd.f32 %v1970_v12, %v1952_v48  ;;  %v1982_v40 = vadd.f32 %v1965_v33, %v1949_v42  ;;  %v1984_v58 = vadd.f32 %v1970_v12, %v1951_v56 }
 0xc58   : > { %v1987_v35 = vadd.f32 %v1975_v46, %v1954_v25  ;;  %v1989_v39 = vadd.f32 %v1980_v54, %v1956_v51  ;;  %v1986_v28 = vadd.f32 %v1975_v46, %v1953_v50  ;;  %v1988_v53 = vadd.f32 %v1980_v54, %v1955_v57 }
 0xc59   : > { %v1994_v24 = vpack.c.bf16 %v1985_v29, %v1983_v36  ;;  %v1993_v60 = vpack.c.bf16 %v1984_v58, %v1982_v40 }
 0xc5a   : > { %v1996_v61 = vpack.c.bf16 %v1989_v39, %v1987_v35  ;;  %v1995_v62 = vpack.c.bf16 %v1988_v53, %v1986_v28 }
 0xc5b   : > { %2008 = vrot.lane.b32.xlu0 %v1994_v24, %s3134_s18  ;;  %2006 = vrot.lane.b32.xlu1 %v1993_v60, %s3134_s18 }
 0xc5f   : > { %2012 = vrot.lane.b32.xlu0 %v1996_v61, %s3134_s18  ;;  %2010 = vrot.lane.b32.xlu1 %v1995_v62, %s3134_s18  ;;  %s3014_s18 = sshll.u32 %s3135_s21, 4  ;;  %s3015_s18 = int_to_ptr.vmem [resolvable:$false] %s3014_s18 }
 0xc60   : > { %s3016_s30 = scalar_lea.vmem %s3015_s18, 512  ;;  %p3017_p12 = scmp.lt.s32.totalorder %s4005_s3, %s3015_s18 }
 0xc61   : > { %p3018_p1 = scmp.lt.s32.totalorder %s3016_s30, %s3010_s6 }
 0xc63   : > { %p3019_p13 = por %p3018_p1, %p3017_p12 }
 0xc65   : > { %p3020_p0 = pnand %p3019_p13, %p3013_p3 }
 0xccd   : > { %v2009_v63 = vpop.permute.xlu0 %2008  ;;  %v2007_v1 = vpop.permute.xlu1 %2006 }
 0xcce   : > { %v2015_v2 = vsel %vm1817_vm15, %v2007_v1, %v2009_v63 }
 0xccf   : > { %2392 = vmatpush3.bf16.msra.mxu1 %v2015_v2 }
 0xcd0   : > { %2393 = vmatprep.subr.bf16.mxu1 %v3907_v14 }
 0xcd1   : > { %v2013_v3 = vpop.permute.xlu0 %2012  ;;  %v2011_v4 = vpop.permute.xlu1 %2010 }
 0xcd2   : > { %v2016_v5 = vsel %vm1817_vm15, %v2011_v4, %v2013_v3 }
 0xcd3   : > { %2394 = vmatpush3.bf16.msra.mxu1 %v2016_v5 }
 0xcd6   : > { %2396 = vmatmul.mubr.msk.bf16.vlgmr.msra.gmra.mrb[8].mxu1 %vm1374_vm3, %v2632_v6 }
 0xda9   : > { %v2056_v7 = vpop.f32.mrb[8].mxu1 }
 0xdaa   : > { %v2057_v8 = vadd.f32 %v2056_v7, %v3851_v19  ;;  %v2397_v14 = vpop.f32.mrb[9].mxu1 }
 0xdab   : > { %v2059_v11 = vpop.f32.mrb[10].mxu1 }
 0xdac   : > { %2063 = vst.msk [vmem:[%s657_s17] sm:$0xff] %vm874_vm4, %v2057_v8  ;;  %v2060_v59 = vadd.f32 %v2059_v11, %v3854_v22  ;;  %v2398_v13 = vpop.f32.mrb[11].mxu1 }
 0xdae   : > { %2064 = vst.msk [vmem:[%s657_s17 + $0x8] sm:$0xff] %vm874_vm4, %v2060_v59 }
 0xdaf   : > { %3023 = shalt.err (!%p3020_p0)
}
 0xdb0   : > { %s3024_s8 = scalar_lea.hbm %s4010_s11, 256  ;;  %s3028_s22 = scalar_lea.hbm %s4147_s14, 512 }
 0xdb1   : > { %p3025_p7 = scmp.ne.s32.totalorder %s4010_s11, %s3024_s8  ;;  %p3029_p10 = scmp.lt.u32.totalorder %s4010_s11, %s4147_s14 }
 0xdb2   : > { %p3030_p5 = scmp.lt.u32.totalorder %s3028_s22, %s3024_s8  ;;  %p3032_p4 = scmp.lt.u32.totalorder %s3024_s8, %s4010_s11 }
 0xdb3   : > { %p3026_p2 = pnand %p3025_p7, %p4148_p8 }
 0xdb4   : > { %p3031_p9 = por %p3030_p5, %p3029_p10 }
 0xdb5   : > { %p3027_p6 = pneg %p3026_p2 }
 0xdb6   : > { %p3033_p11 = por %p3032_p4, %p3031_p9 }
 0xdb8   : > { %p3034_p3 = pnand %p3033_p11, %p3027_p6 }
 0xdba   : > { %3037 = shalt.err (!%p3034_p3)
}
 0xdbb   : > { %s3136_s15 = smov 128   ;;  %s3137_s17 = smov 8  }
 0xdbc   : > { %2475 = dma.vmem_to_hbm [thread:$0]  (%p4148_p8), %s4005_s3, 256, %s4010_s11, %s2066_s0, %s3136_s15, %s3136_s15, %s3137_s17  }
 0xdbd PF: > { %s2094_s5 = sand.u32 1, %s3092_s25   ;;  %p4149_p12 = scmp.ne.s32.totalorder %s4125_s29, 0 }
 0xdbe   : > { %p4150_p1 = scmp.ge.s32.totalorder %s3104_s28, 2  ;;  %s2095_s7 = scalar_lea.sflag [#allocation5], %s2094_s5 }
 0xdc0   : > { %p2519_p13 = pnand %p4150_p1, %p4149_p12 }
 0xdc2   : > { %3087 = dma.done.wait (!%p2519_p13), %s2095_s7, 256  }
 0xdc3   : > { %3089 = vsyncadd (!%p2519_p13), %s2095_s7, 4294967040  ;;  %p34_p0 = scmp.ge.s32.totalorder %s3521_s2, 4   ;;  %s4151_s25 = smov %s3096_s26 }
 0xdc4   : > { %s4152_s26 = smov %s3100_s27  ;;  %s4153_s27 = smov %s3533_s19 }
 0xdc5   : > { %s4154_s28 = smov %s3521_s2  ;;  %36 = sbr.rel (!%p34_p0) target bundleno = 26 (0x1a), region = 183 }
 0xdcc   :  { %2100 = vsyncpa [#allocation4], 1 }
 0xdcd   :  { %2102 = vsyncpa [#allocation4 + $0x1], 1 }
 0xdce   :  { %2103 = vsyncpa [#allocation7], 1 }
 0xdcf   :  { %2105 = vsyncpa [#allocation7 + $0x1], 1 }
 0xdd0   :  { %2106 = vsyncpa [#allocation10], 1 }
 0xdd1   :  { %2107 = vsyncpa [#allocation13], 1 }
 0xdd2   :  { %2108 = vsyncpa [#allocation16], 1 }
 0xdd3   :  { %2109 = vsyncpa [#allocation19], 1 }
 0xdd4   :  { %2110 = vsyncpa [#allocation22], 1 }
 0xdd5   :  { %2111 = vsyncpa [#allocation5], 1 }
 0xdd6   :  { %2113 = vsyncpa [#allocation5 + $0x1], 1 }

// kernel: avse4_forward.6
= control target key start
LH: loop header
LB: loop body
LE: loop exit
PB: predicated region body
PF: predicated region fallthrough
CT: control target
= control target key end

     0   :  { %s6154_s0 = inlined_call_operand.hbm [shape: f32[2,64,2], index: 0, kind: input, shape index: {}]   ;;  %s6155_s1 = inlined_call_operand.hbm [shape: f32[5,64,1], index: 1, kind: input, shape index: {}, may-alias: {1,4}]   ;;  %s6156_s2 = inlined_call_operand.hbm [shape: f32[5,64,1], index: 2, kind: input, shape index: {}, may-alias: {2,5}]   ;;  %s6157_s3 = inlined_call_operand.hbm [shape: f32[5,64,3], index: 3, kind: input, shape index: {}]   ;;  %s6158_s4 = inlined_call_operand.hbm [shape: f32[5,64,1], index: 4, kind: input, shape index: {}, may-alias: {1,4}]   ;;  %s6159_s5 = inlined_call_operand.hbm [shape: f32[5,64,1], index: 5, kind: input, shape index: {}, may-alias: {2,5}]   ;;  %s6160_s6 = inlined_call_operand.hbm [shape: bf16[5,64,64], index: 6, kind: input, shape index: {}]   ;;  %s6161_s7 = inlined_call_operand.hbm [shape: f32[5,1,1], index: 7, kind: input, shape index: {}]   ;;  %s6162_s8 = inlined_call_operand.hbm [shape: f32[2,64,2], index: 8, kind: output, shape index: {}]  }
   0x1   :  { %6180 = sst [smem:[#allocation26_spill]] %s6155_s1 }
   0x2   :  { %13 = vsyncpa [#allocation4], 0 }
   0x3   :  { %15 = vsyncpa [#allocation4 + $0x1], 0 }
   0x4   :  { %16 = vsyncpa [#allocation7], 0 }
   0x5   :  { %17 = vsyncpa [#allocation10], 0 }
   0x6   :  { %18 = vsyncpa [#allocation13], 0 }
   0x7   :  { %19 = vsyncpa [#allocation16], 0 }
   0x8   :  { %20 = vsyncpa [#allocation5], 0 }
   0x9   :  { %22 = vsyncpa [#allocation5 + $0x1], 0  ;;  %s4637_s27 = smov 0   ;;  %s4639_s28 = smov 0  }
   0xa   :  { %s4641_s29 = smov 0   ;;  %s4643_s30 = smov 0  }
   0xb LB: > { %s4568_s9 = smov [#allocation6]   ;;  %s4658_s11 = sadd.s32 4294967295, %s4566_s30   ;;  %s4566_s30 = sphi %s4643_s30, %s6221_s30   ;;  %s4562_s29 = sphi %s4641_s29, %s6220_s29   ;;  %s4558_s28 = sphi %s4639_s28, %s6219_s28   ;;  %s4554_s27 = sphi %s4637_s27, %s6218_s27  }
   0xc   : > { %s244_s10 = sshll.u32 %s4568_s9, 4  ;;  %p3842_p0 = scmp.ge.s32.totalorder %s4566_s30, 1  ;;  %s4663_s10 = int_to_ptr.vmem [resolvable:$true] %s244_s10 }
   0xd   : > { %p6163_p1 = scmp.eq.s32.totalorder %s4658_s11, 0  ;;  %p232_p2 = scmp.lt.s32.totalorder %s4566_s30, 3 }
   0xe   : > { %s4569_s13 = smov [#allocation9]   ;;  %s4570_s16 = smov [#allocation12]  }
   0xf   : > { %p4665_p3 = pnand %p3842_p0, %p232_p2  ;;  %s270_s14 = sshll.u32 %s4569_s13, 4  ;;  %s4678_s14 = int_to_ptr.vmem [resolvable:$true] %s270_s14 }
  0x10   : > { %s296_s17 = sshll.u32 %s4570_s16, 4  ;;  %s6183_s1 = sld [smem:[#allocation26_spill]]  ;;  %s4680_s17 = int_to_ptr.vmem [resolvable:$true] %s296_s17 }
  0x11   : > { %s6181_s12 = scalar_select %p4665_p3, 1, 0 }
  0x12   : > { %p4076_p5 = pneg %p4665_p3 }
  0x14   : > { %p4674_p6 = pnand %p4076_p5, %p6163_p1 }
  0x16   : > { %s4258_s20 = scalar_lea.hbm %s6183_s1, 5120  ;;  %p4690_p8 = pneg %p4674_p6 }
  0x17   : > { %p4259_p7 = scmp.ne.s32.totalorder %s6183_s1, %s4258_s20  ;;  %p4265_p11 = scmp.lt.u32.totalorder %s4258_s20, %s6183_s1 }
  0x19   : > { %p4261_p9 = pnand %p4690_p8, %p4259_p7 }
  0x1b   : > { %p4262_p10 = pneg %p4261_p9 }
  0x1d   : > { %p4267_p12 = pnand %p4265_p11, %p4262_p10 }
  0x1f   : > { %4270 = shalt.err (!%p4267_p12)
}
  0x20   : > { %s4271_s26 = scalar_lea.vmem %s4663_s10, 5120  ;;  %p4279_p5 = scmp.lt.s32.totalorder %s4663_s10, %s4663_s10 }
  0x21   : > { %p4272_p13 = scmp.ne.s32.totalorder %s4663_s10, %s4271_s26  ;;  %p4280_p4 = scmp.lt.s32.totalorder %s4271_s26, %s4271_s26 }
  0x23   : > { %p4274_p0 = pnand %p4272_p13, %p4690_p8  ;;  %p4281_p7 = por %p4280_p4, %p4279_p5 }
  0x25   : > { %p4275_p2 = pneg %p4274_p0 }
  0x27   : > { %p4282_p9 = pnand %p4281_p7, %p4275_p2 }
  0x29   : > { %4285 = shalt.err (!%p4282_p9)
}
  0x2a   : > { %s6165_s9 = smov 128   ;;  %s4572_s13 = smov 8  }
  0x2b   : > { %4079 = dma.hbm_to_vmem [thread:$0]  (!%p4674_p6), %s6183_s1, 5120, %s4663_s10, [#allocation7], %s6165_s9, %s6165_s9, %s4572_s13  }
  0x2c   : > { %s4286_s21 = scalar_lea.hbm %s6157_s3, 5120 }
  0x2d   : > { %p4287_p4 = scmp.ne.s32.totalorder %s6157_s3, %s4286_s21  ;;  %p4293_p12 = scmp.lt.u32.totalorder %s4286_s21, %s6157_s3 }
  0x2f   : > { %p4289_p10 = pnand %p4287_p4, %p4690_p8 }
  0x31   : > { %p4290_p11 = pneg %p4289_p10 }
  0x33   : > { %p4295_p13 = pnand %p4293_p12, %p4290_p11 }
  0x35   : > { %4298 = shalt.err (!%p4295_p13)
}
  0x36   : > { %s4299_s10 = scalar_lea.vmem %s4678_s14, 5120  ;;  %p4307_p7 = scmp.lt.s32.totalorder %s4678_s14, %s4678_s14 }
  0x37   : > { %p4300_p0 = scmp.ne.s32.totalorder %s4678_s14, %s4299_s10  ;;  %p4308_p9 = scmp.lt.s32.totalorder %s4299_s10, %s4299_s10 }
  0x39   : > { %p4302_p2 = pnand %p4300_p0, %p4690_p8  ;;  %p4309_p4 = por %p4308_p9, %p4307_p7 }
  0x3b   : > { %p4303_p5 = pneg %p4302_p2 }
  0x3d   : > { %p4310_p10 = pnand %p4309_p4, %p4303_p5 }
  0x3f   : > { %4313 = shalt.err (!%p4310_p10)
}
  0x40   : > { %4085 = dma.hbm_to_vmem [thread:$0]  (!%p4674_p6), %s6157_s3, 5120, %s4678_s14, [#allocation10], %s6165_s9, %s6165_s9, %s4572_s13  }
  0x41   : > { %s4314_s21 = scalar_lea.hbm %s6159_s5, 5120 }
  0x42   : > { %p4315_p11 = scmp.ne.s32.totalorder %s6159_s5, %s4314_s21  ;;  %p4321_p0 = scmp.lt.u32.totalorder %s4314_s21, %s6159_s5 }
  0x44   : > { %p4317_p12 = pnand %p4315_p11, %p4690_p8 }
  0x46   : > { %p4318_p13 = pneg %p4317_p12 }
  0x48   : > { %p4323_p2 = pnand %p4321_p0, %p4318_p13 }
  0x4a   : > { %4326 = shalt.err (!%p4323_p2)
}
  0x4b   : > { %s4327_s14 = scalar_lea.vmem %s4680_s17, 5120  ;;  %p4335_p4 = scmp.lt.s32.totalorder %s4680_s17, %s4680_s17 }
  0x4c   : > { %p4328_p5 = scmp.ne.s32.totalorder %s4680_s17, %s4327_s14  ;;  %p4336_p10 = scmp.lt.s32.totalorder %s4327_s14, %s4327_s14 }
  0x4e   : > { %p4330_p7 = pnand %p4328_p5, %p4690_p8  ;;  %p4337_p11 = por %p4336_p10, %p4335_p4 }
  0x50   : > { %p4331_p9 = pneg %p4330_p7 }
  0x52   : > { %p4338_p12 = pnand %p4337_p11, %p4331_p9 }
  0x54   : > { %4341 = shalt.err (!%p4338_p12)
}
  0x55   : > { %4091 = dma.hbm_to_vmem [thread:$0]  (!%p4674_p6), %s6159_s5, 5120, %s4680_s17, [#allocation13], %s6165_s9, %s6165_s9, %s4572_s13  }
  0x56   : > { %s4573_s18 = smov [#allocation8]   ;;  %s4574_s20 = smov [#allocation11]  }
  0x57   : > { %s257_s19 = sshll.u32 %s4573_s18, 4  ;;  %s283_s21 = sshll.u32 %s4574_s20, 4  ;;  %s258_s19 = int_to_ptr.vmem [resolvable:$true] %s257_s19  ;;  %s284_s21 = int_to_ptr.vmem [resolvable:$true] %s283_s21 }
  0x58   : > { %s4342_s25 = scalar_lea.hbm %s6156_s2, 5120 }
  0x59   : > { %p4343_p13 = scmp.ne.s32.totalorder %s6156_s2, %s4342_s25  ;;  %p4349_p5 = scmp.lt.u32.totalorder %s4342_s25, %s6156_s2 }
  0x5b   : > { %p4345_p0 = pnand %p4343_p13, %p4690_p8 }
  0x5d   : > { %p4346_p2 = pneg %p4345_p0 }
  0x5f   : > { %p4351_p7 = pnand %p4349_p5, %p4346_p2 }
  0x61   : > { %4354 = shalt.err (!%p4351_p7)
}
  0x62   : > { %s4355_s17 = scalar_lea.vmem %s258_s19, 5120  ;;  %p4363_p11 = scmp.lt.s32.totalorder %s258_s19, %s258_s19 }
  0x63   : > { %p4356_p9 = scmp.ne.s32.totalorder %s258_s19, %s4355_s17  ;;  %p4364_p12 = scmp.lt.s32.totalorder %s4355_s17, %s4355_s17 }
  0x65   : > { %p4358_p4 = pnand %p4356_p9, %p4690_p8  ;;  %p4365_p1 = por %p4364_p12, %p4363_p11 }
  0x67   : > { %p4359_p10 = pneg %p4358_p4 }
  0x69   : > { %p4366_p3 = pnand %p4365_p1, %p4359_p10 }
  0x6b   : > { %4369 = shalt.err (!%p4366_p3)
}
  0x6c   : > { %4082 = dma.hbm_to_vmem [thread:$0]  (!%p4674_p6), %s6156_s2, 5120, %s258_s19, [#allocation7], %s6165_s9, %s6165_s9, %s4572_s13  }
  0x6d   : > { %s4370_s22 = scalar_lea.hbm %s6158_s4, 5120 }
  0x6e   : > { %p4371_p1 = scmp.ne.s32.totalorder %s6158_s4, %s4370_s22  ;;  %p4377_p0 = scmp.lt.u32.totalorder %s4370_s22, %s6158_s4 }
  0x70   : > { %p4373_p3 = pnand %p4371_p1, %p4690_p8 }
  0x72   : > { %p4374_p13 = pneg %p4373_p3 }
  0x74   : > { %p4379_p2 = pnand %p4377_p0, %p4374_p13 }
  0x76   : > { %4382 = shalt.err (!%p4379_p2)
}
  0x77   : > { %s4383_s10 = scalar_lea.vmem %s284_s21, 5120  ;;  %p4391_p4 = scmp.lt.s32.totalorder %s284_s21, %s284_s21 }
  0x78   : > { %p4384_p5 = scmp.ne.s32.totalorder %s284_s21, %s4383_s10  ;;  %p4392_p10 = scmp.lt.s32.totalorder %s4383_s10, %s4383_s10 }
  0x7a   : > { %p4386_p7 = pnand %p4384_p5, %p4690_p8  ;;  %p4393_p11 = por %p4392_p10, %p4391_p4 }
  0x7c   : > { %p4387_p9 = pneg %p4386_p7 }
  0x7e   : > { %p4394_p12 = pnand %p4393_p11, %p4387_p9 }
  0x80   : > { %4397 = shalt.err (!%p4394_p12)
}
  0x81   : > { %4088 = dma.hbm_to_vmem [thread:$0]  (!%p4674_p6), %s6158_s4, 5120, %s284_s21, [#allocation10], %s6165_s9, %s6165_s9, %s4572_s13  }
  0x82   : > { %s4575_s1 = smov [#allocation14]   ;;  %s4398_s22 = scalar_lea.hbm %s6160_s6, 2560 }
  0x83   : > { %s309_s16 = sshll.u32 %s4575_s1, 4  ;;  %p4399_p1 = scmp.ne.s32.totalorder %s6160_s6, %s4398_s22  ;;  %s310_s16 = int_to_ptr.vmem [resolvable:$true] %s309_s16 }
  0x84   : > { %p4405_p0 = scmp.lt.u32.totalorder %s4398_s22, %s6160_s6 }
  0x85   : > { %p4401_p3 = pnand %p4399_p1, %p4690_p8 }
  0x87   : > { %p4402_p13 = pneg %p4401_p3 }
  0x89   : > { %p4407_p2 = pnand %p4405_p0, %p4402_p13 }
  0x8b   : > { %4410 = shalt.err (!%p4407_p2)
}
  0x8c   : > { %s4411_s21 = scalar_lea.vmem %s310_s16, 2560  ;;  %p4419_p4 = scmp.lt.s32.totalorder %s310_s16, %s310_s16 }
  0x8d   : > { %p4412_p5 = scmp.ne.s32.totalorder %s310_s16, %s4411_s21  ;;  %p4420_p10 = scmp.lt.s32.totalorder %s4411_s21, %s4411_s21 }
  0x8f   : > { %p4414_p7 = pnand %p4412_p5, %p4690_p8  ;;  %p4421_p11 = por %p4420_p10, %p4419_p4 }
  0x91   : > { %p4415_p9 = pneg %p4414_p7 }
  0x93   : > { %p4422_p12 = pnand %p4421_p11, %p4415_p9 }
  0x95   : > { %4425 = shalt.err (!%p4422_p12)
}
  0x96   : > { %s4576_s10 = smov 64   ;;  %s4577_s19 = smov 4  }
  0x97   : > { %4094 = dma.hbm_to_vmem [thread:$0]  (!%p4674_p6), %s6160_s6, 2560, %s310_s16, [#allocation13], %s4576_s10, %s4576_s10, %s4577_s19  }
  0x98   : > { %s4578_s18 = smov [#allocation15]   ;;  %s4426_s25 = scalar_lea.hbm %s6161_s7, 80 }
  0x99   : > { %s322_s20 = sshll.u32 %s4578_s18, 4  ;;  %p4427_p1 = scmp.ne.s32.totalorder %s6161_s7, %s4426_s25  ;;  %s323_s20 = int_to_ptr.vmem [resolvable:$true] %s322_s20 }
  0x9a   : > { %p4433_p0 = scmp.lt.u32.totalorder %s4426_s25, %s6161_s7 }
  0x9b   : > { %p4429_p3 = pnand %p4427_p1, %p4690_p8 }
  0x9d   : > { %p4430_p13 = pneg %p4429_p3 }
  0x9f   : > { %p4435_p2 = pnand %p4433_p0, %p4430_p13 }
  0xa1   : > { %4438 = shalt.err (!%p4435_p2)
}
  0xa2   : > { %s4439_s16 = scalar_lea.vmem %s323_s20, 80  ;;  %s4446_s10 = scalar_lea.vmem %s323_s20, 96 }
  0xa3   : > { %p4440_p5 = scmp.ne.s32.totalorder %s323_s20, %s4439_s16  ;;  %p4447_p4 = scmp.lt.s32.totalorder %s323_s20, %s323_s20 }
  0xa4   : > { %p4448_p10 = scmp.lt.s32.totalorder %s4446_s10, %s4439_s16 }
  0xa5   : > { %p4442_p7 = pnand %p4440_p5, %p4690_p8 }
  0xa6   : > { %p4449_p11 = por %p4448_p10, %p4447_p4 }
  0xa7   : > { %p4443_p9 = pneg %p4442_p7 }
  0xa9   : > { %p4450_p12 = pnand %p4449_p11, %p4443_p9 }
  0xab   : > { %4453 = shalt.err (!%p4450_p12)
}
  0xac   : > { %s4579_s19 = smov 16   ;;  %s4580_s23 = smov 1  }
  0xad   : > { %4097 = dma.hbm_to_vmem [thread:$0]  (!%p4674_p6), %s6161_s7, 80, %s323_s20, [#allocation16], %s4579_s19, %s4579_s19, %s4580_s23  }
  0xae   : > { %s3841_s1 = sadd.s32 4294967294, %s4566_s30   ;;  %s4846_s18 = sadd.s32 1, %s4566_s30  }
  0xaf   : > { %s35_s22 = sadd.s32 1, %s4562_s29  ;;  %s32_s24 = ssub.s32 %s4566_s30, %s4846_s18 }
  0xb0   : > { %p42_p8 = scmp.ne.s32.totalorder %s4562_s29, %s4558_s28  ;;  %p33_p1 = scmp.eq.s32.totalorder %s32_s24, 0 }
  0xb1   : > { %p43_p3 = scmp.eq.s32.totalorder %s4566_s30, 0  ;;  %p48_p13 = scmp.ne.s32.totalorder %s4558_s28, %s4554_s27 }
  0xb2   : > { %p219_p0 = scmp.eq.s32.totalorder %s4658_s11, 1  ;;  %p6185_p5 = scmp.eq.s32.totalorder %s4658_s11, 0 }
  0xb3   : > { %s4858_s25 = scalar_select %p33_p1, %s4562_s29, %s35_s22  }
  0xb4   : > { %p44_p2 = por %p43_p3, %p42_p8  ;;  %p4862_p7 = por %p6185_p5, %p48_p13 }
  0xb5   : > { %p4866_p6 = por %p219_p0, %p42_p8  ;;  %p225_p9 = scmp.eq.s32.totalorder %s3841_s1, 1 }
  0xb6   : > { %p4113_p4 = scmp.lt.s32.totalorder %s4566_s30, 2  ;;  %s336_s26 = sand.u32 1, %s4562_s29  }
  0xb7   : > { %s6187_s20 = scalar_select %p4866_p6, 1, 0 }
  0xb8   : > { %p4872_p10 = por %p225_p9, %p48_p13  ;;  %s3851_s21 = sshll.u32 %s336_s26, 6 }
  0xb9   : > { %s3914_s16 = sshll.u32 %s4566_s30, 10  ;;  %s340_s9 = scalar_lea.vmem [#allocation3], %s3851_s21 }
  0xba   : > { %s6188_s14 = scalar_select %p4872_p10, 1, 0 }
  0xbb   : > { %s4880_s23 = scalar_lea.hbm %s6154_s0, %s3914_s16  ;;  %s347_s17 = sshll.u32 %s340_s9, 4  ;;  %s4886_s17 = int_to_ptr.vmem [resolvable:$true] %s347_s17 }
  0xbc   : > { %p4882_p11 = pnand %p4113_p4, %p44_p2  ;;  %s4888_s22 = scalar_lea.sflag [#allocation4], %s336_s26 }
  0xbd   : > { %s4454_s24 = scalar_lea.hbm %s4880_s23, 1024  ;;  %s4459_s10 = scalar_lea.hbm %s6154_s0, 2048 }
  0xbe   : > { %p4455_p12 = scmp.ne.s32.totalorder %s4880_s23, %s4454_s24  ;;  %p4456_p8 = pneg %p4882_p11 }
  0xbf   : > { %p4460_p13 = scmp.lt.u32.totalorder %s4880_s23, %s6154_s0  ;;  %p4461_p0 = scmp.lt.u32.totalorder %s4459_s10, %s4454_s24 }
  0xc0   : > { %p4457_p1 = pnand %p4456_p8, %p4455_p12  ;;  %p4463_p5 = scmp.lt.u32.totalorder %s4454_s24, %s4880_s23 }
  0xc1   : > { %p4462_p2 = por %p4461_p0, %p4460_p13 }
  0xc2   : > { %p4458_p3 = pneg %p4457_p1 }
  0xc3   : > { %p4464_p9 = por %p4463_p5, %p4462_p2 }
  0xc5   : > { %p4465_p4 = pnand %p4464_p9, %p4458_p3 }
  0xc7   : > { %4468 = shalt.err (!%p4465_p4)
}
  0xc8   : > { %s4469_s26 = scalar_lea.vmem %s4886_s17, 1024  ;;  %s4581_s21 = smov [#allocation3]  }
  0xc9   : > { %p4470_p12 = scmp.ne.s32.totalorder %s4886_s17, %s4469_s26  ;;  %s4474_s16 = sshll.u32 %s4581_s21, 4  ;;  %s4475_s16 = int_to_ptr.vmem [resolvable:$false] %s4474_s16 }
  0xca   : > { %s4476_s19 = scalar_lea.vmem %s4475_s16, 2048  ;;  %p4477_p6 = scmp.lt.s32.totalorder %s4886_s17, %s4475_s16 }
  0xcb   : > { %p4472_p1 = pnand %p4470_p12, %p4456_p8  ;;  %p4478_p13 = scmp.lt.s32.totalorder %s4476_s19, %s4469_s26 }
  0xcd   : > { %p4473_p10 = pneg %p4472_p1  ;;  %p4479_p0 = por %p4478_p13, %p4477_p6 }
  0xcf   : > { %p4480_p2 = pnand %p4479_p0, %p4473_p10 }
  0xd1   : > { %4483 = shalt.err (!%p4480_p2)
}
  0xd2   : > { %s6190_s24 = smov 128   ;;  %p6191_p8 = scmp.ne.s32.totalorder %s6181_s12, 0 }
  0xd3   : > { %4101 = dma.hbm_to_vmem [thread:$0]  (!%p4882_p11), %s4880_s23, 1024, %s4886_s17, %s4888_s22, %s6190_s24, %s6190_s24, %s4572_s13  }
  0xd4   : > { %359 = sbr.rel (%p6191_p8) target bundleno = 3064 (0xbf8), region = 52 }
  0xdb   : > { %s4922_s10 = sand.u32 1, %s4558_s28  }
  0xdc   : > { %s3855_s9 = sshll.u32 %s4922_s10, 6  ;;  %s362_s26 = scalar_lea.sflag [#allocation4], %s4922_s10 }
  0xdd   : > { %s4928_s1 = scalar_lea.vmem [#allocation3], %s3855_s9 }
  0xde   : > { %4529 = dma.done.wait (%p4862_p7), %s362_s26, 1024  }
  0xdf   : > { %4531 = vsyncadd (%p4862_p7), %s362_s26, 4294966272  ;;  %p6192_p6 = scmp.eq.s32.totalorder %s4658_s11, 0 }
  0xe1   : > { %4533 = dma.done.wait (%p6192_p6), [#allocation7], 10240   ;;  %p6193_p10 = pmov %p6192_p6 }
  0xe2   : > { %p6194_p11 = pmov %p6192_p6 }
  0xe3   : > { %4535 = vsyncadd (%p6193_p10), [#allocation7], 4294957056 }
  0xe4   : > { %4537 = dma.done.wait (%p6194_p11), [#allocation10], 10240   ;;  %p6195_p3 = pmov %p6192_p6 }
  0xe6   : > { %4539 = vsyncadd (%p6195_p3), [#allocation10], 4294957056  ;;  %p6196_p5 = pmov %p6195_p3 }
  0xe7   : > { %p6197_p9 = pmov %p6195_p3 }
  0xe8   : > { %4541 = dma.done.wait (%p6196_p5), [#allocation13], 7680  }
  0xe9   : > { %4543 = vsyncadd (%p6197_p9), [#allocation13], 4294959616  ;;  %p6198_p7 = pmov %p6195_p3 }
  0xea   : > { %p6199_p4 = pmov %p6195_p3 }
  0xeb   : > { %4545 = dma.done.wait (%p6198_p7), [#allocation16], 80  }
  0xec   : > { %4547 = vsyncadd (%p6199_p4), [#allocation16], 4294967216  ;;  %v6171_v0 = vmov 0   ;;  %v519_v1 = vld [vmem:[#allocation8 + $0x10] sm:$0xff]  ;;  %v520_v3 = vld [vmem:[#allocation8 + $0x18] sm:$0xff]  ;;  %vm435_vm0 = vcmask 7168  }
  0xed   : > { %4177 = vset.pattern.permute.xlu1 %v6171_v0  ;;  %4176 = vset.pattern.permute.xlu0 %v6171_v0  ;;  %v463_v2 = vld [vmem:[#allocation6 + $0x10] sm:$0xff]  ;;  %v464_v4 = vld [vmem:[#allocation6 + $0x18] sm:$0xff]  ;;  %vm444_vm1 = vcmask 31768   ;;  %v4583_v9 = vmov 0.0   ;;  %v614_v10 = vld [vmem:[#allocation9] sm:$0xff]  ;;  %v6169_v12 = vmov 1  }
  0xee   : > { %537 = vperm.xlu1 %4177, %v519_v1   ;;  %481 = vperm.xlu0 %4176, %v463_v2   ;;  %v468_v5 = vld [vmem:[#allocation6 + $0x38] sm:$0xff]  ;;  %v467_v6 = vld [vmem:[#allocation6 + $0x30] sm:$0xff]  ;;  %436 = vst.msk [vmem:[#allocation2] sm:$0xff] %vm435_vm0, %v4583_v9  ;;  %437 = vst.msk [vmem:[#allocation2 + $0x8] sm:$0xff] %vm435_vm0, %v4583_v9  ;;  %v6167_v14 = vmov 2   ;;  %s4586_s12 = smov 1  }
  0xef   : > { %v524_v7 = vld [vmem:[#allocation8 + $0x38] sm:$0xff]  ;;  %v523_v8 = vld [vmem:[#allocation8 + $0x30] sm:$0xff]  ;;  %438 = vst.msk [vmem:[#allocation2 + $0x10] sm:$0xff] %vm435_vm0, %v4583_v9  ;;  %439 = vst.msk [vmem:[#allocation2 + $0x18] sm:$0xff] %vm435_vm0, %v4583_v9  ;;  %s4587_s13 = smov 127   ;;  %s4588_s15 = smov 126  }
  0xf0   : > { %440 = vst.msk [vmem:[#allocation2 + $0x20] sm:$0xff] %vm435_vm0, %v4583_v9  ;;  %441 = vst.msk [vmem:[#allocation2 + $0x28] sm:$0xff] %vm435_vm0, %v4583_v9  ;;  %v615_v11 = vld [vmem:[#allocation9 + $0x8] sm:$0xff]  ;;  %v616_v13 = vld [vmem:[#allocation9 + $0x10] sm:$0xff]  ;;  %vm605_vm2 = vcmask 23560   ;;  %vm1016_vm5 = vcmask 523264  }
  0xf1   : > { %442 = vst.msk [vmem:[#allocation2 + $0x30] sm:$0xff] %vm435_vm0, %v4583_v9  ;;  %443 = vst.msk [vmem:[#allocation2 + $0x38] sm:$0xff] %vm435_vm0, %v4583_v9  ;;  %v4963_v15 = vld [vmem:[#allocation9 + $0x30] sm:$0xff]  ;;  %v617_v16 = vld [vmem:[#allocation9 + $0x18] sm:$0xff]  ;;  %s3915_s23 = sshll.u32 %s4658_s11, 10  ;;  %s425_s17 = scalar_lea.vmem [#allocation17], %s3855_s9 }
  0xf2   : > { %542 = vperm.xlu1 %4177, %v520_v3   ;;  %486 = vperm.xlu0 %4176, %v464_v4   ;;  %445 = vst.msk [vmem:[#allocation2] sm:$0xff] %vm444_vm1, %v4583_v9  ;;  %446 = vst.msk [vmem:[#allocation2 + $0x8] sm:$0xff] %vm444_vm1, %v4583_v9  ;;  %v618_v17 = vld [vmem:[#allocation9 + $0x20] sm:$0xff]  ;;  %v619_v18 = vld [vmem:[#allocation9 + $0x28] sm:$0xff]  ;;  %s3701_s22 = sshll.u32 %s425_s17, 4  ;;  %s6100_s16 = scalar_lea.hbm %s6162_s8, %s3915_s23  ;;  %s6102_s22 = int_to_ptr.vmem [resolvable:$true] %s3701_s22 }
  0xf3   : > { %447 = vst.msk [vmem:[#allocation2 + $0x10] sm:$0xff] %vm444_vm1, %v4583_v9  ;;  %448 = vst.msk [vmem:[#allocation2 + $0x18] sm:$0xff] %vm444_vm1, %v4583_v9  ;;  %v4970_v19 = vld [vmem:[#allocation9 + $0x38] sm:$0xff]  ;;  %v4981_v20 = vld [vmem:[%s4928_s1 + $0x10] sm:$0xff]  ;;  %s3688_s19 = scalar_lea.sflag [#allocation5], %s4922_s10  ;;  %s4484_s24 = scalar_lea.vmem %s6102_s22, 1024 }
  0xf4   : > { %449 = vst.msk [vmem:[#allocation2 + $0x20] sm:$0xff] %vm444_vm1, %v4583_v9  ;;  %450 = vst.msk [vmem:[#allocation2 + $0x28] sm:$0xff] %vm444_vm1, %v4583_v9  ;;  %v455_v21 = vmax.f32 %v4981_v20, 0.0  ;;  %v4985_v22 = vld [vmem:[%s4928_s1 + $0x18] sm:$0xff]  ;;  %v4989_v30 = vld [vmem:[%s4928_s1 + $0x30] sm:$0xff]  ;;  %p4485_p12 = scmp.ne.s32.totalorder %s6102_s22, %s4484_s24  ;;  %p6215_p1 = scmp.ne.s32.totalorder %s6187_s20, 0 }
  0xf5   : > { %451 = vst.msk [vmem:[#allocation2 + $0x30] sm:$0xff] %vm444_vm1, %v4583_v9  ;;  %452 = vst.msk [vmem:[#allocation2 + $0x38] sm:$0xff] %vm444_vm1, %v4583_v9  ;;  %v456_v26 = vmax.f32 %v4985_v22, 0.0  ;;  %v4993_v32 = vld [vmem:[%s4928_s1 + $0x38] sm:$0xff]  ;;  %v459_v34 = vmax.f32 %v4989_v30, 0.0  ;;  %v872_v52 = vld [vmem:[#allocation11] sm:$0xff] }
  0xf6   : > { %506 = vperm.xlu1 %4177, %v468_v5   ;;  %501 = vperm.xlu0 %4176, %v467_v6   ;;  %v460_v37 = vmax.f32 %v4993_v32, 0.0  ;;  %v3864_v38 = vld [vmem:[#allocation15] ss:$0 sm:$0xff]  ;;  %v873_v55 = vld [vmem:[#allocation11 + $0x8] sm:$0xff]  ;;  %v874_v63 = vld [vmem:[#allocation11 + $0x10] sm:$0xff]  ;;  %p4486_p13 = pnand %p4485_p12, %p6215_p1  ;;  %s4589_s9 = smov [#allocation17]  }
  0xf7   : > { %v928_v60 = vld [vmem:[#allocation12] sm:$0xff]  ;;  %v929_v61 = vld [vmem:[#allocation12 + $0x8] sm:$0xff]  ;;  %v875_v2 = vld [vmem:[#allocation11 + $0x18] sm:$0xff]  ;;  %s4488_s26 = sshll.u32 %s4589_s9, 4  ;;  %s4489_s26 = int_to_ptr.vmem [resolvable:$false] %s4488_s26 }
  0xf8   : > { %v930_v4 = vld [vmem:[#allocation12 + $0x10] sm:$0xff]  ;;  %v931_v5 = vld [vmem:[#allocation12 + $0x18] sm:$0xff]  ;;  %p4487_p0 = pneg %p4486_p13  ;;  %p4491_p2 = scmp.lt.s32.totalorder %s6102_s22, %s4489_s26 }
  0xf9   : > { %v4999_v45 = vld [vmem:[#allocation2] sm:$0xff]  ;;  %v5002_v48 = vld [vmem:[#allocation2 + $0x8] sm:$0xff] }
  0xfa   : > { %562 = vperm.xlu1 %4177, %v524_v7   ;;  %557 = vperm.xlu0 %4176, %v523_v8  }
  0xfb   : > { %v5020_v3 = vld [vmem:[#allocation2 + $0x20] sm:$0xff]  ;;  %v5022_v7 = vld [vmem:[#allocation2 + $0x28] sm:$0xff] }
  0xfe   : > { %4178 = vset.pattern.permute.xlu0 %v6169_v12  ;;  %4179 = vset.pattern.permute.xlu1 %v6169_v12 }
  0xff   : > { %679 = vperm.xlu0 %4178, %v614_v10   ;;  %683 = vperm.xlu1 %4179, %v615_v11  }
 0x103   : > { %687 = vperm.xlu0 %4178, %v616_v13   ;;  %4180 = vset.pattern.permute.xlu1 %v6167_v14 }
 0x104   : > { %759 = vperm.xlu1 %4180, %v614_v10  }
 0x107   : > { %703 = vperm.xlu0 %4178, %v4963_v15  }
 0x108   : > { %4181 = vset.pattern.permute.xlu1 %v6169_v12 }
 0x109   : > { %691 = vperm.xlu1 %4181, %v617_v16  }
 0x10b   : > { %4185 = vset.pattern.permute.xlu0 %v6167_v14 }
 0x10c   : > { %763 = vperm.xlu0 %4185, %v615_v11  }
 0x10d   : > { %4182 = vset.pattern.permute.xlu1 %v6167_v14 }
 0x10e   : > { %767 = vperm.xlu1 %4182, %v616_v13  }
 0x110   : > { %771 = vperm.xlu0 %4185, %v617_v16  }
 0x112   : > { %4183 = vset.pattern.permute.xlu1 %v6169_v12 }
 0x113   : > { %695 = vperm.xlu1 %4183, %v618_v17  }
 0x114   : > { %775 = vperm.xlu0 %4185, %v618_v17  }
 0x117   : > { %699 = vperm.xlu1 %4183, %v619_v18  }
 0x118   : > { %787 = vperm.xlu0 %4185, %v4970_v19  }
 0x11b   : > { %4184 = vset.pattern.permute.xlu1 %v6167_v14 }
 0x11c   : > { %779 = vperm.xlu1 %4184, %v619_v18   ;;  %4189 = vset.pattern.permute.xlu0 %v6171_v0 }
 0x11d   : > { %642 = vperm.xlu0 %4189, %v616_v13  }
 0x120   : > { %4186 = vset.pattern.permute.xlu1 %v6169_v12 }
 0x121   : > { %707 = vperm.xlu1 %4186, %v4970_v19  }
 0x125   : > { %4187 = vset.pattern.permute.xlu1 %v6167_v14 }
 0x126   : > { %783 = vperm.xlu1 %4187, %v4963_v15  }
 0x12a   : > { %4188 = vset.pattern.permute.xlu1 %v6171_v0 }
 0x12b   : > { %632 = vperm.xlu1 %4188, %v614_v10  }
 0x12f   : > { %637 = vperm.xlu1 %4188, %v615_v11   ;;  %v876_v11 = vld [vmem:[#allocation11 + $0x20] sm:$0xff] }
 0x133   : > { %647 = vperm.xlu1 %4188, %v617_v16  }
 0x16d   : > { %v538_v23 = vpop.permute.xlu1 %537  ;;  %v482_v24 = vpop.permute.xlu0 %481 }
 0x16e   : > { %v511_v25 = vmul.f32 %v482_v24, %v455_v21  ;;  %v933_v21 = vld [vmem:[#allocation12 + $0x28] sm:$0xff]  ;;  %v879_v24 = vld [vmem:[#allocation11 + $0x38] sm:$0xff] }
 0x170   : > { %v567_v27 = vadd.f32 %v538_v23, %v511_v25  ;;  %v878_v23 = vld [vmem:[#allocation11 + $0x30] sm:$0xff] }
 0x171   : > { %v543_v28 = vpop.permute.xlu1 %542  ;;  %v487_v29 = vpop.permute.xlu0 %486 }
 0x172   : > { %v512_v31 = vmul.f32 %v487_v29, %v456_v26  ;;  %585 = vrot.lane.b32.xlu1 %v567_v27, %s4586_s12 }
 0x174   : > { %v568_v33 = vadd.f32 %v543_v28, %v512_v31 }
 0x175   : > { %v507_v35 = vpop.permute.xlu1 %506  ;;  %v502_v36 = vpop.permute.xlu0 %501 }
 0x176   : > { %587 = vrot.lane.b32.xlu1 %v568_v33, %s4586_s12  ;;  %v515_v39 = vmul.f32 %v502_v36, %v459_v34  ;;  %v516_v42 = vmul.f32 %v507_v35, %v460_v37 }
 0x179   : > { %v563_v40 = vpop.permute.xlu1 %562  ;;  %v558_v41 = vpop.permute.xlu0 %557 }
 0x17a   : > { %v571_v43 = vadd.f32 %v558_v41, %v515_v39  ;;  %853 = vperm.xlu1 %4188, %v3864_v38   ;;  %v572_v44 = vadd.f32 %v563_v40, %v516_v42 }
 0x17c   : > { %593 = vrot.lane.b32.xlu0 %v571_v43, %s4586_s12 }
 0x17e   : > { %595 = vrot.lane.b32.xlu1 %v572_v44, %s4586_s12  ;;  %v680_v46 = vpop.permute.xlu0 %679  ;;  %v684_v47 = vpop.permute.xlu1 %683 }
 0x17f   : > { %v710_v49 = vmul.f32 %v680_v46, %v4999_v45  ;;  %v711_v50 = vmul.f32 %v684_v47, %v5002_v48 }
 0x180   : > { %652 = vperm.xlu0 %4189, %v618_v17  }
 0x182   : > { %657 = vperm.xlu1 %4188, %v619_v18   ;;  %v5006_v51 = vpop.permute.xlu0 %687 }
 0x183   : > { %v760_v53 = vpop.permute.xlu1 %759 }
 0x184   : > { %726 = vrot.lane.b32.xlu0 %v710_v49, %s4587_s13  ;;  %v790_v56 = vmul.f32 %v760_v53, %v4999_v45  ;;  %v461_v53 = vld [vmem:[#allocation6] sm:$0xff] }
 0x186   : > { %728 = vrot.lane.b32.xlu1 %v711_v50, %s4587_s13  ;;  %v5010_v54 = vpop.permute.xlu0 %703  ;;  %v934_v50 = vld [vmem:[#allocation12 + $0x30] sm:$0xff] }
 0x188   : > { %882 = vperm.xlu0 %4189, %v872_v52   ;;  %v5013_v57 = vpop.permute.xlu1 %691 }
 0x18a   : > { %887 = vperm.xlu1 %4188, %v873_v55  }
 0x18b   : > { %v764_v58 = vpop.permute.xlu0 %763 }
 0x18c   : > { %v791_v59 = vmul.f32 %v764_v58, %v5002_v48  ;;  %806 = vrot.lane.b32.xlu0 %v790_v56, %s4588_s15  ;;  %v1103_v58 = vld [vmem:[#allocation6 + $0x40] sm:$0xff] }
 0x18d   : > { %v768_v62 = vpop.permute.xlu1 %767 }
 0x18e   : > { %808 = vrot.lane.b32.xlu1 %v791_v59, %s4588_s15 }
 0x18f   : > { %v772_v8 = vpop.permute.xlu0 %771 }
 0x190   : > { %938 = vperm.xlu0 %4189, %v928_v60  }
 0x192   : > { %943 = vperm.xlu1 %4188, %v929_v61   ;;  %v696_v1 = vpop.permute.xlu1 %695 }
 0x193   : > { %v714_v9 = vmul.f32 %v696_v1, %v5020_v3  ;;  %v776_v13 = vpop.permute.xlu0 %775 }
 0x194   : > { %662 = vperm.xlu0 %4189, %v4963_v15   ;;  %v877_v15 = vld [vmem:[#allocation11 + $0x28] sm:$0xff]  ;;  %v794_v17 = vmul.f32 %v776_v13, %v5020_v3 }
 0x196   : > { %667 = vperm.xlu1 %4188, %v4970_v19   ;;  %v700_v6 = vpop.permute.xlu1 %699  ;;  %v932_v19 = vld [vmem:[#allocation12 + $0x20] sm:$0xff] }
 0x197   : > { %v715_v10 = vmul.f32 %v700_v6, %v5022_v7  ;;  %v788_v31 = vpop.permute.xlu0 %787 }
 0x198   : > { %892 = vperm.xlu0 %4189, %v874_v63  }
 0x19a   : > { %897 = vperm.xlu1 %4188, %v875_v2   ;;  %v517_v2 = vld [vmem:[#allocation8] sm:$0xff] }
 0x19b   : > { %v780_v16 = vpop.permute.xlu1 %779 }
 0x19c   : > { %948 = vperm.xlu0 %4189, %v930_v4   ;;  %v795_v18 = vmul.f32 %v780_v16, %v5022_v7  ;;  %v5035_v35 = vpop.permute.xlu0 %642  ;;  %v462_v16 = vld [vmem:[#allocation6 + $0x8] sm:$0xff] }
 0x19e   : > { %953 = vperm.xlu1 %4188, %v931_v5  }
 0x1a0   : > { %734 = vrot.lane.b32.xlu0 %v714_v9, %s4587_s13  ;;  %v708_v25 = vpop.permute.xlu1 %707  ;;  %v935_v9 = vld [vmem:[#allocation12 + $0x38] sm:$0xff] }
 0x1a2   : > { %736 = vrot.lane.b32.xlu1 %v715_v10, %s4587_s13 }
 0x1a4   : > { %902 = vperm.xlu0 %4189, %v876_v11   ;;  %v1160_v11 = vld [vmem:[#allocation8 + $0x40] sm:$0xff] }
 0x1a5   : > { %v784_v26 = vpop.permute.xlu1 %783 }
 0x1a6   : > { %907 = vperm.xlu1 %4188, %v877_v15  }
 0x1a8   : > { %814 = vrot.lane.b32.xlu0 %v794_v17, %s4588_s15 }
 0x1aa   : > { %816 = vrot.lane.b32.xlu1 %v795_v18, %s4588_s15  ;;  %v633_v27 = vpop.permute.xlu1 %632  ;;  %v1105_v18 = vld [vmem:[#allocation6 + $0x50] sm:$0xff] }
 0x1ab   : > { %v670_v60 = vmul.f32 %v633_v27, %v4999_v45  ;;  %v4238_v27 = vld [vmem:[#allocation14] sm:$0xff]  }
 0x1ac   : > { %958 = vperm.xlu0 %4189, %v932_v19   ;;  %3964 = vmatprep.mubr.msk.bf16.mxu0 %vm1016_vm5, %v4238_v27 }
 0x1ae   : > { %963 = vperm.xlu1 %4188, %v933_v21   ;;  %v638_v28 = vpop.permute.xlu1 %637 }
 0x1b0   : > { %912 = vperm.xlu0 %4189, %v878_v23  }
 0x1b2   : > { %917 = vperm.xlu1 %4188, %v879_v24   ;;  %v5032_v29 = vpop.permute.xlu1 %647 }
 0x1e4   : > { %v586_v33 = vpop.permute.xlu1 %585 }
 0x1e5   : > { %608 = vst.msk [vmem:[#allocation2 + $0x10] sm:$0xff] %vm605_vm2, %v586_v33  ;;  %v518_v33 = vld [vmem:[#allocation8 + $0x8] sm:$0xff] }
 0x1e8   : > { %v588_v34 = vpop.permute.xlu1 %587 }
 0x1e9   : > { %609 = vst.msk [vmem:[#allocation2 + $0x18] sm:$0xff] %vm605_vm2, %v588_v34  ;;  %v465_v34 = vld [vmem:[#allocation6 + $0x20] sm:$0xff] }
 0x1ec   : > { %v5038_v36 = vld [vmem:[#allocation2 + $0x10] sm:$0xff] }
 0x1ed   : > { %v712_v37 = vmul.f32 %v5006_v51, %v5038_v36  ;;  %v792_v40 = vmul.f32 %v768_v62, %v5038_v36  ;;  %v671_v62 = vmul.f32 %v638_v28, %v5002_v48  ;;  %v1162_v28 = vld [vmem:[#allocation8 + $0x50] sm:$0xff] }
 0x1ee   : > { %v594_v38 = vpop.permute.xlu0 %593 }
 0x1ef   : > { %612 = vst.msk [vmem:[#allocation2 + $0x30] sm:$0xff] %vm605_vm2, %v594_v38  ;;  %730 = vrot.lane.b32.xlu0 %v712_v37, %s4587_s13  ;;  %v1161_v37 = vld [vmem:[#allocation8 + $0x48] sm:$0xff]  ;;  %v1107_v38 = vld [vmem:[#allocation6 + $0x60] sm:$0xff] }
 0x1f0   : > { %v5044_v39 = vld [vmem:[#allocation2 + $0x18] sm:$0xff] }
 0x1f1   : > { %v713_v41 = vmul.f32 %v5013_v57, %v5044_v39  ;;  %v793_v42 = vmul.f32 %v772_v8, %v5044_v39 }
 0x1f3   : > { %810 = vrot.lane.b32.xlu0 %v792_v40, %s4588_s15  ;;  %732 = vrot.lane.b32.xlu1 %v713_v41, %s4587_s13  ;;  %v1106_v40 = vld [vmem:[#allocation6 + $0x58] sm:$0xff]  ;;  %v521_v41 = vld [vmem:[#allocation8 + $0x20] sm:$0xff] }
 0x1f6   : > { %v5052_v43 = vld [vmem:[#allocation2 + $0x30] sm:$0xff] }
 0x1f7   : > { %812 = vrot.lane.b32.xlu1 %v793_v42, %s4588_s15  ;;  %v716_v44 = vmul.f32 %v5010_v54, %v5052_v43  ;;  %v796_v47 = vmul.f32 %v784_v26, %v5052_v43  ;;  %v1104_v26 = vld [vmem:[#allocation6 + $0x48] sm:$0xff]  ;;  %v1163_v42 = vld [vmem:[#allocation8 + $0x58] sm:$0xff] }
 0x1f9   : > { %738 = vrot.lane.b32.xlu0 %v716_v44, %s4587_s13  ;;  %v5058_v46 = vpop.permute.xlu1 %853  ;;  %v1164_v44 = vld [vmem:[#allocation8 + $0x60] sm:$0xff] }
 0x1fd   : > { %818 = vrot.lane.b32.xlu0 %v796_v47, %s4588_s15  ;;  %v596_v49 = vpop.permute.xlu1 %595  ;;  %v466_v47 = vld [vmem:[#allocation6 + $0x28] sm:$0xff] }
 0x1fe   : > { %613 = vst.msk [vmem:[#allocation2 + $0x38] sm:$0xff] %vm605_vm2, %v596_v49  ;;  %v1109_v49 = vld [vmem:[#allocation6 + $0x70] sm:$0xff] }
 0x1ff   : > { %v5063_v51 = vpop.permute.xlu0 %652 }
 0x201   : > { %968 = vperm.xlu0 %4189, %v934_v50   ;;  %v5065_v52 = vpop.permute.xlu1 %657  ;;  %v1108_v50 = vld [vmem:[#allocation6 + $0x68] sm:$0xff] }
 0x203   : > { %v727_v55 = vpop.permute.xlu0 %726 }
 0x204   : > { %v750_v63 = vadd.f32 %v727_v55, %v670_v60  ;;  %v522_v55 = vld [vmem:[#allocation8 + $0x28] sm:$0xff]  ;;  %v1110_v60 = vld [vmem:[#allocation6 + $0x78] sm:$0xff] }
 0x205   : > { %471 = vperm.xlu0 %4189, %v461_v53   ;;  %v729_v54 = vpop.permute.xlu1 %728  ;;  %v5067_v56 = vld [vmem:[#allocation2 + $0x38] sm:$0xff]  ;;  %v1166_v53 = vld [vmem:[#allocation8 + $0x70] sm:$0xff] }
 0x206   : > { %v717_v57 = vmul.f32 %v708_v25, %v5067_v56  ;;  %v797_v1 = vmul.f32 %v788_v31, %v5067_v56  ;;  %v751_v5 = vadd.f32 %v729_v54, %v671_v62  ;;  %v1167_v62 = vld [vmem:[#allocation8 + $0x78] sm:$0xff] }
 0x207   : > { %v883_v59 = vpop.permute.xlu0 %882 }
 0x208   : > { %740 = vrot.lane.b32.xlu1 %v717_v57, %s4587_s13  ;;  %v1165_v57 = vld [vmem:[#allocation8 + $0x68] sm:$0xff] }
 0x209   : > { %1113 = vperm.xlu0 %4189, %v1103_v58   ;;  %v888_v61 = vpop.permute.xlu1 %887 }
 0x20b   : > { %v807_v4 = vpop.permute.xlu0 %806 }
 0x20c   : > { %v830_v6 = vadd.f32 %v807_v4, %v750_v63  ;;  %820 = vrot.lane.b32.xlu1 %v797_v1, %s4588_s15 }
 0x20d   : > { %527 = vperm.xlu0 %4189, %v517_v2   ;;  %v809_v8 = vpop.permute.xlu1 %808 }
 0x20e   : > { %vm839_vm3 = vcmp.gt.f32.partialorder %v830_v6, 0.0  ;;  %v856_v45 = vmul.f32 %v5058_v46, %v830_v6  ;;  %v831_v10 = vadd.f32 %v809_v8, %v751_v5 }
 0x20f   : > { %v939_v21 = vpop.permute.xlu0 %938 }
 0x210   : > { %vm840_vm4 = vcmp.gt.f32.partialorder %v831_v10, 0.0  ;;  %v857_v48 = vmul.f32 %v5058_v46, %v831_v10  ;;  %v864_v13 = vsel %vm839_vm3, %v830_v6, %v856_v45  ;;  %973 = vperm.xlu1 %4188, %v935_v9  }
 0x211   : > { %v920_v15 = vmul.f32 %v883_v59, %v864_v13  ;;  %1170 = vperm.xlu0 %4189, %v1160_v11   ;;  %v944_v23 = vpop.permute.xlu1 %943  ;;  %v674_v13 = vmul.f32 %v5063_v51, %v5020_v3 }
 0x212   : > { %v865_v17 = vsel %vm840_vm4, %v831_v10, %v857_v48  ;;  %v675_v48 = vmul.f32 %v5065_v52, %v5022_v7  ;;  %v673_v7 = vmul.f32 %v5032_v29, %v5044_v39 }
 0x213   : > { %v921_v19 = vmul.f32 %v888_v61, %v865_v17  ;;  %v976_v24 = vadd.f32 %v939_v21, %v920_v15  ;;  %v5078_v54 = vpop.permute.xlu0 %662 }
 0x214   : > { %476 = vperm.xlu1 %4188, %v462_v16  }
 0x215   : > { %v977_v25 = vadd.f32 %v944_v23, %v921_v19  ;;  %1123 = vperm.xlu0 %4189, %v1105_v18   ;;  %v5081_v58 = vpop.permute.xlu1 %667  ;;  %v672_v18 = vmul.f32 %v5035_v35, %v5038_v36 }
 0x217   : > { %v992_v31 = vpack.c.bf16 %v977_v25, %v976_v24  ;;  %v893_v59 = vpop.permute.xlu0 %892 }
 0x218   : > { %1118 = vperm.xlu1 %4188, %v1104_v26  }
 0x219   : > { %1180 = vperm.xlu0 %4189, %v1162_v28   ;;  %3956 = vmatprep.subr.bf16.mxu0 %v992_v31  ;;  %v898_v61 = vpop.permute.xlu1 %897 }
 0x21a   : > { %3957 = vmatpush3.bf16.msra.mxu0 %v992_v31 }
 0x21b   : > { %v949_v63 = vpop.permute.xlu0 %948 }
 0x21c   : > { %532 = vperm.xlu1 %4188, %v518_v33  }
 0x21d   : > { %491 = vperm.xlu0 %4189, %v465_v34   ;;  %v954_v1 = vpop.permute.xlu1 %953 }
 0x21f   : > { %v735_v2 = vpop.permute.xlu0 %734 }
 0x220   : > { %1175 = vperm.xlu1 %4188, %v1161_v37   ;;  %v754_v19 = vadd.f32 %v735_v2, %v674_v13 }
 0x221   : > { %1133 = vperm.xlu0 %4189, %v1107_v38   ;;  %v737_v4 = vpop.permute.xlu1 %736 }
 0x222   : > { %v755_v15 = vadd.f32 %v737_v4, %v675_v48 }
 0x223   : > { %v903_v5 = vpop.permute.xlu0 %902 }
 0x224   : > { %1128 = vperm.xlu1 %4188, %v1106_v40  }
 0x225   : > { %547 = vperm.xlu0 %4189, %v521_v41   ;;  %v908_v6 = vpop.permute.xlu1 %907 }
 0x227   : > { %v815_v8 = vpop.permute.xlu0 %814 }
 0x228   : > { %1185 = vperm.xlu1 %4188, %v1163_v42   ;;  %v834_v23 = vadd.f32 %v815_v8, %v754_v19 }
 0x229   : > { %1190 = vperm.xlu0 %4189, %v1164_v44   ;;  %v817_v9 = vpop.permute.xlu1 %816 }
 0x22a   : > { %v835_v21 = vadd.f32 %v817_v9, %v755_v15  ;;  %v860_v3 = vmul.f32 %v5058_v46, %v834_v23  ;;  %vm843_vm8 = vcmp.gt.f32.partialorder %v834_v23, 0.0 }
 0x22b   : > { %v959_v45 = vpop.permute.xlu0 %958 }
 0x22c   : > { %496 = vperm.xlu1 %4188, %v466_v47   ;;  %v861_v27 = vmul.f32 %v5058_v46, %v835_v21  ;;  %vm844_vm6 = vcmp.gt.f32.partialorder %v835_v21, 0.0  ;;  %v868_v34 = vsel %vm843_vm8, %v834_v23, %v860_v3  ;;  %v5117_v23 = vld [vmem:[#allocation9 + $0x40] sm:$0xff] }
 0x22d   : > { %1143 = vperm.xlu0 %4189, %v1109_v49   ;;  %v964_v10 = vpop.permute.xlu1 %963  ;;  %v924_v29 = vmul.f32 %v903_v5, %v868_v34 }
 0x22e   : > { %v869_v36 = vsel %vm844_vm6, %v835_v21, %v861_v27 }
 0x22f   : > { %v5084_v11 = vpop.permute.xlu0 %912  ;;  %v925_v38 = vmul.f32 %v908_v6, %v869_v36  ;;  %v980_v49 = vadd.f32 %v959_v45, %v924_v29  ;;  %v5105_v6 = vld [vmem:[%s4928_s1] sm:$0xff] }
 0x230   : > { %1138 = vperm.xlu1 %4188, %v1108_v50  }
 0x231   : > { %1200 = vperm.xlu0 %4189, %v1166_v53   ;;  %v5090_v16 = vpop.permute.xlu1 %917  ;;  %v981_v42 = vadd.f32 %v964_v10, %v925_v38  ;;  %v453_v10 = vmax.f32 %v5105_v6, 0.0 }
 0x233   : > { %v994_v53 = vpack.c.bf16 %v981_v42, %v980_v49  ;;  %v5154_v42 = vld [vmem:[#allocation9 + $0x58] sm:$0xff] }
 0x234   : > { %552 = vperm.xlu1 %4188, %v522_v55  }
 0x235   : > { %4190 = vset.pattern.permute.xlu0 %v6169_v12 }
 0x238   : > { %1195 = vperm.xlu1 %4188, %v1165_v57  }
 0x23c   : > { %1148 = vperm.xlu1 %4188, %v1110_v60  }
 0x240   : > { %1205 = vperm.xlu1 %4188, %v1167_v62  }
 0x244   : > { %4191 = vset.pattern.permute.xlu1 %v6169_v12 }
 0x261   : > { %v731_v17 = vpop.permute.xlu0 %730 }
 0x262   : > { %v752_v24 = vadd.f32 %v731_v17, %v672_v18 }
 0x265   : > { %v811_v25 = vpop.permute.xlu0 %810  ;;  %v733_v26 = vpop.permute.xlu1 %732 }
 0x266   : > { %v832_v28 = vadd.f32 %v811_v25, %v752_v24  ;;  %v753_v52 = vadd.f32 %v733_v26, %v673_v7  ;;  %v5120_v25 = vld [vmem:[%s4928_s1 + $0x8] sm:$0xff] }
 0x267   : > { %v454_v7 = vmax.f32 %v5120_v25, 0.0 }
 0x268   : > { %vm841_vm7 = vcmp.gt.f32.partialorder %v832_v28, 0.0  ;;  %v858_v51 = vmul.f32 %v5058_v46, %v832_v28 }
 0x269   : > { %v813_v35 = vpop.permute.xlu1 %812 }
 0x26a   : > { %v866_v31 = vsel %vm841_vm7, %v832_v28, %v858_v51  ;;  %v833_v33 = vadd.f32 %v813_v35, %v753_v52  ;;  %v4240_v28 = vld [vmem:[#allocation14 + $0x10] sm:$0xff]  }
 0x26b   : > { %v922_v40 = vmul.f32 %v893_v59, %v866_v31  ;;  %v739_v55 = vpop.permute.xlu0 %738  ;;  %v676_v59 = vmul.f32 %v5078_v54, %v5052_v43  ;;  %v4241_v31 = vld [vmem:[#allocation14 + $0x18] sm:$0xff]  }
 0x26c   : > { %vm842_vm9 = vcmp.gt.f32.partialorder %v833_v33, 0.0  ;;  %v859_v37 = vmul.f32 %v5058_v46, %v833_v33 }
 0x26d   : > { %v978_v44 = vadd.f32 %v949_v63, %v922_v40  ;;  %v5145_v40 = vld [vmem:[%s4928_s1 + $0x20] sm:$0xff] }
 0x26e   : > { %v867_v41 = vsel %vm842_vm9, %v833_v33, %v859_v37  ;;  %v5138_v37 = vld [vmem:[#allocation9 + $0x48] sm:$0xff] }
 0x26f   : > { %v923_v39 = vmul.f32 %v898_v61, %v867_v41  ;;  %v819_v60 = vpop.permute.xlu0 %818  ;;  %v677_v61 = vmul.f32 %v5081_v58, %v5067_v56 }
 0x271   : > { %v979_v47 = vadd.f32 %v954_v1, %v923_v39  ;;  %v756_v1 = vadd.f32 %v739_v55, %v676_v59  ;;  %v457_v39 = vmax.f32 %v5145_v40, 0.0 }
 0x273   : > { %v993_v50 = vpack.c.bf16 %v979_v47, %v978_v44  ;;  %v836_v4 = vadd.f32 %v819_v60, %v756_v1  ;;  %v5158_v47 = vld [vmem:[%s4928_s1 + $0x28] sm:$0xff]  ;;  %v5175_v1 = vld [vmem:[#allocation9 + $0x70] sm:$0xff]  ;;  %s4490_s1 = scalar_lea.vmem %s4489_s26, 2048 }
 0x274   : > { %v458_v55 = vmax.f32 %v5158_v47, 0.0  ;;  %p4492_p8 = scmp.lt.s32.totalorder %s4490_s1, %s4484_s24 }
 0x275   : > { %3958 = vmatprep.subr.bf16.mxu0 %v993_v50  ;;  %v862_v9 = vmul.f32 %v5058_v46, %v836_v4  ;;  %vm845_vm10 = vcmp.gt.f32.partialorder %v836_v4, 0.0 }
 0x276   : > { %3959 = vmatpush3.bf16.msra.mxu0 %v993_v50  ;;  %p4493_p6 = por %p4492_p8, %p4491_p2 }
 0x277   : > { %3960 = vmatprep.subr.bf16.mxu0 %v994_v53  ;;  %v870_v56 = vsel %vm845_vm10, %v836_v4, %v862_v9 }
 0x278   : > { %v926_v15 = vmul.f32 %v5084_v11, %v870_v56  ;;  %v4239_v11 = vld [vmem:[#allocation14 + $0x8] sm:$0xff]   ;;  %p4494_p10 = pnand %p4493_p6, %p4487_p0 }
 0x27a   : > { %3961 = vmatpush3.bf16.msra.mxu0 %v994_v53  ;;  %v741_v57 = vpop.permute.xlu1 %740 }
 0x27b   : > { %v757_v2 = vadd.f32 %v741_v57, %v677_v61 }
 0x27e   : > { %v821_v62 = vpop.permute.xlu1 %820 }
 0x27f   : > { %v837_v5 = vadd.f32 %v821_v62, %v757_v2  ;;  %v5168_v62 = vld [vmem:[#allocation9 + $0x68] sm:$0xff]  ;;  %v5180_v2 = vld [vmem:[#allocation9 + $0x78] sm:$0xff] }
 0x280   : > { %v969_v63 = vpop.permute.xlu0 %968 }
 0x281   : > { %v863_v45 = vmul.f32 %v5058_v46, %v837_v5  ;;  %vm846_vm11 = vcmp.gt.f32.partialorder %v837_v5, 0.0  ;;  %v982_v46 = vadd.f32 %v969_v63, %v926_v15  ;;  %v5170_v63 = vld [vmem:[#allocation9 + $0x60] sm:$0xff] }
 0x283   : > { %v871_v58 = vsel %vm846_vm11, %v837_v5, %v863_v45 }
 0x284   : > { %v472_v8 = vpop.permute.xlu0 %471  ;;  %v927_v17 = vmul.f32 %v5090_v16, %v871_v58  ;;  %v5125_v16 = vld [vmem:[#allocation9 + $0x50] sm:$0xff] }
 0x285   : > { %v509_v54 = vmul.f32 %v472_v8, %v453_v10 }
 0x288   : > { %v5110_v43 = vpop.permute.xlu0 %1113 }
 0x28c   : > { %v528_v48 = vpop.permute.xlu0 %527 }
 0x28d   : > { %v565_v13 = vadd.f32 %v528_v48, %v509_v54 }
 0x28f   : > { %581 = vrot.lane.b32.xlu0 %v565_v13, %s4586_s12  ;;  %v974_v18 = vpop.permute.xlu1 %973 }
 0x290   : > { %v983_v19 = vadd.f32 %v974_v18, %v927_v17  ;;  %v5115_v21 = vpop.permute.xlu0 %1170 }
 0x292   : > { %v995_v24 = vpack.c.bf16 %v983_v19, %v982_v46 }
 0x293   : > { %v477_v26 = vpop.permute.xlu1 %476  ;;  %1322 = vperm.xlu0 %4190, %v5117_v23  }
 0x294   : > { %v5123_v27 = vpop.permute.xlu0 %1123  ;;  %3962 = vmatprep.subr.bf16.mxu0 %v995_v24  ;;  %v510_v52 = vmul.f32 %v477_v26, %v454_v7 }
 0x295   : > { %3963 = vmatpush3.bf16.msra.mxu0 %v995_v24 }
 0x297   : > { %v5128_v3 = vpop.permute.xlu1 %1118  ;;  %1330 = vperm.xlu0 %4190, %v5125_v16  }
 0x298   : > { %3965 = vmatmul.mubr.msk.bf16.vlgmr.msra.gmra.mrb[0].mxu0 %vm1016_vm5, %v4239_v11  ;;  %v5132_v51 = vpop.permute.xlu0 %1180 }
 0x299   : > { %3968 = vmatprep.mubr.msk.bf16.mxu0 %vm1016_vm5, %v4240_v28 }
 0x29b   : > { %v533_v35 = vpop.permute.xlu1 %532 }
 0x29c   : > { %v566_v36 = vadd.f32 %v533_v35, %v510_v52  ;;  %v492_v33 = vpop.permute.xlu0 %491 }
 0x29d   : > { %v513_v50 = vmul.f32 %v492_v33, %v457_v39 }
 0x29e   : > { %583 = vrot.lane.b32.xlu1 %v566_v36, %s4586_s12 }
 0x29f   : > { %v5136_v34 = vpop.permute.xlu1 %1175 }
 0x2a0   : > { %3969 = vmatmul.mubr.msk.bf16.gmra.mrb[4].mxu0 %vm1016_vm5, %v4241_v31  ;;  %v5147_v41 = vpop.permute.xlu0 %1133 }
 0x2a2   : > { %1326 = vperm.xlu1 %4191, %v5138_v37  }
 0x2a3   : > { %v5142_v38 = vpop.permute.xlu1 %1128 }
 0x2a4   : > { %v548_v44 = vpop.permute.xlu0 %547 }
 0x2a5   : > { %v569_v53 = vadd.f32 %v548_v44, %v513_v50 }
 0x2a6   : > { %4192 = vset.pattern.permute.xlu1 %v6167_v14 }
 0x2a7   : > { %1402 = vperm.xlu1 %4192, %v5117_v23   ;;  %v5151_v29 = vpop.permute.xlu1 %1185 }
 0x2a8   : > { %v5191_v4 = vpop.permute.xlu0 %1190 }
 0x2ab   : > { %4193 = vset.pattern.permute.xlu1 %v6169_v12  ;;  %v497_v49 = vpop.permute.xlu1 %496 }
 0x2ac   : > { %1334 = vperm.xlu1 %4193, %v5154_v42   ;;  %v514_v60 = vmul.f32 %v497_v49, %v458_v55  ;;  %v1144_v5 = vpop.permute.xlu0 %1143 }
 0x2af   : > { %v5162_v57 = vpop.permute.xlu1 %1138 }
 0x2b0   : > { %589 = vrot.lane.b32.xlu1 %v569_v53, %s4586_s12  ;;  %v1201_v8 = vpop.permute.xlu0 %1200 }
 0x2b1   : > { %4194 = vset.pattern.permute.xlu1 %v6167_v14 }
 0x2b3   : > { %v553_v59 = vpop.permute.xlu1 %552 }
 0x2b4   : > { %v570_v61 = vadd.f32 %v553_v59, %v514_v60  ;;  %1410 = vperm.xlu1 %4194, %v5125_v16  }
 0x2b6   : > { %591 = vrot.lane.b32.xlu0 %v570_v61, %s4586_s12 }
 0x2b7   : > { %v5193_v9 = vpop.permute.xlu1 %1195 }
 0x2b8   : > { %4195 = vset.pattern.permute.xlu1 %v6169_v12 }
 0x2b9   : > { %1342 = vperm.xlu1 %4195, %v5168_v62  }
 0x2ba   : > { %1338 = vperm.xlu0 %4190, %v5170_v63  }
 0x2bb   : > { %v5196_v10 = vpop.permute.xlu1 %1148 }
 0x2bd   : > { %4196 = vset.pattern.permute.xlu1 %v6167_v14 }
 0x2be   : > { %1346 = vperm.xlu0 %4190, %v5175_v1   ;;  %1418 = vperm.xlu1 %4196, %v5170_v63  }
 0x2bf   : > { %v5198_v56 = vpop.permute.xlu1 %1205 }
 0x2c2   : > { %4197 = vset.pattern.permute.xlu0 %v6167_v14  ;;  %4198 = vset.pattern.permute.xlu1 %v6169_v12 }
 0x2c3   : > { %1406 = vperm.xlu0 %4197, %v5138_v37   ;;  %1350 = vperm.xlu1 %4198, %v5180_v2  }
 0x2c7   : > { %1414 = vperm.xlu0 %4197, %v5154_v42   ;;  %4199 = vset.pattern.permute.xlu1 %v6167_v14 }
 0x2c8   : > { %1426 = vperm.xlu1 %4199, %v5175_v1  }
 0x2cb   : > { %1422 = vperm.xlu0 %4197, %v5168_v62  }
 0x2cc   : > { %4200 = vset.pattern.permute.xlu1 %v6171_v0 }
 0x301   : > { %v582_v45 = vpop.permute.xlu0 %581 }
 0x302   : > { %606 = vst.msk [vmem:[#allocation2] sm:$0xff] %vm605_vm2, %v582_v45  ;;  %v3873_v45 = vld [vmem:[#allocation15 + $0x1] ss:$0 sm:$0xff] }
 0x310   : > { %v584_v54 = vpop.permute.xlu1 %583 }
 0x311   : > { %607 = vst.msk [vmem:[#allocation2 + $0x8] sm:$0xff] %vm605_vm2, %v584_v54  ;;  %v1577_v54 = vld [vmem:[#allocation12 + $0x58] sm:$0xff] }
 0x312   : > { %v5201_v58 = vpop.permute.xlu0 %1322 }
 0x316   : > { %v5205_v13 = vpop.permute.xlu0 %1330 }
 0x321   : > { %v5203_v48 = vpop.permute.xlu1 %1326 }
 0x326   : > { %v5207_v15 = vpop.permute.xlu1 %1402 }
 0x328   : > { %v592_v17 = vpop.permute.xlu0 %591 }
 0x329   : > { %611 = vst.msk [vmem:[#allocation2 + $0x28] sm:$0xff] %vm605_vm2, %v592_v17  ;;  %v1522_v17 = vld [vmem:[#allocation11 + $0x68] sm:$0xff] }
 0x32b   : > { %v5210_v18 = vpop.permute.xlu1 %1334 }
 0x32f   : > { %v590_v46 = vpop.permute.xlu1 %589 }
 0x330   : > { %610 = vst.msk [vmem:[#allocation2 + $0x20] sm:$0xff] %vm605_vm2, %v590_v46  ;;  %v1579_v46 = vld [vmem:[#allocation12 + $0x68] sm:$0xff] }
 0x36b   : > { %v3966_v19 = vpop.f32.mrb[0].mxu0 }
 0x36c   : > { %v5214_v24 = vadd.f32 %v3966_v19, %v4981_v20  ;;  %v1063_v26 = vpop.f32.mrb[1].mxu0  ;;  %v1524_v19 = vld [vmem:[#allocation11 + $0x78] sm:$0xff] }
 0x36d   : > { %v5217_v11 = vadd.f32 %v1063_v26, %v5105_v6  ;;  %v3967_v28 = vpop.f32.mrb[2].mxu0  ;;  %v1411_v26 = vpop.permute.xlu1 %1410 }
 0x36e   : > { %v1096_v7 = vmax.f32 %v5214_v24, 0.0  ;;  %v1066_v52 = vpop.f32.mrb[3].mxu0  ;;  %v5228_v49 = vadd.f32 %v3967_v28, %v4985_v22  ;;  %v1339_v28 = vpop.permute.xlu0 %1338 }
 0x36f   : > { %v1094_v35 = vmax.f32 %v5217_v11, 0.0 }
 0x370   : > { %v1153_v36 = vmul.f32 %v5123_v27, %v1096_v7  ;;  %v5234_v27 = vadd.f32 %v1066_v52, %v5120_v25 }
 0x371   : > { %v1151_v31 = vmul.f32 %v5110_v43, %v1094_v35  ;;  %v1097_v43 = vmax.f32 %v5228_v49, 0.0 }
 0x372   : > { %v1210_v33 = vadd.f32 %v5132_v51, %v1153_v36  ;;  %v1095_v51 = vmax.f32 %v5234_v27, 0.0  ;;  %v1347_v7 = vpop.permute.xlu0 %1346 }
 0x373   : > { %v1208_v39 = vadd.f32 %v5115_v21, %v1151_v31  ;;  %v3970_v20 = vpop.f32.mrb[4].mxu0  ;;  %v1154_v21 = vmul.f32 %v5142_v38, %v1097_v43  ;;  %v1517_v38 = vld [vmem:[#allocation11 + $0x40] sm:$0xff] }
 0x374   : > { %v1079_v44 = vpop.f32.mrb[5].mxu0  ;;  %1228 = vrot.lane.b32.xlu1 %v1210_v33, %s4586_s12  ;;  %v5241_v22 = vadd.f32 %v3970_v20, %v4989_v30  ;;  %v1152_v25 = vmul.f32 %v5128_v3, %v1095_v51  ;;  %v1574_v3 = vld [vmem:[#allocation12 + $0x40] sm:$0xff] }
 0x375   : > { %v3971_v6 = vpop.f32.mrb[6].mxu0  ;;  %1224 = vrot.lane.b32.xlu0 %v1208_v39, %s4586_s12 }
 0x376   : > { %v1082_v50 = vpop.f32.mrb[7].mxu0  ;;  %v1100_v53 = vmax.f32 %v5241_v22, 0.0  ;;  %v1209_v30 = vadd.f32 %v5136_v34, %v1152_v25  ;;  %v1407_v35 = vpop.permute.xlu0 %1406 }
 0x377   : > { %v5262_v59 = vadd.f32 %v1082_v50, %v5158_v47  ;;  %v1576_v47 = vld [vmem:[#allocation12 + $0x50] sm:$0xff] }
 0x378   : > { %1275 = vperm.xlu1 %4200, %v5117_v23   ;;  %v1211_v23 = vadd.f32 %v5151_v29, %v1154_v21  ;;  %v1157_v55 = vmul.f32 %v1144_v5, %v1100_v53 }
 0x379   : > { %1430 = vperm.xlu0 %4197, %v5180_v2   ;;  %v1099_v61 = vmax.f32 %v5262_v59, 0.0 }
 0x37a   : > { %v1214_v29 = vadd.f32 %v1201_v8, %v1157_v55  ;;  %v1415_v31 = vpop.permute.xlu0 %1414 }
 0x37b   : > { %v1156_v5 = vmul.f32 %v5162_v57, %v1099_v61  ;;  %v1575_v57 = vld [vmem:[#allocation12 + $0x48] sm:$0xff] }
 0x37c   : > { %1280 = vperm.xlu1 %4200, %v5138_v37   ;;  %v5249_v37 = vadd.f32 %v1079_v44, %v5145_v40 }
 0x37d   : > { %4201 = vset.pattern.permute.xlu0 %v6171_v0  ;;  %v1213_v8 = vadd.f32 %v5193_v9, %v1156_v5  ;;  %v1520_v9 = vld [vmem:[#allocation11 + $0x58] sm:$0xff] }
 0x37e   : > { %1285 = vperm.xlu0 %4201, %v5125_v16   ;;  %v1098_v16 = vmax.f32 %v5249_v37, 0.0  ;;  %v1423_v33 = vpop.permute.xlu0 %1422 }
 0x380   : > { %1290 = vperm.xlu1 %4200, %v5154_v42   ;;  %v5256_v42 = vadd.f32 %v3971_v6, %v4993_v32  ;;  %v1155_v40 = vmul.f32 %v5147_v41, %v1098_v16 }
 0x382   : > { %1295 = vperm.xlu0 %4201, %v5170_v63   ;;  %v1101_v60 = vmax.f32 %v5256_v42, 0.0  ;;  %v1212_v34 = vadd.f32 %v5191_v4, %v1155_v40  ;;  %v1519_v63 = vld [vmem:[#allocation11 + $0x50] sm:$0xff]  ;;  %v1521_v4 = vld [vmem:[#allocation11 + $0x60] sm:$0xff] }
 0x384   : > { %1230 = vrot.lane.b32.xlu1 %v1211_v23, %s4586_s12  ;;  %v1158_v32 = vmul.f32 %v5196_v10, %v1101_v60  ;;  %v1523_v10 = vld [vmem:[#allocation11 + $0x70] sm:$0xff] }
 0x386   : > { %1527 = vperm.xlu0 %4201, %v1517_v38   ;;  %v1215_v41 = vadd.f32 %v5198_v56, %v1158_v32  ;;  %v1518_v56 = vld [vmem:[#allocation11 + $0x48] sm:$0xff] }
 0x388   : > { %1226 = vrot.lane.b32.xlu1 %v1209_v30, %s4586_s12 }
 0x38a   : > { %1584 = vperm.xlu0 %4201, %v1574_v3  }
 0x38c   : > { %1236 = vrot.lane.b32.xlu1 %v1214_v29, %s4586_s12 }
 0x38e   : > { %1305 = vperm.xlu0 %4201, %v5175_v1   ;;  %v1578_v1 = vld [vmem:[#allocation12 + $0x60] sm:$0xff] }
 0x390   : > { %1232 = vrot.lane.b32.xlu1 %v1212_v34, %s4586_s12 }
 0x392   : > { %1537 = vperm.xlu0 %4201, %v1519_v63  }
 0x394   : > { %1238 = vrot.lane.b32.xlu1 %v1215_v41, %s4586_s12 }
 0x396   : > { %1594 = vperm.xlu0 %4201, %v1576_v47  }
 0x398   : > { %1234 = vrot.lane.b32.xlu1 %v1213_v8, %s4586_s12 }
 0x39a   : > { %1547 = vperm.xlu0 %4201, %v1521_v4  }
 0x39c   : > { %1497 = vperm.xlu1 %4200, %v3873_v45  }
 0x39e   : > { %1604 = vperm.xlu0 %4201, %v1578_v1   ;;  %v1580_v1 = vld [vmem:[#allocation12 + $0x70] sm:$0xff] }
 0x3a0   : > { %1300 = vperm.xlu1 %4200, %v5168_v62   ;;  %v5277_v62 = vpop.permute.xlu1 %1342 }
 0x3a2   : > { %1557 = vperm.xlu0 %4201, %v1523_v10  }
 0x3a4   : > { %1532 = vperm.xlu1 %4200, %v1518_v56   ;;  %v1419_v52 = vpop.permute.xlu1 %1418  ;;  %v1749_v56 = vld [vmem:[#allocation6 + $0x80] sm:$0xff] }
 0x3a8   : > { %1589 = vperm.xlu1 %4200, %v1575_v57   ;;  %v1351_v36 = vpop.permute.xlu1 %1350 }
 0x3ac   : > { %1310 = vperm.xlu1 %4200, %v5180_v2   ;;  %v1427_v2 = vpop.permute.xlu1 %1426 }
 0x3b0   : > { %1542 = vperm.xlu1 %4200, %v1520_v9   ;;  %v1806_v9 = vld [vmem:[#allocation8 + $0x80] sm:$0xff] }
 0x3b4   : > { %1599 = vperm.xlu1 %4200, %v1577_v54   ;;  %v1581_v54 = vld [vmem:[#allocation12 + $0x78] sm:$0xff] }
 0x3b8   : > { %1552 = vperm.xlu1 %4200, %v1522_v17   ;;  %v1751_v17 = vld [vmem:[#allocation6 + $0x90] sm:$0xff] }
 0x3bc   : > { %1609 = vperm.xlu1 %4200, %v1579_v46   ;;  %v1750_v46 = vld [vmem:[#allocation6 + $0x88] sm:$0xff] }
 0x3c0   : > { %1562 = vperm.xlu1 %4200, %v1524_v19   ;;  %v1808_v19 = vld [vmem:[#allocation8 + $0x90] sm:$0xff] }
 0x3e6   : > { %v1229_v39 = vpop.permute.xlu1 %1228 }
 0x3e7   : > { %1250 = vst.msk [vmem:[#allocation2 + $0x10] sm:$0xff] %vm605_vm2, %v1229_v39  ;;  %v1225_v20 = vpop.permute.xlu0 %1224 }
 0x3e8   : > { %1248 = vst.msk [vmem:[#allocation2] sm:$0xff] %vm605_vm2, %v1225_v20  ;;  %v1812_v20 = vld [vmem:[#allocation8 + $0xb0] sm:$0xff] }
 0x3ee   : > { %v5281_v44 = vld [vmem:[#allocation2 + $0x10] sm:$0xff] }
 0x3ef   : > { %v1355_v6 = vmul.f32 %v5205_v13, %v5281_v44  ;;  %v1435_v50 = vmul.f32 %v1411_v26, %v5281_v44  ;;  %v5287_v43 = vld [vmem:[#allocation2] sm:$0xff]  ;;  %v1807_v26 = vld [vmem:[#allocation8 + $0x88] sm:$0xff] }
 0x3f0   : > { %v1353_v51 = vmul.f32 %v5201_v58, %v5287_v43  ;;  %v1433_v13 = vmul.f32 %v5207_v15, %v5287_v43 }
 0x3f1   : > { %1373 = vrot.lane.b32.xlu0 %v1355_v6, %s4587_s13  ;;  %v1811_v6 = vld [vmem:[#allocation8 + $0xa8] sm:$0xff] }
 0x3f5   : > { %1453 = vrot.lane.b32.xlu0 %v1435_v50, %s4588_s15 }
 0x3f7   : > { %v5290_v21 = vpop.permute.xlu1 %1275 }
 0x3f8   : > { %v1431_v47 = vpop.permute.xlu0 %1430 }
 0x3f9   : > { %1369 = vrot.lane.b32.xlu0 %v1353_v51, %s4587_s13  ;;  %v1756_v51 = vld [vmem:[#allocation6 + $0xb8] sm:$0xff] }
 0x3fb   : > { %v5295_v23 = vpop.permute.xlu1 %1280 }
 0x3fd   : > { %1449 = vrot.lane.b32.xlu0 %v1433_v13, %s4588_s15 }
 0x3ff   : > { %v5300_v25 = vpop.permute.xlu1 %1290 }
 0x403   : > { %v1231_v53 = vpop.permute.xlu1 %1230 }
 0x404   : > { %1251 = vst.msk [vmem:[#allocation2 + $0x18] sm:$0xff] %vm605_vm2, %v1231_v53  ;;  %v1813_v53 = vld [vmem:[#allocation8 + $0xb8] sm:$0xff] }
 0x407   : > { %v1227_v38 = vpop.permute.xlu1 %1226 }
 0x408   : > { %1249 = vst.msk [vmem:[#allocation2 + $0x8] sm:$0xff] %vm605_vm2, %v1227_v38 }
 0x40b   : > { %v1237_v30 = vpop.permute.xlu1 %1236  ;;  %v5304_v55 = vld [vmem:[#allocation2 + $0x18] sm:$0xff] }
 0x40c   : > { %1254 = vst.msk [vmem:[#allocation2 + $0x30] sm:$0xff] %vm605_vm2, %v1237_v30  ;;  %v1356_v58 = vmul.f32 %v5210_v18, %v5304_v55  ;;  %v1436_v16 = vmul.f32 %v1415_v31, %v5304_v55  ;;  %v5361_v30 = vld [vmem:[#allocation9 + $0x80] sm:$0xff] }
 0x40e   : > { %1375 = vrot.lane.b32.xlu1 %v1356_v58, %s4587_s13 }
 0x40f   : > { %v1233_v15 = vpop.permute.xlu1 %1232  ;;  %v5312_v3 = vld [vmem:[#allocation2 + $0x8] sm:$0xff] }
 0x410   : > { %1252 = vst.msk [vmem:[#allocation2 + $0x20] sm:$0xff] %vm605_vm2, %v1233_v15  ;;  %v1354_v60 = vmul.f32 %v5203_v48, %v5312_v3  ;;  %v1434_v32 = vmul.f32 %v1407_v35, %v5312_v3  ;;  %v1810_v35 = vld [vmem:[#allocation8 + $0xa0] sm:$0xff]  ;;  %v5366_v15 = vld [vmem:[#allocation9 + $0x90] sm:$0xff] }
 0x412   : > { %1455 = vrot.lane.b32.xlu1 %v1436_v16, %s4588_s15  ;;  %v5368_v16 = vld [vmem:[#allocation9 + $0x88] sm:$0xff] }
 0x413   : > { %v5315_v29 = vld [vmem:[#allocation2 + $0x30] sm:$0xff]  ;;  %v1239_v40 = vpop.permute.xlu1 %1238 }
 0x414   : > { %1255 = vst.msk [vmem:[#allocation2 + $0x38] sm:$0xff] %vm605_vm2, %v1239_v40  ;;  %v1359_v18 = vmul.f32 %v1347_v7, %v5315_v29  ;;  %v1439_v61 = vmul.f32 %v1427_v2, %v5315_v29  ;;  %v1752_v7 = vld [vmem:[#allocation6 + $0x98] sm:$0xff]  ;;  %v1755_v2 = vld [vmem:[#allocation6 + $0xb0] sm:$0xff] }
 0x416   : > { %1371 = vrot.lane.b32.xlu1 %v1354_v60, %s4587_s13  ;;  %1381 = vrot.lane.b32.xlu0 %v1359_v18, %s4587_s13  ;;  %v5377_v18 = vld [vmem:[#allocation9 + $0xa0] sm:$0xff] }
 0x417   : > { %v1235_v34 = vpop.permute.xlu1 %1234  ;;  %v5326_v63 = vld [vmem:[#allocation2 + $0x20] sm:$0xff] }
 0x418   : > { %1253 = vst.msk [vmem:[#allocation2 + $0x28] sm:$0xff] %vm605_vm2, %v1235_v34  ;;  %v1357_v41 = vmul.f32 %v1339_v28, %v5326_v63  ;;  %v1437_v8 = vmul.f32 %v1419_v52, %v5326_v63  ;;  %v4242_v28 = vld [vmem:[#allocation14 + $0x20] sm:$0xff]   ;;  %v5348_v52 = vpop.permute.xlu0 %1285  ;;  %v5381_v34 = vld [vmem:[#allocation9 + $0xb0] sm:$0xff] }
 0x419   : > { %3980 = vmatprep.mubr.msk.bf16.mxu1 %vm1016_vm5, %v4242_v28 }
 0x41a   : > { %1451 = vrot.lane.b32.xlu1 %v1434_v32, %s4588_s15  ;;  %1461 = vrot.lane.b32.xlu0 %v1439_v61, %s4588_s15 }
 0x41b   : > { %v5330_v48 = vld [vmem:[#allocation2 + $0x38] sm:$0xff]  ;;  %v5354_v50 = vpop.permute.xlu1 %1497 }
 0x41c   : > { %v1360_v5 = vmul.f32 %v1351_v36, %v5330_v48  ;;  %v1440_v4 = vmul.f32 %v1431_v47, %v5330_v48  ;;  %v1809_v36 = vld [vmem:[#allocation8 + $0x98] sm:$0xff]  ;;  %v5350_v31 = vpop.permute.xlu0 %1295 }
 0x41e   : > { %1377 = vrot.lane.b32.xlu0 %v1357_v41, %s4587_s13  ;;  %1383 = vrot.lane.b32.xlu1 %v1360_v5, %s4587_s13  ;;  %v5388_v41 = vld [vmem:[#allocation9 + $0x98] sm:$0xff] }
 0x41f   : > { %v5338_v45 = vld [vmem:[#allocation2 + $0x28] sm:$0xff]  ;;  %v5359_v38 = vpop.permute.xlu1 %1300 }
 0x420   : > { %v1358_v10 = vmul.f32 %v5277_v62, %v5338_v45  ;;  %v1438_v57 = vmul.f32 %v1423_v33, %v5338_v45  ;;  %v1753_v62 = vld [vmem:[#allocation6 + $0xa0] sm:$0xff]  ;;  %v1754_v33 = vld [vmem:[#allocation6 + $0xa8] sm:$0xff]  ;;  %v5352_v39 = vpop.permute.xlu0 %1527 }
 0x422   : > { %1457 = vrot.lane.b32.xlu0 %v1437_v8, %s4588_s15  ;;  %1463 = vrot.lane.b32.xlu1 %v1440_v4, %s4588_s15 }
 0x423   : > { %v5370_v40 = vpop.permute.xlu1 %1532 }
 0x424   : > { %v5356_v13 = vpop.permute.xlu0 %1584 }
 0x426   : > { %1614 = vperm.xlu0 %4201, %v1580_v1   ;;  %1379 = vrot.lane.b32.xlu1 %v1358_v10, %s4587_s13  ;;  %v5404_v1 = vld [vmem:[#allocation9 + $0xa8] sm:$0xff] }
 0x427   : > { %v5383_v32 = vpop.permute.xlu1 %1589  ;;  %6200 = vst [vmem:[#allocation24_spill] sm:$0xff] %v5404_v1 }
 0x428   : > { %v5363_v58 = vpop.permute.xlu0 %1305 }
 0x42a   : > { %1759 = vperm.xlu0 %4201, %v1749_v56   ;;  %1459 = vrot.lane.b32.xlu1 %v1438_v57, %s4588_s15  ;;  %v5413_v57 = vld [vmem:[#allocation9 + $0xb8] sm:$0xff] }
 0x42b   : > { %v5393_v5 = vpop.permute.xlu1 %1310 }
 0x42c   : > { %v5372_v60 = vpop.permute.xlu0 %1537 }
 0x42e   : > { %1816 = vperm.xlu0 %4201, %v1806_v9   ;;  %1619 = vperm.xlu1 %4200, %v1581_v54  }
 0x42f   : > { %v1543_v8 = vpop.permute.xlu1 %1542 }
 0x430   : > { %v5385_v61 = vpop.permute.xlu0 %1594 }
 0x432   : > { %1769 = vperm.xlu0 %4201, %v1751_v17   ;;  %1764 = vperm.xlu1 %4200, %v1750_v46  }
 0x433   : > { %v1600_v10 = vpop.permute.xlu1 %1599 }
 0x434   : > { %v5395_v47 = vpop.permute.xlu0 %1547 }
 0x436   : > { %1826 = vperm.xlu0 %4201, %v1808_v19   ;;  %1821 = vperm.xlu1 %4200, %v1807_v26  }
 0x437   : > { %v5415_v9 = vpop.permute.xlu1 %1552 }
 0x438   : > { %v5402_v4 = vpop.permute.xlu0 %1604 }
 0x43a   : > { %1779 = vperm.xlu0 %4201, %v1753_v62   ;;  %1774 = vperm.xlu1 %4200, %v1752_v7   ;;  %v1313_v62 = vmul.f32 %v5290_v21, %v5287_v43  ;;  %v1316_v7 = vmul.f32 %v5300_v25, %v5304_v55  ;;  %v1314_v21 = vmul.f32 %v5295_v23, %v5312_v3 }
 0x43b   : > { %v5420_v17 = vpop.permute.xlu1 %1609 }
 0x43c   : > { %v5409_v56 = vpop.permute.xlu0 %1557 }
 0x43e   : > { %1836 = vperm.xlu0 %4201, %v1810_v35   ;;  %1831 = vperm.xlu1 %4200, %v1809_v36   ;;  %v1315_v36 = vmul.f32 %v5348_v52, %v5281_v44 }
 0x43f   : > { %v5424_v19 = vpop.permute.xlu1 %1562 }
 0x442   : > { %1789 = vperm.xlu0 %4201, %v1755_v2   ;;  %1784 = vperm.xlu1 %4200, %v1754_v33  }
 0x446   : > { %1846 = vperm.xlu0 %4201, %v1812_v20   ;;  %1841 = vperm.xlu1 %4200, %v1811_v6  }
 0x44a   : > { %1794 = vperm.xlu1 %4200, %v1756_v51   ;;  %4202 = vset.pattern.permute.xlu0 %v6169_v12 }
 0x44b   : > { %1968 = vperm.xlu0 %4202, %v5361_v30  }
 0x44e   : > { %1851 = vperm.xlu1 %4200, %v1813_v53  }
 0x44f   : > { %1976 = vperm.xlu0 %4202, %v5366_v15  }
 0x452   : > { %4203 = vset.pattern.permute.xlu1 %v6169_v12 }
 0x453   : > { %1972 = vperm.xlu1 %4203, %v5368_v16   ;;  %1984 = vperm.xlu0 %4202, %v5377_v18  }
 0x457   : > { %4204 = vset.pattern.permute.xlu1 %v6167_v14  ;;  %1992 = vperm.xlu0 %4202, %v5381_v34  }
 0x458   : > { %2048 = vperm.xlu1 %4204, %v5361_v30  }
 0x45b   : > { %4209 = vset.pattern.permute.xlu0 %v6167_v14 }
 0x45c   : > { %4205 = vset.pattern.permute.xlu1 %v6169_v12  ;;  %2052 = vperm.xlu0 %4209, %v5368_v16  }
 0x45d   : > { %1980 = vperm.xlu1 %4205, %v5388_v41  }
 0x460   : > { %2060 = vperm.xlu0 %4209, %v5388_v41  }
 0x461   : > { %4206 = vset.pattern.permute.xlu1 %v6167_v14 }
 0x462   : > { %2056 = vperm.xlu1 %4206, %v5366_v15  }
 0x463   : > { %v1374_v54 = vpop.permute.xlu0 %1373 }
 0x464   : > { %2068 = vperm.xlu0 %4209, %v5404_v1   ;;  %v1395_v6 = vadd.f32 %v1374_v54, %v1315_v36 }
 0x466   : > { %4207 = vset.pattern.permute.xlu1 %v6169_v12 }
 0x467   : > { %1988 = vperm.xlu1 %4207, %v5404_v1   ;;  %v1454_v46 = vpop.permute.xlu0 %1453 }
 0x46b   : > { %4208 = vset.pattern.permute.xlu1 %v6167_v14  ;;  %v1370_v26 = vpop.permute.xlu0 %1369 }
 0x46c   : > { %2064 = vperm.xlu1 %4208, %v5377_v18   ;;  %v1393_v2 = vadd.f32 %v1370_v26, %v1313_v62 }
 0x46f   : > { %v1450_v35 = vpop.permute.xlu0 %1449 }
 0x470   : > { %4210 = vset.pattern.permute.xlu1 %v6169_v12  ;;  %v1473_v51 = vadd.f32 %v1450_v35, %v1393_v2  ;;  %v1317_v2 = vmul.f32 %v5350_v31, %v5326_v63  ;;  %v1318_v63 = vmul.f32 %v5359_v38, %v5338_v45 }
 0x471   : > { %1996 = vperm.xlu1 %4210, %v5413_v57  }
 0x472   : > { %v1500_v1 = vmul.f32 %v5354_v50, %v1473_v51  ;;  %vm1483_vm12 = vcmp.gt.f32.partialorder %v1473_v51, 0.0 }
 0x474   : > { %v1508_v54 = vsel %vm1483_vm12, %v1473_v51, %v1500_v1 }
 0x475   : > { %4211 = vset.pattern.permute.xlu1 %v6167_v14  ;;  %v1475_v14 = vadd.f32 %v1454_v46, %v1395_v6  ;;  %v1565_v23 = vmul.f32 %v5352_v39, %v1508_v54 }
 0x476   : > { %2072 = vperm.xlu1 %4211, %v5381_v34  }
 0x477   : > { %v1502_v44 = vmul.f32 %v5354_v50, %v1475_v14  ;;  %vm1485_vm14 = vcmp.gt.f32.partialorder %v1475_v14, 0.0 }
 0x47a   : > { %4212 = vset.pattern.permute.xlu1 %v6171_v0 }
 0x480   : > { %v1376_v28 = vpop.permute.xlu1 %1375 }
 0x481   : > { %v1396_v33 = vadd.f32 %v1376_v28, %v1316_v7  ;;  %v1510_v28 = vsel %vm1485_vm14, %v1475_v14, %v1502_v44  ;;  %v1622_v14 = vadd.f32 %v5356_v13, %v1565_v23  ;;  %v4243_v23 = vld [vmem:[#allocation14 + $0x28] sm:$0xff]  }
 0x484   : > { %v1456_v20 = vpop.permute.xlu1 %1455 }
 0x485   : > { %v1476_v53 = vadd.f32 %v1456_v20, %v1396_v33 }
 0x487   : > { %v1503_v43 = vmul.f32 %v5354_v50, %v1476_v53  ;;  %vm1486_vm13 = vcmp.gt.f32.partialorder %v1476_v53, 0.0 }
 0x488   : > { %v1382_v12 = vpop.permute.xlu0 %1381  ;;  %v1372_v0 = vpop.permute.xlu1 %1371 }
 0x489   : > { %v1394_v25 = vadd.f32 %v1372_v0, %v1314_v21  ;;  %v1511_v26 = vsel %vm1486_vm13, %v1476_v53, %v1503_v43  ;;  %v1567_v0 = vmul.f32 %v5372_v60, %v1510_v28  ;;  %v1319_v60 = vmul.f32 %v5363_v58, %v5315_v29 }
 0x48a   : > { %v1568_v7 = vmul.f32 %v1543_v8, %v1511_v26 }
 0x48b   : > { %v1624_v39 = vadd.f32 %v5385_v61, %v1567_v0 }
 0x48c   : > { %v1462_v55 = vpop.permute.xlu0 %1461  ;;  %v1452_v52 = vpop.permute.xlu1 %1451  ;;  %v1625_v8 = vadd.f32 %v1600_v10, %v1568_v7 }
 0x48d   : > { %v1474_v46 = vadd.f32 %v1452_v52, %v1394_v25  ;;  %v1399_v25 = vadd.f32 %v1382_v12, %v1319_v60 }
 0x48e   : > { %v1640_v44 = vpack.c.bf16 %v1625_v8, %v1624_v39 }
 0x48f   : > { %vm1484_vm15 = vcmp.gt.f32.partialorder %v1474_v46, 0.0  ;;  %v1501_v62 = vmul.f32 %v5354_v50, %v1474_v46  ;;  %v1479_v54 = vadd.f32 %v1462_v55, %v1399_v25 }
 0x490   : > { %v1378_v35 = vpop.permute.xlu0 %1377  ;;  %v1384_v36 = vpop.permute.xlu1 %1383 }
 0x491   : > { %v1509_v3 = vsel %vm1484_vm15, %v1474_v46, %v1501_v62  ;;  %v1397_v1 = vadd.f32 %v1378_v35, %v1317_v2  ;;  %vm1489_vm3 = vcmp.gt.f32.partialorder %v1479_v54, 0.0 }
 0x492   : > { %v1566_v33 = vmul.f32 %v5370_v40, %v1509_v3  ;;  %v4245_v3 = vld [vmem:[#allocation14 + $0x38] sm:$0xff]  }
 0x494   : > { %v1458_v20 = vpop.permute.xlu0 %1457  ;;  %v1464_v6 = vpop.permute.xlu1 %1463  ;;  %v1623_v51 = vadd.f32 %v5383_v32, %v1566_v33  ;;  %v1320_v32 = vmul.f32 %v5393_v5, %v5330_v48  ;;  %v1506_v48 = vmul.f32 %v5354_v50, %v1479_v54 }
 0x495   : > { %v1477_v53 = vadd.f32 %v1458_v20, %v1397_v1 }
 0x496   : > { %v1639_v43 = vpack.c.bf16 %v1623_v51, %v1622_v14  ;;  %v1400_v52 = vadd.f32 %v1384_v36, %v1320_v32  ;;  %v1514_v62 = vsel %vm1489_vm3, %v1479_v54, %v1506_v48 }
 0x497   : > { %v1504_v31 = vmul.f32 %v5354_v50, %v1477_v53  ;;  %vm1487_vm0 = vcmp.gt.f32.partialorder %v1477_v53, 0.0  ;;  %v1571_v7 = vmul.f32 %v5409_v56, %v1514_v62 }
 0x498   : > { %3972 = vmatprep.subr.bf16.mxu1 %v1639_v43  ;;  %v1380_v21 = vpop.permute.xlu1 %1379  ;;  %v1480_v26 = vadd.f32 %v1464_v6, %v1400_v52 }
 0x499   : > { %3973 = vmatpush3.bf16.msra.mxu1 %v1639_v43  ;;  %v1398_v40 = vadd.f32 %v1380_v21, %v1318_v63  ;;  %v1512_v61 = vsel %vm1487_vm0, %v1477_v53, %v1504_v31 }
 0x49a   : > { %3974 = vmatprep.subr.bf16.mxu1 %v1640_v44  ;;  %v1569_v38 = vmul.f32 %v5395_v47, %v1512_v61  ;;  %v1507_v5 = vmul.f32 %v5354_v50, %v1480_v26  ;;  %vm1490_vm4 = vcmp.gt.f32.partialorder %v1480_v26, 0.0 }
 0x49c   : > { %v1460_v13 = vpop.permute.xlu1 %1459  ;;  %v1626_v29 = vadd.f32 %v5402_v4, %v1569_v38  ;;  %v1515_v47 = vsel %vm1490_vm4, %v1480_v26, %v1507_v5  ;;  %v6201_v38 = vmov 0  }
 0x49d   : > { %v1478_v10 = vadd.f32 %v1460_v13, %v1398_v40  ;;  %3975 = vmatpush3.bf16.msra.mxu1 %v1640_v44 }
 0x49f   : > { %vm1488_vm1 = vcmp.gt.f32.partialorder %v1478_v10, 0.0  ;;  %v1505_v45 = vmul.f32 %v5354_v50, %v1478_v10  ;;  %v4244_v50 = vld [vmem:[#allocation14 + $0x30] sm:$0xff]  }
 0x4a1   : > { %v1513_v46 = vsel %vm1488_vm1, %v1478_v10, %v1505_v45 }
 0x4a2   : > { %v1570_v28 = vmul.f32 %v5415_v9, %v1513_v46  ;;  %v1572_v9 = vmul.f32 %v5424_v19, %v1515_v47 }
 0x4a4   : > { %v1627_v58 = vadd.f32 %v5420_v17, %v1570_v28 }
 0x4a5   : > { %v1615_v55 = vpop.permute.xlu0 %1614 }
 0x4a6   : > { %v1641_v12 = vpack.c.bf16 %v1627_v58, %v1626_v29  ;;  %v1628_v4 = vadd.f32 %v1615_v55, %v1571_v7  ;;  %v2163_v58 = vld [vmem:[#allocation11 + $0x80] sm:$0xff] }
 0x4a8   : > { %3976 = vmatprep.subr.bf16.mxu1 %v1641_v12 }
 0x4a9   : > { %3977 = vmatpush3.bf16.msra.mxu1 %v1641_v12  ;;  %v1760_v2 = vpop.permute.xlu0 %1759  ;;  %v2220_v12 = vld [vmem:[#allocation12 + $0x80] sm:$0xff] }
 0x4ad   : > { %v1620_v35 = vpop.permute.xlu1 %1619  ;;  %v1817_v0 = vpop.permute.xlu0 %1816 }
 0x4ae   : > { %v1629_v36 = vadd.f32 %v1620_v35, %v1572_v9 }
 0x4b0   : > { %v1642_v17 = vpack.c.bf16 %v1629_v36, %v1628_v4  ;;  %v2165_v4 = vld [vmem:[#allocation11 + $0x90] sm:$0xff] }
 0x4b1   : > { %v1765_v56 = vpop.permute.xlu1 %1764  ;;  %v1770_v33 = vpop.permute.xlu0 %1769 }
 0x4b2   : > { %3978 = vmatprep.subr.bf16.mxu1 %v1642_v17 }
 0x4b3   : > { %3979 = vmatpush3.bf16.msra.mxu1 %v1642_v17 }
 0x4b5   : > { %v1822_v6 = vpop.permute.xlu1 %1821  ;;  %v1827_v21 = vpop.permute.xlu0 %1826 }
 0x4b6   : > { %3981 = vmatmul.mubr.msk.bf16.vlgmr.msra.gmra.mrb[0].mxu1 %vm1016_vm5, %v4243_v23 }
 0x4b7   : > { %3984 = vmatprep.mubr.msk.bf16.mxu1 %vm1016_vm5, %v4244_v50  ;;  %v2222_v50 = vld [vmem:[#allocation12 + $0x90] sm:$0xff] }
 0x4b9   : > { %v1775_v31 = vpop.permute.xlu1 %1774  ;;  %v1780_v61 = vpop.permute.xlu0 %1779 }
 0x4bd   : > { %v1832_v10 = vpop.permute.xlu1 %1831  ;;  %v1837_v45 = vpop.permute.xlu0 %1836 }
 0x4be   : > { %3985 = vmatmul.mubr.msk.bf16.gmra.mrb[4].mxu1 %vm1016_vm5, %v4245_v3  ;;  %v2167_v3 = vld [vmem:[#allocation11 + $0xa0] sm:$0xff] }
 0x4c1   : > { %v1790_v29 = vpop.permute.xlu0 %1789 }
 0x589   : > { %v3982_v19 = vpop.f32.mrb[0].mxu1 }
 0x58a   : > { %v5466_v1 = vadd.f32 %v3982_v19, %v5214_v24  ;;  %v1709_v20 = vpop.f32.mrb[1].mxu1  ;;  %v2221_v19 = vld [vmem:[#allocation12 + $0x88] sm:$0xff] }
 0x58b   : > { %v5469_v14 = vadd.f32 %v1709_v20, %v5217_v11  ;;  %v3983_v51 = vpop.f32.mrb[2].mxu1  ;;  %v2166_v20 = vld [vmem:[#allocation11 + $0x98] sm:$0xff] }
 0x58c   : > { %v1742_v8 = vmax.f32 %v5466_v1, 0.0  ;;  %v1712_v53 = vpop.f32.mrb[3].mxu1  ;;  %v5476_v11 = vadd.f32 %v3983_v51, %v5228_v49  ;;  %v2168_v51 = vld [vmem:[#allocation11 + $0xa8] sm:$0xff] }
 0x58d   : > { %v1740_v43 = vmax.f32 %v5469_v14, 0.0  ;;  %v5482_v52 = vadd.f32 %v1712_v53, %v5234_v27  ;;  %v2225_v53 = vld [vmem:[#allocation12 + $0xa8] sm:$0xff] }
 0x58e   : > { %v1799_v39 = vmul.f32 %v1770_v33, %v1742_v8  ;;  %v1743_v25 = vmax.f32 %v5476_v11, 0.0  ;;  %v2164_v33 = vld [vmem:[#allocation11 + $0x88] sm:$0xff] }
 0x58f   : > { %v1797_v44 = vmul.f32 %v1760_v2, %v1740_v43  ;;  %v1741_v49 = vmax.f32 %v5482_v52, 0.0  ;;  %v3882_v2 = vld [vmem:[#allocation15 + $0x2] ss:$0 sm:$0xff] }
 0x590   : > { %v1856_v63 = vadd.f32 %v1827_v21, %v1799_v39  ;;  %v1800_v54 = vmul.f32 %v1775_v31, %v1743_v25  ;;  %v2170_v39 = vld [vmem:[#allocation11 + $0xb8] sm:$0xff] }
 0x591   : > { %v1854_v40 = vadd.f32 %v1817_v0, %v1797_v44  ;;  %v3986_v13 = vpop.f32.mrb[4].mxu1  ;;  %v1798_v28 = vmul.f32 %v1765_v56, %v1741_v49  ;;  %v2224_v0 = vld [vmem:[#allocation12 + $0xa0] sm:$0xff] }
 0x592   : > { %1874 = vrot.lane.b32.xlu1 %v1856_v63, %s4586_s12  ;;  %v1725_v24 = vpop.f32.mrb[5].mxu1  ;;  %v5488_v26 = vadd.f32 %v3986_v13, %v5241_v22  ;;  %v1857_v46 = vadd.f32 %v1832_v10, %v1800_v54  ;;  %v6202_v56 = vld [vmem:[#allocation24_spill] sm:$0xff] }
 0x593   : > { %v3987_v60 = vpop.f32.mrb[6].mxu1  ;;  %1870 = vrot.lane.b32.xlu0 %v1854_v40, %s4586_s12  ;;  %v1855_v48 = vadd.f32 %v1822_v6, %v1798_v28  ;;  %v2223_v6 = vld [vmem:[#allocation12 + $0x98] sm:$0xff] }
 0x594   : > { %v1728_v32 = vpop.f32.mrb[7].mxu1  ;;  %v1746_v27 = vmax.f32 %v5488_v26, 0.0 }
 0x595   : > { %v5505_v55 = vadd.f32 %v1728_v32, %v5262_v59 }
 0x596   : > { %1921 = vperm.xlu1 %4212, %v5361_v30   ;;  %v1785_v30 = vpop.permute.xlu1 %1784  ;;  %v1803_v5 = vmul.f32 %v1790_v29, %v1746_v27 }
 0x597   : > { %2076 = vperm.xlu0 %4209, %v5413_v57  }
 0x59a   : > { %1926 = vperm.xlu1 %4212, %v5368_v16   ;;  %v5494_v16 = vadd.f32 %v1725_v24, %v5249_v37  ;;  %v1842_v22 = vpop.permute.xlu1 %1841  ;;  %v1847_v37 = vpop.permute.xlu0 %1846 }
 0x59b   : > { %4213 = vset.pattern.permute.xlu0 %v6201_v38  ;;  %v1860_v62 = vadd.f32 %v1847_v37, %v1803_v5 }
 0x59c   : > { %1931 = vperm.xlu0 %4213, %v5366_v15   ;;  %v1744_v15 = vmax.f32 %v5494_v16, 0.0 }
 0x59e   : > { %1936 = vperm.xlu1 %4212, %v5388_v41   ;;  %v5500_v41 = vadd.f32 %v3987_v60, %v5256_v42  ;;  %v1801_v47 = vmul.f32 %v1780_v61, %v1744_v15  ;;  %v1795_v7 = vpop.permute.xlu1 %1794  ;;  %v1745_v42 = vmax.f32 %v5505_v55, 0.0  ;;  %v1969_v21 = vpop.permute.xlu0 %1968 }
 0x5a0   : > { %1941 = vperm.xlu0 %4213, %v5377_v18   ;;  %v1747_v18 = vmax.f32 %v5500_v41, 0.0  ;;  %v1858_v9 = vadd.f32 %v1837_v45, %v1801_v47  ;;  %v1802_v23 = vmul.f32 %v1785_v30, %v1745_v42 }
 0x5a2   : > { %1876 = vrot.lane.b32.xlu1 %v1857_v46, %s4586_s12  ;;  %v1804_v35 = vmul.f32 %v1795_v7, %v1747_v18  ;;  %v1852_v36 = vpop.permute.xlu1 %1851  ;;  %v1859_v59 = vadd.f32 %v1842_v22, %v1802_v23  ;;  %v1977_v63 = vpop.permute.xlu0 %1976 }
 0x5a4   : > { %2173 = vperm.xlu0 %4213, %v2163_v58   ;;  %v1861_v17 = vadd.f32 %v1852_v36, %v1804_v35 }
 0x5a6   : > { %1872 = vrot.lane.b32.xlu1 %v1855_v48, %s4586_s12  ;;  %v1973_v8 = vpop.permute.xlu1 %1972  ;;  %v1985_v40 = vpop.permute.xlu0 %1984 }
 0x5a8   : > { %2230 = vperm.xlu0 %4213, %v2220_v12  }
 0x5aa   : > { %1882 = vrot.lane.b32.xlu1 %v1860_v62, %s4586_s12  ;;  %v2049_v43 = vpop.permute.xlu1 %2048 }
 0x5ac   : > { %1951 = vperm.xlu0 %4213, %v5381_v34   ;;  %v2169_v34 = vld [vmem:[#allocation11 + $0xb0] sm:$0xff] }
 0x5ae   : > { %1878 = vrot.lane.b32.xlu1 %v1858_v9, %s4586_s12  ;;  %v1981_v44 = vpop.permute.xlu1 %1980 }
 0x5b0   : > { %2183 = vperm.xlu0 %4213, %v2165_v4  }
 0x5b2   : > { %1884 = vrot.lane.b32.xlu1 %v1861_v17, %s4586_s12  ;;  %v2057_v31 = vpop.permute.xlu1 %2056 }
 0x5b4   : > { %2240 = vperm.xlu0 %4213, %v2222_v50  }
 0x5b6   : > { %1880 = vrot.lane.b32.xlu1 %v1859_v59, %s4586_s12  ;;  %v5515_v13 = vpop.permute.xlu1 %1988 }
 0x5b8   : > { %2193 = vperm.xlu0 %4213, %v2167_v3  }
 0x5ba   : > { %2143 = vperm.xlu1 %4212, %v3882_v2   ;;  %v2065_v24 = vpop.permute.xlu1 %2064 }
 0x5bc   : > { %2250 = vperm.xlu0 %4213, %v2224_v0  }
 0x5be   : > { %1946 = vperm.xlu1 %4212, %v6202_v56   ;;  %v1997_v32 = vpop.permute.xlu1 %1996 }
 0x5c0   : > { %2203 = vperm.xlu0 %4213, %v2169_v34  }
 0x5c2   : > { %2178 = vperm.xlu1 %4212, %v2164_v33   ;;  %v2073_v10 = vpop.permute.xlu1 %2072 }
 0x5c6   : > { %2235 = vperm.xlu1 %4212, %v2221_v19   ;;  %v2226_v19 = vld [vmem:[#allocation12 + $0xb0] sm:$0xff] }
 0x5ca   : > { %1956 = vperm.xlu1 %4212, %v5413_v57   ;;  %v1993_v57 = vpop.permute.xlu0 %1992 }
 0x5ce   : > { %2188 = vperm.xlu1 %4212, %v2166_v20   ;;  %v2053_v60 = vpop.permute.xlu0 %2052 }
 0x5d2   : > { %2245 = vperm.xlu1 %4212, %v2223_v6   ;;  %v2061_v61 = vpop.permute.xlu0 %2060  ;;  %v2395_v6 = vld [vmem:[#allocation6 + $0xc0] sm:$0xff] }
 0x5d6   : > { %2198 = vperm.xlu1 %4212, %v2168_v51   ;;  %v2069_v25 = vpop.permute.xlu0 %2068 }
 0x5da   : > { %2255 = vperm.xlu1 %4212, %v2225_v53   ;;  %v2227_v53 = vld [vmem:[#allocation12 + $0xb8] sm:$0xff] }
 0x5de   : > { %2208 = vperm.xlu1 %4212, %v2170_v39   ;;  %v2396_v39 = vld [vmem:[#allocation6 + $0xc8] sm:$0xff] }
 0x604   : > { %v1875_v45 = vpop.permute.xlu1 %1874 }
 0x605   : > { %1896 = vst.msk [vmem:[#allocation2 + $0x10] sm:$0xff] %vm605_vm2, %v1875_v45  ;;  %v1871_v54 = vpop.permute.xlu0 %1870  ;;  %v2457_v45 = vld [vmem:[#allocation8 + $0xe8] sm:$0xff] }
 0x606   : > { %1894 = vst.msk [vmem:[#allocation2] sm:$0xff] %vm605_vm2, %v1871_v54 }
 0x60c   : > { %v5519_v49 = vld [vmem:[#allocation2 + $0x10] sm:$0xff] }
 0x60d   : > { %v2001_v30 = vmul.f32 %v1977_v63, %v5519_v49  ;;  %v2081_v46 = vmul.f32 %v2057_v31, %v5519_v49  ;;  %v5524_v28 = vld [vmem:[#allocation2] sm:$0xff] }
 0x60e   : > { %v1999_v29 = vmul.f32 %v1969_v21, %v5524_v28  ;;  %v2079_v22 = vmul.f32 %v2049_v43, %v5524_v28  ;;  %v2397_v43 = vld [vmem:[#allocation6 + $0xd0] sm:$0xff]  ;;  %v4246_v63 = vld [vmem:[#allocation14 + $0x40] sm:$0xff]  }
 0x60f   : > { %2019 = vrot.lane.b32.xlu0 %v2001_v30, %s4587_s13  ;;  %v2454_v21 = vld [vmem:[#allocation8 + $0xd0] sm:$0xff]  ;;  %3996 = vmatprep.mubr.msk.bf16.mxu0 %vm1016_vm5, %v4246_v63  ;;  %v2399_v31 = vld [vmem:[#allocation6 + $0xe0] sm:$0xff]  ;;  %v2402_v30 = vld [vmem:[#allocation6 + $0xf8] sm:$0xff] }
 0x613   : > { %2099 = vrot.lane.b32.xlu0 %v2081_v46, %s4588_s15 }
 0x615   : > { %v5527_v27 = vpop.permute.xlu1 %1921 }
 0x616   : > { %v2077_v0 = vpop.permute.xlu0 %2076 }
 0x617   : > { %2015 = vrot.lane.b32.xlu0 %v1999_v29, %s4587_s13  ;;  %v6203_v29 = vmov 1  }
 0x619   : > { %v5531_v58 = vpop.permute.xlu1 %1926 }
 0x61b   : > { %2095 = vrot.lane.b32.xlu0 %v2079_v22, %s4588_s15  ;;  %v2459_v22 = vld [vmem:[#allocation8 + $0xf8] sm:$0xff] }
 0x61d   : > { %v5535_v48 = vpop.permute.xlu1 %1936 }
 0x621   : > { %v1877_v5 = vpop.permute.xlu1 %1876 }
 0x622   : > { %1897 = vst.msk [vmem:[#allocation2 + $0x18] sm:$0xff] %vm605_vm2, %v1877_v5 }
 0x625   : > { %v1873_v15 = vpop.permute.xlu1 %1872 }
 0x626   : > { %1895 = vst.msk [vmem:[#allocation2 + $0x8] sm:$0xff] %vm605_vm2, %v1873_v15  ;;  %v5594_v15 = vld [vmem:[#allocation9 + $0xc0] sm:$0xff] }
 0x629   : > { %v1883_v12 = vpop.permute.xlu1 %1882  ;;  %v5539_v37 = vld [vmem:[#allocation2 + $0x18] sm:$0xff] }
 0x62a   : > { %1900 = vst.msk [vmem:[#allocation2 + $0x30] sm:$0xff] %vm605_vm2, %v1883_v12  ;;  %v2002_v62 = vmul.f32 %v1981_v44, %v5539_v37  ;;  %v2082_v18 = vmul.f32 %v2061_v61, %v5539_v37  ;;  %v2453_v44 = vld [vmem:[#allocation8 + $0xc8] sm:$0xff] }
 0x62b   : > { %v2400_v61 = vld [vmem:[#allocation6 + $0xe8] sm:$0xff] }
 0x62c   : > { %2021 = vrot.lane.b32.xlu1 %v2002_v62, %s4587_s13  ;;  %v5599_v62 = vld [vmem:[#allocation9 + $0xd0] sm:$0xff] }
 0x62d   : > { %v1879_v47 = vpop.permute.xlu1 %1878  ;;  %v5546_v7 = vld [vmem:[#allocation2 + $0x8] sm:$0xff] }
 0x62e   : > { %1898 = vst.msk [vmem:[#allocation2 + $0x20] sm:$0xff] %vm605_vm2, %v1879_v47  ;;  %v2000_v42 = vmul.f32 %v1973_v8, %v5546_v7  ;;  %v2080_v17 = vmul.f32 %v2053_v60, %v5546_v7  ;;  %v2452_v8 = vld [vmem:[#allocation8 + $0xc0] sm:$0xff]  ;;  %v5601_v47 = vld [vmem:[#allocation9 + $0xc8] sm:$0xff] }
 0x630   : > { %2101 = vrot.lane.b32.xlu1 %v2082_v18, %s4588_s15 }
 0x631   : > { %v5549_v9 = vld [vmem:[#allocation2 + $0x30] sm:$0xff]  ;;  %v1885_v35 = vpop.permute.xlu1 %1884 }
 0x632   : > { %1901 = vst.msk [vmem:[#allocation2 + $0x38] sm:$0xff] %vm605_vm2, %v1885_v35  ;;  %v2005_v4 = vmul.f32 %v1993_v57, %v5549_v9  ;;  %v2085_v23 = vmul.f32 %v2073_v10, %v5549_v9  ;;  %v2456_v57 = vld [vmem:[#allocation8 + $0xe0] sm:$0xff] }
 0x634   : > { %2017 = vrot.lane.b32.xlu1 %v2000_v42, %s4587_s13  ;;  %2027 = vrot.lane.b32.xlu0 %v2005_v4, %s4587_s13  ;;  %v5610_v42 = vld [vmem:[#allocation9 + $0xe0] sm:$0xff]  ;;  %v6204_v4 = vmov 2  }
 0x635   : > { %v1881_v36 = vpop.permute.xlu1 %1880  ;;  %v5559_v50 = vld [vmem:[#allocation2 + $0x20] sm:$0xff] }
 0x636   : > { %1899 = vst.msk [vmem:[#allocation2 + $0x28] sm:$0xff] %vm605_vm2, %v1881_v36  ;;  %v2003_v3 = vmul.f32 %v1985_v40, %v5559_v50  ;;  %v2083_v34 = vmul.f32 %v2065_v24, %v5559_v50  ;;  %v2398_v40 = vld [vmem:[#allocation6 + $0xd8] sm:$0xff]  ;;  %v5614_v36 = vld [vmem:[#allocation9 + $0xf0] sm:$0xff] }
 0x637   : > { %v2455_v24 = vld [vmem:[#allocation8 + $0xd8] sm:$0xff]  ;;  %6205 = vst [vmem:[#allocation24_spill] sm:$0xff] %v5614_v36 }
 0x638   : > { %2097 = vrot.lane.b32.xlu1 %v2080_v17, %s4588_s15  ;;  %2107 = vrot.lane.b32.xlu0 %v2085_v23, %s4588_s15 }
 0x639   : > { %v5563_v59 = vld [vmem:[#allocation2 + $0x38] sm:$0xff]  ;;  %v5587_v54 = vpop.permute.xlu1 %2143 }
 0x63a   : > { %v2006_v2 = vmul.f32 %v1997_v32, %v5563_v59  ;;  %v2086_v56 = vmul.f32 %v2077_v0, %v5563_v59  ;;  %v2401_v32 = vld [vmem:[#allocation6 + $0xf0] sm:$0xff] }
 0x63c   : > { %2023 = vrot.lane.b32.xlu0 %v2003_v3, %s4587_s13  ;;  %2029 = vrot.lane.b32.xlu1 %v2006_v2, %s4587_s13  ;;  %v5621_v3 = vld [vmem:[#allocation9 + $0xd8] sm:$0xff] }
 0x63d   : > { %v5571_v33 = vld [vmem:[#allocation2 + $0x28] sm:$0xff]  ;;  %v5592_v5 = vpop.permute.xlu1 %1946 }
 0x63e   : > { %v2004_v20 = vmul.f32 %v5515_v13, %v5571_v33  ;;  %v2084_v51 = vmul.f32 %v2069_v25, %v5571_v33  ;;  %v5581_v13 = vpop.permute.xlu0 %1931  ;;  %v2458_v25 = vld [vmem:[#allocation8 + $0xf0] sm:$0xff] }
 0x640   : > { %2103 = vrot.lane.b32.xlu0 %v2083_v34, %s4588_s15  ;;  %2109 = vrot.lane.b32.xlu1 %v2086_v56, %s4588_s15 }
 0x641   : > { %v5603_v18 = vpop.permute.xlu1 %2178 }
 0x642   : > { %v5583_v60 = vpop.permute.xlu0 %1941 }
 0x644   : > { %2260 = vperm.xlu0 %4213, %v2226_v19   ;;  %2025 = vrot.lane.b32.xlu1 %v2004_v20, %s4587_s13  ;;  %v5637_v19 = vld [vmem:[#allocation9 + $0xe8] sm:$0xff] }
 0x645   : > { %v5616_v17 = vpop.permute.xlu1 %2235  ;;  %6206 = vst [vmem:[#allocation25_spill] sm:$0xff] %v5637_v19 }
 0x646   : > { %v5585_v10 = vpop.permute.xlu0 %2173 }
 0x648   : > { %2405 = vperm.xlu0 %4213, %v2395_v6   ;;  %2105 = vrot.lane.b32.xlu1 %v2084_v51, %s4588_s15  ;;  %v5646_v51 = vld [vmem:[#allocation9 + $0xf8] sm:$0xff] }
 0x649   : > { %v5626_v2 = vpop.permute.xlu1 %1956 }
 0x64a   : > { %v5589_v46 = vpop.permute.xlu0 %2230 }
 0x64c   : > { %2462 = vperm.xlu0 %4213, %v2452_v8   ;;  %2265 = vperm.xlu1 %4212, %v2227_v53  }
 0x64d   : > { %v2189_v34 = vpop.permute.xlu1 %2188 }
 0x64e   : > { %v5596_v12 = vpop.permute.xlu0 %1951 }
 0x650   : > { %2415 = vperm.xlu0 %4213, %v2397_v43   ;;  %2410 = vperm.xlu1 %4212, %v2396_v39  }
 0x651   : > { %v2246_v20 = vpop.permute.xlu1 %2245 }
 0x652   : > { %v5605_v35 = vpop.permute.xlu0 %2183 }
 0x654   : > { %2472 = vperm.xlu0 %4213, %v2454_v21   ;;  %2467 = vperm.xlu1 %4212, %v2453_v44  }
 0x655   : > { %v5648_v8 = vpop.permute.xlu1 %2198 }
 0x656   : > { %v5618_v23 = vpop.permute.xlu0 %2240 }
 0x658   : > { %2425 = vperm.xlu0 %4213, %v2399_v31   ;;  %2420 = vperm.xlu1 %4212, %v2398_v40   ;;  %v1959_v31 = vmul.f32 %v5527_v27, %v5524_v28  ;;  %v1962_v40 = vmul.f32 %v5535_v48, %v5539_v37  ;;  %v1960_v27 = vmul.f32 %v5531_v58, %v5546_v7 }
 0x659   : > { %v5653_v43 = vpop.permute.xlu1 %2255 }
 0x65a   : > { %v5628_v0 = vpop.permute.xlu0 %2193 }
 0x65c   : > { %2482 = vperm.xlu0 %4213, %v2456_v57   ;;  %2477 = vperm.xlu1 %4212, %v2455_v24   ;;  %v1961_v24 = vmul.f32 %v5581_v13, %v5519_v49 }
 0x65d   : > { %v5657_v21 = vpop.permute.xlu1 %2208 }
 0x65e   : > { %v5635_v56 = vpop.permute.xlu0 %2250 }
 0x660   : > { %2435 = vperm.xlu0 %4213, %v2401_v32   ;;  %2430 = vperm.xlu1 %4212, %v2400_v61  }
 0x662   : > { %v5642_v6 = vpop.permute.xlu0 %2203 }
 0x664   : > { %2492 = vperm.xlu0 %4213, %v2458_v25   ;;  %2487 = vperm.xlu1 %4212, %v2457_v45  }
 0x668   : > { %2440 = vperm.xlu1 %4212, %v2402_v30   ;;  %4214 = vset.pattern.permute.xlu0 %v6203_v29 }
 0x669   : > { %2614 = vperm.xlu0 %4214, %v5594_v15  }
 0x66c   : > { %2497 = vperm.xlu1 %4212, %v2459_v22  }
 0x66d   : > { %2622 = vperm.xlu0 %4214, %v5599_v62  }
 0x670   : > { %4215 = vset.pattern.permute.xlu1 %v6203_v29 }
 0x671   : > { %2618 = vperm.xlu1 %4215, %v5601_v47   ;;  %2630 = vperm.xlu0 %4214, %v5610_v42  }
 0x675   : > { %4216 = vset.pattern.permute.xlu1 %v6204_v4  ;;  %2638 = vperm.xlu0 %4214, %v5614_v36  }
 0x676   : > { %2694 = vperm.xlu1 %4216, %v5594_v15  }
 0x679   : > { %4221 = vset.pattern.permute.xlu0 %v6204_v4 }
 0x67a   : > { %4217 = vset.pattern.permute.xlu1 %v6203_v29  ;;  %2698 = vperm.xlu0 %4221, %v5601_v47  }
 0x67b   : > { %2626 = vperm.xlu1 %4217, %v5621_v3  }
 0x67e   : > { %2706 = vperm.xlu0 %4221, %v5621_v3  }
 0x67f   : > { %4218 = vset.pattern.permute.xlu1 %v6204_v4 }
 0x680   : > { %2702 = vperm.xlu1 %4218, %v5599_v62  }
 0x681   : > { %v2020_v53 = vpop.permute.xlu0 %2019 }
 0x682   : > { %2714 = vperm.xlu0 %4221, %v5637_v19   ;;  %v2041_v45 = vadd.f32 %v2020_v53, %v1961_v24 }
 0x684   : > { %4219 = vset.pattern.permute.xlu1 %v6203_v29 }
 0x685   : > { %2634 = vperm.xlu1 %4219, %v5637_v19   ;;  %v2100_v39 = vpop.permute.xlu0 %2099 }
 0x689   : > { %4220 = vset.pattern.permute.xlu1 %v6204_v4  ;;  %v2016_v44 = vpop.permute.xlu0 %2015 }
 0x68a   : > { %2710 = vperm.xlu1 %4220, %v5610_v42   ;;  %v2039_v32 = vadd.f32 %v2016_v44, %v1959_v31 }
 0x68d   : > { %v2096_v57 = vpop.permute.xlu0 %2095 }
 0x68e   : > { %4222 = vset.pattern.permute.xlu1 %v6203_v29  ;;  %v2119_v30 = vadd.f32 %v2096_v57, %v2039_v32  ;;  %v1963_v32 = vmul.f32 %v5583_v60, %v5559_v50  ;;  %v1964_v50 = vmul.f32 %v5592_v5, %v5571_v33 }
 0x68f   : > { %2642 = vperm.xlu1 %4222, %v5646_v51  }
 0x690   : > { %vm2129_vm6 = vcmp.gt.f32.partialorder %v2119_v30, 0.0 }
 0x693   : > { %4223 = vset.pattern.permute.xlu1 %v6204_v4  ;;  %v2121_v4 = vadd.f32 %v2100_v39, %v2041_v45 }
 0x694   : > { %2718 = vperm.xlu1 %4223, %v5614_v36   ;;  %v2146_v36 = vmul.f32 %v5587_v54, %v2119_v30 }
 0x695   : > { %v2148_v49 = vmul.f32 %v5587_v54, %v2121_v4  ;;  %vm2131_vm8 = vcmp.gt.f32.partialorder %v2121_v4, 0.0 }
 0x696   : > { %v2154_v53 = vsel %vm2129_vm6, %v2119_v30, %v2146_v36 }
 0x698   : > { %4224 = vset.pattern.permute.xlu1 %v6201_v38 }
 0x69e   : > { %v2022_v63 = vpop.permute.xlu1 %2021 }
 0x69f   : > { %v2042_v61 = vadd.f32 %v2022_v63, %v1962_v40  ;;  %v2156_v63 = vsel %vm2131_vm8, %v2121_v4, %v2148_v49  ;;  %v2211_v40 = vmul.f32 %v5585_v10, %v2154_v53 }
 0x6a1   : > { %v2268_v4 = vadd.f32 %v5589_v46, %v2211_v40 }
 0x6a2   : > { %v2102_v25 = vpop.permute.xlu1 %2101 }
 0x6a3   : > { %v2122_v22 = vadd.f32 %v2102_v25, %v2042_v61 }
 0x6a5   : > { %v2149_v28 = vmul.f32 %v5587_v54, %v2122_v22  ;;  %vm2132_vm7 = vcmp.gt.f32.partialorder %v2122_v22, 0.0 }
 0x6a6   : > { %v2028_v29 = vpop.permute.xlu0 %2027  ;;  %v2018_v19 = vpop.permute.xlu1 %2017 }
 0x6a7   : > { %v2040_v48 = vadd.f32 %v2018_v19, %v1960_v27  ;;  %v2157_v44 = vsel %vm2132_vm7, %v2122_v22, %v2149_v28  ;;  %v2213_v19 = vmul.f32 %v5605_v35, %v2156_v63  ;;  %v1965_v35 = vmul.f32 %v5596_v12, %v5549_v9 }
 0x6a8   : > { %v2214_v57 = vmul.f32 %v2189_v34, %v2157_v44 }
 0x6a9   : > { %v2270_v28 = vadd.f32 %v5618_v23, %v2213_v19 }
 0x6aa   : > { %v2108_v37 = vpop.permute.xlu0 %2107  ;;  %v2098_v13 = vpop.permute.xlu1 %2097  ;;  %v2271_v22 = vadd.f32 %v2246_v20, %v2214_v57 }
 0x6ab   : > { %v2120_v39 = vadd.f32 %v2098_v13, %v2040_v48  ;;  %v2045_v48 = vadd.f32 %v2028_v29, %v1965_v35 }
 0x6ac   : > { %v2286_v49 = vpack.c.bf16 %v2271_v22, %v2270_v28 }
 0x6ad   : > { %vm2130_vm9 = vcmp.gt.f32.partialorder %v2120_v39, 0.0  ;;  %v2147_v31 = vmul.f32 %v5587_v54, %v2120_v39  ;;  %v2125_v53 = vadd.f32 %v2108_v37, %v2045_v48 }
 0x6ae   : > { %v2024_v24 = vpop.permute.xlu0 %2023  ;;  %v2030_v58 = vpop.permute.xlu1 %2029 }
 0x6af   : > { %v2155_v7 = vsel %vm2130_vm9, %v2120_v39, %v2147_v31  ;;  %v2043_v36 = vadd.f32 %v2024_v24, %v1963_v32  ;;  %vm2135_vm12 = vcmp.gt.f32.partialorder %v2125_v53, 0.0 }
 0x6b0   : > { %v2212_v61 = vmul.f32 %v5603_v18, %v2155_v7  ;;  %v4249_v7 = vld [vmem:[#allocation14 + $0x58] sm:$0xff]  }
 0x6b2   : > { %v2104_v25 = vpop.permute.xlu0 %2103  ;;  %v2110_v45 = vpop.permute.xlu1 %2109  ;;  %v2269_v30 = vadd.f32 %v5616_v17, %v2212_v61  ;;  %v1966_v17 = vmul.f32 %v5626_v2, %v5563_v59  ;;  %v2152_v59 = vmul.f32 %v5587_v54, %v2125_v53 }
 0x6b3   : > { %v2123_v10 = vadd.f32 %v2104_v25, %v2043_v36 }
 0x6b4   : > { %v2285_v34 = vpack.c.bf16 %v2269_v30, %v2268_v4  ;;  %v2046_v13 = vadd.f32 %v2030_v58, %v1966_v17  ;;  %v2160_v31 = vsel %vm2135_vm12, %v2125_v53, %v2152_v59  ;;  %v4247_v58 = vld [vmem:[#allocation14 + $0x48] sm:$0xff]  }
 0x6b5   : > { %v2150_v60 = vmul.f32 %v5587_v54, %v2123_v10  ;;  %vm2133_vm10 = vcmp.gt.f32.partialorder %v2123_v10, 0.0  ;;  %v2217_v40 = vmul.f32 %v5642_v6, %v2160_v31 }
 0x6b6   : > { %3988 = vmatprep.subr.bf16.mxu0 %v2285_v34  ;;  %v2026_v27 = vpop.permute.xlu1 %2025  ;;  %v2126_v44 = vadd.f32 %v2110_v45, %v2046_v13 }
 0x6b7   : > { %3989 = vmatpush3.bf16.msra.mxu0 %v2285_v34  ;;  %v2044_v18 = vadd.f32 %v2026_v27, %v1964_v50  ;;  %v2158_v23 = vsel %vm2133_vm10, %v2123_v10, %v2150_v60 }
 0x6b8   : > { %3990 = vmatprep.subr.bf16.mxu0 %v2286_v49  ;;  %v2215_v5 = vmul.f32 %v5628_v0, %v2158_v23  ;;  %v2153_v2 = vmul.f32 %v5587_v54, %v2126_v44  ;;  %vm2136_vm13 = vcmp.gt.f32.partialorder %v2126_v44, 0.0 }
 0x6ba   : > { %v2106_v46 = vpop.permute.xlu1 %2105  ;;  %v2272_v9 = vadd.f32 %v5635_v56, %v2215_v5  ;;  %v2161_v0 = vsel %vm2136_vm13, %v2126_v44, %v2153_v2  ;;  %v2866_v2 = vld [vmem:[#allocation12 + $0xc0] sm:$0xff] }
 0x6bb   : > { %v2124_v20 = vadd.f32 %v2106_v46, %v2044_v18  ;;  %3991 = vmatpush3.bf16.msra.mxu0 %v2286_v49 }
 0x6bd   : > { %vm2134_vm11 = vcmp.gt.f32.partialorder %v2124_v20, 0.0  ;;  %v2151_v33 = vmul.f32 %v5587_v54, %v2124_v20  ;;  %v4248_v54 = vld [vmem:[#allocation14 + $0x50] sm:$0xff]  }
 0x6bf   : > { %v2159_v39 = vsel %vm2134_vm11, %v2124_v20, %v2151_v33 }
 0x6c0   : > { %v2216_v63 = vmul.f32 %v5648_v8, %v2159_v39  ;;  %v2218_v8 = vmul.f32 %v5657_v21, %v2161_v0 }
 0x6c2   : > { %v2273_v12 = vadd.f32 %v5653_v43, %v2216_v63 }
 0x6c3   : > { %v2261_v37 = vpop.permute.xlu0 %2260 }
 0x6c4   : > { %v2287_v29 = vpack.c.bf16 %v2273_v12, %v2272_v9  ;;  %v2274_v56 = vadd.f32 %v2261_v37, %v2217_v40  ;;  %v2809_v9 = vld [vmem:[#allocation11 + $0xc0] sm:$0xff] }
 0x6c6   : > { %3992 = vmatprep.subr.bf16.mxu0 %v2287_v29 }
 0x6c7   : > { %3993 = vmatpush3.bf16.msra.mxu0 %v2287_v29  ;;  %v2406_v32 = vpop.permute.xlu0 %2405 }
 0x6cb   : > { %v2266_v57 = vpop.permute.xlu1 %2265  ;;  %v2463_v19 = vpop.permute.xlu0 %2462 }
 0x6cc   : > { %v2275_v24 = vadd.f32 %v2266_v57, %v2218_v8  ;;  %v6207_v57 = vld [vmem:[#allocation24_spill] sm:$0xff] }
 0x6ce   : > { %v2288_v43 = vpack.c.bf16 %v2275_v24, %v2274_v56  ;;  %v2811_v56 = vld [vmem:[#allocation11 + $0xd0] sm:$0xff] }
 0x6cf   : > { %v2411_v6 = vpop.permute.xlu1 %2410  ;;  %v2416_v61 = vpop.permute.xlu0 %2415 }
 0x6d0   : > { %3994 = vmatprep.subr.bf16.mxu0 %v2288_v43 }
 0x6d1   : > { %3995 = vmatpush3.bf16.msra.mxu0 %v2288_v43 }
 0x6d3   : > { %v2468_v45 = vpop.permute.xlu1 %2467  ;;  %v2473_v27 = vpop.permute.xlu0 %2472 }
 0x6d4   : > { %3997 = vmatmul.mubr.msk.bf16.vlgmr.msra.gmra.mrb[8].mxu0 %vm1016_vm5, %v4247_v58 }
 0x6d5   : > { %4000 = vmatprep.mubr.msk.bf16.mxu0 %vm1016_vm5, %v4248_v54  ;;  %v2868_v54 = vld [vmem:[#allocation12 + $0xd0] sm:$0xff] }
 0x6d7   : > { %v2421_v60 = vpop.permute.xlu1 %2420  ;;  %v2426_v23 = vpop.permute.xlu0 %2425 }
 0x6db   : > { %v2478_v20 = vpop.permute.xlu1 %2477  ;;  %v2483_v33 = vpop.permute.xlu0 %2482 }
 0x6dc   : > { %4001 = vmatmul.mubr.msk.bf16.gmra.mrb[12].mxu0 %vm1016_vm5, %v4249_v7  ;;  %v2813_v7 = vld [vmem:[#allocation11 + $0xe0] sm:$0xff] }
 0x6df   : > { %v2436_v63 = vpop.permute.xlu0 %2435 }
 0x7a7   : > { %v3998_v21 = vpop.f32.mrb[8].mxu0 }
 0x7a8   : > { %v5699_v36 = vadd.f32 %v3998_v21, %v5466_v1  ;;  %v2355_v25 = vpop.f32.mrb[9].mxu0  ;;  %v2810_v21 = vld [vmem:[#allocation11 + $0xc8] sm:$0xff] }
 0x7a9   : > { %v5702_v4 = vadd.f32 %v2355_v25, %v5469_v14  ;;  %v3999_v30 = vpop.f32.mrb[10].mxu0  ;;  %v2867_v25 = vld [vmem:[#allocation12 + $0xc8] sm:$0xff] }
 0x7aa   : > { %v2388_v22 = vmax.f32 %v5699_v36, 0.0  ;;  %v2358_v10 = vpop.f32.mrb[11].mxu0  ;;  %v5709_v14 = vadd.f32 %v3999_v30, %v5476_v11  ;;  %v2869_v30 = vld [vmem:[#allocation12 + $0xd8] sm:$0xff] }
 0x7ab   : > { %v2386_v34 = vmax.f32 %v5702_v4, 0.0  ;;  %v5715_v13 = vadd.f32 %v2358_v10, %v5482_v52 }
 0x7ac   : > { %v2445_v28 = vmul.f32 %v2416_v61, %v2388_v22  ;;  %v2389_v48 = vmax.f32 %v5709_v14, 0.0  ;;  %v6208_v61 = vld [vmem:[#allocation25_spill] sm:$0xff] }
 0x7ad   : > { %v2443_v49 = vmul.f32 %v2406_v32, %v2386_v34  ;;  %v2387_v11 = vmax.f32 %v5715_v13, 0.0  ;;  %v3891_v32 = vld [vmem:[#allocation15 + $0x3] ss:$0 sm:$0xff]  ;;  %v2814_v22 = vld [vmem:[#allocation11 + $0xe8] sm:$0xff] }
 0x7ae   : > { %v2502_v50 = vadd.f32 %v2473_v27, %v2445_v28  ;;  %v2446_v5 = vmul.f32 %v2421_v60, %v2389_v48  ;;  %v2871_v34 = vld [vmem:[#allocation12 + $0xe8] sm:$0xff]  ;;  %v2816_v27 = vld [vmem:[#allocation11 + $0xf8] sm:$0xff] }
 0x7af   : > { %v2500_v18 = vadd.f32 %v2463_v19, %v2443_v49  ;;  %v4002_v46 = vpop.f32.mrb[12].mxu0  ;;  %v2444_v39 = vmul.f32 %v2411_v6, %v2387_v11  ;;  %v2870_v19 = vld [vmem:[#allocation12 + $0xe0] sm:$0xff]  ;;  %v2815_v6 = vld [vmem:[#allocation11 + $0xf0] sm:$0xff] }
 0x7b0   : > { %2520 = vrot.lane.b32.xlu1 %v2502_v50, %s4586_s12  ;;  %v2371_v1 = vpop.f32.mrb[13].mxu0  ;;  %v5721_v53 = vadd.f32 %v4002_v46, %v5488_v26  ;;  %v2503_v44 = vadd.f32 %v2478_v20, %v2446_v5 }
 0x7b1   : > { %v4003_v35 = vpop.f32.mrb[14].mxu0  ;;  %2516 = vrot.lane.b32.xlu0 %v2500_v18, %s4586_s12  ;;  %v2501_v12 = vadd.f32 %v2468_v45, %v2444_v39  ;;  %v2812_v45 = vld [vmem:[#allocation11 + $0xd8] sm:$0xff] }
 0x7b2   : > { %v2374_v17 = vpop.f32.mrb[15].mxu0  ;;  %v2392_v52 = vmax.f32 %v5721_v53, 0.0 }
 0x7b3   : > { %v5738_v0 = vadd.f32 %v2374_v17, %v5505_v55 }
 0x7b4   : > { %2567 = vperm.xlu1 %4224, %v5594_v15   ;;  %v2431_v15 = vpop.permute.xlu1 %2430  ;;  %v2449_v59 = vmul.f32 %v2436_v63, %v2392_v52 }
 0x7b5   : > { %2722 = vperm.xlu0 %4221, %v5646_v51  }
 0x7b8   : > { %2572 = vperm.xlu1 %4224, %v5601_v47   ;;  %v5727_v47 = vadd.f32 %v2371_v1, %v5494_v16  ;;  %v2488_v26 = vpop.permute.xlu1 %2487  ;;  %v2493_v16 = vpop.permute.xlu0 %2492 }
 0x7b9   : > { %4225 = vset.pattern.permute.xlu0 %v6201_v38  ;;  %v2506_v29 = vadd.f32 %v2493_v16, %v2449_v59 }
 0x7ba   : > { %2577 = vperm.xlu0 %4225, %v5599_v62   ;;  %v2390_v62 = vmax.f32 %v5727_v47, 0.0 }
 0x7bc   : > { %2582 = vperm.xlu1 %4224, %v5621_v3   ;;  %v5733_v3 = vadd.f32 %v4003_v35, %v5500_v41  ;;  %v2447_v31 = vmul.f32 %v2426_v23, %v2390_v62  ;;  %v2441_v37 = vpop.permute.xlu1 %2440  ;;  %v2391_v41 = vmax.f32 %v5738_v0, 0.0  ;;  %v2615_v49 = vpop.permute.xlu0 %2614 }
 0x7be   : > { %2587 = vperm.xlu0 %4225, %v5610_v42   ;;  %v2393_v42 = vmax.f32 %v5733_v3, 0.0  ;;  %v2504_v40 = vadd.f32 %v2483_v33, %v2447_v31  ;;  %v2448_v58 = vmul.f32 %v2431_v15, %v2391_v41 }
 0x7c0   : > { %2522 = vrot.lane.b32.xlu1 %v2503_v44, %s4586_s12  ;;  %v2450_v8 = vmul.f32 %v2441_v37, %v2393_v42  ;;  %v2498_v24 = vpop.permute.xlu1 %2497  ;;  %v2505_v55 = vadd.f32 %v2488_v26, %v2448_v58  ;;  %v2623_v60 = vpop.permute.xlu0 %2622 }
 0x7c2   : > { %2819 = vperm.xlu0 %4225, %v2809_v9   ;;  %v2507_v43 = vadd.f32 %v2498_v24, %v2450_v8 }
 0x7c4   : > { %2518 = vrot.lane.b32.xlu1 %v2501_v12, %s4586_s12  ;;  %v2619_v10 = vpop.permute.xlu1 %2618  ;;  %v2631_v46 = vpop.permute.xlu0 %2630 }
 0x7c6   : > { %2876 = vperm.xlu0 %4225, %v2866_v2  }
 0x7c8   : > { %2528 = vrot.lane.b32.xlu1 %v2506_v29, %s4586_s12  ;;  %v2695_v28 = vpop.permute.xlu1 %2694 }
 0x7ca   : > { %2597 = vperm.xlu0 %4225, %v6207_v57  }
 0x7cc   : > { %2524 = vrot.lane.b32.xlu1 %v2504_v40, %s4586_s12  ;;  %v2627_v50 = vpop.permute.xlu1 %2626 }
 0x7ce   : > { %2829 = vperm.xlu0 %4225, %v2811_v56  }
 0x7d0   : > { %2530 = vrot.lane.b32.xlu1 %v2507_v43, %s4586_s12  ;;  %v2703_v18 = vpop.permute.xlu1 %2702 }
 0x7d2   : > { %2886 = vperm.xlu0 %4225, %v2868_v54  }
 0x7d4   : > { %2526 = vrot.lane.b32.xlu1 %v2505_v55, %s4586_s12  ;;  %v5748_v1 = vpop.permute.xlu1 %2634 }
 0x7d6   : > { %2839 = vperm.xlu0 %4225, %v2813_v7  }
 0x7d8   : > { %2789 = vperm.xlu1 %4224, %v3891_v32   ;;  %v2711_v35 = vpop.permute.xlu1 %2710 }
 0x7da   : > { %2896 = vperm.xlu0 %4225, %v2870_v19  }
 0x7dc   : > { %2592 = vperm.xlu1 %4224, %v6208_v61   ;;  %v2643_v23 = vpop.permute.xlu1 %2642 }
 0x7de   : > { %2849 = vperm.xlu0 %4225, %v2815_v6  }
 0x7e0   : > { %2824 = vperm.xlu1 %4224, %v2810_v21   ;;  %v2719_v48 = vpop.permute.xlu1 %2718 }
 0x7e4   : > { %2881 = vperm.xlu1 %4224, %v2867_v25   ;;  %v2872_v25 = vld [vmem:[#allocation12 + $0xf0] sm:$0xff] }
 0x7e8   : > { %2602 = vperm.xlu1 %4224, %v5646_v51   ;;  %v2639_v51 = vpop.permute.xlu0 %2638 }
 0x7ec   : > { %2834 = vperm.xlu1 %4224, %v2812_v45   ;;  %v2699_v17 = vpop.permute.xlu0 %2698 }
 0x7f0   : > { %2891 = vperm.xlu1 %4224, %v2869_v30   ;;  %v2707_v20 = vpop.permute.xlu0 %2706  ;;  %v3041_v30 = vld [vmem:[#allocation6 + $0x100] sm:$0xff] }
 0x7f4   : > { %2844 = vperm.xlu1 %4224, %v2814_v22   ;;  %v2715_v33 = vpop.permute.xlu0 %2714 }
 0x7f8   : > { %2901 = vperm.xlu1 %4224, %v2871_v34   ;;  %v2873_v34 = vld [vmem:[#allocation12 + $0xf8] sm:$0xff] }
 0x7fc   : > { %2854 = vperm.xlu1 %4224, %v2816_v27   ;;  %v3042_v27 = vld [vmem:[#allocation6 + $0x108] sm:$0xff] }
 0x822   : > { %v2521_v5 = vpop.permute.xlu1 %2520 }
 0x823   : > { %2542 = vst.msk [vmem:[#allocation2 + $0x10] sm:$0xff] %vm605_vm2, %v2521_v5  ;;  %v2517_v11 = vpop.permute.xlu0 %2516  ;;  %v3103_v5 = vld [vmem:[#allocation8 + $0x128] sm:$0xff] }
 0x824   : > { %2540 = vst.msk [vmem:[#allocation2] sm:$0xff] %vm605_vm2, %v2517_v11 }
 0x82a   : > { %v5752_v15 = vld [vmem:[#allocation2 + $0x10] sm:$0xff] }
 0x82b   : > { %v2647_v44 = vmul.f32 %v2623_v60, %v5752_v15  ;;  %v2727_v39 = vmul.f32 %v2703_v18, %v5752_v15  ;;  %v5757_v52 = vld [vmem:[#allocation2] sm:$0xff] }
 0x82c   : > { %v2645_v9 = vmul.f32 %v2615_v49, %v5757_v52  ;;  %v2725_v12 = vmul.f32 %v2695_v28, %v5757_v52  ;;  %v3043_v28 = vld [vmem:[#allocation6 + $0x110] sm:$0xff]  ;;  %v4250_v60 = vld [vmem:[#allocation14 + $0x60] sm:$0xff]  }
 0x82d   : > { %2665 = vrot.lane.b32.xlu0 %v2647_v44, %s4587_s13  ;;  %v3100_v49 = vld [vmem:[#allocation8 + $0x110] sm:$0xff]  ;;  %4012 = vmatprep.mubr.msk.bf16.mxu1 %vm1016_vm5, %v4250_v60  ;;  %v3045_v18 = vld [vmem:[#allocation6 + $0x120] sm:$0xff]  ;;  %v3048_v44 = vld [vmem:[#allocation6 + $0x138] sm:$0xff] }
 0x831   : > { %2745 = vrot.lane.b32.xlu0 %v2727_v39, %s4588_s15 }
 0x833   : > { %v5760_v63 = vpop.permute.xlu1 %2567 }
 0x834   : > { %v2723_v19 = vpop.permute.xlu0 %2722 }
 0x835   : > { %2661 = vrot.lane.b32.xlu0 %v2645_v9, %s4587_s13  ;;  %v6209_v9 = vmov 1  }
 0x837   : > { %v5764_v26 = vpop.permute.xlu1 %2572 }
 0x839   : > { %2741 = vrot.lane.b32.xlu0 %v2725_v12, %s4588_s15  ;;  %v3105_v12 = vld [vmem:[#allocation8 + $0x138] sm:$0xff] }
 0x83b   : > { %v5768_v59 = vpop.permute.xlu1 %2582 }
 0x83f   : > { %v2523_v62 = vpop.permute.xlu1 %2522 }
 0x840   : > { %2543 = vst.msk [vmem:[#allocation2 + $0x18] sm:$0xff] %vm605_vm2, %v2523_v62 }
 0x843   : > { %v2519_v2 = vpop.permute.xlu1 %2518 }
 0x844   : > { %2541 = vst.msk [vmem:[#allocation2 + $0x8] sm:$0xff] %vm605_vm2, %v2519_v2  ;;  %v5827_v2 = vld [vmem:[#allocation9 + $0x100] sm:$0xff] }
 0x847   : > { %v2529_v16 = vpop.permute.xlu1 %2528  ;;  %v5772_v29 = vld [vmem:[#allocation2 + $0x18] sm:$0xff] }
 0x848   : > { %2546 = vst.msk [vmem:[#allocation2 + $0x30] sm:$0xff] %vm605_vm2, %v2529_v16  ;;  %v2648_v31 = vmul.f32 %v2627_v50, %v5772_v29  ;;  %v2728_v37 = vmul.f32 %v2707_v20, %v5772_v29  ;;  %v3099_v50 = vld [vmem:[#allocation8 + $0x108] sm:$0xff] }
 0x849   : > { %v3046_v20 = vld [vmem:[#allocation6 + $0x128] sm:$0xff] }
 0x84a   : > { %2667 = vrot.lane.b32.xlu1 %v2648_v31, %s4587_s13  ;;  %v5832_v31 = vld [vmem:[#allocation9 + $0x110] sm:$0xff] }
 0x84b   : > { %v2525_v42 = vpop.permute.xlu1 %2524  ;;  %v5779_v40 = vld [vmem:[#allocation2 + $0x8] sm:$0xff] }
 0x84c   : > { %2544 = vst.msk [vmem:[#allocation2 + $0x20] sm:$0xff] %vm605_vm2, %v2525_v42  ;;  %v2646_v57 = vmul.f32 %v2619_v10, %v5779_v40  ;;  %v2726_v43 = vmul.f32 %v2699_v17, %v5779_v40  ;;  %v3098_v10 = vld [vmem:[#allocation8 + $0x100] sm:$0xff]  ;;  %v5834_v42 = vld [vmem:[#allocation9 + $0x108] sm:$0xff] }
 0x84e   : > { %2747 = vrot.lane.b32.xlu1 %v2728_v37, %s4588_s15 }
 0x84f   : > { %v5782_v8 = vld [vmem:[#allocation2 + $0x30] sm:$0xff]  ;;  %v2531_v41 = vpop.permute.xlu1 %2530 }
 0x850   : > { %2547 = vst.msk [vmem:[#allocation2 + $0x38] sm:$0xff] %vm605_vm2, %v2531_v41  ;;  %v2651_v56 = vmul.f32 %v2639_v51, %v5782_v8  ;;  %v2731_v58 = vmul.f32 %v2719_v48, %v5782_v8  ;;  %v3102_v51 = vld [vmem:[#allocation8 + $0x120] sm:$0xff] }
 0x852   : > { %2663 = vrot.lane.b32.xlu1 %v2646_v57, %s4587_s13  ;;  %2673 = vrot.lane.b32.xlu0 %v2651_v56, %s4587_s13  ;;  %v5843_v57 = vld [vmem:[#allocation9 + $0x120] sm:$0xff]  ;;  %v6210_v56 = vmov 2  }
 0x853   : > { %v2527_v24 = vpop.permute.xlu1 %2526  ;;  %v5792_v54 = vld [vmem:[#allocation2 + $0x20] sm:$0xff] }
 0x854   : > { %2545 = vst.msk [vmem:[#allocation2 + $0x28] sm:$0xff] %vm605_vm2, %v2527_v24  ;;  %v2649_v7 = vmul.f32 %v2631_v46, %v5792_v54  ;;  %v2729_v6 = vmul.f32 %v2711_v35, %v5792_v54  ;;  %v3044_v46 = vld [vmem:[#allocation6 + $0x118] sm:$0xff]  ;;  %v5847_v24 = vld [vmem:[#allocation9 + $0x130] sm:$0xff] }
 0x855   : > { %v3101_v35 = vld [vmem:[#allocation8 + $0x118] sm:$0xff]  ;;  %6211 = vst [vmem:[#allocation24_spill] sm:$0xff] %v5847_v24 }
 0x856   : > { %2743 = vrot.lane.b32.xlu1 %v2726_v43, %s4588_s15  ;;  %2753 = vrot.lane.b32.xlu0 %v2731_v58, %s4588_s15 }
 0x857   : > { %v5796_v55 = vld [vmem:[#allocation2 + $0x38] sm:$0xff]  ;;  %v5820_v11 = vpop.permute.xlu1 %2789 }
 0x858   : > { %v2652_v32 = vmul.f32 %v2643_v23, %v5796_v55  ;;  %v2732_v61 = vmul.f32 %v2723_v19, %v5796_v55  ;;  %v3047_v23 = vld [vmem:[#allocation6 + $0x130] sm:$0xff] }
 0x85a   : > { %2669 = vrot.lane.b32.xlu0 %v2649_v7, %s4587_s13  ;;  %2675 = vrot.lane.b32.xlu1 %v2652_v32, %s4587_s13  ;;  %v5854_v7 = vld [vmem:[#allocation9 + $0x118] sm:$0xff] }
 0x85b   : > { %v5804_v21 = vld [vmem:[#allocation2 + $0x28] sm:$0xff]  ;;  %v5825_v62 = vpop.permute.xlu1 %2592 }
 0x85c   : > { %v2650_v45 = vmul.f32 %v5748_v1, %v5804_v21  ;;  %v2730_v22 = vmul.f32 %v2715_v33, %v5804_v21  ;;  %v5814_v1 = vpop.permute.xlu0 %2577  ;;  %v3104_v33 = vld [vmem:[#allocation8 + $0x130] sm:$0xff] }
 0x85e   : > { %2749 = vrot.lane.b32.xlu0 %v2729_v6, %s4588_s15  ;;  %2755 = vrot.lane.b32.xlu1 %v2732_v61, %s4588_s15 }
 0x85f   : > { %v5836_v37 = vpop.permute.xlu1 %2824 }
 0x860   : > { %v5816_v17 = vpop.permute.xlu0 %2587 }
 0x862   : > { %2906 = vperm.xlu0 %4225, %v2872_v25   ;;  %2671 = vrot.lane.b32.xlu1 %v2650_v45, %s4587_s13  ;;  %v5870_v25 = vld [vmem:[#allocation9 + $0x128] sm:$0xff] }
 0x863   : > { %v5849_v43 = vpop.permute.xlu1 %2881  ;;  %6212 = vst [vmem:[#allocation25_spill] sm:$0xff] %v5870_v25 }
 0x864   : > { %v5818_v48 = vpop.permute.xlu0 %2819 }
 0x866   : > { %3051 = vperm.xlu0 %4225, %v3041_v30   ;;  %2751 = vrot.lane.b32.xlu1 %v2730_v22, %s4588_s15  ;;  %v5879_v22 = vld [vmem:[#allocation9 + $0x138] sm:$0xff] }
 0x867   : > { %v5859_v32 = vpop.permute.xlu1 %2602 }
 0x868   : > { %v5822_v39 = vpop.permute.xlu0 %2876 }
 0x86a   : > { %3108 = vperm.xlu0 %4225, %v3098_v10   ;;  %2911 = vperm.xlu1 %4224, %v2873_v34  }
 0x86b   : > { %v2835_v6 = vpop.permute.xlu1 %2834 }
 0x86c   : > { %v5829_v16 = vpop.permute.xlu0 %2597 }
 0x86e   : > { %3061 = vperm.xlu0 %4225, %v3043_v28   ;;  %3056 = vperm.xlu1 %4224, %v3042_v27  }
 0x86f   : > { %v2892_v45 = vpop.permute.xlu1 %2891 }
 0x870   : > { %v5838_v41 = vpop.permute.xlu0 %2829 }
 0x872   : > { %3118 = vperm.xlu0 %4225, %v3100_v49   ;;  %3113 = vperm.xlu1 %4224, %v3099_v50  }
 0x873   : > { %v5881_v10 = vpop.permute.xlu1 %2844 }
 0x874   : > { %v5851_v58 = vpop.permute.xlu0 %2886 }
 0x876   : > { %3071 = vperm.xlu0 %4225, %v3045_v18   ;;  %3066 = vperm.xlu1 %4224, %v3044_v46   ;;  %v2605_v18 = vmul.f32 %v5760_v63, %v5757_v52  ;;  %v2608_v46 = vmul.f32 %v5768_v59, %v5772_v29  ;;  %v2606_v63 = vmul.f32 %v5764_v26, %v5779_v40 }
 0x877   : > { %v5886_v28 = vpop.permute.xlu1 %2901 }
 0x878   : > { %v5861_v19 = vpop.permute.xlu0 %2839 }
 0x87a   : > { %3128 = vperm.xlu0 %4225, %v3102_v51   ;;  %3123 = vperm.xlu1 %4224, %v3101_v35   ;;  %v2607_v35 = vmul.f32 %v5814_v1, %v5752_v15 }
 0x87b   : > { %v5890_v49 = vpop.permute.xlu1 %2854 }
 0x87c   : > { %v5868_v61 = vpop.permute.xlu0 %2896 }
 0x87e   : > { %3081 = vperm.xlu0 %4225, %v3047_v23   ;;  %3076 = vperm.xlu1 %4224, %v3046_v20  }
 0x880   : > { %v5875_v30 = vpop.permute.xlu0 %2849 }
 0x882   : > { %3138 = vperm.xlu0 %4225, %v3104_v33   ;;  %3133 = vperm.xlu1 %4224, %v3103_v5  }
 0x886   : > { %3086 = vperm.xlu1 %4224, %v3048_v44   ;;  %4226 = vset.pattern.permute.xlu0 %v6209_v9 }
 0x887   : > { %3260 = vperm.xlu0 %4226, %v5827_v2  }
 0x88a   : > { %3143 = vperm.xlu1 %4224, %v3105_v12  }
 0x88b   : > { %3268 = vperm.xlu0 %4226, %v5832_v31  }
 0x88e   : > { %4227 = vset.pattern.permute.xlu1 %v6209_v9 }
 0x88f   : > { %3264 = vperm.xlu1 %4227, %v5834_v42   ;;  %3276 = vperm.xlu0 %4226, %v5843_v57  }
 0x893   : > { %4228 = vset.pattern.permute.xlu1 %v6210_v56  ;;  %3284 = vperm.xlu0 %4226, %v5847_v24  }
 0x894   : > { %3340 = vperm.xlu1 %4228, %v5827_v2  }
 0x897   : > { %4233 = vset.pattern.permute.xlu0 %v6210_v56 }
 0x898   : > { %4229 = vset.pattern.permute.xlu1 %v6209_v9  ;;  %3344 = vperm.xlu0 %4233, %v5834_v42  }
 0x899   : > { %3272 = vperm.xlu1 %4229, %v5854_v7  }
 0x89c   : > { %3352 = vperm.xlu0 %4233, %v5854_v7  }
 0x89d   : > { %4230 = vset.pattern.permute.xlu1 %v6210_v56 }
 0x89e   : > { %3348 = vperm.xlu1 %4230, %v5832_v31  }
 0x89f   : > { %v2666_v34 = vpop.permute.xlu0 %2665 }
 0x8a0   : > { %3360 = vperm.xlu0 %4233, %v5870_v25   ;;  %v2687_v5 = vadd.f32 %v2666_v34, %v2607_v35 }
 0x8a2   : > { %4231 = vset.pattern.permute.xlu1 %v6209_v9 }
 0x8a3   : > { %3280 = vperm.xlu1 %4231, %v5870_v25   ;;  %v2746_v27 = vpop.permute.xlu0 %2745 }
 0x8a4   : > { %v2767_v12 = vadd.f32 %v2746_v27, %v2687_v5 }
 0x8a6   : > { %v2794_v15 = vmul.f32 %v5820_v11, %v2767_v12  ;;  %vm2777_vm0 = vcmp.gt.f32.partialorder %v2767_v12, 0.0 }
 0x8a7   : > { %4232 = vset.pattern.permute.xlu1 %v6210_v56  ;;  %v2662_v50 = vpop.permute.xlu0 %2661 }
 0x8a8   : > { %3356 = vperm.xlu1 %4232, %v5843_v57   ;;  %v2685_v23 = vadd.f32 %v2662_v50, %v2605_v18 }
 0x8ab   : > { %v2742_v51 = vpop.permute.xlu0 %2741 }
 0x8ac   : > { %4234 = vset.pattern.permute.xlu1 %v6209_v9  ;;  %v2765_v44 = vadd.f32 %v2742_v51, %v2685_v23  ;;  %v2609_v23 = vmul.f32 %v5816_v17, %v5792_v54  ;;  %v2610_v54 = vmul.f32 %v5825_v62, %v5804_v21 }
 0x8ad   : > { %3288 = vperm.xlu1 %4234, %v5879_v22  }
 0x8ae   : > { %vm2775_vm14 = vcmp.gt.f32.partialorder %v2765_v44, 0.0 }
 0x8b1   : > { %4235 = vset.pattern.permute.xlu1 %v6210_v56 }
 0x8b2   : > { %3364 = vperm.xlu1 %4235, %v5847_v24   ;;  %v2792_v24 = vmul.f32 %v5820_v11, %v2765_v44 }
 0x8b4   : > { %v2800_v34 = vsel %vm2775_vm14, %v2765_v44, %v2792_v24 }
 0x8b6   : > { %4236 = vset.pattern.permute.xlu1 %v6201_v38 }
 0x8bc   : > { %v2668_v60 = vpop.permute.xlu1 %2667 }
 0x8bd   : > { %v2688_v20 = vadd.f32 %v2668_v60, %v2608_v46  ;;  %v2802_v60 = vsel %vm2777_vm0, %v2767_v12, %v2794_v15  ;;  %v2857_v46 = vmul.f32 %v5818_v48, %v2800_v34 }
 0x8bf   : > { %v2914_v44 = vadd.f32 %v5822_v39, %v2857_v46 }
 0x8c0   : > { %v2748_v33 = vpop.permute.xlu1 %2747 }
 0x8c1   : > { %v2768_v9 = vadd.f32 %v2748_v33, %v2688_v20 }
 0x8c3   : > { %v2795_v52 = vmul.f32 %v5820_v11, %v2768_v9  ;;  %vm2778_vm15 = vcmp.gt.f32.partialorder %v2768_v9, 0.0 }
 0x8c4   : > { %v2674_v56 = vpop.permute.xlu0 %2673  ;;  %v2664_v25 = vpop.permute.xlu1 %2663 }
 0x8c5   : > { %v2686_v59 = vadd.f32 %v2664_v25, %v2606_v63  ;;  %v2803_v50 = vsel %vm2778_vm15, %v2768_v9, %v2795_v52  ;;  %v2859_v25 = vmul.f32 %v5838_v41, %v2802_v60  ;;  %v2611_v41 = vmul.f32 %v5829_v16, %v5782_v8 }
 0x8c6   : > { %v2860_v51 = vmul.f32 %v2835_v6, %v2803_v50  ;;  %vm3678_vm15 = vcmask 15360  }
 0x8c7   : > { %v2916_v52 = vadd.f32 %v5851_v58, %v2859_v25 }
 0x8c8   : > { %v2754_v29 = vpop.permute.xlu0 %2753  ;;  %v2744_v1 = vpop.permute.xlu1 %2743  ;;  %v2917_v12 = vadd.f32 %v2892_v45, %v2860_v51 }
 0x8c9   : > { %v2766_v27 = vadd.f32 %v2744_v1, %v2686_v59  ;;  %v2691_v59 = vadd.f32 %v2674_v56, %v2611_v41 }
 0x8ca   : > { %v2932_v15 = vpack.c.bf16 %v2917_v12, %v2916_v52 }
 0x8cb   : > { %vm2776_vm1 = vcmp.gt.f32.partialorder %v2766_v27, 0.0  ;;  %v2793_v18 = vmul.f32 %v5820_v11, %v2766_v27  ;;  %v2771_v34 = vadd.f32 %v2754_v29, %v2691_v59 }
 0x8cc   : > { %v2670_v35 = vpop.permute.xlu0 %2669  ;;  %v2676_v26 = vpop.permute.xlu1 %2675 }
 0x8cd   : > { %v2801_v40 = vsel %vm2776_vm1, %v2766_v27, %v2793_v18  ;;  %v2689_v24 = vadd.f32 %v2670_v35, %v2609_v23  ;;  %vm2781_vm6 = vcmp.gt.f32.partialorder %v2771_v34, 0.0 }
 0x8ce   : > { %v2858_v20 = vmul.f32 %v5836_v37, %v2801_v40  ;;  %v4253_v40 = vld [vmem:[#allocation14 + $0x78] sm:$0xff]  }
 0x8d0   : > { %v2750_v33 = vpop.permute.xlu0 %2749  ;;  %v2756_v5 = vpop.permute.xlu1 %2755  ;;  %v2915_v9 = vadd.f32 %v5849_v43, %v2858_v20  ;;  %v2612_v43 = vmul.f32 %v5859_v32, %v5796_v55  ;;  %v2798_v55 = vmul.f32 %v5820_v11, %v2771_v34 }
 0x8d1   : > { %v2769_v48 = vadd.f32 %v2750_v33, %v2689_v24 }
 0x8d2   : > { %v2931_v6 = vpack.c.bf16 %v2915_v9, %v2914_v44  ;;  %v2692_v1 = vadd.f32 %v2676_v26, %v2612_v43  ;;  %v2806_v18 = vsel %vm2781_vm6, %v2771_v34, %v2798_v55  ;;  %v4251_v26 = vld [vmem:[#allocation14 + $0x68] sm:$0xff]   ;;  %v3512_v55 = vld [vmem:[#allocation12 + $0x100] sm:$0xff] }
 0x8d3   : > { %v2796_v17 = vmul.f32 %v5820_v11, %v2769_v48  ;;  %vm2779_vm3 = vcmp.gt.f32.partialorder %v2769_v48, 0.0  ;;  %v2863_v46 = vmul.f32 %v5875_v30, %v2806_v18 }
 0x8d4   : > { %4004 = vmatprep.subr.bf16.mxu1 %v2931_v6  ;;  %v2672_v63 = vpop.permute.xlu1 %2671  ;;  %v2772_v50 = vadd.f32 %v2756_v5, %v2692_v1 }
 0x8d5   : > { %4005 = vmatpush3.bf16.msra.mxu1 %v2931_v6  ;;  %v2690_v37 = vadd.f32 %v2672_v63, %v2610_v54  ;;  %v2804_v58 = vsel %vm2779_vm3, %v2769_v48, %v2796_v17 }
 0x8d6   : > { %4006 = vmatprep.subr.bf16.mxu1 %v2932_v15  ;;  %v2861_v62 = vmul.f32 %v5861_v19, %v2804_v58  ;;  %v2799_v32 = vmul.f32 %v5820_v11, %v2772_v50  ;;  %vm2782_vm7 = vcmp.gt.f32.partialorder %v2772_v50, 0.0 }
 0x8d8   : > { %v2752_v39 = vpop.permute.xlu1 %2751  ;;  %v2918_v8 = vadd.f32 %v5868_v61, %v2861_v62  ;;  %v2807_v19 = vsel %vm2782_vm7, %v2772_v50, %v2799_v32 }
 0x8d9   : > { %v2770_v45 = vadd.f32 %v2752_v39, %v2690_v37  ;;  %4007 = vmatpush3.bf16.msra.mxu1 %v2932_v15 }
 0x8db   : > { %vm2780_vm4 = vcmp.gt.f32.partialorder %v2770_v45, 0.0  ;;  %v2797_v21 = vmul.f32 %v5820_v11, %v2770_v45  ;;  %v4252_v11 = vld [vmem:[#allocation14 + $0x70] sm:$0xff]  }
 0x8dd   : > { %v2805_v27 = vsel %vm2780_vm4, %v2770_v45, %v2797_v21 }
 0x8de   : > { %v2862_v60 = vmul.f32 %v5881_v10, %v2805_v27  ;;  %v2864_v10 = vmul.f32 %v5890_v49, %v2807_v19 }
 0x8e0   : > { %v2919_v16 = vadd.f32 %v5886_v28, %v2862_v60  ;;  %v3455_v60 = vld [vmem:[#allocation11 + $0x100] sm:$0xff] }
 0x8e1   : > { %v2907_v29 = vpop.permute.xlu0 %2906 }
 0x8e2   : > { %v2933_v56 = vpack.c.bf16 %v2919_v16, %v2918_v8  ;;  %v2920_v61 = vadd.f32 %v2907_v29, %v2863_v46 }
 0x8e4   : > { %4008 = vmatprep.subr.bf16.mxu1 %v2933_v56 }
 0x8e5   : > { %4009 = vmatpush3.bf16.msra.mxu1 %v2933_v56  ;;  %v3052_v23 = vpop.permute.xlu0 %3051 }
 0x8e9   : > { %v2912_v51 = vpop.permute.xlu1 %2911  ;;  %v3109_v25 = vpop.permute.xlu0 %3108 }
 0x8ea   : > { %v2921_v35 = vadd.f32 %v2912_v51, %v2864_v10  ;;  %v6213_v10 = vld [vmem:[#allocation24_spill] sm:$0xff]  ;;  %v3457_v51 = vld [vmem:[#allocation11 + $0x110] sm:$0xff] }
 0x8ec   : > { %v2934_v28 = vpack.c.bf16 %v2921_v35, %v2920_v61 }
 0x8ed   : > { %v3057_v30 = vpop.permute.xlu1 %3056  ;;  %v3062_v20 = vpop.permute.xlu0 %3061 }
 0x8ee   : > { %4010 = vmatprep.subr.bf16.mxu1 %v2934_v28 }
 0x8ef   : > { %4011 = vmatpush3.bf16.msra.mxu1 %v2934_v28 }
 0x8f1   : > { %v3114_v5 = vpop.permute.xlu1 %3113  ;;  %v3119_v63 = vpop.permute.xlu0 %3118 }
 0x8f2   : > { %4013 = vmatmul.mubr.msk.bf16.vlgmr.msra.gmra.mrb[8].mxu1 %vm1016_vm5, %v4251_v26  ;;  %v3514_v26 = vld [vmem:[#allocation12 + $0x110] sm:$0xff] }
 0x8f3   : > { %4016 = vmatprep.mubr.msk.bf16.mxu1 %vm1016_vm5, %v4252_v11  ;;  %v3459_v11 = vld [vmem:[#allocation11 + $0x120] sm:$0xff] }
 0x8f5   : > { %v3067_v17 = vpop.permute.xlu1 %3066  ;;  %v3072_v58 = vpop.permute.xlu0 %3071 }
 0x8f9   : > { %v3124_v45 = vpop.permute.xlu1 %3123  ;;  %v3129_v21 = vpop.permute.xlu0 %3128 }
 0x8fa   : > { %4017 = vmatmul.mubr.msk.bf16.gmra.mrb[12].mxu1 %vm1016_vm5, %v4253_v40  ;;  %v3900_v40 = vld [vmem:[#allocation15 + $0x4] ss:$0 sm:$0xff] }
 0x9c5   : > { %v4014_v49 = vpop.f32.mrb[8].mxu1 }
 0x9c6   : > { %v5932_v24 = vadd.f32 %v4014_v49, %v5699_v36  ;;  %v3001_v33 = vpop.f32.mrb[9].mxu1  ;;  %v3513_v49 = vld [vmem:[#allocation12 + $0x108] sm:$0xff] }
 0x9c7   : > { %v5935_v44 = vadd.f32 %v3001_v33, %v5702_v4  ;;  %v4015_v9 = vpop.f32.mrb[10].mxu1  ;;  %v3458_v33 = vld [vmem:[#allocation11 + $0x118] sm:$0xff] }
 0x9c8   : > { %v3034_v12 = vmax.f32 %v5932_v24, 0.0  ;;  %v3004_v48 = vpop.f32.mrb[11].mxu1  ;;  %v5942_v4 = vadd.f32 %v4015_v9, %v5709_v14  ;;  %v3460_v9 = vld [vmem:[#allocation11 + $0x128] sm:$0xff] }
 0x9c9   : > { %v3032_v6 = vmax.f32 %v5935_v44, 0.0  ;;  %v5948_v1 = vadd.f32 %v3004_v48, %v5715_v13  ;;  %v3517_v48 = vld [vmem:[#allocation12 + $0x128] sm:$0xff] }
 0x9ca   : > { %v3091_v52 = vmul.f32 %v3062_v20, %v3034_v12  ;;  %v3035_v59 = vmax.f32 %v5942_v4, 0.0  ;;  %v3456_v20 = vld [vmem:[#allocation11 + $0x108] sm:$0xff] }
 0x9cb   : > { %v3089_v15 = vmul.f32 %v3052_v23, %v3032_v6  ;;  %v3033_v14 = vmax.f32 %v5948_v1, 0.0  ;;  %v3516_v23 = vld [vmem:[#allocation12 + $0x120] sm:$0xff] }
 0x9cc   : > { %v3148_v54 = vadd.f32 %v3119_v63, %v3091_v52  ;;  %v3092_v62 = vmul.f32 %v3067_v17, %v3035_v59  ;;  %v3462_v52 = vld [vmem:[#allocation11 + $0x138] sm:$0xff] }
 0x9cd   : > { %v3146_v37 = vadd.f32 %v3109_v25, %v3089_v15  ;;  %v4018_v39 = vpop.f32.mrb[12].mxu1  ;;  %v3090_v27 = vmul.f32 %v3057_v30, %v3033_v14  ;;  %v3461_v25 = vld [vmem:[#allocation11 + $0x130] sm:$0xff] }
 0x9ce   : > { %3166 = vrot.lane.b32.xlu1 %v3148_v54, %s4586_s12  ;;  %v3017_v36 = vpop.f32.mrb[13].mxu1  ;;  %v5954_v34 = vadd.f32 %v4018_v39, %v5721_v53  ;;  %v3149_v50 = vadd.f32 %v3124_v45, %v3092_v62  ;;  %v6214_v30 = vld [vmem:[#allocation25_spill] sm:$0xff] }
 0x9cf   : > { %v4019_v41 = vpop.f32.mrb[14].mxu1  ;;  %3162 = vrot.lane.b32.xlu0 %v3146_v37, %s4586_s12  ;;  %v3147_v8 = vadd.f32 %v3114_v5, %v3090_v27  ;;  %v3515_v5 = vld [vmem:[#allocation12 + $0x118] sm:$0xff] }
 0x9d0   : > { %v3020_v43 = vpop.f32.mrb[15].mxu1  ;;  %v3038_v13 = vmax.f32 %v5954_v34, 0.0 }
 0x9d1   : > { %v5971_v18 = vadd.f32 %v3020_v43, %v5738_v0 }
 0x9d2   : > { %3213 = vperm.xlu1 %4236, %v5827_v2   ;;  %v3077_v2 = vpop.permute.xlu1 %3076 }
 0x9d3   : > { %3368 = vperm.xlu0 %4233, %v5879_v22  }
 0x9d6   : > { %3218 = vperm.xlu1 %4236, %v5834_v42   ;;  %v5960_v42 = vadd.f32 %v3017_v36, %v5727_v47  ;;  %v3134_v53 = vpop.permute.xlu1 %3133 }
 0x9d7   : > { %4237 = vset.pattern.permute.xlu0 %v6201_v38  ;;  %v3082_v38 = vpop.permute.xlu0 %3081 }
 0x9d8   : > { %3223 = vperm.xlu0 %4237, %v5832_v31   ;;  %v3095_v16 = vmul.f32 %v3082_v38, %v3038_v13  ;;  %v3036_v31 = vmax.f32 %v5960_v42, 0.0 }
 0x9da   : > { %3228 = vperm.xlu1 %4236, %v5854_v7   ;;  %v5966_v7 = vadd.f32 %v4019_v41, %v5733_v3  ;;  %v3093_v56 = vmul.f32 %v3072_v58, %v3036_v31  ;;  %v3087_v19 = vpop.permute.xlu1 %3086  ;;  %v3037_v3 = vmax.f32 %v5971_v18, 0.0 }
 0x9db   : > { %v3139_v47 = vpop.permute.xlu0 %3138 }
 0x9dc   : > { %3233 = vperm.xlu0 %4237, %v5843_v57   ;;  %v3152_v32 = vadd.f32 %v3139_v47, %v3095_v16  ;;  %v3039_v57 = vmax.f32 %v5966_v7, 0.0  ;;  %v3150_v29 = vadd.f32 %v3129_v21, %v3093_v56  ;;  %v3094_v28 = vmul.f32 %v3077_v2, %v3037_v3 }
 0x9de   : > { %3168 = vrot.lane.b32.xlu1 %v3149_v50, %s4586_s12  ;;  %v3096_v46 = vmul.f32 %v3087_v19, %v3039_v57  ;;  %v3144_v61 = vpop.permute.xlu1 %3143  ;;  %v3151_v0 = vadd.f32 %v3134_v53, %v3094_v28 }
 0x9df   : > { %v3261_v63 = vpop.permute.xlu0 %3260 }
 0x9e0   : > { %3465 = vperm.xlu0 %4237, %v3455_v60   ;;  %v3153_v35 = vadd.f32 %v3144_v61, %v3096_v46 }
 0x9e2   : > { %3164 = vrot.lane.b32.xlu1 %v3147_v8, %s4586_s12  ;;  %v3265_v12 = vpop.permute.xlu1 %3264 }
 0x9e3   : > { %v3269_v54 = vpop.permute.xlu0 %3268 }
 0x9e4   : > { %3522 = vperm.xlu0 %4237, %v3512_v55  }
 0x9e6   : > { %3174 = vrot.lane.b32.xlu1 %v3152_v32, %s4586_s12  ;;  %v3341_v6 = vpop.permute.xlu1 %3340 }
 0x9e7   : > { %v3277_v37 = vpop.permute.xlu0 %3276 }
 0x9e8   : > { %3243 = vperm.xlu0 %4237, %v6213_v10  }
 0x9ea   : > { %3170 = vrot.lane.b32.xlu1 %v3150_v29, %s4586_s12  ;;  %v3273_v15 = vpop.permute.xlu1 %3272 }
 0x9ec   : > { %3475 = vperm.xlu0 %4237, %v3457_v51  }
 0x9ee   : > { %3176 = vrot.lane.b32.xlu1 %v3153_v35, %s4586_s12  ;;  %v3349_v17 = vpop.permute.xlu1 %3348 }
 0x9f0   : > { %3532 = vperm.xlu0 %4237, %v3514_v26  }
 0x9f2   : > { %3172 = vrot.lane.b32.xlu1 %v3151_v0, %s4586_s12  ;;  %v5981_v39 = vpop.permute.xlu1 %3280 }
 0x9f4   : > { %3485 = vperm.xlu0 %4237, %v3459_v11  }
 0x9f6   : > { %3435 = vperm.xlu1 %4236, %v3900_v40   ;;  %v3357_v36 = vpop.permute.xlu1 %3356 }
 0x9f8   : > { %3542 = vperm.xlu0 %4237, %v3516_v23  }
 0x9fa   : > { %3238 = vperm.xlu1 %4236, %v6214_v30   ;;  %v3289_v43 = vpop.permute.xlu1 %3288 }
 0x9fc   : > { %3495 = vperm.xlu0 %4237, %v3461_v25  }
 0x9fe   : > { %3470 = vperm.xlu1 %4236, %v3456_v20   ;;  %v3365_v45 = vpop.permute.xlu1 %3364 }
 0xa02   : > { %3527 = vperm.xlu1 %4236, %v3513_v49  }
 0xa06   : > { %3248 = vperm.xlu1 %4236, %v5879_v22   ;;  %v3285_v22 = vpop.permute.xlu0 %3284 }
 0xa0a   : > { %3480 = vperm.xlu1 %4236, %v3458_v33   ;;  %v3345_v41 = vpop.permute.xlu0 %3344 }
 0xa0e   : > { %3537 = vperm.xlu1 %4236, %v3515_v5   ;;  %v3353_v58 = vpop.permute.xlu0 %3352  ;;  %v3518_v5 = vld [vmem:[#allocation12 + $0x130] sm:$0xff] }
 0xa12   : > { %3490 = vperm.xlu1 %4236, %v3460_v9   ;;  %v5983_v59 = vpop.permute.xlu0 %3360 }
 0xa16   : > { %3547 = vperm.xlu1 %4236, %v3517_v48   ;;  %v3519_v48 = vld [vmem:[#allocation12 + $0x138] sm:$0xff] }
 0xa1a   : > { %3500 = vperm.xlu1 %4236, %v3462_v52   ;;  %v4255_v52 = vld [vmem:[#allocation14 + $0x90] sm:$0xff]  }
 0xa1b   : > { %4032 = vmatprep.mubr.msk.bf16.mxu1 %vm1016_vm5, %v4255_v52 }
 0xa40   : > { %v3167_v21 = vpop.permute.xlu1 %3166 }
 0xa41   : > { %3188 = vst.msk [vmem:[#allocation2 + $0x10] sm:$0xff] %vm605_vm2, %v3167_v21  ;;  %v3163_v62 = vpop.permute.xlu0 %3162 }
 0xa42   : > { %3186 = vst.msk [vmem:[#allocation2] sm:$0xff] %vm605_vm2, %v3163_v62 }
 0xa48   : > { %v5987_v14 = vld [vmem:[#allocation2 + $0x10] sm:$0xff] }
 0xa49   : > { %v3293_v2 = vmul.f32 %v3269_v54, %v5987_v14  ;;  %v3373_v50 = vmul.f32 %v3349_v17, %v5987_v14  ;;  %v3203_v27 = vld [vmem:[#allocation2] sm:$0xff] }
 0xa4a   : > { %v3291_v13 = vmul.f32 %v3261_v63, %v3203_v27  ;;  %v3371_v53 = vmul.f32 %v3341_v6, %v3203_v27  ;;  %v4254_v6 = vld [vmem:[#allocation14 + $0x80] sm:$0xff]  }
 0xa4b   : > { %3311 = vrot.lane.b32.xlu0 %v3293_v2, %s4587_s13  ;;  %4028 = vmatprep.mubr.msk.bf16.mxu0 %vm1016_vm5, %v4254_v6 }
 0xa4f   : > { %3391 = vrot.lane.b32.xlu0 %v3373_v50, %s4588_s15 }
 0xa51   : > { %v3214_v38 = vpop.permute.xlu1 %3213 }
 0xa52   : > { %v5993_v60 = vmul.f32 %v3214_v38, %v3203_v27  ;;  %v3369_v30 = vpop.permute.xlu0 %3368 }
 0xa53   : > { %3307 = vrot.lane.b32.xlu0 %v3291_v13, %s4587_s13 }
 0xa55   : > { %v3219_v8 = vpop.permute.xlu1 %3218 }
 0xa57   : > { %3387 = vrot.lane.b32.xlu0 %v3371_v53, %s4588_s15  ;;  %v3224_v63 = vpop.permute.xlu0 %3223 }
 0xa59   : > { %v3229_v16 = vpop.permute.xlu1 %3228 }
 0xa5d   : > { %v3169_v31 = vpop.permute.xlu1 %3168 }
 0xa5e   : > { %3189 = vst.msk [vmem:[#allocation2 + $0x18] sm:$0xff] %vm605_vm2, %v3169_v31 }
 0xa61   : > { %v3165_v55 = vpop.permute.xlu1 %3164 }
 0xa62   : > { %3187 = vst.msk [vmem:[#allocation2 + $0x8] sm:$0xff] %vm605_vm2, %v3165_v55 }
 0xa65   : > { %v3175_v47 = vpop.permute.xlu1 %3174  ;;  %v3206_v32 = vld [vmem:[#allocation2 + $0x18] sm:$0xff] }
 0xa66   : > { %3192 = vst.msk [vmem:[#allocation2 + $0x30] sm:$0xff] %vm605_vm2, %v3175_v47  ;;  %v3294_v56 = vmul.f32 %v3273_v15, %v3206_v32  ;;  %v6000_v57 = vmul.f32 %v3229_v16, %v3206_v32  ;;  %v3374_v46 = vmul.f32 %v3353_v58, %v3206_v32  ;;  %v3234_v15 = vpop.permute.xlu0 %3233 }
 0xa68   : > { %3313 = vrot.lane.b32.xlu1 %v3294_v56, %s4587_s13 }
 0xa69   : > { %v3171_v19 = vpop.permute.xlu1 %3170  ;;  %v3204_v29 = vld [vmem:[#allocation2 + $0x8] sm:$0xff] }
 0xa6a   : > { %3190 = vst.msk [vmem:[#allocation2 + $0x20] sm:$0xff] %vm605_vm2, %v3171_v19  ;;  %v6004_v3 = vmul.f32 %v3219_v8, %v3204_v29  ;;  %v3292_v35 = vmul.f32 %v3265_v12, %v3204_v29  ;;  %v3372_v0 = vmul.f32 %v3345_v41, %v3204_v29  ;;  %v3466_v54 = vpop.permute.xlu0 %3465  ;;  %v3253_v8 = vmul.f32 %v3224_v63, %v5987_v14 }
 0xa6c   : > { %3393 = vrot.lane.b32.xlu1 %v3374_v46, %s4588_s15 }
 0xa6d   : > { %v6007_v10 = vld [vmem:[#allocation2 + $0x30] sm:$0xff]  ;;  %v3177_v51 = vpop.permute.xlu1 %3176 }
 0xa6e   : > { %v3297_v61 = vmul.f32 %v3285_v22, %v6007_v10  ;;  %3193 = vst.msk [vmem:[#allocation2 + $0x38] sm:$0xff] %vm605_vm2, %v3177_v51  ;;  %v3377_v26 = vmul.f32 %v3365_v45, %v6007_v10 }
 0xa70   : > { %3309 = vrot.lane.b32.xlu1 %v3292_v35, %s4587_s13  ;;  %3319 = vrot.lane.b32.xlu0 %v3297_v61, %s4587_s13 }
 0xa71   : > { %v3173_v28 = vpop.permute.xlu1 %3172  ;;  %v6015_v11 = vld [vmem:[#allocation2 + $0x20] sm:$0xff] }
 0xa72   : > { %3191 = vst.msk [vmem:[#allocation2 + $0x28] sm:$0xff] %vm605_vm2, %v3173_v28  ;;  %v3295_v23 = vmul.f32 %v3277_v37, %v6015_v11  ;;  %v3375_v20 = vmul.f32 %v3357_v36, %v6015_v11  ;;  %v3523_v37 = vpop.permute.xlu0 %3522 }
 0xa74   : > { %3389 = vrot.lane.b32.xlu1 %v3372_v0, %s4588_s15  ;;  %3399 = vrot.lane.b32.xlu0 %v3377_v26, %s4588_s15 }
 0xa75   : > { %v6019_v40 = vld [vmem:[#allocation2 + $0x38] sm:$0xff]  ;;  %v6039_v17 = vpop.permute.xlu1 %3435 }
 0xa76   : > { %v3298_v25 = vmul.f32 %v3289_v43, %v6019_v40  ;;  %v3378_v49 = vmul.f32 %v3369_v30, %v6019_v40  ;;  %v6043_v22 = vpop.permute.xlu0 %3243 }
 0xa78   : > { %3315 = vrot.lane.b32.xlu0 %v3295_v23, %s4587_s13  ;;  %3321 = vrot.lane.b32.xlu1 %v3298_v25, %s4587_s13 }
 0xa79   : > { %v6027_v33 = vld [vmem:[#allocation2 + $0x28] sm:$0xff] }
 0xa7a   : > { %v3296_v9 = vmul.f32 %v5981_v39, %v6027_v33  ;;  %v3376_v12 = vmul.f32 %v5983_v59, %v6027_v33  ;;  %v6041_v39 = vpop.permute.xlu1 %3238  ;;  %v3476_v41 = vpop.permute.xlu0 %3475 }
 0xa7c   : > { %3395 = vrot.lane.b32.xlu0 %v3375_v20, %s4588_s15  ;;  %3401 = vrot.lane.b32.xlu1 %v3378_v49, %s4588_s15 }
 0xa7e   : > { %v3471_v36 = vpop.permute.xlu1 %3470  ;;  %v3533_v58 = vpop.permute.xlu0 %3532 }
 0xa80   : > { %3552 = vperm.xlu0 %4237, %v3518_v5   ;;  %3317 = vrot.lane.b32.xlu1 %v3296_v9, %s4587_s13 }
 0xa82   : > { %v3528_v43 = vpop.permute.xlu1 %3527  ;;  %v6047_v59 = vpop.permute.xlu0 %3485 }
 0xa84   : > { %3397 = vrot.lane.b32.xlu1 %v3376_v12, %s4588_s15 }
 0xa86   : > { %v6045_v45 = vpop.permute.xlu1 %3248  ;;  %v6049_v62 = vpop.permute.xlu0 %3542 }
 0xa88   : > { %3557 = vperm.xlu1 %4236, %v3519_v48  }
 0xa8a   : > { %v3481_v21 = vpop.permute.xlu1 %3480  ;;  %v6051_v50 = vpop.permute.xlu0 %3495 }
 0xa8e   : > { %v3538_v2 = vpop.permute.xlu1 %3537 }
 0xa92   : > { %v6053_v27 = vpop.permute.xlu1 %3490 }
 0xa96   : > { %v6055_v38 = vpop.permute.xlu1 %3547 }
 0xa9a   : > { %v6058_v31 = vpop.permute.xlu1 %3500 }
 0xabd   : > { %v3312_v13 = vpop.permute.xlu0 %3311 }
 0xabe   : > { %v3333_v16 = vadd.f32 %v3312_v13, %v3253_v8  ;;  %v3255_v8 = vmul.f32 %v3234_v15, %v6015_v11  ;;  %v3257_v15 = vmul.f32 %v6043_v22, %v6007_v10 }
 0xac1   : > { %v3392_v53 = vpop.permute.xlu0 %3391 }
 0xac2   : > { %v3413_v47 = vadd.f32 %v3392_v53, %v3333_v16 }
 0xac4   : > { %v3440_v56 = vmul.f32 %v6039_v17, %v3413_v47  ;;  %vm3423_vm2 = vcmp.gt.f32.partialorder %v3413_v47, 0.0 }
 0xac5   : > { %v3308_v55 = vpop.permute.xlu0 %3307 }
 0xac6   : > { %v3331_v29 = vadd.f32 %v3308_v55, %v5993_v60  ;;  %v3448_v61 = vsel %vm3423_vm2, %v3413_v47, %v3440_v56 }
 0xac7   : > { %v3505_v26 = vmul.f32 %v3476_v41, %v3448_v61 }
 0xac9   : > { %v3388_v19 = vpop.permute.xlu0 %3387  ;;  %v3562_v60 = vadd.f32 %v3533_v58, %v3505_v26 }
 0xaca   : > { %v3411_v35 = vadd.f32 %v3388_v19, %v3331_v29  ;;  %v3256_v19 = vmul.f32 %v6041_v39, %v6027_v33 }
 0xacc   : > { %v3438_v25 = vmul.f32 %v6039_v17, %v3411_v35  ;;  %vm3421_vm9 = vcmp.gt.f32.partialorder %v3411_v35, 0.0 }
 0xace   : > { %v3446_v12 = vsel %vm3421_vm9, %v3411_v35, %v3438_v25 }
 0xacf   : > { %v3503_v63 = vmul.f32 %v3466_v54, %v3446_v12 }
 0xad1   : > { %v3560_v55 = vadd.f32 %v3523_v37, %v3503_v63 }
 0xada   : > { %v3314_v32 = vpop.permute.xlu1 %3313 }
 0xadb   : > { %v3334_v46 = vadd.f32 %v3314_v32, %v6000_v57 }
 0xade   : > { %v3394_v51 = vpop.permute.xlu1 %3393 }
 0xadf   : > { %v3414_v28 = vadd.f32 %v3394_v51, %v3334_v46 }
 0xae1   : > { %vm3424_vm8 = vcmp.gt.f32.partialorder %v3414_v28, 0.0  ;;  %v3441_v14 = vmul.f32 %v6039_v17, %v3414_v28 }
 0xae2   : > { %v3320_v0 = vpop.permute.xlu0 %3319  ;;  %v3310_v23 = vpop.permute.xlu1 %3309 }
 0xae3   : > { %v3449_v30 = vsel %vm3424_vm8, %v3414_v28, %v3441_v14  ;;  %v3332_v49 = vadd.f32 %v3310_v23, %v6004_v3  ;;  %v3337_v33 = vadd.f32 %v3320_v0, %v3257_v15 }
 0xae4   : > { %v3506_v20 = vmul.f32 %v3481_v21, %v3449_v30 }
 0xae6   : > { %v3563_v5 = vadd.f32 %v3538_v2, %v3506_v20  ;;  %v3400_v57 = vpop.permute.xlu0 %3399  ;;  %v3390_v9 = vpop.permute.xlu1 %3389  ;;  %v4256_v20 = vld [vmem:[#allocation14 + $0x88] sm:$0xff]  }
 0xae7   : > { %v3412_v48 = vadd.f32 %v3390_v9, %v3332_v49  ;;  %v3417_v61 = vadd.f32 %v3400_v57, %v3337_v33  ;;  %v4257_v49 = vld [vmem:[#allocation14 + $0x98] sm:$0xff]  }
 0xae8   : > { %v3578_v6 = vpack.c.bf16 %v3563_v5, %v3562_v60 }
 0xae9   : > { %vm3422_vm10 = vcmp.gt.f32.partialorder %v3412_v48, 0.0  ;;  %v3439_v52 = vmul.f32 %v6039_v17, %v3412_v48  ;;  %vm3427_vm13 = vcmp.gt.f32.partialorder %v3417_v61, 0.0 }
 0xaea   : > { %v3316_v41 = vpop.permute.xlu0 %3315  ;;  %v3322_v13 = vpop.permute.xlu1 %3321 }
 0xaeb   : > { %v3447_v53 = vsel %vm3422_vm10, %v3412_v48, %v3439_v52  ;;  %v3335_v21 = vadd.f32 %v3316_v41, %v3255_v8 }
 0xaec   : > { %v3504_v16 = vmul.f32 %v3471_v36, %v3447_v53  ;;  %v3258_v36 = vmul.f32 %v6045_v45, %v6019_v40  ;;  %v3444_v45 = vmul.f32 %v6039_v17, %v3417_v61 }
 0xaee   : > { %v3561_v3 = vadd.f32 %v3528_v43, %v3504_v16  ;;  %v3396_v58 = vpop.permute.xlu0 %3395  ;;  %v3402_v2 = vpop.permute.xlu1 %3401  ;;  %v3338_v39 = vadd.f32 %v3322_v13, %v3258_v36  ;;  %v3452_v0 = vsel %vm3427_vm13, %v3417_v61, %v3444_v45 }
 0xaef   : > { %v3415_v47 = vadd.f32 %v3396_v58, %v3335_v21 }
 0xaf0   : > { %v3577_v32 = vpack.c.bf16 %v3561_v3, %v3560_v55  ;;  %v3418_v35 = vadd.f32 %v3402_v2, %v3338_v39 }
 0xaf1   : > { %v3442_v54 = vmul.f32 %v6039_v17, %v3415_v47  ;;  %vm3425_vm11 = vcmp.gt.f32.partialorder %v3415_v47, 0.0 }
 0xaf2   : > { %4020 = vmatprep.subr.bf16.mxu0 %v3577_v32  ;;  %4036 = vmatprep.subr.bf16.mxu1 %v3577_v32  ;;  %v3318_v56 = vpop.permute.xlu1 %3317  ;;  %v3445_v14 = vmul.f32 %v6039_v17, %v3418_v35  ;;  %vm3428_vm14 = vcmp.gt.f32.partialorder %v3418_v35, 0.0 }
 0xaf3   : > { %4021 = vmatpush3.bf16.msra.mxu0 %v3577_v32  ;;  %4040 = vmatpush3.bf16.msra.mxu1 %v3577_v32  ;;  %v3336_v11 = vadd.f32 %v3318_v56, %v3256_v19  ;;  %v3450_v43 = vsel %vm3425_vm11, %v3415_v47, %v3442_v54 }
 0xaf4   : > { %4022 = vmatprep.subr.bf16.mxu0 %v3578_v6  ;;  %4037 = vmatprep.subr.bf16.mxu1 %v3578_v6  ;;  %v3507_v51 = vmul.f32 %v6047_v59, %v3450_v43  ;;  %v3453_v59 = vsel %vm3428_vm14, %v3418_v35, %v3445_v14 }
 0xaf6   : > { %v3398_v37 = vpop.permute.xlu1 %3397  ;;  %v3564_v22 = vadd.f32 %v6049_v62, %v3507_v51  ;;  %v3510_v62 = vmul.f32 %v6058_v31, %v3453_v59 }
 0xaf7   : > { %v3416_v29 = vadd.f32 %v3398_v37, %v3336_v11  ;;  %4023 = vmatpush3.bf16.msra.mxu0 %v3578_v6  ;;  %4041 = vmatpush3.bf16.msra.mxu1 %v3578_v6 }
 0xaf9   : > { %vm3426_vm12 = vcmp.gt.f32.partialorder %v3416_v29, 0.0  ;;  %v3443_v46 = vmul.f32 %v6039_v17, %v3416_v29 }
 0xafb   : > { %v3451_v28 = vsel %vm3426_vm12, %v3416_v29, %v3443_v46 }
 0xafc   : > { %v3508_v10 = vmul.f32 %v6053_v27, %v3451_v28  ;;  %v3509_v27 = vmul.f32 %v6051_v50, %v3452_v0 }
 0xafe   : > { %v3565_v40 = vadd.f32 %v6055_v38, %v3508_v10 }
 0xaff   : > { %v3553_v23 = vpop.permute.xlu0 %3552 }
 0xb00   : > { %v3579_v26 = vpack.c.bf16 %v3565_v40, %v3564_v22  ;;  %v3566_v25 = vadd.f32 %v3553_v23, %v3509_v27 }
 0xb02   : > { %4024 = vmatprep.subr.bf16.mxu0 %v3579_v26  ;;  %4038 = vmatprep.subr.bf16.mxu1 %v3579_v26 }
 0xb03   : > { %4025 = vmatpush3.bf16.msra.mxu0 %v3579_v26  ;;  %4042 = vmatpush3.bf16.msra.mxu1 %v3579_v26 }
 0xb07   : > { %v3558_v38 = vpop.permute.xlu1 %3557 }
 0xb08   : > { %v3567_v30 = vadd.f32 %v3558_v38, %v3510_v62 }
 0xb0a   : > { %v3580_v17 = vpack.c.bf16 %v3567_v30, %v3566_v25 }
 0xb0c   : > { %4026 = vmatprep.subr.bf16.mxu0 %v3580_v17  ;;  %4039 = vmatprep.subr.bf16.mxu1 %v3580_v17 }
 0xb0d   : > { %4027 = vmatpush3.bf16.msra.mxu0 %v3580_v17  ;;  %4043 = vmatpush3.bf16.msra.mxu1 %v3580_v17 }
 0xb10   : > { %4029 = vmatmul.mubr.msk.bf16.vlgmr.msra.gmra.mrb[16].mxu0 %vm1016_vm5, %v4256_v20  ;;  %4033 = vmatmul.mubr.msk.bf16.vlgmr.msra.gmra.mrb[16].mxu1 %vm1016_vm5, %v4257_v49 }
 0xbe3   : > { %v4030_v60 = vpop.f32.mrb[16].mxu0  ;;  %v4034_v50 = vpop.f32.mrb[16].mxu1 }
 0xbe4   : > { %v3656_v31 = vadd.f32 %v4030_v60, %v5932_v24  ;;  %v3672_v5 = vadd.f32 %v4034_v50, %v5954_v34  ;;  %v3647_v57 = vpop.f32.mrb[17].mxu0  ;;  %v3663_v9 = vpop.f32.mrb[17].mxu1 }
 0xbe5   : > { %v3648_v12 = vadd.f32 %v3647_v57, %v5935_v44  ;;  %v3664_v48 = vadd.f32 %v3663_v9, %v5960_v42  ;;  %v4031_v6 = vpop.f32.mrb[18].mxu0  ;;  %v4035_v52 = vpop.f32.mrb[18].mxu1 }
 0xbe6   : > { %3681 = vst.msk [vmem:[%s425_s17 + $0x10] sm:$0xff] %vm3678_vm15, %v3656_v31  ;;  %3685 = vst.msk [vmem:[%s425_s17 + $0x30] sm:$0xff] %vm3678_vm15, %v3672_v5  ;;  %v3659_v63 = vadd.f32 %v4031_v6, %v5942_v4  ;;  %v3675_v41 = vadd.f32 %v4035_v52, %v5966_v7  ;;  %v3650_v24 = vpop.f32.mrb[19].mxu0  ;;  %v3666_v34 = vpop.f32.mrb[19].mxu1 }
 0xbe7   : > { %3679 = vst.msk [vmem:[%s425_s17] sm:$0xff] %vm3678_vm15, %v3648_v12  ;;  %3683 = vst.msk [vmem:[%s425_s17 + $0x20] sm:$0xff] %vm3678_vm15, %v3664_v48  ;;  %v3651_v44 = vadd.f32 %v3650_v24, %v5948_v1  ;;  %v3667_v4 = vadd.f32 %v3666_v34, %v5971_v18 }
 0xbe8   : > { %3682 = vst.msk [vmem:[%s425_s17 + $0x18] sm:$0xff] %vm3678_vm15, %v3659_v63  ;;  %3686 = vst.msk [vmem:[%s425_s17 + $0x38] sm:$0xff] %vm3678_vm15, %v3675_v41 }
 0xbe9   : > { %3680 = vst.msk [vmem:[%s425_s17 + $0x8] sm:$0xff] %vm3678_vm15, %v3651_v44  ;;  %3684 = vst.msk [vmem:[%s425_s17 + $0x28] sm:$0xff] %vm3678_vm15, %v3667_v4 }
 0xbea   : > { %4497 = shalt.err (!%p4494_p10)
}
 0xbeb   : > { %s4498_s12 = scalar_lea.hbm %s6100_s16, 1024  ;;  %s4502_s23 = scalar_lea.hbm %s6162_s8, 2048 }
 0xbec   : > { %p4499_p11 = scmp.ne.s32.totalorder %s6100_s16, %s4498_s12  ;;  %p4503_p9 = scmp.lt.u32.totalorder %s6100_s16, %s6162_s8 }
 0xbed   : > { %p4504_p7 = scmp.lt.u32.totalorder %s4502_s23, %s4498_s12  ;;  %p4506_p12 = scmp.lt.u32.totalorder %s4498_s12, %s6100_s16 }
 0xbee   : > { %p4500_p3 = pnand %p4499_p11, %p6215_p1 }
 0xbef   : > { %p4505_p4 = por %p4504_p7, %p4503_p9 }
 0xbf0   : > { %p4501_p5 = pneg %p4500_p3 }
 0xbf1   : > { %p4507_p13 = por %p4506_p12, %p4505_p4 }
 0xbf3   : > { %p4508_p0 = pnand %p4507_p13, %p4501_p5 }
 0xbf5   : > { %4511 = shalt.err (!%p4508_p0)
}
 0xbf6   : > { %s4590_s21 = smov 128   ;;  %s4591_s24 = smov 8  }
 0xbf7   : > { %4074 = dma.vmem_to_hbm [thread:$0]  (%p6215_p1), %s6102_s22, 1024, %s6100_s16, %s3688_s19, %s4590_s21, %s4590_s21, %s4591_s24  }
 0xbf8 PF: > { %s3716_s9 = sand.u32 1, %s4554_s27   ;;  %p6216_p2 = scmp.ne.s32.totalorder %s6188_s14, 0 }
 0xbf9   : > { %p6217_p8 = scmp.ge.s32.totalorder %s4566_s30, 2  ;;  %s3717_s26 = scalar_lea.sflag [#allocation5], %s3716_s9 }
 0xbfb   : > { %p4103_p6 = pnand %p6217_p8, %p6216_p2 }
 0xbfd   : > { %4549 = dma.done.wait (!%p4103_p6), %s3717_s26, 1024  }
 0xbfe   : > { %4551 = vsyncadd (!%p4103_p6), %s3717_s26, 4294966272  ;;  %p25_p10 = scmp.ge.s32.totalorder %s4846_s18, 4   ;;  %s6218_s27 = smov %s4558_s28 }
 0xbff   : > { %s6219_s28 = smov %s4562_s29  ;;  %s6220_s29 = smov %s4858_s25 }
 0xc00   : > { %s6221_s30 = smov %s4846_s18  ;;  %27 = sbr.rel (!%p25_p10) target bundleno = 11 (0xb), region = 153 }
 0xc07   :  { %3722 = vsyncpa [#allocation4], 1 }
 0xc08   :  { %3724 = vsyncpa [#allocation4 + $0x1], 1 }
 0xc09   :  { %3725 = vsyncpa [#allocation7], 1 }
 0xc0a   :  { %3726 = vsyncpa [#allocation10], 1 }
 0xc0b   :  { %3727 = vsyncpa [#allocation13], 1 }
 0xc0c   :  { %3728 = vsyncpa [#allocation16], 1 }
 0xc0d   :  { %3729 = vsyncpa [#allocation5], 1 }
 0xc0e   :  { %3731 = vsyncpa [#allocation5 + $0x1], 1 }

</bundles_post_ra>
